<compile_context>
chip_gen: v7x
topology: tpu7x:2x2x1
jax: 0.10.0
libtpu: 0.0.40
codegen_flags: <defaults>
</compile_context>

<pallas_src>
import functools

import jax
import jax.numpy as jnp
from jax import lax
from jax.experimental import pallas as pl
from jax.experimental.pallas import tpu as pltpu

BN_EPS = 1e-5


def _round_up(x, m):
    return (x + m - 1) // m * m


def _conv_image(xp, wmat, *, h, w, c_in):
    """3x3 'valid' conv over one replication-padded image held in VMEM.

    xp: (h+2, w+2, c_in) padded image value; wmat: (9*c_in, c_pad) weights.
    The 9 shifted taps are concatenated along channels in-register (no HBM
    im2col) and contracted with a single K=9*c_in matmul.
    Returns f32 (h*w, c_pad).
    """
    taps = []
    for kh in range(3):
        for kw in range(3):
            taps.append(xp[kh:kh + h, kw:kw + w, :])
    patches = jnp.concatenate(taps, axis=-1)               # (h, w, 9*c_in)
    lhs = patches.reshape(h * w, 9 * c_in)                  # (h*w, 9*c_in)
    return jnp.dot(lhs, wmat, preferred_element_type=jnp.float32)


def conv_stats_kernel(x_ref, w_ref, sum_ref, ssq_ref, *, b, h, w, c_in, c_pad):
    """Pass 1 (parallel): conv (bias-free) + per-block channel sum / sumsq."""
    wmat = w_ref[...]
    s = jnp.zeros((1, c_pad), jnp.float32)
    sq = jnp.zeros((1, c_pad), jnp.float32)
    for bi in range(b):
        y = _conv_image(x_ref[bi], wmat, h=h, w=w, c_in=c_in)  # (h*w, c_pad)
        s = s + jnp.sum(y, axis=0, keepdims=True)
        sq = sq + jnp.sum(y * y, axis=0, keepdims=True)
    sum_ref[...] = s[None]
    ssq_ref[...] = sq[None]


def conv_apply_kernel(x_ref, w_ref, scale_ref, offset_ref, o_ref,
                      *, b, h, w, c_in, c_out, c_pad):
    """Pass 2 (parallel): conv + folded BN affine + ReLU, NCHW-ready output."""
    wmat = w_ref[...]
    scale = scale_ref[...]       # (c_out, 1)
    offset = offset_ref[...]     # (c_out, 1)
    for bi in range(b):
        y = _conv_image(x_ref[bi], wmat, h=h, w=w, c_in=c_in)  # (h*w, c_pad)
        yt = y.T[:c_out, :]                                     # (c_out, h*w)
        o_ref[bi] = jnp.maximum(yt * scale + offset, 0.0).astype(o_ref.dtype)


@jax.jit
def my_conv_forward(x_nchw, conv_w, conv_b, bn_gamma, bn_beta):
    """Forward of myConv: ReLU(BN(Conv2d3x3(ReplicationPad2d(x)))), stride=1.

    conv_b is accepted for interface parity but unused: the conv bias cancels
    exactly under training-mode BatchNorm (batch statistics).
    """
    del conv_b
    n, c_in, h, w = x_nchw.shape
    c_out = conv_w.shape[0]
    hw = h * w
    c_pad = max(128, _round_up(c_out, 128))   # MXU-N / transpose-friendly width

    x_nhwc = jnp.transpose(x_nchw, (0, 2, 3, 1))            # NCHW -> NHWC
    x_pad = jnp.pad(x_nhwc, ((0, 0), (1, 1), (1, 1), (0, 0)), mode="edge")

    # (C_out, C_in, 3, 3) -> (kh, kw, C_in, C_out) -> (9*C_in, C_out); zero-pad
    # output channels to c_pad so the MXU output tile / in-kernel transpose stay
    # well shaped.  Padded channels are never stored.
    w_r = jnp.transpose(conv_w, (2, 3, 1, 0)).reshape(9 * c_in, c_out)
    w_p = jnp.pad(w_r, ((0, 0), (0, c_pad - c_out))).astype(jnp.float32)

    # Images per grid step: large enough for efficient DMAs / per-step overhead
    # amortization, small enough that double-buffered blocks + f32 intermediates
    # fit VMEM on every generation (v7x: 64 MiB physical / 32 MiB scoped).
    per_img = 4 * ((h + 2) * (w + 2) * c_in + c_out * hw + hw * (9 * c_in + c_pad))
    blk_b = max(1, min(n, 8, (2 * 1024 * 1024) // max(per_img, 1)))
    while n % blk_b:
        blk_b -= 1
    n_blk = n // blk_b

    cparams = pltpu.CompilerParams(
        dimension_semantics=("parallel",),
        vmem_limit_bytes=32 * 1024 * 1024)

    x_blk = pl.BlockSpec((blk_b, h + 2, w + 2, c_in), lambda i: (i, 0, 0, 0))
    w_blk = pl.BlockSpec((9 * c_in, c_pad), lambda i: (0, 0))
    stat_blk = pl.BlockSpec((1, 1, c_pad), lambda i: (i, 0, 0))

    # Pass 1: per-block partial channel statistics (fully parallel grid).
    sums, ssqs = pl.pallas_call(
        functools.partial(conv_stats_kernel, b=blk_b, h=h, w=w,
                          c_in=c_in, c_pad=c_pad),
        out_shape=(jax.ShapeDtypeStruct((n_blk, 1, c_pad), jnp.float32),
                   jax.ShapeDtypeStruct((n_blk, 1, c_pad), jnp.float32)),
        grid=(n_blk,),
        in_specs=[x_blk, w_blk],
        out_specs=(stat_blk, stat_blk),
        compiler_params=cparams,
    )(x_pad, w_p)

    # Tiny BN fold on (c_out,) vectors in the wrapper (training-mode batch
    # stats, biased variance as in PyTorch normalization).
    count = float(n * hw)
    total = jnp.sum(sums, axis=(0, 1))[:c_out]
    total_sq = jnp.sum(ssqs, axis=(0, 1))[:c_out]
    mean = total / count
    var = jnp.maximum(total_sq / count - mean * mean, 0.0)
    inv_std = lax.rsqrt(var + BN_EPS)
    scale = bn_gamma * inv_std
    offset = bn_beta - scale * mean
    scale_col = scale.reshape(c_out, 1).astype(jnp.float32)
    offset_col = offset.reshape(c_out, 1).astype(jnp.float32)

    col_blk = pl.BlockSpec((c_out, 1), lambda i: (0, 0))

    # Pass 2: conv + affine + ReLU; stores NCHW-ready (B, c_out, h*w) blocks so
    # no channel padding / slice / transpose pass over HBM is needed afterwards.
    out = pl.pallas_call(
        functools.partial(conv_apply_kernel, b=blk_b, h=h, w=w,
                          c_in=c_in, c_out=c_out, c_pad=c_pad),
        out_shape=jax.ShapeDtypeStruct((n, c_out, hw), jnp.float32),
        grid=(n_blk,),
        in_specs=[x_blk, w_blk, col_blk, col_blk],
        out_specs=pl.BlockSpec((blk_b, c_out, hw), lambda i: (i, 0, 0)),
        compiler_params=cparams,
    )(x_pad, w_p, scale_col, offset_col)

    return out.reshape(n, c_out, h, w)                       # NCHW (free reshape)


def _reference(x_nchw, conv_w, conv_b, bn_gamma, bn_beta):
    """Pure-JAX reference (same semantics) for a correctness check."""
    x_nhwc = jnp.transpose(x_nchw, (0, 2, 3, 1))
    xp = jnp.pad(x_nhwc, ((0, 0), (1, 1), (1, 1), (0, 0)), mode="edge")
    w_hwio = jnp.transpose(conv_w, (2, 3, 1, 0))              # HWIO
    y = jax.lax.conv_general_dilated(
        xp, w_hwio, window_strides=(1, 1), padding="VALID",
        dimension_numbers=("NHWC", "HWIO", "NHWC"))
    y = y + conv_b.reshape(1, 1, 1, -1)
    mean = jnp.mean(y, axis=(0, 1, 2), keepdims=True)
    var = jnp.mean((y - mean) ** 2, axis=(0, 1, 2), keepdims=True)
    y = bn_gamma.reshape(1, 1, 1, -1) * (y - mean) * jax.lax.rsqrt(
        var + BN_EPS) + bn_beta.reshape(1, 1, 1, -1)
    y = jnp.maximum(y, 0.0)
    return jnp.transpose(y, (0, 3, 1, 2))


if __name__ == "__main__":
    # Small shapes consistent with myConv(num_filter=16, in_channels=8)
    N, C_IN, H, W = 2, 8, 16, 16
    C_OUT = 16

    key = jax.random.PRNGKey(0)
    k_x, k_w, k_b, k_g, k_beta = jax.random.split(key, 5)

    x = jax.random.normal(k_x, (N, C_IN, H, W), dtype=jnp.float32)
    conv_w = jax.random.normal(k_w, (C_OUT, C_IN, 3, 3), dtype=jnp.float32) * 0.1
    conv_b = jax.random.normal(k_b, (C_OUT,), dtype=jnp.float32) * 0.1
    bn_gamma = 1.0 + 0.1 * jax.random.normal(k_g, (C_OUT,), dtype=jnp.float32)
    bn_beta = 0.1 * jax.random.normal(k_beta, (C_OUT,), dtype=jnp.float32)

    out = my_conv_forward(x, conv_w, conv_b, bn_gamma, bn_beta)
    out = jax.block_until_ready(out)

    ref = _reference(x, conv_w, conv_b, bn_gamma, bn_beta)
    assert out.shape == (N, C_OUT, H, W), out.shape
    assert jnp.allclose(out, ref, atol=1e-4, rtol=1e-4), "mismatch vs reference"

    print("KERNEL_OK")
</pallas_src>

<mosaic_0001>
module attributes {stable_mosaic.version = 11 : i64} {
  func.func @conv_stats_kernel(%arg0: i32, %arg1: memref<2x18x18x8xf32, #tpu.memory_space<vmem>>, %arg2: memref<72x128xf32, #tpu.memory_space<vmem>>, %arg3: memref<1x1x128xf32, #tpu.memory_space<vmem>>, %arg4: memref<1x1x128xf32, #tpu.memory_space<vmem>>) attributes {dimension_semantics = [#tpu.dimension_semantics<parallel>], iteration_bounds = array<i64: 1>, scalar_prefetch = 0 : i64, scratch_operands = 0 : i64, tpu.core_type = #tpu.core_type<tc>, window_params = [{transform_indices = @transform_0, window_bounds = array<i64: 2, 18, 18, 8>}, {pipeline_mode = #tpu.pipeline_mode<synchronous>, transform_indices = @transform_1, window_bounds = array<i64: 72, 128>}, {transform_indices = @transform_2, window_bounds = array<i64: 1, 1, 128>}, {transform_indices = @transform_3, window_bounds = array<i64: 1, 1, 128>}]} {
    %c0 = arith.constant 0 : index
    %c0_0 = arith.constant 0 : index
    %0 = vector.load %arg2[%c0, %c0_0] : memref<72x128xf32, #tpu.memory_space<vmem>>, vector<72x128xf32>
    %cst = arith.constant 0.000000e+00 : f32
    %1 = vector.broadcast %cst : f32 to vector<1x128xf32>
    %cst_1 = arith.constant 0.000000e+00 : f32
    %2 = vector.broadcast %cst_1 : f32 to vector<1x128xf32>
    %c0_2 = arith.constant 0 : index
    %c0_3 = arith.constant 0 : index
    %c0_4 = arith.constant 0 : index
    %c0_5 = arith.constant 0 : index
    %3 = vector.load %arg1[%c0_2, %c0_3, %c0_4, %c0_5] : memref<2x18x18x8xf32, #tpu.memory_space<vmem>>, vector<1x18x18x8xf32>
    %4 = vector.shape_cast %3 : vector<1x18x18x8xf32> to vector<18x18x8xf32>
    %5 = vector.extract_strided_slice %4 {offsets = [0, 0, 0], sizes = [16, 16, 8], strides = [1, 1, 1]} : vector<18x18x8xf32> to vector<16x16x8xf32>
    %6 = vector.extract_strided_slice %4 {offsets = [0, 1, 0], sizes = [16, 16, 8], strides = [1, 1, 1]} : vector<18x18x8xf32> to vector<16x16x8xf32>
    %7 = vector.extract_strided_slice %4 {offsets = [0, 2, 0], sizes = [16, 16, 8], strides = [1, 1, 1]} : vector<18x18x8xf32> to vector<16x16x8xf32>
    %8 = vector.extract_strided_slice %4 {offsets = [1, 0, 0], sizes = [16, 16, 8], strides = [1, 1, 1]} : vector<18x18x8xf32> to vector<16x16x8xf32>
    %9 = vector.extract_strided_slice %4 {offsets = [1, 1, 0], sizes = [16, 16, 8], strides = [1, 1, 1]} : vector<18x18x8xf32> to vector<16x16x8xf32>
    %10 = vector.extract_strided_slice %4 {offsets = [1, 2, 0], sizes = [16, 16, 8], strides = [1, 1, 1]} : vector<18x18x8xf32> to vector<16x16x8xf32>
    %11 = vector.extract_strided_slice %4 {offsets = [2, 0, 0], sizes = [16, 16, 8], strides = [1, 1, 1]} : vector<18x18x8xf32> to vector<16x16x8xf32>
    %12 = vector.extract_strided_slice %4 {offsets = [2, 1, 0], sizes = [16, 16, 8], strides = [1, 1, 1]} : vector<18x18x8xf32> to vector<16x16x8xf32>
    %13 = vector.extract_strided_slice %4 {offsets = [2, 2, 0], sizes = [16, 16, 8], strides = [1, 1, 1]} : vector<18x18x8xf32> to vector<16x16x8xf32>
    %14 = tpu.concatenate %5, %6, %7, %8, %9, %10, %11, %12, %13 in 2 : vector<16x16x8xf32>, vector<16x16x8xf32>, vector<16x16x8xf32>, vector<16x16x8xf32>, vector<16x16x8xf32>, vector<16x16x8xf32>, vector<16x16x8xf32>, vector<16x16x8xf32>, vector<16x16x8xf32> -> vector<16x16x72xf32>
    %15 = vector.shape_cast %14 : vector<16x16x72xf32> to vector<256x72xf32>
    %cst_6 = arith.constant dense<0.000000e+00> : vector<256x128xf32>
    %16 = tpu.matmul %15, %0, %cst_6 {dimension_numbers = #tpu.dot_dimension_numbers<[1], [0], [0], [1], [0, 0, 1, 1], [], []>} : vector<256x72xf32>, vector<72x128xf32>, vector<256x128xf32> -> vector<256x128xf32>
    %cst_7 = arith.constant dense<0.000000e+00> : vector<128xf32>
    %17 = vector.multi_reduction <add>, %16, %cst_7 [0] : vector<256x128xf32> to vector<128xf32>
    %18 = vector.shape_cast %17 : vector<128xf32> to vector<1x128xf32>
    %19 = arith.addf %1, %18 : vector<1x128xf32>
    %20 = arith.mulf %16, %16 : vector<256x128xf32>
    %cst_8 = arith.constant dense<0.000000e+00> : vector<128xf32>
    %21 = vector.multi_reduction <add>, %20, %cst_8 [0] : vector<256x128xf32> to vector<128xf32>
    %22 = vector.shape_cast %21 : vector<128xf32> to vector<1x128xf32>
    %23 = arith.addf %2, %22 : vector<1x128xf32>
    %c1 = arith.constant 1 : index
    %c0_9 = arith.constant 0 : index
    %c0_10 = arith.constant 0 : index
    %c0_11 = arith.constant 0 : index
    %24 = vector.load %arg1[%c1, %c0_9, %c0_10, %c0_11] : memref<2x18x18x8xf32, #tpu.memory_space<vmem>>, vector<1x18x18x8xf32>
    %25 = vector.shape_cast %24 : vector<1x18x18x8xf32> to vector<18x18x8xf32>
    %26 = vector.extract_strided_slice %25 {offsets = [0, 0, 0], sizes = [16, 16, 8], strides = [1, 1, 1]} : vector<18x18x8xf32> to vector<16x16x8xf32>
    %27 = vector.extract_strided_slice %25 {offsets = [0, 1, 0], sizes = [16, 16, 8], strides = [1, 1, 1]} : vector<18x18x8xf32> to vector<16x16x8xf32>
    %28 = vector.extract_strided_slice %25 {offsets = [0, 2, 0], sizes = [16, 16, 8], strides = [1, 1, 1]} : vector<18x18x8xf32> to vector<16x16x8xf32>
    %29 = vector.extract_strided_slice %25 {offsets = [1, 0, 0], sizes = [16, 16, 8], strides = [1, 1, 1]} : vector<18x18x8xf32> to vector<16x16x8xf32>
    %30 = vector.extract_strided_slice %25 {offsets = [1, 1, 0], sizes = [16, 16, 8], strides = [1, 1, 1]} : vector<18x18x8xf32> to vector<16x16x8xf32>
    %31 = vector.extract_strided_slice %25 {offsets = [1, 2, 0], sizes = [16, 16, 8], strides = [1, 1, 1]} : vector<18x18x8xf32> to vector<16x16x8xf32>
    %32 = vector.extract_strided_slice %25 {offsets = [2, 0, 0], sizes = [16, 16, 8], strides = [1, 1, 1]} : vector<18x18x8xf32> to vector<16x16x8xf32>
    %33 = vector.extract_strided_slice %25 {offsets = [2, 1, 0], sizes = [16, 16, 8], strides = [1, 1, 1]} : vector<18x18x8xf32> to vector<16x16x8xf32>
    %34 = vector.extract_strided_slice %25 {offsets = [2, 2, 0], sizes = [16, 16, 8], strides = [1, 1, 1]} : vector<18x18x8xf32> to vector<16x16x8xf32>
    %35 = tpu.concatenate %26, %27, %28, %29, %30, %31, %32, %33, %34 in 2 : vector<16x16x8xf32>, vector<16x16x8xf32>, vector<16x16x8xf32>, vector<16x16x8xf32>, vector<16x16x8xf32>, vector<16x16x8xf32>, vector<16x16x8xf32>, vector<16x16x8xf32>, vector<16x16x8xf32> -> vector<16x16x72xf32>
    %36 = vector.shape_cast %35 : vector<16x16x72xf32> to vector<256x72xf32>
    %cst_12 = arith.constant dense<0.000000e+00> : vector<256x128xf32>
    %37 = tpu.matmul %36, %0, %cst_12 {dimension_numbers = #tpu.dot_dimension_numbers<[1], [0], [0], [1], [0, 0, 1, 1], [], []>} : vector<256x72xf32>, vector<72x128xf32>, vector<256x128xf32> -> vector<256x128xf32>
    %cst_13 = arith.constant dense<0.000000e+00> : vector<128xf32>
    %38 = vector.multi_reduction <add>, %37, %cst_13 [0] : vector<256x128xf32> to vector<128xf32>
    %39 = vector.shape_cast %38 : vector<128xf32> to vector<1x128xf32>
    %40 = arith.addf %19, %39 : vector<1x128xf32>
    %41 = arith.mulf %37, %37 : vector<256x128xf32>
    %cst_14 = arith.constant dense<0.000000e+00> : vector<128xf32>
    %42 = vector.multi_reduction <add>, %41, %cst_14 [0] : vector<256x128xf32> to vector<128xf32>
    %43 = vector.shape_cast %42 : vector<128xf32> to vector<1x128xf32>
    %44 = arith.addf %23, %43 : vector<1x128xf32>
    %45 = vector.shape_cast %40 : vector<1x128xf32> to vector<1x1x128xf32>
    %c0_15 = arith.constant 0 : index
    %c0_16 = arith.constant 0 : index
    %c0_17 = arith.constant 0 : index
    %46 = vector.load %arg3[%c0_15, %c0_16, %c0_17] : memref<1x1x128xf32, #tpu.memory_space<vmem>>, vector<1x1x128xf32>
    tpu.vector_store %arg3[%c0_15, %c0_16, %c0_17], %45 {strides = array<i32>} : memref<1x1x128xf32, #tpu.memory_space<vmem>>, vector<1x1x128xf32>,
    %47 = vector.shape_cast %44 : vector<1x128xf32> to vector<1x1x128xf32>
    %c0_18 = arith.constant 0 : index
    %c0_19 = arith.constant 0 : index
    %c0_20 = arith.constant 0 : index
    %48 = vector.load %arg4[%c0_18, %c0_19, %c0_20] : memref<1x1x128xf32, #tpu.memory_space<vmem>>, vector<1x1x128xf32>
    tpu.vector_store %arg4[%c0_18, %c0_19, %c0_20], %47 {strides = array<i32>} : memref<1x1x128xf32, #tpu.memory_space<vmem>>, vector<1x1x128xf32>,
    return
  }
  func.func @transform_0(%arg0: i32) -> (i32, i32, i32, i32) {
    %c0_i32 = arith.constant 0 : i32
    %c0_i32_0 = arith.constant 0 : i32
    %c0_i32_1 = arith.constant 0 : i32
    %c0_i32_2 = arith.constant 0 : i32
    return %arg0, %c0_i32, %c0_i32_0, %c0_i32_1 : i32, i32, i32, i32
  }
  func.func @transform_1(%arg0: i32) -> (i32, i32) {
    %c0_i32 = arith.constant 0 : i32
    %c0_i32_0 = arith.constant 0 : i32
    %c0_i32_1 = arith.constant 0 : i32
    return %c0_i32, %c0_i32_0 : i32, i32
  }
  func.func @transform_2(%arg0: i32) -> (i32, i32, i32) {
    %c0_i32 = arith.constant 0 : i32
    %c0_i32_0 = arith.constant 0 : i32
    %c0_i32_1 = arith.constant 0 : i32
    return %arg0, %c0_i32, %c0_i32_0 : i32, i32, i32
  }
  func.func @transform_3(%arg0: i32) -> (i32, i32, i32) {
    %c0_i32 = arith.constant 0 : i32
    %c0_i32_0 = arith.constant 0 : i32
    %c0_i32_1 = arith.constant 0 : i32
    return %arg0, %c0_i32, %c0_i32_0 : i32, i32, i32
  }
}

module attributes {stable_mosaic.version = 11 : i64} {
  func.func @conv_apply_kernel(%arg0: i32, %arg1: memref<2x18x18x8xf32, #tpu.memory_space<vmem>>, %arg2: memref<72x128xf32, #tpu.memory_space<vmem>>, %arg3: memref<16x1xf32, #tpu.memory_space<vmem>>, %arg4: memref<16x1xf32, #tpu.memory_space<vmem>>, %arg5: memref<2x16x256xf32, #tpu.memory_space<vmem>>) attributes {dimension_semantics = [#tpu.dimension_semantics<parallel>], iteration_bounds = array<i64: 1>, scalar_prefetch = 0 : i64, scratch_operands = 0 : i64, tpu.core_type = #tpu.core_type<tc>, window_params = [{transform_indices = @transform_0, window_bounds = array<i64: 2, 18, 18, 8>}, {pipeline_mode = #tpu.pipeline_mode<synchronous>, transform_indices = @transform_1, window_bounds = array<i64: 72, 128>}, {pipeline_mode = #tpu.pipeline_mode<synchronous>, transform_indices = @transform_2, window_bounds = array<i64: 16, 1>}, {pipeline_mode = #tpu.pipeline_mode<synchronous>, transform_indices = @transform_3, window_bounds = array<i64: 16, 1>}, {transform_indices = @transform_4, window_bounds = array<i64: 2, 16, 256>}]} {
    %c0 = arith.constant 0 : index
    %c0_0 = arith.constant 0 : index
    %0 = vector.load %arg2[%c0, %c0_0] : memref<72x128xf32, #tpu.memory_space<vmem>>, vector<72x128xf32>
    %c0_1 = arith.constant 0 : index
    %c0_2 = arith.constant 0 : index
    %1 = vector.load %arg3[%c0_1, %c0_2] : memref<16x1xf32, #tpu.memory_space<vmem>>, vector<16x1xf32>
    %c0_3 = arith.constant 0 : index
    %c0_4 = arith.constant 0 : index
    %2 = vector.load %arg4[%c0_3, %c0_4] : memref<16x1xf32, #tpu.memory_space<vmem>>, vector<16x1xf32>
    %c0_5 = arith.constant 0 : index
    %c0_6 = arith.constant 0 : index
    %c0_7 = arith.constant 0 : index
    %c0_8 = arith.constant 0 : index
    %3 = vector.load %arg1[%c0_5, %c0_6, %c0_7, %c0_8] : memref<2x18x18x8xf32, #tpu.memory_space<vmem>>, vector<1x18x18x8xf32>
    %4 = vector.shape_cast %3 : vector<1x18x18x8xf32> to vector<18x18x8xf32>
    %5 = vector.extract_strided_slice %4 {offsets = [0, 0, 0], sizes = [16, 16, 8], strides = [1, 1, 1]} : vector<18x18x8xf32> to vector<16x16x8xf32>
    %6 = vector.extract_strided_slice %4 {offsets = [0, 1, 0], sizes = [16, 16, 8], strides = [1, 1, 1]} : vector<18x18x8xf32> to vector<16x16x8xf32>
    %7 = vector.extract_strided_slice %4 {offsets = [0, 2, 0], sizes = [16, 16, 8], strides = [1, 1, 1]} : vector<18x18x8xf32> to vector<16x16x8xf32>
    %8 = vector.extract_strided_slice %4 {offsets = [1, 0, 0], sizes = [16, 16, 8], strides = [1, 1, 1]} : vector<18x18x8xf32> to vector<16x16x8xf32>
    %9 = vector.extract_strided_slice %4 {offsets = [1, 1, 0], sizes = [16, 16, 8], strides = [1, 1, 1]} : vector<18x18x8xf32> to vector<16x16x8xf32>
    %10 = vector.extract_strided_slice %4 {offsets = [1, 2, 0], sizes = [16, 16, 8], strides = [1, 1, 1]} : vector<18x18x8xf32> to vector<16x16x8xf32>
    %11 = vector.extract_strided_slice %4 {offsets = [2, 0, 0], sizes = [16, 16, 8], strides = [1, 1, 1]} : vector<18x18x8xf32> to vector<16x16x8xf32>
    %12 = vector.extract_strided_slice %4 {offsets = [2, 1, 0], sizes = [16, 16, 8], strides = [1, 1, 1]} : vector<18x18x8xf32> to vector<16x16x8xf32>
    %13 = vector.extract_strided_slice %4 {offsets = [2, 2, 0], sizes = [16, 16, 8], strides = [1, 1, 1]} : vector<18x18x8xf32> to vector<16x16x8xf32>
    %14 = tpu.concatenate %5, %6, %7, %8, %9, %10, %11, %12, %13 in 2 : vector<16x16x8xf32>, vector<16x16x8xf32>, vector<16x16x8xf32>, vector<16x16x8xf32>, vector<16x16x8xf32>, vector<16x16x8xf32>, vector<16x16x8xf32>, vector<16x16x8xf32>, vector<16x16x8xf32> -> vector<16x16x72xf32>
    %15 = vector.shape_cast %14 : vector<16x16x72xf32> to vector<256x72xf32>
    %cst = arith.constant dense<0.000000e+00> : vector<256x128xf32>
    %16 = tpu.matmul %15, %0, %cst {dimension_numbers = #tpu.dot_dimension_numbers<[1], [0], [0], [1], [0, 0, 1, 1], [], []>} : vector<256x72xf32>, vector<72x128xf32>, vector<256x128xf32> -> vector<256x128xf32>
    %17 = tpu.transpose %16, [1, 0] : vector<256x128xf32> -> vector<128x256xf32>
    %18 = vector.extract_strided_slice %17 {offsets = [0, 0], sizes = [16, 256], strides = [1, 1]} : vector<128x256xf32> to vector<16x256xf32>
    %19 = vector.broadcast %1 : vector<16x1xf32> to vector<16x256xf32>
    %20 = arith.mulf %18, %19 : vector<16x256xf32>
    %21 = vector.broadcast %2 : vector<16x1xf32> to vector<16x256xf32>
    %22 = arith.addf %20, %21 : vector<16x256xf32>
    %cst_9 = arith.constant 0.000000e+00 : f32
    %23 = vector.broadcast %cst_9 : f32 to vector<16x256xf32>
    %24 = arith.maximumf %22, %23 : vector<16x256xf32>
    %c0_10 = arith.constant 0 : index
    %c0_11 = arith.constant 0 : index
    %c0_12 = arith.constant 0 : index
    %25 = vector.load %arg5[%c0_10, %c0_11, %c0_12] : memref<2x16x256xf32, #tpu.memory_space<vmem>>, vector<1x16x256xf32>
    %26 = vector.shape_cast %25 : vector<1x16x256xf32> to vector<16x256xf32>
    %27 = vector.shape_cast %24 : vector<16x256xf32> to vector<1x16x256xf32>
    tpu.vector_store %arg5[%c0_10, %c0_11, %c0_12], %27 {strides = array<i32>} : memref<2x16x256xf32, #tpu.memory_space<vmem>>, vector<1x16x256xf32>,
    %c1 = arith.constant 1 : index
    %c0_13 = arith.constant 0 : index
    %c0_14 = arith.constant 0 : index
    %c0_15 = arith.constant 0 : index
    %28 = vector.load %arg1[%c1, %c0_13, %c0_14, %c0_15] : memref<2x18x18x8xf32, #tpu.memory_space<vmem>>, vector<1x18x18x8xf32>
    %29 = vector.shape_cast %28 : vector<1x18x18x8xf32> to vector<18x18x8xf32>
    %30 = vector.extract_strided_slice %29 {offsets = [0, 0, 0], sizes = [16, 16, 8], strides = [1, 1, 1]} : vector<18x18x8xf32> to vector<16x16x8xf32>
    %31 = vector.extract_strided_slice %29 {offsets = [0, 1, 0], sizes = [16, 16, 8], strides = [1, 1, 1]} : vector<18x18x8xf32> to vector<16x16x8xf32>
    %32 = vector.extract_strided_slice %29 {offsets = [0, 2, 0], sizes = [16, 16, 8], strides = [1, 1, 1]} : vector<18x18x8xf32> to vector<16x16x8xf32>
    %33 = vector.extract_strided_slice %29 {offsets = [1, 0, 0], sizes = [16, 16, 8], strides = [1, 1, 1]} : vector<18x18x8xf32> to vector<16x16x8xf32>
    %34 = vector.extract_strided_slice %29 {offsets = [1, 1, 0], sizes = [16, 16, 8], strides = [1, 1, 1]} : vector<18x18x8xf32> to vector<16x16x8xf32>
    %35 = vector.extract_strided_slice %29 {offsets = [1, 2, 0], sizes = [16, 16, 8], strides = [1, 1, 1]} : vector<18x18x8xf32> to vector<16x16x8xf32>
    %36 = vector.extract_strided_slice %29 {offsets = [2, 0, 0], sizes = [16, 16, 8], strides = [1, 1, 1]} : vector<18x18x8xf32> to vector<16x16x8xf32>
    %37 = vector.extract_strided_slice %29 {offsets = [2, 1, 0], sizes = [16, 16, 8], strides = [1, 1, 1]} : vector<18x18x8xf32> to vector<16x16x8xf32>
    %38 = vector.extract_strided_slice %29 {offsets = [2, 2, 0], sizes = [16, 16, 8], strides = [1, 1, 1]} : vector<18x18x8xf32> to vector<16x16x8xf32>
    %39 = tpu.concatenate %30, %31, %32, %33, %34, %35, %36, %37, %38 in 2 : vector<16x16x8xf32>, vector<16x16x8xf32>, vector<16x16x8xf32>, vector<16x16x8xf32>, vector<16x16x8xf32>, vector<16x16x8xf32>, vector<16x16x8xf32>, vector<16x16x8xf32>, vector<16x16x8xf32> -> vector<16x16x72xf32>
    %40 = vector.shape_cast %39 : vector<16x16x72xf32> to vector<256x72xf32>
    %cst_16 = arith.constant dense<0.000000e+00> : vector<256x128xf32>
    %41 = tpu.matmul %40, %0, %cst_16 {dimension_numbers = #tpu.dot_dimension_numbers<[1], [0], [0], [1], [0, 0, 1, 1], [], []>} : vector<256x72xf32>, vector<72x128xf32>, vector<256x128xf32> -> vector<256x128xf32>
    %42 = tpu.transpose %41, [1, 0] : vector<256x128xf32> -> vector<128x256xf32>
    %43 = vector.extract_strided_slice %42 {offsets = [0, 0], sizes = [16, 256], strides = [1, 1]} : vector<128x256xf32> to vector<16x256xf32>
    %44 = vector.broadcast %1 : vector<16x1xf32> to vector<16x256xf32>
    %45 = arith.mulf %43, %44 : vector<16x256xf32>
    %46 = vector.broadcast %2 : vector<16x1xf32> to vector<16x256xf32>
    %47 = arith.addf %45, %46 : vector<16x256xf32>
    %cst_17 = arith.constant 0.000000e+00 : f32
    %48 = vector.broadcast %cst_17 : f32 to vector<16x256xf32>
    %49 = arith.maximumf %47, %48 : vector<16x256xf32>
    %c1_18 = arith.constant 1 : index
    %c0_19 = arith.constant 0 : index
    %c0_20 = arith.constant 0 : index
    %50 = vector.load %arg5[%c1_18, %c0_19, %c0_20] : memref<2x16x256xf32, #tpu.memory_space<vmem>>, vector<1x16x256xf32>
    %51 = vector.shape_cast %50 : vector<1x16x256xf32> to vector<16x256xf32>
    %52 = vector.shape_cast %49 : vector<16x256xf32> to vector<1x16x256xf32>
    tpu.vector_store %arg5[%c1_18, %c0_19, %c0_20], %52 {strides = array<i32>} : memref<2x16x256xf32, #tpu.memory_space<vmem>>, vector<1x16x256xf32>,
    return
  }
  func.func @transform_0(%arg0: i32) -> (i32, i32, i32, i32) {
    %c0_i32 = arith.constant 0 : i32
    %c0_i32_0 = arith.constant 0 : i32
    %c0_i32_1 = arith.constant 0 : i32
    %c0_i32_2 = arith.constant 0 : i32
    return %arg0, %c0_i32, %c0_i32_0, %c0_i32_1 : i32, i32, i32, i32
  }
  func.func @transform_1(%arg0: i32) -> (i32, i32) {
    %c0_i32 = arith.constant 0 : i32
    %c0_i32_0 = arith.constant 0 : i32
    %c0_i32_1 = arith.constant 0 : i32
    return %c0_i32, %c0_i32_0 : i32, i32
  }
  func.func @transform_2(%arg0: i32) -> (i32, i32) {
    %c0_i32 = arith.constant 0 : i32
    %c0_i32_0 = arith.constant 0 : i32
    %c0_i32_1 = arith.constant 0 : i32
    return %c0_i32, %c0_i32_0 : i32, i32
  }
  func.func @transform_3(%arg0: i32) -> (i32, i32) {
    %c0_i32 = arith.constant 0 : i32
    %c0_i32_0 = arith.constant 0 : i32
    %c0_i32_1 = arith.constant 0 : i32
    return %c0_i32, %c0_i32_0 : i32, i32
  }
  func.func @transform_4(%arg0: i32) -> (i32, i32, i32) {
    %c0_i32 = arith.constant 0 : i32
    %c0_i32_0 = arith.constant 0 : i32
    %c0_i32_1 = arith.constant 0 : i32
    return %arg0, %c0_i32, %c0_i32_0 : i32, i32, i32
  }
}

</mosaic_0001>

<bundles_post_ra>
// kernel: my_conv_forward.2
= control target key start
LH: loop header
LB: loop body
LE: loop exit
PB: predicated region body
PF: predicated region fallthrough
CT: control target
= control target key end

     0   :  { %vm124_vm0 = vcmask 1046528   ;;  %s3964_s30 = smov 8   ;;  %vm301_vm1 = vcmask 1045504   ;;  %s3965_s4 = smov 16   ;;  %vm1080_vm2 = vcmask 64512   ;;  %vm1113_vm3 = vcmask 130048   ;;  %s8234_s0 = inlined_call_operand.vmem [shape: f32[2,18,18,8], index: 0, kind: input, shape index: {}]   ;;  %s8235_s1 = inlined_call_operand.vmem [shape: f32[72,128], index: 1, kind: input, shape index: {}]   ;;  %s8236_s2 = inlined_call_operand.vmem [shape: f32[1,1,128], index: 2, kind: output, shape index: {0}]   ;;  %s8237_s3 = inlined_call_operand.vmem [shape: f32[1,1,128], index: 3, kind: output, shape index: {1}]  }
   0x1   :  { %v3995_v0 = vld [vmem:[%s8234_s0 + $0x18] sm:$0xff]  ;;  %v4000_v1 = vld [vmem:[%s8234_s0 + $0x20] sm:$0xff]  ;;  %v4012_v5 = vld [vmem:[%s8234_s0 + $0x8] sm:$0xff]  ;;  %s3966_s5 = smov 24   ;;  %s3967_s10 = smov 32   ;;  %vm1146_vm4 = vcmask 195584  }
   0x2   :  { %v4005_v2 = vld [vmem:[%s8234_s0] sm:$0xff]  ;;  %v130_v3 = vrot.slane %v3995_v0, 1  ;;  %v131_v4 = vrot.slane %v4000_v1, 1  ;;  %v4018_v7 = vld [vmem:[%s8234_s0 + $0x28] sm:$0x3]  ;;  %v126_v8 = vrot.slane %v4012_v5, 1 }
   0x3   :  { %v125_v6 = vrot.slane %v4005_v2, 1  ;;  %v133_v9 = vrot.slane %v4018_v7, 1  ;;  %v4025_v10 = vld [vmem:[%s8234_s0 + $0x10] sm:$0x3]  ;;  %v4030_v11 = vld [vmem:[%s8234_s0 + $0x38] sm:$0xff]  ;;  %v4070_v24 = vld [vmem:[%s8234_s0 + $0x48] sm:$0xff] }
   0x4   :  { %v4033_v12 = vsel %vm124_vm0, %v130_v3, %v131_v4  ;;  %v128_v13 = vrot.slane %v4025_v10, 1  ;;  %v4039_v14 = vld [vmem:[%s8234_s0 + $0x40] sm:$0x3]  ;;  %v4044_v15 = vld [vmem:[%s8234_s0 + $0x30] sm:$0xff]  ;;  %v136_v18 = vrot.slane %v4030_v11, 1  ;;  %v140_v29 = vrot.slane %v4070_v24, 1 }
   0x5   :  { %209 = vrot.lane.b32.xlu1 %v4033_v12, %s3964_s30  ;;  %v127_v16 = vsel %vm124_vm0, %v125_v6, %v126_v8  ;;  %v4051_v17 = vsel %vm124_vm0, %v131_v4, %v133_v9  ;;  %v138_v19 = vrot.slane %v4039_v14, 1  ;;  %v135_v21 = vrot.slane %v4044_v15, 1  ;;  %v4060_v22 = vld [vmem:[%s8234_s0 + $0x50] sm:$0xff]  ;;  %v4065_v23 = vld [vmem:[%s8234_s0 + $0x58] sm:$0x3]  ;;  %v4087_v30 = vld [vmem:[%s8234_s0 + $0x68] sm:$0xff] }
   0x6   :  { %205 = vrot.lane.b32.xlu0 %v127_v16, %s3964_s30  ;;  %v129_v20 = vsel %vm124_vm0, %v126_v8, %v128_v13  ;;  %v141_v26 = vrot.slane %v4060_v22, 1  ;;  %v143_v27 = vrot.slane %v4065_v23, 1  ;;  %v4092_v31 = vld [vmem:[%s8234_s0 + $0x70] sm:$0x3]  ;;  %v4097_v32 = vld [vmem:[%s8234_s0 + $0x60] sm:$0xff]  ;;  %v146_v34 = vrot.slane %v4087_v30, 1 }
   0x7   :  { %v4076_v25 = vsel %vm124_vm0, %v136_v18, %v138_v19  ;;  %v4081_v28 = vsel %vm124_vm0, %v135_v21, %v136_v18  ;;  %v148_v35 = vrot.slane %v4092_v31, 1  ;;  %v145_v37 = vrot.slane %v4097_v32, 1  ;;  %v4115_v38 = vld [vmem:[%s8234_s0 + $0x80] sm:$0xff]  ;;  %v4120_v39 = vld [vmem:[%s8234_s0 + $0x88] sm:$0x3]  ;;  %v4125_v40 = vld [vmem:[%s8234_s0 + $0x78] sm:$0xff] }
   0x8   :  { %v4104_v33 = vsel %vm124_vm0, %v141_v26, %v143_v27  ;;  %v4109_v36 = vsel %vm124_vm0, %v140_v29, %v141_v26  ;;  %v151_v42 = vrot.slane %v4115_v38, 1  ;;  %v153_v43 = vrot.slane %v4120_v39, 1  ;;  %v4143_v46 = vld [vmem:[%s8234_s0 + $0x98] sm:$0xff]  ;;  %v4148_v47 = vld [vmem:[%s8234_s0 + $0xa0] sm:$0x3]  ;;  %v4153_v48 = vld [vmem:[%s8234_s0 + $0x90] sm:$0xff] }
   0x9   :  { %211 = vrot.lane.b32.xlu1 %v4051_v17, %s3964_s30  ;;  %8435 = vst [vmem:[#allocation2_spill] sm:$0xff] %v4109_v36  ;;  %v4132_v41 = vsel %vm124_vm0, %v146_v34, %v148_v35  ;;  %v4137_v44 = vsel %vm124_vm0, %v145_v37, %v146_v34  ;;  %v150_v45 = vrot.slane %v4125_v40, 1  ;;  %v156_v50 = vrot.slane %v4143_v46, 1  ;;  %v4171_v54 = vld [vmem:[%s8234_s0 + $0xb0] sm:$0xff]  ;;  %v4176_v55 = vld [vmem:[%s8234_s0 + $0xb8] sm:$0x3] }
   0xa   :  { %207 = vrot.lane.b32.xlu0 %v129_v20, %s3964_s30  ;;  %8436 = vst [vmem:[#allocation3_spill] sm:$0xff] %v4132_v41  ;;  %8437 = vst [vmem:[#allocation4_spill] sm:$0xff] %v4137_v44  ;;  %v4160_v49 = vsel %vm124_vm0, %v151_v42, %v153_v43  ;;  %v158_v51 = vrot.slane %v4148_v47, 1  ;;  %v155_v53 = vrot.slane %v4153_v48, 1  ;;  %v4181_v56 = vld [vmem:[%s8234_s0 + $0xa8] sm:$0xff]  ;;  %v161_v58 = vrot.slane %v4171_v54, 1 }
   0xb   :  { %8438 = vst [vmem:[#allocation5_spill] sm:$0xff] %v4160_v49  ;;  %v4165_v52 = vsel %vm124_vm0, %v150_v45, %v151_v42  ;;  %v163_v59 = vrot.slane %v4176_v55, 1  ;;  %v160_v61 = vrot.slane %v4181_v56, 1  ;;  %v4199_v62 = vld [vmem:[%s8234_s0 + $0xc8] sm:$0xff]  ;;  %v4204_v63 = vld [vmem:[%s8234_s0 + $0xd0] sm:$0x3] }
   0xc   :  { %8439 = vst [vmem:[#allocation6_spill] sm:$0xff] %v4165_v52  ;;  %v4188_v57 = vsel %vm124_vm0, %v156_v50, %v158_v51  ;;  %v4193_v60 = vsel %vm124_vm0, %v155_v53, %v156_v50  ;;  %v4209_v3 = vld [vmem:[%s8234_s0 + $0xc0] sm:$0xff]  ;;  %v166_v6 = vrot.slane %v4199_v62, 1  ;;  %v168_v8 = vrot.slane %v4204_v63, 1  ;;  %v4232_v18 = vld [vmem:[%s8234_s0 + $0xe8] sm:$0x3] }
   0xd   :  { %215 = vrot.lane.b32.xlu1 %v4076_v25, %s3964_s30  ;;  %8440 = vst [vmem:[#allocation7_spill] sm:$0xff] %v4188_v57  ;;  %8441 = vst [vmem:[#allocation8_spill] sm:$0xff] %v4193_v60  ;;  %v4216_v4 = vsel %vm124_vm0, %v161_v58, %v163_v59  ;;  %v4221_v9 = vsel %vm124_vm0, %v160_v61, %v161_v58  ;;  %v165_v13 = vrot.slane %v4209_v3, 1  ;;  %v4227_v16 = vld [vmem:[%s8234_s0 + $0xe0] sm:$0xff]  ;;  %v4237_v19 = vld [vmem:[%s8234_s0 + $0xd8] sm:$0xff]  ;;  %v173_v26 = vrot.slane %v4232_v18, 1 }
   0xe   :  { %213 = vrot.lane.b32.xlu0 %v4081_v28, %s3964_s30  ;;  %8442 = vst [vmem:[#allocation9_spill] sm:$0xff] %v4216_v4  ;;  %8443 = vst [vmem:[#allocation10_spill] sm:$0xff] %v4221_v9  ;;  %v4244_v20 = vsel %vm124_vm0, %v166_v6, %v168_v8  ;;  %v171_v21 = vrot.slane %v4227_v16, 1  ;;  %v170_v29 = vrot.slane %v4237_v19, 1  ;;  %v4255_v34 = vld [vmem:[%s8234_s0 + $0xf8] sm:$0xff]  ;;  %v4265_v37 = vld [vmem:[%s8234_s0 + $0xf0] sm:$0xff] }
   0xf   :  { %8444 = vst [vmem:[#allocation11_spill] sm:$0xff] %v4244_v20  ;;  %v4249_v27 = vsel %vm124_vm0, %v165_v13, %v166_v6  ;;  %v4260_v35 = vld [vmem:[%s8234_s0 + $0x100] sm:$0x3]  ;;  %v176_v43 = vrot.slane %v4255_v34, 1  ;;  %v175_v51 = vrot.slane %v4265_v37, 1  ;;  %v4283_v53 = vld [vmem:[%s8234_s0 + $0x110] sm:$0xff] }
  0x10   :  { %8445 = vst [vmem:[#allocation12_spill] sm:$0xff] %v4249_v27  ;;  %v4272_v42 = vsel %vm124_vm0, %v171_v21, %v173_v26  ;;  %v178_v45 = vrot.slane %v4260_v35, 1  ;;  %v4277_v50 = vsel %vm124_vm0, %v170_v29, %v171_v21  ;;  %v4288_v58 = vld [vmem:[%s8234_s0 + $0x118] sm:$0x3]  ;;  %v4293_v59 = vld [vmem:[%s8234_s0 + $0x108] sm:$0xff]  ;;  %v181_v6 = vrot.slane %v4283_v53, 1 }
  0x11   :  { %219 = vrot.lane.b32.xlu1 %v4104_v33, %s3964_s30  ;;  %8446 = vst [vmem:[#allocation13_spill] sm:$0xff] %v4272_v42  ;;  %8447 = vst [vmem:[#allocation14_spill] sm:$0xff] %v4277_v50  ;;  %v183_v8 = vrot.slane %v4288_v58, 1  ;;  %v4305_v13 = vsel %vm124_vm0, %v175_v51, %v176_v43  ;;  %v180_v21 = vrot.slane %v4293_v59, 1  ;;  %v4311_v26 = vld [vmem:[%s8234_s0 + $0x128] sm:$0xff]  ;;  %s3968_s13 = smov 40  }
  0x12   :  { %217 = vrot.lane.b32.xlu0 %v4109_v36, %s3964_s30  ;;  %v4300_v61 = vsel %vm124_vm0, %v176_v43, %v178_v45  ;;  %8449 = vst [vmem:[#allocation16_spill] sm:$0xff] %v4305_v13  ;;  %v4316_v29 = vld [vmem:[%s8234_s0 + $0x130] sm:$0x3]  ;;  %v4321_v45 = vld [vmem:[%s8234_s0 + $0x120] sm:$0xff]  ;;  %v186_v51 = vrot.slane %v4311_v26, 1  ;;  %s3969_s14 = smov 48  }
  0x13   :  { %8448 = vst [vmem:[#allocation15_spill] sm:$0xff] %v4300_v61  ;;  %v4328_v43 = vsel %vm124_vm0, %v181_v6, %v183_v8  ;;  %v4349_v8 = vld [vmem:[%s8234_s0 + $0x138] sm:$0xff]  ;;  %s3970_s19 = smov 56   ;;  %vm1179_vm5 = vcmask 261120   ;;  %vm1212_vm6 = vcmask 326656   ;;  %vm1245_vm7 = vcmask 392192  }
  0x14   :  { %8450 = vst [vmem:[#allocation17_spill] sm:$0xff] %v4328_v43  ;;  %vm1278_vm8 = vcmask 457728   ;;  %vm1311_vm9 = vcmask 523264   ;;  %vm1344_vm10 = vcmask 588800  }
  0x15   :  { %223 = vrot.lane.b32.xlu1 %v4132_v41, %s3964_s30 }
  0x16   :  { %221 = vrot.lane.b32.xlu0 %v4137_v44, %s3964_s30 }
  0x19   :  { %227 = vrot.lane.b32.xlu1 %v4160_v49, %s3964_s30  ;;  %v4395_v49 = vld [vmem:[%s8234_s0 + $0x170] sm:$0xff] }
  0x1a   :  { %225 = vrot.lane.b32.xlu0 %v4165_v52, %s3964_s30 }
  0x1d   :  { %231 = vrot.lane.b32.xlu1 %v4188_v57, %s3964_s30 }
  0x1e   :  { %229 = vrot.lane.b32.xlu0 %v4193_v60, %s3964_s30  ;;  %v4367_v60 = vld [vmem:[%s8234_s0 + $0x158] sm:$0xff] }
  0x21   :  { %235 = vrot.lane.b32.xlu1 %v4216_v4, %s3964_s30  ;;  %v190_v4 = vrot.slane %v4349_v8, 1 }
  0x22   :  { %233 = vrot.lane.b32.xlu0 %v4221_v9, %s3964_s30 }
  0x25   :  { %239 = vrot.lane.b32.xlu1 %v4244_v20, %s3964_s30  ;;  %v4339_v20 = vld [vmem:[%s8234_s0 + $0x140] sm:$0xff] }
  0x26   :  { %237 = vrot.lane.b32.xlu0 %v4249_v27, %s3964_s30  ;;  %v185_v27 = vrot.slane %v4321_v45, 1 }
  0x28   :  { %v4361_v9 = vsel %vm124_vm0, %v185_v27, %v186_v51 }
  0x29   :  { %243 = vrot.lane.b32.xlu1 %v4272_v42, %s3964_s30  ;;  %v4333_v42 = vsel %vm124_vm0, %v180_v21, %v181_v6  ;;  %v191_v21 = vrot.slane %v4339_v20, 1  ;;  %8453 = vst [vmem:[#allocation20_spill] sm:$0xff] %v4361_v9 }
  0x2a   :  { %241 = vrot.lane.b32.xlu0 %v4277_v50, %s3964_s30  ;;  %v188_v50 = vrot.slane %v4316_v29, 1  ;;  %8451 = vst [vmem:[#allocation18_spill] sm:$0xff] %v4333_v42 }
  0x2b   :  { %v4389_v57 = vsel %vm124_vm0, %v190_v4, %v191_v21 }
  0x2c   :  { %v4356_v6 = vsel %vm124_vm0, %v186_v51, %v188_v50  ;;  %v4377_v50 = vld [vmem:[%s8234_s0 + $0x150] sm:$0xff]  ;;  %v196_v51 = vrot.slane %v4367_v60, 1  ;;  %8455 = vst [vmem:[#allocation22_spill] sm:$0xff] %v4389_v57 }
  0x2d   :  { %247 = vrot.lane.b32.xlu1 %v4300_v61, %s3964_s30  ;;  %8452 = vst [vmem:[#allocation19_spill] sm:$0xff] %v4356_v6  ;;  %v195_v52 = vrot.slane %v4377_v50, 1 }
  0x2e   :  { %245 = vrot.lane.b32.xlu0 %v4305_v13, %s3964_s30  ;;  %v4344_v13 = vld [vmem:[%s8234_s0 + $0x148] sm:$0x3] }
  0x2f   :  { %v193_v61 = vrot.slane %v4344_v13, 1  ;;  %v4417_v44 = vsel %vm124_vm0, %v195_v52, %v196_v51  ;;  %v302_v52 = vrot.slane %v4005_v2, 2 }
  0x30   :  { %8457 = vst [vmem:[#allocation24_spill] sm:$0xff] %v4417_v44 }
  0x31   :  { %251 = vrot.lane.b32.xlu1 %v4328_v43, %s3964_s30  ;;  %v4384_v27 = vsel %vm124_vm0, %v191_v21, %v193_v61  ;;  %v4405_v61 = vld [vmem:[%s8234_s0 + $0x168] sm:$0xff]  ;;  %v201_v21 = vrot.slane %v4395_v49, 1 }
  0x32   :  { %249 = vrot.lane.b32.xlu0 %v4333_v42, %s3964_s30  ;;  %v4372_v42 = vld [vmem:[%s8234_s0 + $0x160] sm:$0x3]  ;;  %8454 = vst [vmem:[#allocation21_spill] sm:$0xff] %v4384_v27  ;;  %v200_v41 = vrot.slane %v4405_v61, 1 }
  0x33   :  { %v198_v43 = vrot.slane %v4372_v42, 1 }
  0x34   :  { %v4430_v36 = vsel %vm124_vm0, %v200_v41, %v201_v21  ;;  %v307_v41 = vrot.slane %v3995_v0, 2 }
  0x35   :  { %255 = vrot.lane.b32.xlu1 %v4356_v6, %s3964_s30  ;;  %v4412_v4 = vsel %vm124_vm0, %v196_v51, %v198_v43  ;;  %v303_v43 = vrot.slane %v4012_v5, 2  ;;  %8458 = vst [vmem:[#allocation25_spill] sm:$0xff] %v4430_v36  ;;  %v310_v5 = vrot.slane %v4018_v7, 2  ;;  %v312_v7 = vrot.slane %v4044_v15, 2 }
  0x36   :  { %253 = vrot.lane.b32.xlu0 %v4361_v9, %s3964_s30  ;;  %v4400_v9 = vld [vmem:[%s8234_s0 + $0x178] sm:$0x3]  ;;  %8456 = vst [vmem:[#allocation23_spill] sm:$0xff] %v4412_v4 }
  0x37   :  { %v203_v6 = vrot.slane %v4400_v9, 1 }
  0x39   :  { %259 = vrot.lane.b32.xlu1 %v4384_v27, %s3964_s30  ;;  %v305_v27 = vrot.slane %v4025_v10, 2  ;;  %v304_v10 = vsel %vm301_vm1, %v302_v52, %v303_v43  ;;  %v318_v52 = vrot.slane %v4060_v22, 2 }
  0x3a   :  { %257 = vrot.lane.b32.xlu0 %v4389_v57, %s3964_s30  ;;  %v4425_v57 = vsel %vm124_vm0, %v201_v21, %v203_v6  ;;  %v308_v6 = vrot.slane %v4000_v1, 2  ;;  %v313_v21 = vrot.slane %v4030_v11, 2 }
  0x3b   :  { %v306_v51 = vsel %vm301_vm1, %v303_v43, %v305_v27  ;;  %v315_v27 = vrot.slane %v4039_v14, 2 }
  0x3c   :  { %v4445_v2 = vsel %vm301_vm1, %v308_v6, %v310_v5  ;;  %v4463_v14 = vsel %vm301_vm1, %v312_v7, %v313_v21  ;;  %v328_v7 = vrot.slane %v4115_v38, 2 }
  0x3d   :  { %263 = vrot.lane.b32.xlu1 %v4412_v4, %s3964_s30  ;;  %v4458_v43 = vsel %vm301_vm1, %v313_v21, %v315_v27  ;;  %v322_v21 = vrot.slane %v4097_v32, 2 }
  0x3e   :  { %261 = vrot.lane.b32.xlu0 %v4417_v44, %s3964_s30 }
  0x41   :  { %267 = vrot.lane.b32.xlu1 %v4425_v57, %s3964_s30 }
  0x42   :  { %265 = vrot.lane.b32.xlu0 %v4430_v36, %s3964_s30  ;;  %v4450_v36 = vsel %vm301_vm1, %v307_v41, %v308_v6  ;;  %v317_v6 = vrot.slane %v4070_v24, 2  ;;  %v325_v41 = vrot.slane %v4092_v31, 2 }
  0x45   :  { %384 = vrot.lane.b32.xlu1 %v306_v51, %s3965_s4  ;;  %v320_v51 = vrot.slane %v4065_v23, 2  ;;  %v4476_v23 = vsel %vm301_vm1, %v317_v6, %v318_v52 }
  0x46   :  { %382 = vrot.lane.b32.xlu0 %v304_v10, %s3965_s4  ;;  %v323_v10 = vrot.slane %v4087_v30, 2  ;;  %8459 = vst [vmem:[#allocation26_spill] sm:$0xff] %v4476_v23 }
  0x47   :  { %v4471_v5 = vsel %vm301_vm1, %v318_v52, %v320_v51  ;;  %v330_v51 = vrot.slane %v4120_v39, 2  ;;  %v327_v52 = vrot.slane %v4125_v40, 2 }
  0x48   :  { %v4484_v27 = vsel %vm301_vm1, %v323_v10, %v325_v41  ;;  %v4489_v31 = vsel %vm301_vm1, %v322_v21, %v323_v10  ;;  %v333_v41 = vrot.slane %v4143_v46, 2  ;;  %v332_v10 = vrot.slane %v4153_v48, 2 }
  0x49   :  { %388 = vrot.lane.b32.xlu1 %v4445_v2, %s3965_s4  ;;  %8460 = vst [vmem:[#allocation27_spill] sm:$0xff] %v4489_v31  ;;  %v4497_v6 = vsel %vm301_vm1, %v328_v7, %v330_v51  ;;  %v4502_v39 = vsel %vm301_vm1, %v327_v52, %v328_v7  ;;  %v338_v51 = vrot.slane %v4171_v54, 2  ;;  %v337_v7 = vrot.slane %v4181_v56, 2 }
  0x4a   :  { %386 = vrot.lane.b32.xlu0 %v4450_v36, %s3965_s4  ;;  %8461 = vst [vmem:[#allocation28_spill] sm:$0xff] %v4502_v39 }
  0x4d   :  { %392 = vrot.lane.b32.xlu1 %v4458_v43, %s3965_s4 }
  0x4e   :  { %390 = vrot.lane.b32.xlu0 %v4463_v14, %s3965_s4 }
  0x51   :  { %396 = vrot.lane.b32.xlu1 %v4471_v5, %s3965_s4 }
  0x52   :  { %394 = vrot.lane.b32.xlu0 %v4476_v23, %s3965_s4  ;;  %v335_v23 = vrot.slane %v4148_v47, 2  ;;  %v4515_v47 = vsel %vm301_vm1, %v332_v10, %v333_v41 }
  0x53   :  { %8462 = vst [vmem:[#allocation29_spill] sm:$0xff] %v4515_v47 }
  0x54   :  { %v4510_v21 = vsel %vm301_vm1, %v333_v41, %v335_v23  ;;  %v343_v23 = vrot.slane %v4199_v62, 2  ;;  %v342_v41 = vrot.slane %v4209_v3, 2 }
  0x55   :  { %400 = vrot.lane.b32.xlu1 %v4484_v27, %s3965_s4 }
  0x56   :  { %398 = vrot.lane.b32.xlu0 %v4489_v31, %s3965_s4  ;;  %v340_v31 = vrot.slane %v4176_v55, 2  ;;  %v4528_v55 = vsel %vm301_vm1, %v337_v7, %v338_v51 }
  0x57   :  { %8463 = vst [vmem:[#allocation30_spill] sm:$0xff] %v4528_v55 }
  0x58   :  { %v4523_v52 = vsel %vm301_vm1, %v338_v51, %v340_v31  ;;  %v348_v31 = vrot.slane %v4227_v16, 2  ;;  %v347_v51 = vrot.slane %v4237_v19, 2 }
  0x59   :  { %404 = vrot.lane.b32.xlu1 %v4497_v6, %s3965_s4 }
  0x5a   :  { %402 = vrot.lane.b32.xlu0 %v4502_v39, %s3965_s4  ;;  %v345_v39 = vrot.slane %v4204_v63, 2  ;;  %v4541_v63 = vsel %vm301_vm1, %v342_v41, %v343_v23 }
  0x5b   :  { %8464 = vst [vmem:[#allocation31_spill] sm:$0xff] %v4541_v63 }
  0x5c   :  { %v4536_v10 = vsel %vm301_vm1, %v343_v23, %v345_v39  ;;  %v353_v39 = vrot.slane %v4255_v34, 2  ;;  %v352_v23 = vrot.slane %v4265_v37, 2 }
  0x5d   :  { %408 = vrot.lane.b32.xlu1 %v4510_v21, %s3965_s4 }
  0x5e   :  { %406 = vrot.lane.b32.xlu0 %v4515_v47, %s3965_s4  ;;  %v350_v47 = vrot.slane %v4232_v18, 2  ;;  %v4554_v18 = vsel %vm301_vm1, %v347_v51, %v348_v31 }
  0x5f   :  { %8466 = vst [vmem:[#allocation33_spill] sm:$0xff] %v4554_v18 }
  0x60   :  { %v4549_v7 = vsel %vm301_vm1, %v348_v31, %v350_v47  ;;  %v358_v47 = vrot.slane %v4283_v53, 2  ;;  %v357_v31 = vrot.slane %v4293_v59, 2 }
  0x61   :  { %412 = vrot.lane.b32.xlu1 %v4523_v52, %s3965_s4  ;;  %8465 = vst [vmem:[#allocation32_spill] sm:$0xff] %v4549_v7 }
  0x62   :  { %410 = vrot.lane.b32.xlu0 %v4528_v55, %s3965_s4  ;;  %v355_v55 = vrot.slane %v4260_v35, 2  ;;  %v4567_v35 = vsel %vm301_vm1, %v352_v23, %v353_v39 }
  0x63   :  { %8467 = vst [vmem:[#allocation34_spill] sm:$0xff] %v4567_v35 }
  0x64   :  { %v4562_v41 = vsel %vm301_vm1, %v353_v39, %v355_v55  ;;  %v363_v55 = vrot.slane %v4311_v26, 2  ;;  %v362_v39 = vrot.slane %v4321_v45, 2 }
  0x65   :  { %416 = vrot.lane.b32.xlu1 %v4536_v10, %s3965_s4 }
  0x66   :  { %414 = vrot.lane.b32.xlu0 %v4541_v63, %s3965_s4  ;;  %v360_v63 = vrot.slane %v4288_v58, 2  ;;  %v4580_v58 = vsel %vm301_vm1, %v357_v31, %v358_v47 }
  0x67   :  { %8469 = vst [vmem:[#allocation36_spill] sm:$0xff] %v4580_v58 }
  0x68   :  { %v4575_v51 = vsel %vm301_vm1, %v358_v47, %v360_v63  ;;  %v368_v63 = vrot.slane %v4339_v20, 2  ;;  %v367_v47 = vrot.slane %v4349_v8, 2 }
  0x69   :  { %420 = vrot.lane.b32.xlu1 %v4549_v7, %s3965_s4  ;;  %8468 = vst [vmem:[#allocation35_spill] sm:$0xff] %v4575_v51 }
  0x6a   :  { %418 = vrot.lane.b32.xlu0 %v4554_v18, %s3965_s4  ;;  %v365_v18 = vrot.slane %v4316_v29, 2  ;;  %v4593_v29 = vsel %vm301_vm1, %v362_v39, %v363_v55 }
  0x6b   :  { %8470 = vst [vmem:[#allocation37_spill] sm:$0xff] %v4593_v29 }
  0x6c   :  { %v4588_v23 = vsel %vm301_vm1, %v363_v55, %v365_v18  ;;  %v373_v18 = vrot.slane %v4367_v60, 2  ;;  %v372_v55 = vrot.slane %v4377_v50, 2 }
  0x6d   :  { %424 = vrot.lane.b32.xlu1 %v4562_v41, %s3965_s4 }
  0x6e   :  { %422 = vrot.lane.b32.xlu0 %v4567_v35, %s3965_s4  ;;  %v370_v35 = vrot.slane %v4344_v13, 2  ;;  %v4608_v13 = vsel %vm301_vm1, %v367_v47, %v368_v63  ;;  %v377_v47 = vrot.slane %v4405_v61, 2 }
  0x6f   :  { %8473 = vst [vmem:[#allocation40_spill] sm:$0xff] %v4608_v13 }
  0x70   :  { %v4601_v31 = vsel %vm301_vm1, %v368_v63, %v370_v35  ;;  %v4625_v63 = vsel %vm301_vm1, %v372_v55, %v373_v18 }
  0x71   :  { %428 = vrot.lane.b32.xlu1 %v4575_v51, %s3965_s4  ;;  %8471 = vst [vmem:[#allocation38_spill] sm:$0xff] %v4601_v31  ;;  %8476 = vst [vmem:[#allocation43_spill] sm:$0xff] %v4625_v63 }
  0x72   :  { %426 = vrot.lane.b32.xlu0 %v4580_v58, %s3965_s4  ;;  %v375_v58 = vrot.slane %v4372_v42, 2  ;;  %v378_v42 = vrot.slane %v4395_v49, 2 }
  0x74   :  { %v4618_v35 = vsel %vm301_vm1, %v373_v18, %v375_v58 }
  0x75   :  { %432 = vrot.lane.b32.xlu1 %v4588_v23, %s3965_s4 }
  0x76   :  { %430 = vrot.lane.b32.xlu0 %v4593_v29, %s3965_s4 }
  0x77   :  { %v4605_v51 = vpop.permute.xlu1 %209 }
  0x78   :  { %8472 = vst [vmem:[#allocation39_spill] sm:$0xff] %v4605_v51  ;;  %v4611_v39 = vpop.permute.xlu0 %205  ;;  %v380_v51 = vrot.slane %v4400_v9, 2  ;;  %v4640_v9 = vsel %vm301_vm1, %v377_v47, %v378_v42 }
  0x79   :  { %8474 = vst [vmem:[#allocation41_spill] sm:$0xff] %v4611_v39  ;;  %436 = vrot.lane.b32.xlu1 %v4601_v31, %s3965_s4 }
  0x7a   :  { %434 = vrot.lane.b32.xlu0 %v4608_v13, %s3965_s4  ;;  %v4635_v58 = vsel %vm301_vm1, %v378_v42, %v380_v51 }
  0x7b   :  { %v4622_v29 = vpop.permute.xlu1 %211 }
  0x7c   :  { %8475 = vst [vmem:[#allocation42_spill] sm:$0xff] %v4622_v29  ;;  %v4628_v39 = vpop.permute.xlu0 %207 }
  0x7d   :  { %8477 = vst [vmem:[#allocation44_spill] sm:$0xff] %v4628_v39  ;;  %440 = vrot.lane.b32.xlu1 %v4618_v35, %s3965_s4 }
  0x7e   :  { %438 = vrot.lane.b32.xlu0 %v4625_v63, %s3965_s4 }
  0x7f   :  { %v4637_v13 = vpop.permute.xlu1 %215 }
  0x80   :  { %8478 = vst [vmem:[#allocation45_spill] sm:$0xff] %v4637_v13  ;;  %v4642_v18 = vpop.permute.xlu0 %213  ;;  %v8526_v13 = vld [vmem:[#allocation6_spill] sm:$0xff] }
  0x81   :  { %8479 = vst [vmem:[#allocation46_spill] sm:$0xff] %v4642_v18  ;;  %444 = vrot.lane.b32.xlu1 %v4635_v58, %s3965_s4 }
  0x82   :  { %442 = vrot.lane.b32.xlu0 %v4640_v9, %s3965_s4 }
  0x83   :  { %v4648_v55 = vpop.permute.xlu1 %219 }
  0x84   :  { %8480 = vst [vmem:[#allocation47_spill] sm:$0xff] %v4648_v55  ;;  %v4650_v39 = vpop.permute.xlu0 %217  ;;  %v8522_v55 = vld [vmem:[#allocation4_spill] sm:$0xff] }
  0x85   :  { %8481 = vst [vmem:[#allocation48_spill] sm:$0xff] %v4650_v39  ;;  %482 = vrot.lane.b32.xlu1 %v4000_v1, %s3966_s5 }
  0x86   :  { %480 = vrot.lane.b32.xlu0 %v3995_v0, %s3966_s5 }
  0x87   :  { %v4656_v51 = vpop.permute.xlu1 %223 }
  0x88   :  { %8482 = vst [vmem:[#allocation49_spill] sm:$0xff] %v4656_v51  ;;  %v4658_v42 = vpop.permute.xlu0 %221 }
  0x89   :  { %8483 = vst [vmem:[#allocation50_spill] sm:$0xff] %v4658_v42  ;;  %486 = vrot.lane.b32.xlu1 %v4030_v11, %s3966_s5 }
  0x8a   :  { %484 = vrot.lane.b32.xlu0 %v4044_v15, %s3966_s5 }
  0x8b   :  { %v4664_v47 = vpop.permute.xlu1 %227 }
  0x8c   :  { %8484 = vst [vmem:[#allocation51_spill] sm:$0xff] %v4664_v47  ;;  %v4666_v39 = vpop.permute.xlu0 %225 }
  0x8d   :  { %8485 = vst [vmem:[#allocation52_spill] sm:$0xff] %v4666_v39  ;;  %490 = vrot.lane.b32.xlu1 %v4060_v22, %s3966_s5 }
  0x8e   :  { %488 = vrot.lane.b32.xlu0 %v4070_v24, %s3966_s5 }
  0x8f   :  { %v4672_v0 = vpop.permute.xlu1 %231 }
  0x90   :  { %8486 = vst [vmem:[#allocation53_spill] sm:$0xff] %v4672_v0  ;;  %v4674_v1 = vpop.permute.xlu0 %229 }
  0x91   :  { %8487 = vst [vmem:[#allocation54_spill] sm:$0xff] %v4674_v1  ;;  %494 = vrot.lane.b32.xlu1 %v4087_v30, %s3966_s5 }
  0x92   :  { %492 = vrot.lane.b32.xlu0 %v4097_v32, %s3966_s5 }
  0x93   :  { %v4680_v42 = vpop.permute.xlu1 %235 }
  0x94   :  { %8488 = vst [vmem:[#allocation55_spill] sm:$0xff] %v4680_v42  ;;  %v4682_v47 = vpop.permute.xlu0 %233 }
  0x95   :  { %8489 = vst [vmem:[#allocation56_spill] sm:$0xff] %v4682_v47  ;;  %498 = vrot.lane.b32.xlu1 %v4115_v38, %s3966_s5 }
  0x96   :  { %496 = vrot.lane.b32.xlu0 %v4125_v40, %s3966_s5 }
  0x97   :  { %v4688_v39 = vpop.permute.xlu1 %239 }
  0x98   :  { %8490 = vst [vmem:[#allocation57_spill] sm:$0xff] %v4688_v39  ;;  %v4690_v0 = vpop.permute.xlu0 %237 }
  0x99   :  { %8491 = vst [vmem:[#allocation58_spill] sm:$0xff] %v4690_v0  ;;  %502 = vrot.lane.b32.xlu1 %v4143_v46, %s3966_s5 }
  0x9a   :  { %500 = vrot.lane.b32.xlu0 %v4153_v48, %s3966_s5 }
  0x9b   :  { %v4696_v1 = vpop.permute.xlu1 %243 }
  0x9c   :  { %8492 = vst [vmem:[#allocation59_spill] sm:$0xff] %v4696_v1  ;;  %v4698_v42 = vpop.permute.xlu0 %241 }
  0x9d   :  { %8493 = vst [vmem:[#allocation60_spill] sm:$0xff] %v4698_v42  ;;  %506 = vrot.lane.b32.xlu1 %v4171_v54, %s3966_s5 }
  0x9e   :  { %504 = vrot.lane.b32.xlu0 %v4181_v56, %s3966_s5 }
  0x9f   :  { %v4704_v47 = vpop.permute.xlu1 %247 }
  0xa0   :  { %8494 = vst [vmem:[#allocation61_spill] sm:$0xff] %v4704_v47  ;;  %v4706_v39 = vpop.permute.xlu0 %245 }
  0xa1   :  { %8495 = vst [vmem:[#allocation62_spill] sm:$0xff] %v4706_v39  ;;  %510 = vrot.lane.b32.xlu1 %v4199_v62, %s3966_s5 }
  0xa2   :  { %508 = vrot.lane.b32.xlu0 %v4209_v3, %s3966_s5 }
  0xa3   :  { %v4712_v0 = vpop.permute.xlu1 %251 }
  0xa4   :  { %8496 = vst [vmem:[#allocation63_spill] sm:$0xff] %v4712_v0  ;;  %v4714_v1 = vpop.permute.xlu0 %249 }
  0xa5   :  { %8497 = vst [vmem:[#allocation64_spill] sm:$0xff] %v4714_v1  ;;  %514 = vrot.lane.b32.xlu1 %v4227_v16, %s3966_s5 }
  0xa6   :  { %512 = vrot.lane.b32.xlu0 %v4237_v19, %s3966_s5 }
  0xa7   :  { %v4720_v42 = vpop.permute.xlu1 %255 }
  0xa8   :  { %8498 = vst [vmem:[#allocation65_spill] sm:$0xff] %v4720_v42  ;;  %v4722_v47 = vpop.permute.xlu0 %253 }
  0xa9   :  { %8499 = vst [vmem:[#allocation66_spill] sm:$0xff] %v4722_v47  ;;  %518 = vrot.lane.b32.xlu1 %v4255_v34, %s3966_s5 }
  0xaa   :  { %516 = vrot.lane.b32.xlu0 %v4265_v37, %s3966_s5 }
  0xab   :  { %v4728_v39 = vpop.permute.xlu1 %259 }
  0xac   :  { %8500 = vst [vmem:[#allocation67_spill] sm:$0xff] %v4728_v39  ;;  %v4730_v0 = vpop.permute.xlu0 %257 }
  0xad   :  { %8501 = vst [vmem:[#allocation68_spill] sm:$0xff] %v4730_v0  ;;  %522 = vrot.lane.b32.xlu1 %v4283_v53, %s3966_s5 }
  0xae   :  { %520 = vrot.lane.b32.xlu0 %v4293_v59, %s3966_s5 }
  0xaf   :  { %v4736_v1 = vpop.permute.xlu1 %263 }
  0xb0   :  { %8502 = vst [vmem:[#allocation69_spill] sm:$0xff] %v4736_v1  ;;  %v4738_v42 = vpop.permute.xlu0 %261 }
  0xb1   :  { %8503 = vst [vmem:[#allocation70_spill] sm:$0xff] %v4738_v42  ;;  %526 = vrot.lane.b32.xlu1 %v4311_v26, %s3966_s5 }
  0xb2   :  { %524 = vrot.lane.b32.xlu0 %v4321_v45, %s3966_s5 }
  0xb3   :  { %v4744_v47 = vpop.permute.xlu1 %267 }
  0xb4   :  { %8504 = vst [vmem:[#allocation71_spill] sm:$0xff] %v4744_v47  ;;  %v4746_v39 = vpop.permute.xlu0 %265 }
  0xb5   :  { %8505 = vst [vmem:[#allocation72_spill] sm:$0xff] %v4746_v39  ;;  %530 = vrot.lane.b32.xlu1 %v4339_v20, %s3966_s5  ;;  %v4778_v39 = vld [vmem:[%s8234_s0 + $0x180] sm:$0xff] }
  0xb6   :  { %528 = vrot.lane.b32.xlu0 %v4349_v8, %s3966_s5 }
  0xb7   :  { %v4752_v0 = vpop.permute.xlu1 %384 }
  0xb8   :  { %8506 = vst [vmem:[#allocation73_spill] sm:$0xff] %v4752_v0  ;;  %v4754_v1 = vpop.permute.xlu0 %382 }
  0xb9   :  { %8507 = vst [vmem:[#allocation74_spill] sm:$0xff] %v4754_v1  ;;  %534 = vrot.lane.b32.xlu1 %v4367_v60, %s3966_s5  ;;  %v4771_v1 = vld [vmem:[%s8234_s0 + $0x188] sm:$0xff] }
  0xba   :  { %532 = vrot.lane.b32.xlu0 %v4377_v50, %s3966_s5 }
  0xbb   :  { %v4760_v42 = vpop.permute.xlu1 %388 }
  0xbc   :  { %8508 = vst [vmem:[#allocation75_spill] sm:$0xff] %v4760_v42  ;;  %v4762_v47 = vpop.permute.xlu0 %386 }
  0xbd   :  { %8509 = vst [vmem:[#allocation76_spill] sm:$0xff] %v4762_v47  ;;  %538 = vrot.lane.b32.xlu1 %v4395_v49, %s3966_s5 }
  0xbe   :  { %536 = vrot.lane.b32.xlu0 %v4405_v61, %s3966_s5 }
  0xbf   :  { %v4773_v0 = vpop.permute.xlu1 %392 }
  0xc0   :  { %8510 = vst [vmem:[#allocation77_spill] sm:$0xff] %v4773_v0  ;;  %v4780_v42 = vpop.permute.xlu0 %390 }
  0xc1   :  { %8511 = vst [vmem:[#allocation78_spill] sm:$0xff] %v4780_v42  ;;  %542 = vrot.lane.b32.xlu1 %v4771_v1, %s3966_s5 }
  0xc2   :  { %540 = vrot.lane.b32.xlu0 %v4778_v39, %s3966_s5 }
  0xc3   :  { %v4786_v47 = vpop.permute.xlu1 %396 }
  0xc4   :  { %8512 = vst [vmem:[#allocation79_spill] sm:$0xff] %v4786_v47  ;;  %v4788_v51 = vpop.permute.xlu0 %394 }
  0xc5   :  { %8513 = vst [vmem:[#allocation80_spill] sm:$0xff] %v4788_v51  ;;  %584 = vrot.lane.b32.xlu1 %v4051_v17, %s3967_s10  ;;  %v8518_v17 = vld [vmem:[#allocation2_spill] sm:$0xff] }
  0xc6   :  { %582 = vrot.lane.b32.xlu0 %v4033_v12, %s3967_s10 }
  0xc7   :  { %v4794_v0 = vpop.permute.xlu1 %400 }
  0xc8   :  { %8514 = vst [vmem:[#allocation81_spill] sm:$0xff] %v4794_v0  ;;  %v4796_v42 = vpop.permute.xlu0 %398 }
  0xc9   :  { %8515 = vst [vmem:[#allocation82_spill] sm:$0xff] %v4796_v42  ;;  %588 = vrot.lane.b32.xlu1 %v4076_v25, %s3967_s10  ;;  %v8521_v42 = vld [vmem:[#allocation3_spill] sm:$0xff] }
  0xca   :  { %586 = vrot.lane.b32.xlu0 %v4081_v28, %s3967_s10 }
  0xcb   :  { %v4802_v47 = vpop.permute.xlu1 %404 }
  0xcc   :  { %8516 = vst [vmem:[#allocation83_spill] sm:$0xff] %v4802_v47  ;;  %v4804_v51 = vpop.permute.xlu0 %402 }
  0xcd   :  { %8517 = vst [vmem:[#allocation84_spill] sm:$0xff] %v4804_v51  ;;  %592 = vrot.lane.b32.xlu1 %v4104_v33, %s3967_s10  ;;  %v8525_v51 = vld [vmem:[#allocation5_spill] sm:$0xff] }
  0xce   :  { %590 = vrot.lane.b32.xlu0 %v8518_v17, %s3967_s10 }
  0xcf   :  { %v4810_v12 = vpop.permute.xlu1 %408 }
  0xd0   :  { %8519 = vst [vmem:[#allocation2_spill] sm:$0xff] %v4810_v12  ;;  %v4812_v0 = vpop.permute.xlu0 %406 }
  0xd1   :  { %8520 = vst [vmem:[#allocation85_spill] sm:$0xff] %v4812_v0  ;;  %596 = vrot.lane.b32.xlu1 %v8521_v42, %s3967_s10  ;;  %v8529_v0 = vld [vmem:[#allocation7_spill] sm:$0xff]  ;;  %v8530_v42 = vld [vmem:[#allocation8_spill] sm:$0xff] }
  0xd2   :  { %594 = vrot.lane.b32.xlu0 %v8522_v55, %s3967_s10 }
  0xd3   :  { %v4818_v18 = vpop.permute.xlu1 %412 }
  0xd4   :  { %8523 = vst [vmem:[#allocation86_spill] sm:$0xff] %v4818_v18  ;;  %v4820_v47 = vpop.permute.xlu0 %410 }
  0xd5   :  { %8524 = vst [vmem:[#allocation87_spill] sm:$0xff] %v4820_v47  ;;  %600 = vrot.lane.b32.xlu1 %v8525_v51, %s3967_s10  ;;  %v8533_v47 = vld [vmem:[#allocation9_spill] sm:$0xff]  ;;  %v8534_v51 = vld [vmem:[#allocation10_spill] sm:$0xff] }
  0xd6   :  { %598 = vrot.lane.b32.xlu0 %v8526_v13, %s3967_s10 }
  0xd7   :  { %v4826_v29 = vpop.permute.xlu1 %416 }
  0xd8   :  { %8527 = vst [vmem:[#allocation88_spill] sm:$0xff] %v4826_v29  ;;  %v4828_v12 = vpop.permute.xlu0 %414 }
  0xd9   :  { %8528 = vst [vmem:[#allocation89_spill] sm:$0xff] %v4828_v12  ;;  %604 = vrot.lane.b32.xlu1 %v8529_v0, %s3967_s10  ;;  %v8537_v12 = vld [vmem:[#allocation11_spill] sm:$0xff]  ;;  %v8538_v0 = vld [vmem:[#allocation12_spill] sm:$0xff] }
  0xda   :  { %602 = vrot.lane.b32.xlu0 %v8530_v42, %s3967_s10 }
  0xdb   :  { %v4834_v55 = vpop.permute.xlu1 %420 }
  0xdc   :  { %8531 = vst [vmem:[#allocation90_spill] sm:$0xff] %v4834_v55  ;;  %v4836_v18 = vpop.permute.xlu0 %418 }
  0xdd   :  { %8532 = vst [vmem:[#allocation91_spill] sm:$0xff] %v4836_v18  ;;  %608 = vrot.lane.b32.xlu1 %v8533_v47, %s3967_s10  ;;  %v8541_v18 = vld [vmem:[#allocation13_spill] sm:$0xff]  ;;  %v8542_v47 = vld [vmem:[#allocation14_spill] sm:$0xff] }
  0xde   :  { %606 = vrot.lane.b32.xlu0 %v8534_v51, %s3967_s10 }
  0xdf   :  { %v4842_v13 = vpop.permute.xlu1 %424 }
  0xe0   :  { %8535 = vst [vmem:[#allocation92_spill] sm:$0xff] %v4842_v13  ;;  %v4844_v29 = vpop.permute.xlu0 %422 }
  0xe1   :  { %8536 = vst [vmem:[#allocation93_spill] sm:$0xff] %v4844_v29  ;;  %612 = vrot.lane.b32.xlu1 %v8537_v12, %s3967_s10  ;;  %v8545_v29 = vld [vmem:[#allocation15_spill] sm:$0xff]  ;;  %v8546_v12 = vld [vmem:[#allocation16_spill] sm:$0xff] }
  0xe2   :  { %610 = vrot.lane.b32.xlu0 %v8538_v0, %s3967_s10 }
  0xe3   :  { %v4850_v42 = vpop.permute.xlu1 %428 }
  0xe4   :  { %8539 = vst [vmem:[#allocation94_spill] sm:$0xff] %v4850_v42  ;;  %v4852_v55 = vpop.permute.xlu0 %426 }
  0xe5   :  { %8540 = vst [vmem:[#allocation95_spill] sm:$0xff] %v4852_v55  ;;  %616 = vrot.lane.b32.xlu1 %v8541_v18, %s3967_s10  ;;  %v8549_v55 = vld [vmem:[#allocation17_spill] sm:$0xff]  ;;  %v8550_v18 = vld [vmem:[#allocation18_spill] sm:$0xff] }
  0xe6   :  { %614 = vrot.lane.b32.xlu0 %v8542_v47, %s3967_s10 }
  0xe7   :  { %v4858_v51 = vpop.permute.xlu1 %432 }
  0xe8   :  { %8543 = vst [vmem:[#allocation96_spill] sm:$0xff] %v4858_v51  ;;  %v4860_v13 = vpop.permute.xlu0 %430 }
  0xe9   :  { %8544 = vst [vmem:[#allocation97_spill] sm:$0xff] %v4860_v13  ;;  %620 = vrot.lane.b32.xlu1 %v8545_v29, %s3967_s10  ;;  %v8553_v13 = vld [vmem:[#allocation19_spill] sm:$0xff]  ;;  %v8554_v29 = vld [vmem:[#allocation20_spill] sm:$0xff] }
  0xea   :  { %618 = vrot.lane.b32.xlu0 %v8546_v12, %s3967_s10 }
  0xeb   :  { %v4866_v0 = vpop.permute.xlu1 %436 }
  0xec   :  { %8547 = vst [vmem:[#allocation98_spill] sm:$0xff] %v4866_v0  ;;  %v4868_v42 = vpop.permute.xlu0 %434 }
  0xed   :  { %8548 = vst [vmem:[#allocation99_spill] sm:$0xff] %v4868_v42  ;;  %624 = vrot.lane.b32.xlu1 %v8549_v55, %s3967_s10  ;;  %v8557_v42 = vld [vmem:[#allocation21_spill] sm:$0xff]  ;;  %v8558_v55 = vld [vmem:[#allocation22_spill] sm:$0xff] }
  0xee   :  { %622 = vrot.lane.b32.xlu0 %v8550_v18, %s3967_s10 }
  0xef   :  { %v4874_v47 = vpop.permute.xlu1 %440 }
  0xf0   :  { %8551 = vst [vmem:[#allocation100_spill] sm:$0xff] %v4874_v47  ;;  %v4876_v51 = vpop.permute.xlu0 %438 }
  0xf1   :  { %8552 = vst [vmem:[#allocation101_spill] sm:$0xff] %v4876_v51  ;;  %628 = vrot.lane.b32.xlu1 %v8553_v13, %s3967_s10  ;;  %v4895_v51 = vld [vmem:[%s8234_s0 + $0x190] sm:$0x3] }
  0xf2   :  { %626 = vrot.lane.b32.xlu0 %v8554_v29, %s3967_s10 }
  0xf3   :  { %v4882_v12 = vpop.permute.xlu1 %444 }
  0xf4   :  { %8555 = vst [vmem:[#allocation102_spill] sm:$0xff] %v4882_v12  ;;  %v4884_v0 = vpop.permute.xlu0 %442  ;;  %v580_v12 = vrot.slane %v4895_v51, 1 }
  0xf5   :  { %8556 = vst [vmem:[#allocation103_spill] sm:$0xff] %v4884_v0  ;;  %632 = vrot.lane.b32.xlu1 %v8557_v42, %s3967_s10  ;;  %v578_v0 = vrot.slane %v4771_v1, 1 }
  0xf6   :  { %630 = vrot.lane.b32.xlu0 %v8558_v55, %s3967_s10  ;;  %v577_v55 = vrot.slane %v4778_v39, 1 }
  0xf7   :  { %v4890_v18 = vpop.permute.xlu1 %482 }
  0xf8   :  { %8559 = vst [vmem:[#allocation104_spill] sm:$0xff] %v4890_v18  ;;  %v4897_v47 = vpop.permute.xlu0 %480 }
  0xf9   :  { %8560 = vst [vmem:[#allocation105_spill] sm:$0xff] %v4897_v47  ;;  %636 = vrot.lane.b32.xlu1 %v4412_v4, %s3967_s10  ;;  %v8563_v47 = vld [vmem:[#allocation25_spill] sm:$0xff]  ;;  %v4915_v4 = vsel %vm124_vm0, %v578_v0, %v580_v12 }
  0xfa   :  { %634 = vrot.lane.b32.xlu0 %v4417_v44, %s3967_s10  ;;  %v4920_v44 = vsel %vm124_vm0, %v577_v55, %v578_v0 }
  0xfb   :  { %v4906_v18 = vpop.permute.xlu1 %486 }
  0xfc   :  { %8561 = vst [vmem:[#allocation106_spill] sm:$0xff] %v4906_v18  ;;  %v4908_v42 = vpop.permute.xlu0 %484 }
  0xfd   :  { %8562 = vst [vmem:[#allocation107_spill] sm:$0xff] %v4908_v42  ;;  %640 = vrot.lane.b32.xlu1 %v4425_v57, %s3967_s10 }
  0xfe   :  { %638 = vrot.lane.b32.xlu0 %v8563_v47, %s3967_s10 }
  0xff   :  { %v4917_v29 = vpop.permute.xlu1 %490 }
 0x100   :  { %8564 = vst [vmem:[#allocation25_spill] sm:$0xff] %v4917_v29  ;;  %v4922_v13 = vpop.permute.xlu0 %488 }
 0x101   :  { %8565 = vst [vmem:[#allocation108_spill] sm:$0xff] %v4922_v13  ;;  %644 = vrot.lane.b32.xlu1 %v4915_v4, %s3967_s10 }
 0x102   :  { %642 = vrot.lane.b32.xlu0 %v4920_v44, %s3967_s10 }
 0x103   :  { %v4928_v42 = vpop.permute.xlu1 %494 }
 0x104   :  { %8566 = vst [vmem:[#allocation109_spill] sm:$0xff] %v4928_v42  ;;  %v4930_v18 = vpop.permute.xlu0 %492 }
 0x105   :  { %8567 = vst [vmem:[#allocation110_spill] sm:$0xff] %v4930_v18  ;;  %685 = vrot.lane.b32.xlu1 %v4445_v2, %s3968_s13  ;;  %v8572_v2 = vld [vmem:[#allocation26_spill] sm:$0xff] }
 0x106   :  { %683 = vrot.lane.b32.xlu0 %v4450_v36, %s3968_s13 }
 0x107   :  { %v4936_v55 = vpop.permute.xlu1 %498 }
 0x108   :  { %8568 = vst [vmem:[#allocation111_spill] sm:$0xff] %v4936_v55  ;;  %v4938_v0 = vpop.permute.xlu0 %496 }
 0x109   :  { %8569 = vst [vmem:[#allocation112_spill] sm:$0xff] %v4938_v0  ;;  %689 = vrot.lane.b32.xlu1 %v4458_v43, %s3968_s13  ;;  %v8575_v0 = vld [vmem:[#allocation27_spill] sm:$0xff] }
 0x10a   :  { %687 = vrot.lane.b32.xlu0 %v4463_v14, %s3968_s13 }
 0x10b   :  { %v4944_v12 = vpop.permute.xlu1 %502 }
 0x10c   :  { %8570 = vst [vmem:[#allocation113_spill] sm:$0xff] %v4944_v12  ;;  %v4946_v18 = vpop.permute.xlu0 %500 }
 0x10d   :  { %8571 = vst [vmem:[#allocation114_spill] sm:$0xff] %v4946_v18  ;;  %693 = vrot.lane.b32.xlu1 %v4471_v5, %s3968_s13  ;;  %v8578_v18 = vld [vmem:[#allocation28_spill] sm:$0xff] }
 0x10e   :  { %691 = vrot.lane.b32.xlu0 %v8572_v2, %s3968_s13 }
 0x10f   :  { %v4952_v36 = vpop.permute.xlu1 %506 }
 0x110   :  { %8573 = vst [vmem:[#allocation26_spill] sm:$0xff] %v4952_v36  ;;  %v4954_v55 = vpop.permute.xlu0 %504 }
 0x111   :  { %8574 = vst [vmem:[#allocation115_spill] sm:$0xff] %v4954_v55  ;;  %697 = vrot.lane.b32.xlu1 %v4484_v27, %s3968_s13  ;;  %v8581_v55 = vld [vmem:[#allocation29_spill] sm:$0xff] }
 0x112   :  { %695 = vrot.lane.b32.xlu0 %v8575_v0, %s3968_s13 }
 0x113   :  { %v4960_v42 = vpop.permute.xlu1 %510 }
 0x114   :  { %8576 = vst [vmem:[#allocation27_spill] sm:$0xff] %v4960_v42  ;;  %v4962_v12 = vpop.permute.xlu0 %508 }
 0x115   :  { %8577 = vst [vmem:[#allocation116_spill] sm:$0xff] %v4962_v12  ;;  %701 = vrot.lane.b32.xlu1 %v4497_v6, %s3968_s13  ;;  %v8584_v12 = vld [vmem:[#allocation30_spill] sm:$0xff] }
 0x116   :  { %699 = vrot.lane.b32.xlu0 %v8578_v18, %s3968_s13 }
 0x117   :  { %v4968_v13 = vpop.permute.xlu1 %514 }
 0x118   :  { %8579 = vst [vmem:[#allocation117_spill] sm:$0xff] %v4968_v13  ;;  %v4970_v36 = vpop.permute.xlu0 %512 }
 0x119   :  { %8580 = vst [vmem:[#allocation118_spill] sm:$0xff] %v4970_v36  ;;  %705 = vrot.lane.b32.xlu1 %v4510_v21, %s3968_s13  ;;  %v8587_v36 = vld [vmem:[#allocation31_spill] sm:$0xff] }
 0x11a   :  { %703 = vrot.lane.b32.xlu0 %v8581_v55, %s3968_s13 }
 0x11b   :  { %v4976_v29 = vpop.permute.xlu1 %518 }
 0x11c   :  { %8582 = vst [vmem:[#allocation119_spill] sm:$0xff] %v4976_v29  ;;  %v4978_v42 = vpop.permute.xlu0 %516 }
 0x11d   :  { %8583 = vst [vmem:[#allocation120_spill] sm:$0xff] %v4978_v42  ;;  %709 = vrot.lane.b32.xlu1 %v4523_v52, %s3968_s13  ;;  %v8590_v42 = vld [vmem:[#allocation33_spill] sm:$0xff] }
 0x11e   :  { %707 = vrot.lane.b32.xlu0 %v8584_v12, %s3968_s13 }
 0x11f   :  { %v4984_v18 = vpop.permute.xlu1 %522 }
 0x120   :  { %8585 = vst [vmem:[#allocation121_spill] sm:$0xff] %v4984_v18  ;;  %v4986_v13 = vpop.permute.xlu0 %520 }
 0x121   :  { %8586 = vst [vmem:[#allocation122_spill] sm:$0xff] %v4986_v13  ;;  %713 = vrot.lane.b32.xlu1 %v4536_v10, %s3968_s13  ;;  %v8593_v13 = vld [vmem:[#allocation34_spill] sm:$0xff] }
 0x122   :  { %711 = vrot.lane.b32.xlu0 %v8587_v36, %s3968_s13 }
 0x123   :  { %v4992_v55 = vpop.permute.xlu1 %526 }
 0x124   :  { %8588 = vst [vmem:[#allocation123_spill] sm:$0xff] %v4992_v55  ;;  %v4994_v29 = vpop.permute.xlu0 %524 }
 0x125   :  { %8589 = vst [vmem:[#allocation124_spill] sm:$0xff] %v4994_v29  ;;  %717 = vrot.lane.b32.xlu1 %v4549_v7, %s3968_s13  ;;  %v8596_v29 = vld [vmem:[#allocation35_spill] sm:$0xff]  ;;  %v8597_v7 = vld [vmem:[#allocation36_spill] sm:$0xff] }
 0x126   :  { %715 = vrot.lane.b32.xlu0 %v8590_v42, %s3968_s13 }
 0x127   :  { %v5000_v12 = vpop.permute.xlu1 %530 }
 0x128   :  { %8591 = vst [vmem:[#allocation125_spill] sm:$0xff] %v5000_v12  ;;  %v5002_v18 = vpop.permute.xlu0 %528 }
 0x129   :  { %8592 = vst [vmem:[#allocation126_spill] sm:$0xff] %v5002_v18  ;;  %721 = vrot.lane.b32.xlu1 %v4562_v41, %s3968_s13  ;;  %v8600_v18 = vld [vmem:[#allocation37_spill] sm:$0xff] }
 0x12a   :  { %719 = vrot.lane.b32.xlu0 %v8593_v13, %s3968_s13 }
 0x12b   :  { %v5008_v36 = vpop.permute.xlu1 %534 }
 0x12c   :  { %8594 = vst [vmem:[#allocation127_spill] sm:$0xff] %v5008_v36  ;;  %v5010_v55 = vpop.permute.xlu0 %532 }
 0x12d   :  { %8595 = vst [vmem:[#allocation128_spill] sm:$0xff] %v5010_v55  ;;  %725 = vrot.lane.b32.xlu1 %v8596_v29, %s3968_s13  ;;  %v8603_v55 = vld [vmem:[#allocation40_spill] sm:$0xff] }
 0x12e   :  { %723 = vrot.lane.b32.xlu0 %v8597_v7, %s3968_s13 }
 0x12f   :  { %v5016_v42 = vpop.permute.xlu1 %538 }
 0x130   :  { %8598 = vst [vmem:[#allocation35_spill] sm:$0xff] %v5016_v42  ;;  %v5018_v12 = vpop.permute.xlu0 %536 }
 0x131   :  { %8599 = vst [vmem:[#allocation129_spill] sm:$0xff] %v5018_v12  ;;  %729 = vrot.lane.b32.xlu1 %v4588_v23, %s3968_s13  ;;  %v679_v12 = vrot.slane %v4771_v1, 2 }
 0x132   :  { %727 = vrot.lane.b32.xlu0 %v8600_v18, %s3968_s13 }
 0x133   :  { %v5024_v13 = vpop.permute.xlu1 %542 }
 0x134   :  { %8601 = vst [vmem:[#allocation130_spill] sm:$0xff] %v5024_v13  ;;  %v5026_v36 = vpop.permute.xlu0 %540  ;;  %v678_v13 = vrot.slane %v4778_v39, 2 }
 0x135   :  { %8602 = vst [vmem:[#allocation131_spill] sm:$0xff] %v5026_v36  ;;  %733 = vrot.lane.b32.xlu1 %v4601_v31, %s3968_s13  ;;  %v681_v36 = vrot.slane %v4895_v51, 2 }
 0x136   :  { %731 = vrot.lane.b32.xlu0 %v8603_v55, %s3968_s13 }
 0x137   :  { %v5032_v7 = vpop.permute.xlu1 %584 }
 0x138   :  { %8604 = vst [vmem:[#allocation40_spill] sm:$0xff] %v5032_v7  ;;  %v5034_v42 = vpop.permute.xlu0 %582 }
 0x139   :  { %8605 = vst [vmem:[#allocation132_spill] sm:$0xff] %v5034_v42  ;;  %737 = vrot.lane.b32.xlu1 %v4618_v35, %s3968_s13  ;;  %v5052_v42 = vsel %vm301_vm1, %v679_v12, %v681_v36 }
 0x13a   :  { %735 = vrot.lane.b32.xlu0 %v4625_v63, %s3968_s13  ;;  %v5057_v63 = vsel %vm301_vm1, %v678_v13, %v679_v12 }
 0x13b   :  { %v5043_v31 = vpop.permute.xlu1 %588 }
 0x13c   :  { %8606 = vst [vmem:[#allocation133_spill] sm:$0xff] %v5043_v31  ;;  %v5045_v18 = vpop.permute.xlu0 %586 }
 0x13d   :  { %8607 = vst [vmem:[#allocation134_spill] sm:$0xff] %v5045_v18  ;;  %741 = vrot.lane.b32.xlu1 %v4635_v58, %s3968_s13 }
 0x13e   :  { %739 = vrot.lane.b32.xlu0 %v4640_v9, %s3968_s13 }
 0x13f   :  { %v5054_v7 = vpop.permute.xlu1 %592 }
 0x140   :  { %v5059_v51 = vpop.permute.xlu0 %590 }
 0x141   :  { %745 = vrot.lane.b32.xlu1 %v5052_v42, %s3968_s13 }
 0x142   :  { %743 = vrot.lane.b32.xlu0 %v5057_v63, %s3968_s13 }
 0x143   :  { %v5065_v18 = vpop.permute.xlu1 %596 }
 0x144   :  { %8608 = vst [vmem:[#allocation135_spill] sm:$0xff] %v5065_v18  ;;  %v5067_v31 = vpop.permute.xlu0 %594  ;;  %v3928_v18 = vld [vmem:[%s8234_s0 + $0x170] sm:$0xff] }
 0x145   :  { %8609 = vst [vmem:[#allocation136_spill] sm:$0xff] %v5067_v31  ;;  %783 = vrot.lane.b32.xlu1 %v4030_v11, %s3969_s14 }
 0x146   :  { %781 = vrot.lane.b32.xlu0 %v4044_v15, %s3969_s14 }
 0x147   :  { %v5073_v13 = vpop.permute.xlu1 %600 }
 0x148   :  { %8610 = vst [vmem:[#allocation137_spill] sm:$0xff] %v5073_v13  ;;  %v5075_v12 = vpop.permute.xlu0 %598  ;;  %v8793_v13 = vld [vmem:[#allocation60_spill] sm:$0xff] }
 0x149   :  { %8611 = vst [vmem:[#allocation138_spill] sm:$0xff] %v5075_v12  ;;  %787 = vrot.lane.b32.xlu1 %v4060_v22, %s3969_s14  ;;  %v3917_v12 = vld [vmem:[%s8234_s0 + $0xd8] sm:$0xff] }
 0x14a   :  { %785 = vrot.lane.b32.xlu0 %v4070_v24, %s3969_s14 }
 0x14b   :  { %v5081_v36 = vpop.permute.xlu1 %604 }
 0x14c   :  { %8612 = vst [vmem:[#allocation139_spill] sm:$0xff] %v5081_v36  ;;  %v5083_v31 = vpop.permute.xlu0 %602  ;;  %v8775_v36 = vld [vmem:[#allocation49_spill] sm:$0xff] }
 0x14d   :  { %8613 = vst [vmem:[#allocation140_spill] sm:$0xff] %v5083_v31  ;;  %791 = vrot.lane.b32.xlu1 %v4087_v30, %s3969_s14  ;;  %v3906_v31 = vld [vmem:[%s8234_s0 + $0x68] sm:$0xff] }
 0x14e   :  { %789 = vrot.lane.b32.xlu0 %v4097_v32, %s3969_s14 }
 0x14f   :  { %v5089_v11 = vpop.permute.xlu1 %608 }
 0x150   :  { %8614 = vst [vmem:[#allocation141_spill] sm:$0xff] %v5089_v11  ;;  %v5091_v15 = vpop.permute.xlu0 %606 }
 0x151   :  { %8615 = vst [vmem:[#allocation142_spill] sm:$0xff] %v5091_v15  ;;  %795 = vrot.lane.b32.xlu1 %v4115_v38, %s3969_s14 }
 0x152   :  { %793 = vrot.lane.b32.xlu0 %v4125_v40, %s3969_s14 }
 0x153   :  { %v5097_v22 = vpop.permute.xlu1 %612 }
 0x154   :  { %8616 = vst [vmem:[#allocation143_spill] sm:$0xff] %v5097_v22  ;;  %v5099_v24 = vpop.permute.xlu0 %610 }
 0x155   :  { %8617 = vst [vmem:[#allocation144_spill] sm:$0xff] %v5099_v24  ;;  %799 = vrot.lane.b32.xlu1 %v4143_v46, %s3969_s14 }
 0x156   :  { %797 = vrot.lane.b32.xlu0 %v4153_v48, %s3969_s14 }
 0x157   :  { %v5105_v30 = vpop.permute.xlu1 %616 }
 0x158   :  { %8618 = vst [vmem:[#allocation145_spill] sm:$0xff] %v5105_v30  ;;  %v5107_v32 = vpop.permute.xlu0 %614 }
 0x159   :  { %8619 = vst [vmem:[#allocation146_spill] sm:$0xff] %v5107_v32  ;;  %803 = vrot.lane.b32.xlu1 %v4171_v54, %s3969_s14 }
 0x15a   :  { %801 = vrot.lane.b32.xlu0 %v4181_v56, %s3969_s14 }
 0x15b   :  { %v5113_v38 = vpop.permute.xlu1 %620 }
 0x15c   :  { %8620 = vst [vmem:[#allocation147_spill] sm:$0xff] %v5113_v38  ;;  %v5115_v40 = vpop.permute.xlu0 %618 }
 0x15d   :  { %8621 = vst [vmem:[#allocation148_spill] sm:$0xff] %v5115_v40  ;;  %807 = vrot.lane.b32.xlu1 %v4199_v62, %s3969_s14  ;;  %v8656_v40 = vld [vmem:[#allocation11_spill] sm:$0xff] }
 0x15e   :  { %805 = vrot.lane.b32.xlu0 %v4209_v3, %s3969_s14 }
 0x15f   :  { %v5121_v46 = vpop.permute.xlu1 %624 }
 0x160   :  { %8622 = vst [vmem:[#allocation149_spill] sm:$0xff] %v5121_v46  ;;  %v5123_v48 = vpop.permute.xlu0 %622 }
 0x161   :  { %8623 = vst [vmem:[#allocation150_spill] sm:$0xff] %v5123_v48  ;;  %811 = vrot.lane.b32.xlu1 %v4227_v16, %s3969_s14  ;;  %v8652_v48 = vld [vmem:[#allocation9_spill] sm:$0xff] }
 0x162   :  { %809 = vrot.lane.b32.xlu0 %v4237_v19, %s3969_s14 }
 0x163   :  { %v5129_v54 = vpop.permute.xlu1 %628 }
 0x164   :  { %8624 = vst [vmem:[#allocation151_spill] sm:$0xff] %v5129_v54  ;;  %v5131_v56 = vpop.permute.xlu0 %626 }
 0x165   :  { %8625 = vst [vmem:[#allocation152_spill] sm:$0xff] %v5131_v56  ;;  %815 = vrot.lane.b32.xlu1 %v4255_v34, %s3969_s14  ;;  %v8648_v56 = vld [vmem:[#allocation7_spill] sm:$0xff] }
 0x166   :  { %813 = vrot.lane.b32.xlu0 %v4265_v37, %s3969_s14 }
 0x167   :  { %v5137_v62 = vpop.permute.xlu1 %632 }
 0x168   :  { %8626 = vst [vmem:[#allocation153_spill] sm:$0xff] %v5137_v62  ;;  %v5139_v3 = vpop.permute.xlu0 %630 }
 0x169   :  { %8627 = vst [vmem:[#allocation154_spill] sm:$0xff] %v5139_v3  ;;  %819 = vrot.lane.b32.xlu1 %v4283_v53, %s3969_s14  ;;  %v8644_v3 = vld [vmem:[#allocation5_spill] sm:$0xff] }
 0x16a   :  { %817 = vrot.lane.b32.xlu0 %v4293_v59, %s3969_s14 }
 0x16b   :  { %v5145_v16 = vpop.permute.xlu1 %636 }
 0x16c   :  { %8628 = vst [vmem:[#allocation155_spill] sm:$0xff] %v5145_v16  ;;  %v5147_v19 = vpop.permute.xlu0 %634 }
 0x16d   :  { %8629 = vst [vmem:[#allocation156_spill] sm:$0xff] %v5147_v19  ;;  %823 = vrot.lane.b32.xlu1 %v4311_v26, %s3969_s14  ;;  %v8640_v19 = vld [vmem:[#allocation3_spill] sm:$0xff] }
 0x16e   :  { %821 = vrot.lane.b32.xlu0 %v4321_v45, %s3969_s14 }
 0x16f   :  { %v5153_v34 = vpop.permute.xlu1 %640 }
 0x170   :  { %8630 = vst [vmem:[#allocation157_spill] sm:$0xff] %v5153_v34  ;;  %v5155_v37 = vpop.permute.xlu0 %638 }
 0x171   :  { %8631 = vst [vmem:[#allocation158_spill] sm:$0xff] %v5155_v37  ;;  %827 = vrot.lane.b32.xlu1 %v4339_v20, %s3969_s14 }
 0x172   :  { %825 = vrot.lane.b32.xlu0 %v4349_v8, %s3969_s14 }
 0x173   :  { %v5161_v53 = vpop.permute.xlu1 %644 }
 0x174   :  { %8632 = vst [vmem:[#allocation159_spill] sm:$0xff] %v5161_v53  ;;  %v5163_v59 = vpop.permute.xlu0 %642 }
 0x175   :  { %8633 = vst [vmem:[#allocation160_spill] sm:$0xff] %v5163_v59  ;;  %831 = vrot.lane.b32.xlu1 %v4367_v60, %s3969_s14  ;;  %v5188_v60 = vld [vmem:[%s8234_s0 + $0x1a0] sm:$0xff] }
 0x176   :  { %829 = vrot.lane.b32.xlu0 %v4377_v50, %s3969_s14 }
 0x177   :  { %v5169_v26 = vpop.permute.xlu1 %685 }
 0x178   :  { %v5171_v45 = vpop.permute.xlu0 %683 }
 0x179   :  { %835 = vrot.lane.b32.xlu1 %v4395_v49, %s3969_s14  ;;  %v5195_v49 = vld [vmem:[%s8234_s0 + $0x198] sm:$0xff] }
 0x17a   :  { %833 = vrot.lane.b32.xlu0 %v4405_v61, %s3969_s14 }
 0x17b   :  { %v5177_v20 = vpop.permute.xlu1 %689 }
 0x17c   :  { %v5179_v8 = vpop.permute.xlu0 %687 }
 0x17d   :  { %839 = vrot.lane.b32.xlu1 %v4771_v1, %s3969_s14 }
 0x17e   :  { %837 = vrot.lane.b32.xlu0 %v4778_v39, %s3969_s14 }
 0x17f   :  { %v5190_v50 = vpop.permute.xlu1 %693 }
 0x180   :  { %v5197_v61 = vpop.permute.xlu0 %691 }
 0x181   :  { %843 = vrot.lane.b32.xlu1 %v5188_v60, %s3969_s14 }
 0x182   :  { %841 = vrot.lane.b32.xlu0 %v5195_v49, %s3969_s14 }
 0x183   :  { %v5203_v39 = vpop.permute.xlu1 %697 }
 0x184   :  { %8634 = vst [vmem:[#allocation161_spill] sm:$0xff] %v5203_v39  ;;  %v5205_v1 = vpop.permute.xlu0 %695 }
 0x185   :  { %8635 = vst [vmem:[#allocation162_spill] sm:$0xff] %v5205_v1  ;;  %885 = vrot.lane.b32.xlu1 %v4076_v25, %s3970_s19  ;;  %v8641_v25 = vld [vmem:[#allocation4_spill] sm:$0xff] }
 0x186   :  { %883 = vrot.lane.b32.xlu0 %v4081_v28, %s3970_s19 }
 0x187   :  { %v5211_v59 = vpop.permute.xlu1 %701 }
 0x188   :  { %8636 = vst [vmem:[#allocation163_spill] sm:$0xff] %v5211_v59  ;;  %v5213_v53 = vpop.permute.xlu0 %699 }
 0x189   :  { %8637 = vst [vmem:[#allocation164_spill] sm:$0xff] %v5213_v53  ;;  %889 = vrot.lane.b32.xlu1 %v4104_v33, %s3970_s19  ;;  %v8645_v33 = vld [vmem:[#allocation6_spill] sm:$0xff] }
 0x18a   :  { %887 = vrot.lane.b32.xlu0 %v8518_v17, %s3970_s19 }
 0x18b   :  { %v5219_v37 = vpop.permute.xlu1 %705 }
 0x18c   :  { %8638 = vst [vmem:[#allocation165_spill] sm:$0xff] %v5219_v37  ;;  %v5221_v34 = vpop.permute.xlu0 %703 }
 0x18d   :  { %8639 = vst [vmem:[#allocation166_spill] sm:$0xff] %v5221_v34  ;;  %893 = vrot.lane.b32.xlu1 %v8640_v19, %s3970_s19  ;;  %v8649_v19 = vld [vmem:[#allocation8_spill] sm:$0xff] }
 0x18e   :  { %891 = vrot.lane.b32.xlu0 %v8641_v25, %s3970_s19 }
 0x18f   :  { %v5227_v28 = vpop.permute.xlu1 %709 }
 0x190   :  { %8642 = vst [vmem:[#allocation3_spill] sm:$0xff] %v5227_v28  ;;  %v5229_v16 = vpop.permute.xlu0 %707 }
 0x191   :  { %8643 = vst [vmem:[#allocation4_spill] sm:$0xff] %v5229_v16  ;;  %897 = vrot.lane.b32.xlu1 %v8644_v3, %s3970_s19  ;;  %v8653_v3 = vld [vmem:[#allocation10_spill] sm:$0xff] }
 0x192   :  { %895 = vrot.lane.b32.xlu0 %v8645_v33, %s3970_s19 }
 0x193   :  { %v5235_v17 = vpop.permute.xlu1 %713 }
 0x194   :  { %8646 = vst [vmem:[#allocation5_spill] sm:$0xff] %v5235_v17  ;;  %v5237_v62 = vpop.permute.xlu0 %711 }
 0x195   :  { %8647 = vst [vmem:[#allocation6_spill] sm:$0xff] %v5237_v62  ;;  %901 = vrot.lane.b32.xlu1 %v8648_v56, %s3970_s19  ;;  %v8657_v56 = vld [vmem:[#allocation12_spill] sm:$0xff]  ;;  %v5540_v62 = vld [vmem:[%s8234_s0 + $0x1e8] sm:$0xff] }
 0x196   :  { %899 = vrot.lane.b32.xlu0 %v8649_v19, %s3970_s19  ;;  %8730 = vst [vmem:[#allocation191_spill] sm:$0xff] %v5540_v62 }
 0x197   :  { %v5243_v25 = vpop.permute.xlu1 %717 }
 0x198   :  { %8650 = vst [vmem:[#allocation7_spill] sm:$0xff] %v5243_v25  ;;  %v5245_v54 = vpop.permute.xlu0 %715  ;;  %v5336_v25 = vld [vmem:[%s8234_s0 + $0x1a8] sm:$0x3] }
 0x199   :  { %8651 = vst [vmem:[#allocation8_spill] sm:$0xff] %v5245_v54  ;;  %905 = vrot.lane.b32.xlu1 %v8652_v48, %s3970_s19  ;;  %v8660_v54 = vld [vmem:[#allocation13_spill] sm:$0xff]  ;;  %v8661_v48 = vld [vmem:[#allocation14_spill] sm:$0xff] }
 0x19a   :  { %903 = vrot.lane.b32.xlu0 %v8653_v3, %s3970_s19 }
 0x19b   :  { %v5251_v33 = vpop.permute.xlu1 %721 }
 0x19c   :  { %8654 = vst [vmem:[#allocation9_spill] sm:$0xff] %v5251_v33  ;;  %v5253_v46 = vpop.permute.xlu0 %719 }
 0x19d   :  { %8655 = vst [vmem:[#allocation10_spill] sm:$0xff] %v5253_v46  ;;  %909 = vrot.lane.b32.xlu1 %v8656_v40, %s3970_s19  ;;  %v8664_v46 = vld [vmem:[#allocation15_spill] sm:$0xff]  ;;  %v8665_v40 = vld [vmem:[#allocation16_spill] sm:$0xff] }
 0x19e   :  { %907 = vrot.lane.b32.xlu0 %v8657_v56, %s3970_s19  ;;  %v13_v56 = vld [vmem:[%s8235_s1] sm:$0xff] }
 0x19f   :  { %v5259_v19 = vpop.permute.xlu1 %725 }
 0x1a0   :  { %8658 = vst [vmem:[#allocation11_spill] sm:$0xff] %v5259_v19  ;;  %v5261_v38 = vpop.permute.xlu0 %723  ;;  %v16_v19 = vld [vmem:[%s8235_s1 + $0x18] sm:$0xff] }
 0x1a1   :  { %8659 = vst [vmem:[#allocation12_spill] sm:$0xff] %v5261_v38  ;;  %913 = vrot.lane.b32.xlu1 %v8660_v54, %s3970_s19  ;;  %v14_v54 = vld [vmem:[%s8235_s1 + $0x8] sm:$0xff] }
 0x1a2   :  { %911 = vrot.lane.b32.xlu0 %v8661_v48, %s3970_s19  ;;  %v3858_v48 = vpack.c.bf16 %v14_v54, %v13_v56 }
 0x1a3   :  { %v5267_v3 = vpop.permute.xlu1 %729 }
 0x1a4   :  { %8662 = vst [vmem:[#allocation13_spill] sm:$0xff] %v5267_v3  ;;  %v5269_v33 = vpop.permute.xlu0 %727  ;;  %3859 = vmatprep.subr.bf16.mxu0 %v3858_v48  ;;  %3875 = vmatprep.subr.bf16.mxu1 %v3858_v48 }
 0x1a5   :  { %8663 = vst [vmem:[#allocation14_spill] sm:$0xff] %v5269_v33  ;;  %917 = vrot.lane.b32.xlu1 %v8664_v46, %s3970_s19  ;;  %v8668_v33 = vld [vmem:[#allocation17_spill] sm:$0xff]  ;;  %v8669_v46 = vld [vmem:[#allocation18_spill] sm:$0xff]  ;;  %3861 = vmatpush3.bf16.msra.mxu0 %v3858_v48 }
 0x1a6   :  { %915 = vrot.lane.b32.xlu0 %v8665_v40, %s3970_s19  ;;  %v15_v40 = vld [vmem:[%s8235_s1 + $0x10] sm:$0xff]  ;;  %3877 = vmatpush3.bf16.msra.mxu1 %v3858_v48 }
 0x1a7   :  { %v5281_v38 = vpop.permute.xlu1 %733  ;;  %v3862_v56 = vpack.c.bf16 %v16_v19, %v15_v40  ;;  %v18_v19 = vld [vmem:[%s8235_s1 + $0x28] sm:$0xff] }
 0x1a8   :  { %8666 = vst [vmem:[#allocation15_spill] sm:$0xff] %v5281_v38  ;;  %v5283_v3 = vpop.permute.xlu0 %731 }
 0x1a9   :  { %8667 = vst [vmem:[#allocation16_spill] sm:$0xff] %v5283_v3  ;;  %921 = vrot.lane.b32.xlu1 %v8668_v33, %s3970_s19  ;;  %v8672_v33 = vld [vmem:[#allocation19_spill] sm:$0xff]  ;;  %3863 = vmatprep.subr.bf16.mxu0 %v3862_v56  ;;  %v17_v3 = vld [vmem:[%s8235_s1 + $0x20] sm:$0xff] }
 0x1aa   :  { %919 = vrot.lane.b32.xlu0 %v8669_v46, %s3970_s19  ;;  %v8673_v46 = vld [vmem:[#allocation20_spill] sm:$0xff]  ;;  %3865 = vmatpush3.bf16.msra.mxu0 %v3862_v56 }
 0x1ab   :  { %v5295_v38 = vpop.permute.xlu1 %737  ;;  %3879 = vmatprep.subr.bf16.mxu1 %v3862_v56 }
 0x1ac   :  { %8670 = vst [vmem:[#allocation17_spill] sm:$0xff] %v5295_v38  ;;  %v5297_v54 = vpop.permute.xlu0 %735  ;;  %3881 = vmatpush3.bf16.msra.mxu1 %v3862_v56  ;;  %v19_v38 = vld [vmem:[%s8235_s1 + $0x30] sm:$0xff] }
 0x1ad   :  { %8671 = vst [vmem:[#allocation18_spill] sm:$0xff] %v5297_v54  ;;  %925 = vrot.lane.b32.xlu1 %v8672_v33, %s3970_s19  ;;  %v3866_v54 = vpack.c.bf16 %v18_v19, %v17_v3  ;;  %v8676_v33 = vld [vmem:[#allocation21_spill] sm:$0xff] }
 0x1ae   :  { %923 = vrot.lane.b32.xlu0 %v8673_v46, %s3970_s19  ;;  %v8677_v46 = vld [vmem:[#allocation22_spill] sm:$0xff]  ;;  %v20_v3 = vld [vmem:[%s8235_s1 + $0x38] sm:$0xff] }
 0x1af   :  { %v5309_v40 = vpop.permute.xlu1 %741  ;;  %3867 = vmatprep.subr.bf16.mxu0 %v3866_v54  ;;  %3883 = vmatprep.subr.bf16.mxu1 %v3866_v54 }
 0x1b0   :  { %8674 = vst [vmem:[#allocation19_spill] sm:$0xff] %v5309_v40  ;;  %v5311_v48 = vpop.permute.xlu0 %739  ;;  %3869 = vmatpush3.bf16.msra.mxu0 %v3866_v54  ;;  %3885 = vmatpush3.bf16.msra.mxu1 %v3866_v54  ;;  %v21_v54 = vld [vmem:[%s8235_s1 + $0x40] sm:$0xff]  ;;  %s3971_s1 = smov 64  }
 0x1b1   :  { %8675 = vst [vmem:[#allocation20_spill] sm:$0xff] %v5311_v48  ;;  %929 = vrot.lane.b32.xlu1 %v8676_v33, %s3970_s19  ;;  %v3870_v48 = vpack.c.bf16 %v20_v3, %v19_v38  ;;  %v8680_v33 = vld [vmem:[#allocation23_spill] sm:$0xff]  ;;  %v879_v3 = vrot.slane %v5188_v60, 1 }
 0x1b2   :  { %927 = vrot.lane.b32.xlu0 %v8677_v46, %s3970_s19  ;;  %v8681_v46 = vld [vmem:[#allocation24_spill] sm:$0xff] }
 0x1b3   :  { %v5323_v19 = vpop.permute.xlu1 %745  ;;  %3871 = vmatprep.subr.bf16.mxu0 %v3870_v48  ;;  %3887 = vmatprep.subr.bf16.mxu1 %v3870_v48 }
 0x1b4   :  { %8678 = vst [vmem:[#allocation21_spill] sm:$0xff] %v5323_v19  ;;  %v5325_v56 = vpop.permute.xlu0 %743  ;;  %3873 = vmatpush3.bf16.msra.mxu0 %v3870_v48  ;;  %3889 = vmatpush3.bf16.msra.mxu1 %v3870_v48 }
 0x1b5   :  { %8679 = vst [vmem:[#allocation22_spill] sm:$0xff] %v5325_v56  ;;  %933 = vrot.lane.b32.xlu1 %v8680_v33, %s3970_s19  ;;  %3742 = vmatprep.subr.mxu0 %v21_v54  ;;  %v881_v33 = vrot.slane %v5336_v25, 1 }
 0x1b6   :  { %931 = vrot.lane.b32.xlu0 %v8681_v46, %s3970_s19  ;;  %v878_v46 = vrot.slane %v5195_v49, 1  ;;  %3808 = vmatprep.subr.mxu1 %v21_v54 }
 0x1b7   :  { %v5331_v40 = vpop.permute.xlu1 %783 }
 0x1b8   :  { %v5338_v38 = vpop.permute.xlu0 %781  ;;  %3743 = vmatpush3.msra.mxu0 %v21_v54  ;;  %3809 = vmatpush3.msra.mxu1 %v21_v54  ;;  %v880_v48 = vsel %vm124_vm0, %v878_v46, %v879_v3 }
 0x1b9   :  { %937 = vrot.lane.b32.xlu1 %v4425_v57, %s3970_s19  ;;  %v882_v57 = vsel %vm124_vm0, %v879_v3, %v881_v33 }
 0x1ba   :  { %935 = vrot.lane.b32.xlu0 %v8563_v47, %s3970_s19 }
 0x1bb   :  { %v5350_v56 = vpop.permute.xlu1 %787 }
 0x1bc   :  { %v5352_v19 = vpop.permute.xlu0 %785 }
 0x1bd   :  { %941 = vrot.lane.b32.xlu1 %v4915_v4, %s3970_s19 }
 0x1be   :  { %939 = vrot.lane.b32.xlu0 %v4920_v44, %s3970_s19 }
 0x1bf   :  { %v5359_v47 = vpop.permute.xlu1 %791 }
 0x1c0   :  { %8682 = vst [vmem:[#allocation23_spill] sm:$0xff] %v5359_v47  ;;  %v5362_v32 = vpop.permute.xlu0 %789  ;;  %v8817_v47 = vld [vmem:[#allocation75_spill] sm:$0xff] }
 0x1c1   :  { %8683 = vst [vmem:[#allocation24_spill] sm:$0xff] %v5362_v32  ;;  %945 = vrot.lane.b32.xlu1 %v882_v57, %s3970_s19 }
 0x1c2   :  { %943 = vrot.lane.b32.xlu0 %v880_v48, %s3970_s19 }
 0x1c3   :  { %v5366_v30 = vpop.permute.xlu1 %795 }
 0x1c4   :  { %8684 = vst [vmem:[#allocation167_spill] sm:$0xff] %v5366_v30  ;;  %v5368_v54 = vpop.permute.xlu0 %793 }
 0x1c5   :  { %8685 = vst [vmem:[#allocation168_spill] sm:$0xff] %v5368_v54  ;;  %986 = vrot.lane.b32.xlu1 %v4458_v43, %s3971_s1 }
 0x1c6   :  { %984 = vrot.lane.b32.xlu0 %v4463_v14, %s3971_s1 }
 0x1c7   :  { %v5374_v44 = vpop.permute.xlu1 %799 }
 0x1c8   :  { %8686 = vst [vmem:[#allocation169_spill] sm:$0xff] %v5374_v44  ;;  %v5376_v4 = vpop.permute.xlu0 %797 }
 0x1c9   :  { %8687 = vst [vmem:[#allocation170_spill] sm:$0xff] %v5376_v4  ;;  %990 = vrot.lane.b32.xlu1 %v4471_v5, %s3971_s1  ;;  %v8692_v5 = vld [vmem:[#allocation28_spill] sm:$0xff] }
 0x1ca   :  { %988 = vrot.lane.b32.xlu0 %v8572_v2, %s3971_s1 }
 0x1cb   :  { %v5382_v3 = vpop.permute.xlu1 %803 }
 0x1cc   :  { %8688 = vst [vmem:[#allocation171_spill] sm:$0xff] %v5382_v3  ;;  %v5384_v33 = vpop.permute.xlu0 %801  ;;  %v8764_v3 = vld [vmem:[#allocation42_spill] sm:$0xff] }
 0x1cd   :  { %8689 = vst [vmem:[#allocation172_spill] sm:$0xff] %v5384_v33  ;;  %994 = vrot.lane.b32.xlu1 %v4484_v27, %s3971_s1  ;;  %v8695_v27 = vld [vmem:[#allocation29_spill] sm:$0xff] }
 0x1ce   :  { %992 = vrot.lane.b32.xlu0 %v8575_v0, %s3971_s1 }
 0x1cf   :  { %v5390_v43 = vpop.permute.xlu1 %807 }
 0x1d0   :  { %8690 = vst [vmem:[#allocation173_spill] sm:$0xff] %v5390_v43  ;;  %v5392_v14 = vpop.permute.xlu0 %805  ;;  %v5582_v43 = vld [vmem:[%s8234_s0 + $0x1f8] sm:$0xff] }
 0x1d1   :  { %8691 = vst [vmem:[#allocation174_spill] sm:$0xff] %v5392_v14  ;;  %998 = vrot.lane.b32.xlu1 %v4497_v6, %s3971_s1  ;;  %v8698_v6 = vld [vmem:[#allocation30_spill] sm:$0xff]  ;;  %8740 = vst [vmem:[#allocation201_spill] sm:$0xff] %v5582_v43  ;;  %v1892_v11 = vrot.slane %v5582_v43, 1 }
 0x1d2   :  { %996 = vrot.lane.b32.xlu0 %v8692_v5, %s3971_s1 }
 0x1d3   :  { %v5398_v2 = vpop.permute.xlu1 %811 }
 0x1d4   :  { %8693 = vst [vmem:[#allocation28_spill] sm:$0xff] %v5398_v2  ;;  %v5400_v46 = vpop.permute.xlu0 %809 }
 0x1d5   :  { %8694 = vst [vmem:[#allocation175_spill] sm:$0xff] %v5400_v46  ;;  %1002 = vrot.lane.b32.xlu1 %v4510_v21, %s3971_s1  ;;  %v8701_v21 = vld [vmem:[#allocation31_spill] sm:$0xff] }
 0x1d6   :  { %1000 = vrot.lane.b32.xlu0 %v8695_v27, %s3971_s1 }
 0x1d7   :  { %v5406_v0 = vpop.permute.xlu1 %815 }
 0x1d8   :  { %8696 = vst [vmem:[#allocation29_spill] sm:$0xff] %v5406_v0  ;;  %v5408_v57 = vpop.permute.xlu0 %813 }
 0x1d9   :  { %8697 = vst [vmem:[#allocation176_spill] sm:$0xff] %v5408_v57  ;;  %1006 = vrot.lane.b32.xlu1 %v4523_v52, %s3971_s1  ;;  %v8704_v57 = vld [vmem:[#allocation32_spill] sm:$0xff]  ;;  %v8705_v52 = vld [vmem:[#allocation33_spill] sm:$0xff] }
 0x1da   :  { %1004 = vrot.lane.b32.xlu0 %v8698_v6, %s3971_s1 }
 0x1db   :  { %v5414_v48 = vpop.permute.xlu1 %819 }
 0x1dc   :  { %8699 = vst [vmem:[#allocation30_spill] sm:$0xff] %v5414_v48  ;;  %v5416_v5 = vpop.permute.xlu0 %817 }
 0x1dd   :  { %8700 = vst [vmem:[#allocation177_spill] sm:$0xff] %v5416_v5  ;;  %1010 = vrot.lane.b32.xlu1 %v4536_v10, %s3971_s1  ;;  %v8708_v10 = vld [vmem:[#allocation34_spill] sm:$0xff] }
 0x1de   :  { %1008 = vrot.lane.b32.xlu0 %v8701_v21, %s3971_s1 }
 0x1df   :  { %v5422_v27 = vpop.permute.xlu1 %823 }
 0x1e0   :  { %8702 = vst [vmem:[#allocation31_spill] sm:$0xff] %v5422_v27  ;;  %v5424_v0 = vpop.permute.xlu0 %821 }
 0x1e1   :  { %8703 = vst [vmem:[#allocation178_spill] sm:$0xff] %v5424_v0  ;;  %1014 = vrot.lane.b32.xlu1 %v8704_v57, %s3971_s1  ;;  %v8711_v57 = vld [vmem:[#allocation36_spill] sm:$0xff] }
 0x1e2   :  { %1012 = vrot.lane.b32.xlu0 %v8705_v52, %s3971_s1 }
 0x1e3   :  { %v5430_v6 = vpop.permute.xlu1 %827 }
 0x1e4   :  { %8706 = vst [vmem:[#allocation32_spill] sm:$0xff] %v5430_v6  ;;  %v5432_v48 = vpop.permute.xlu0 %825 }
 0x1e5   :  { %8707 = vst [vmem:[#allocation33_spill] sm:$0xff] %v5432_v48  ;;  %1018 = vrot.lane.b32.xlu1 %v4562_v41, %s3971_s1  ;;  %v8714_v41 = vld [vmem:[#allocation37_spill] sm:$0xff]  ;;  %v5514_v48 = vld [vmem:[%s8234_s0 + $0x1d0] sm:$0xff] }
 0x1e6   :  { %1016 = vrot.lane.b32.xlu0 %v8708_v10, %s3971_s1  ;;  %8725 = vst [vmem:[#allocation186_spill] sm:$0xff] %v5514_v48 }
 0x1e7   :  { %v5438_v21 = vpop.permute.xlu1 %831 }
 0x1e8   :  { %8709 = vst [vmem:[#allocation34_spill] sm:$0xff] %v5438_v21  ;;  %v5440_v27 = vpop.permute.xlu0 %829 }
 0x1e9   :  { %8710 = vst [vmem:[#allocation179_spill] sm:$0xff] %v5440_v27  ;;  %1022 = vrot.lane.b32.xlu1 %v8596_v29, %s3971_s1  ;;  %v8717_v27 = vld [vmem:[#allocation38_spill] sm:$0xff] }
 0x1ea   :  { %1020 = vrot.lane.b32.xlu0 %v8711_v57, %s3971_s1 }
 0x1eb   :  { %v5446_v52 = vpop.permute.xlu1 %835 }
 0x1ec   :  { %8712 = vst [vmem:[#allocation36_spill] sm:$0xff] %v5446_v52  ;;  %v5448_v6 = vpop.permute.xlu0 %833 }
 0x1ed   :  { %8713 = vst [vmem:[#allocation180_spill] sm:$0xff] %v5448_v6  ;;  %1026 = vrot.lane.b32.xlu1 %v4588_v23, %s3971_s1  ;;  %v8720_v23 = vld [vmem:[#allocation43_spill] sm:$0xff] }
 0x1ee   :  { %1024 = vrot.lane.b32.xlu0 %v8714_v41, %s3971_s1 }
 0x1ef   :  { %v5454_v10 = vpop.permute.xlu1 %839 }
 0x1f0   :  { %8715 = vst [vmem:[#allocation37_spill] sm:$0xff] %v5454_v10  ;;  %v5456_v21 = vpop.permute.xlu0 %837 }
 0x1f1   :  { %8716 = vst [vmem:[#allocation181_spill] sm:$0xff] %v5456_v21  ;;  %1030 = vrot.lane.b32.xlu1 %v8717_v27, %s3971_s1  ;;  %v980_v27 = vrot.slane %v5188_v60, 2 }
 0x1f2   :  { %1028 = vrot.lane.b32.xlu0 %v8603_v55, %s3971_s1  ;;  %v982_v55 = vrot.slane %v5336_v25, 2 }
 0x1f3   :  { %v5462_v29 = vpop.permute.xlu1 %843 }
 0x1f4   :  { %8718 = vst [vmem:[#allocation38_spill] sm:$0xff] %v5462_v29  ;;  %v5464_v57 = vpop.permute.xlu0 %841 }
 0x1f5   :  { %8719 = vst [vmem:[#allocation182_spill] sm:$0xff] %v5464_v57  ;;  %1034 = vrot.lane.b32.xlu1 %v4618_v35, %s3971_s1  ;;  %v979_v57 = vrot.slane %v5195_v49, 2  ;;  %v983_v49 = vsel %vm301_vm1, %v980_v27, %v982_v55  ;;  %v5526_v55 = vld [vmem:[%s8234_s0 + $0x1c8] sm:$0xff] }
 0x1f6   :  { %1032 = vrot.lane.b32.xlu0 %v8720_v23, %s3971_s1  ;;  %v5486_v23 = vld [vmem:[%s8234_s0 + $0x1b8] sm:$0xff]  ;;  %8728 = vst [vmem:[#allocation189_spill] sm:$0xff] %v5526_v55  ;;  %v1882_v2 = vrot.slane %v5526_v55, 1  ;;  %v5875_v55 = vsel %vm1080_vm2, %v3917_v12, %v8793_v13  ;;  %v3919_v13 = vld [vmem:[%s8234_s0 + $0xf0] sm:$0xff]  ;;  %v8797_v12 = vld [vmem:[#allocation62_spill] sm:$0xff] }
 0x1f7   :  { %v5470_v41 = vpop.permute.xlu1 %885  ;;  %8721 = vst [vmem:[#allocation43_spill] sm:$0xff] %v5486_v23  ;;  %v1878_v25 = vrot.slane %v5486_v23, 1  ;;  %v981_v6 = vsel %vm301_vm1, %v979_v57, %v980_v27  ;;  %v1883_v27 = vrot.slane %v5514_v48, 1  ;;  %v8799_v48 = vld [vmem:[#allocation64_spill] sm:$0xff] }
 0x1f8   :  { %v5472_v10 = vpop.permute.xlu0 %883 }
 0x1f9   :  { %1038 = vrot.lane.b32.xlu1 %v4635_v58, %s3971_s1  ;;  %v5491_v58 = vld [vmem:[%s8234_s0 + $0x1c0] sm:$0x3]  ;;  %v5564_v22 = vsel %vm124_vm0, %v1882_v2, %v1883_v27 }
 0x1fa   :  { %1036 = vrot.lane.b32.xlu0 %v4640_v9, %s3971_s1  ;;  %8722 = vst [vmem:[#allocation183_spill] sm:$0xff] %v5491_v58  ;;  %v5498_v9 = vld [vmem:[%s8234_s0 + $0x1b0] sm:$0xff]  ;;  %v1880_v29 = vrot.slane %v5491_v58, 1  ;;  %8736 = vst [vmem:[#allocation197_spill] sm:$0xff] %v5564_v22 }
 0x1fb   :  { %v5481_v35 = vpop.permute.xlu1 %889  ;;  %8723 = vst [vmem:[#allocation184_spill] sm:$0xff] %v5498_v9  ;;  %v1877_v52 = vrot.slane %v5498_v9, 1  ;;  %v8811_v9 = vld [vmem:[#allocation71_spill] sm:$0xff] }
 0x1fc   :  { %v5493_v60 = vpop.permute.xlu0 %887  ;;  %v1881_v57 = vsel %vm124_vm0, %v1878_v25, %v1880_v29 }
 0x1fd   :  { %1042 = vrot.lane.b32.xlu1 %v5052_v42, %s3971_s1  ;;  %v1879_v46 = vsel %vm124_vm0, %v1877_v52, %v1878_v25  ;;  %v1888_v25 = vrot.slane %v5540_v62, 1  ;;  %v8781_v62 = vld [vmem:[#allocation53_spill] sm:$0xff] }
 0x1fe   :  { %1040 = vrot.lane.b32.xlu0 %v5057_v63, %s3971_s1  ;;  %v5519_v63 = vld [vmem:[%s8234_s0 + $0x1d8] sm:$0x3] }
 0x1ff   :  { %v5507_v21 = vpop.permute.xlu1 %893  ;;  %8726 = vst [vmem:[#allocation187_spill] sm:$0xff] %v5519_v63  ;;  %v1885_v0 = vrot.slane %v5519_v63, 1  ;;  %v3921_v63 = vld [vmem:[%s8234_s0 + $0x108] sm:$0xff] }
 0x200   :  { %8724 = vst [vmem:[#allocation185_spill] sm:$0xff] %v5507_v21  ;;  %v5521_v42 = vpop.permute.xlu0 %891  ;;  %v5910_v30 = vsel %vm1080_vm2, %v3921_v63, %v8799_v48  ;;  %v5984_v21 = vsel %vm1080_vm2, %v3928_v18, %v8811_v9  ;;  %v8816_v9 = vld [vmem:[#allocation74_spill] sm:$0xff] }
 0x201   :  { %8727 = vst [vmem:[#allocation188_spill] sm:$0xff] %v5521_v42  ;;  %1046 = vrot.lane.b32.xlu1 %v983_v49, %s3971_s1  ;;  %v5552_v49 = vld [vmem:[%s8234_s0 + $0x1e0] sm:$0xff]  ;;  %v5557_v52 = vsel %vm124_vm0, %v1883_v27, %v1885_v0 }
 0x202   :  { %1044 = vrot.lane.b32.xlu0 %v981_v6, %s3971_s1  ;;  %v5545_v6 = vld [vmem:[%s8234_s0 + $0x1f0] sm:$0x3]  ;;  %8733 = vst [vmem:[#allocation194_spill] sm:$0xff] %v5552_v49  ;;  %8734 = vst [vmem:[#allocation195_spill] sm:$0xff] %v5557_v52  ;;  %v1887_v14 = vrot.slane %v5552_v49, 1  ;;  %v5766_v49 = vsel %vm1080_vm2, %v3906_v31, %v8775_v36  ;;  %v3908_v31 = vld [vmem:[%s8234_s0 + $0x80] sm:$0xff] }
 0x203   :  { %v5533_v5 = vpop.permute.xlu1 %897  ;;  %8731 = vst [vmem:[#allocation192_spill] sm:$0xff] %v5545_v6  ;;  %v1890_v17 = vrot.slane %v5545_v6, 1  ;;  %v8779_v36 = vld [vmem:[#allocation51_spill] sm:$0xff]  ;;  %v3910_v6 = vld [vmem:[%s8234_s0 + $0x98] sm:$0xff] }
 0x204   :  { %8729 = vst [vmem:[#allocation190_spill] sm:$0xff] %v5533_v5  ;;  %v5547_v29 = vpop.permute.xlu0 %895  ;;  %v5596_v15 = vsel %vm124_vm0, %v1887_v14, %v1888_v25  ;;  %v5801_v44 = vsel %vm1080_vm2, %v3910_v6, %v8781_v62 }
 0x205   :  { %8732 = vst [vmem:[#allocation193_spill] sm:$0xff] %v5547_v29  ;;  %1959 = vrot.lane.b32.xlu1 %v1881_v57, %s3964_s30  ;;  %v5570_v57 = vld [vmem:[%s8234_s0 + $0x200] sm:$0xff]  ;;  %v5589_v2 = vsel %vm124_vm0, %v1888_v25, %v1890_v17  ;;  %8743 = vst [vmem:[#allocation204_spill] sm:$0xff] %v5596_v15 }
 0x206   :  { %1957 = vrot.lane.b32.xlu0 %v1879_v46, %s3964_s30  ;;  %8737 = vst [vmem:[#allocation198_spill] sm:$0xff] %v5570_v57  ;;  %v5575_v46 = vld [vmem:[%s8234_s0 + $0x208] sm:$0x3]  ;;  %8741 = vst [vmem:[#allocation202_spill] sm:$0xff] %v5589_v2  ;;  %v1893_v27 = vrot.slane %v5570_v57, 1  ;;  %v3900_v57 = vld [vmem:[%s8234_s0 + $0x20] sm:$0xff] }
 0x207   :  { %v5561_v24 = vpop.permute.xlu1 %901  ;;  %8738 = vst [vmem:[#allocation199_spill] sm:$0xff] %v5575_v46  ;;  %v1895_v16 = vrot.slane %v5575_v46, 1  ;;  %v5607_v17 = vld [vmem:[%s8234_s0 + $0x220] sm:$0x3]  ;;  %v5699_v34 = vsel %vm1080_vm2, %v3900_v57, %v8764_v3 }
 0x208   :  { %8735 = vst [vmem:[#allocation196_spill] sm:$0xff] %v5561_v24  ;;  %v5577_v0 = vpop.permute.xlu0 %899  ;;  %8745 = vst [vmem:[#allocation206_spill] sm:$0xff] %v5607_v17  ;;  %v1900_v43 = vrot.slane %v5607_v17, 1 }
 0x209   :  { %8739 = vst [vmem:[#allocation200_spill] sm:$0xff] %v5577_v0  ;;  %1963 = vrot.lane.b32.xlu1 %v5557_v52, %s3964_s30  ;;  %v5602_v52 = vld [vmem:[%s8234_s0 + $0x218] sm:$0xff]  ;;  %v5621_v14 = vsel %vm124_vm0, %v1893_v27, %v1895_v16 }
 0x20a   :  { %1961 = vrot.lane.b32.xlu0 %v5564_v22, %s3964_s30  ;;  %8744 = vst [vmem:[#allocation205_spill] sm:$0xff] %v5602_v52  ;;  %8748 = vst [vmem:[#allocation209_spill] sm:$0xff] %v5621_v14  ;;  %v1898_v25 = vrot.slane %v5602_v52, 1  ;;  %v5639_v16 = vld [vmem:[%s8234_s0 + $0x238] sm:$0x3] }
 0x20b   :  { %v5593_v28 = vpop.permute.xlu1 %905  ;;  %8752 = vst [vmem:[#allocation213_spill] sm:$0xff] %v5639_v16 }
 0x20c   :  { %8742 = vst [vmem:[#allocation203_spill] sm:$0xff] %v5593_v28  ;;  %v5609_v22 = vpop.permute.xlu0 %903  ;;  %v5614_v28 = vld [vmem:[%s8234_s0 + $0x210] sm:$0xff] }
 0x20d   :  { %8746 = vst [vmem:[#allocation207_spill] sm:$0xff] %v5609_v22  ;;  %8747 = vst [vmem:[#allocation208_spill] sm:$0xff] %v5614_v28  ;;  %1967 = vrot.lane.b32.xlu1 %v5589_v2, %s3964_s30  ;;  %v5628_v22 = vsel %vm124_vm0, %v1892_v11, %v1893_v27  ;;  %v1897_v46 = vrot.slane %v5614_v28, 1  ;;  %v5634_v2 = vld [vmem:[%s8234_s0 + $0x230] sm:$0xff]  ;;  %v5653_v11 = vsel %vm124_vm0, %v1898_v25, %v1900_v43  ;;  %v1905_v28 = vrot.slane %v5639_v16, 1  ;;  %v3899_v16 = vld [vmem:[%s8234_s0] sm:$0xff] }
 0x20e   :  { %1965 = vrot.lane.b32.xlu0 %v5596_v15, %s3964_s30  ;;  %8750 = vst [vmem:[#allocation211_spill] sm:$0xff] %v5628_v22  ;;  %8751 = vst [vmem:[#allocation212_spill] sm:$0xff] %v5634_v2  ;;  %v1903_v27 = vrot.slane %v5634_v2, 1  ;;  %v5671_v43 = vld [vmem:[%s8234_s0 + $0x250] sm:$0x3]  ;;  %v8763_v2 = vld [vmem:[#allocation41_spill] sm:$0xff] }
 0x20f   :  { %v5625_v33 = vpop.permute.xlu1 %909  ;;  %8755 = vst [vmem:[#allocation216_spill] sm:$0xff] %v5653_v11  ;;  %v5660_v17 = vsel %vm124_vm0, %v1897_v46, %v1898_v25  ;;  %8759 = vst [vmem:[#allocation220_spill] sm:$0xff] %v5671_v43  ;;  %v3898_v46 = vld [vmem:[%s8234_s0 + $0x18] sm:$0xff]  ;;  %v8762_v25 = vld [vmem:[#allocation39_spill] sm:$0xff]  ;;  %v1910_v57 = vrot.slane %v5671_v43, 1 }
 0x210   :  { %8749 = vst [vmem:[#allocation210_spill] sm:$0xff] %v5625_v33  ;;  %v5641_v15 = vpop.permute.xlu0 %907  ;;  %v5646_v33 = vld [vmem:[%s8234_s0 + $0x228] sm:$0xff]  ;;  %8757 = vst [vmem:[#allocation218_spill] sm:$0xff] %v5660_v17 }
 0x211   :  { %8753 = vst [vmem:[#allocation214_spill] sm:$0xff] %v5641_v15  ;;  %8754 = vst [vmem:[#allocation215_spill] sm:$0xff] %v5646_v33  ;;  %1971 = vrot.lane.b32.xlu1 %v5621_v14, %s3964_s30  ;;  %v1902_v52 = vrot.slane %v5646_v33, 1  ;;  %v5666_v14 = vld [vmem:[%s8234_s0 + $0x248] sm:$0xff]  ;;  %v5685_v33 = vsel %vm1080_vm2, %v3898_v46, %v8762_v25  ;;  %v8765_v25 = vld [vmem:[#allocation44_spill] sm:$0xff] }
 0x212   :  { %1969 = vrot.lane.b32.xlu0 %v5628_v22, %s3964_s30  ;;  %8758 = vst [vmem:[#allocation219_spill] sm:$0xff] %v5666_v14  ;;  %v3901_v46 = vld [vmem:[%s8234_s0 + $0x8] sm:$0xff]  ;;  %v1908_v3 = vrot.slane %v5666_v14, 1 }
 0x213   :  { %v5657_v15 = vpop.permute.xlu1 %913  ;;  %v5708_v37 = vsel %vm1080_vm2, %v3901_v46, %v8765_v25  ;;  %v3903_v46 = vld [vmem:[%s8234_s0 + $0x30] sm:$0xff]  ;;  %v8768_v25 = vld [vmem:[#allocation46_spill] sm:$0xff]  ;;  %v5734_v43 = vsel %vm124_vm0, %v1902_v52, %v1903_v27 }
 0x214   :  { %8756 = vst [vmem:[#allocation217_spill] sm:$0xff] %v5657_v15  ;;  %v5673_v22 = vpop.permute.xlu0 %911  ;;  %v5678_v15 = vld [vmem:[%s8234_s0 + $0x240] sm:$0xff]  ;;  %8770 = vst [vmem:[#allocation42_spill] sm:$0xff] %v5734_v43  ;;  %v5822_v62 = vsel %vm124_vm0, %v1908_v3, %v1910_v57 }
 0x215   :  { %8760 = vst [vmem:[#allocation221_spill] sm:$0xff] %v5673_v22  ;;  %8761 = vst [vmem:[#allocation222_spill] sm:$0xff] %v5678_v15  ;;  %v5692_v22 = vsel %vm1080_vm2, %v3899_v16, %v8763_v2  ;;  %1975 = vrot.lane.b32.xlu1 %v5653_v11, %s3964_s30  ;;  %v5713_v2 = vsel %vm124_vm0, %v1903_v27, %v1905_v28  ;;  %v3902_v16 = vld [vmem:[%s8234_s0 + $0x38] sm:$0xff]  ;;  %v5729_v28 = vsel %vm1080_vm2, %v3903_v46, %v8768_v25  ;;  %v3904_v46 = vld [vmem:[%s8234_s0 + $0x50] sm:$0xff] }
 0x216   :  { %1973 = vrot.lane.b32.xlu0 %v5660_v17, %s3964_s30  ;;  %8766 = vst [vmem:[#allocation39_spill] sm:$0xff] %v5713_v2  ;;  %v8767_v11 = vld [vmem:[#allocation45_spill] sm:$0xff]  ;;  %v1907_v14 = vrot.slane %v5678_v15, 1  ;;  %v8773_v25 = vld [vmem:[#allocation47_spill] sm:$0xff]  ;;  %v8774_v15 = vld [vmem:[#allocation48_spill] sm:$0xff]  ;;  %v6008_v23 = vsel %vm1113_vm3, %v5692_v22, %v8816_v9 }
 0x217   :  { %v5722_v0 = vsel %vm1080_vm2, %v3902_v16, %v8767_v11  ;;  %v5731_v17 = vpop.permute.xlu1 %917  ;;  %v5740_v11 = vld [vmem:[%s8234_s0 + $0x260] sm:$0xff]  ;;  %v5745_v16 = vld [vmem:[%s8234_s0 + $0x268] sm:$0x3]  ;;  %v5752_v52 = vsel %vm1080_vm2, %v3904_v46, %v8773_v25  ;;  %8784 = vst [vmem:[#allocation48_spill] sm:$0xff] %v5822_v62 }
 0x218   :  { %8769 = vst [vmem:[#allocation41_spill] sm:$0xff] %v5731_v17  ;;  %8771 = vst [vmem:[#allocation44_spill] sm:$0xff] %v5740_v11  ;;  %v3905_v27 = vld [vmem:[%s8234_s0 + $0x48] sm:$0xff]  ;;  %v3907_v46 = vld [vmem:[%s8234_s0 + $0x60] sm:$0xff]  ;;  %v5775_v4 = vpop.permute.xlu0 %915  ;;  %v1913_v6 = vrot.slane %v5740_v11, 1 }
 0x219   :  { %8772 = vst [vmem:[#allocation45_spill] sm:$0xff] %v5745_v16  ;;  %v5759_v17 = vsel %vm1080_vm2, %v3905_v27, %v8774_v15  ;;  %v8776_v25 = vld [vmem:[#allocation50_spill] sm:$0xff]  ;;  %8777 = vst [vmem:[#allocation46_spill] sm:$0xff] %v5775_v4  ;;  %v5780_v15 = vld [vmem:[%s8234_s0 + $0x258] sm:$0xff]  ;;  %v5787_v27 = vsel %vm1080_vm2, %v3908_v31, %v8779_v36  ;;  %1979 = vrot.lane.b32.xlu1 %v5713_v2, %s3964_s30 }
 0x21a   :  { %v5773_v24 = vsel %vm1080_vm2, %v3907_v46, %v8776_v25  ;;  %8778 = vst [vmem:[#allocation47_spill] sm:$0xff] %v5780_v15  ;;  %v3909_v46 = vld [vmem:[%s8234_s0 + $0x78] sm:$0xff]  ;;  %v8780_v25 = vld [vmem:[#allocation52_spill] sm:$0xff]  ;;  %v8782_v36 = vld [vmem:[#allocation54_spill] sm:$0xff]  ;;  %1977 = vrot.lane.b32.xlu0 %v5734_v43, %s3964_s30  ;;  %v1912_v11 = vrot.slane %v5780_v15, 1 }
 0x21b   :  { %v5794_v4 = vsel %vm1080_vm2, %v3909_v46, %v8780_v25  ;;  %v3911_v31 = vld [vmem:[%s8234_s0 + $0x90] sm:$0xff]  ;;  %v8783_v25 = vld [vmem:[#allocation55_spill] sm:$0xff]  ;;  %v5840_v43 = vpop.permute.xlu1 %921 }
 0x21c   :  { %v5808_v53 = vsel %vm1080_vm2, %v3911_v31, %v8782_v36  ;;  %v3912_v46 = vld [vmem:[%s8234_s0 + $0xb0] sm:$0xff]  ;;  %v1915_v31 = vrot.slane %v5745_v16, 1  ;;  %v3913_v36 = vld [vmem:[%s8234_s0 + $0xa8] sm:$0xff]  ;;  %8787 = vst [vmem:[#allocation49_spill] sm:$0xff] %v5840_v43  ;;  %v5843_v16 = vsel %vm124_vm0, %v1907_v14, %v1908_v3  ;;  %v3916_v3 = vld [vmem:[%s8234_s0 + $0xe0] sm:$0xff]  ;;  %v5884_v54 = vpop.permute.xlu0 %919 }
 0x21d   :  { %v5817_v59 = vsel %vm1080_vm2, %v3912_v46, %v8783_v25  ;;  %v8785_v2 = vld [vmem:[#allocation56_spill] sm:$0xff]  ;;  %v3914_v46 = vld [vmem:[%s8234_s0 + $0xc8] sm:$0xff]  ;;  %v8786_v25 = vld [vmem:[#allocation57_spill] sm:$0xff]  ;;  %8788 = vst [vmem:[#allocation50_spill] sm:$0xff] %v5843_v16  ;;  %1983 = vrot.lane.b32.xlu1 %v5822_v62, %s3964_s30 }
 0x21e   :  { %v5831_v29 = vsel %vm1080_vm2, %v3913_v36, %v8785_v2  ;;  %v5838_v57 = vsel %vm1080_vm2, %v3914_v46, %v8786_v25  ;;  %v5849_v2 = vld [vmem:[%s8234_s0 + $0x278] sm:$0xff]  ;;  %v5854_v36 = vld [vmem:[%s8234_s0 + $0x280] sm:$0x3]  ;;  %v8792_v15 = vld [vmem:[#allocation59_spill] sm:$0xff]  ;;  %8795 = vst [vmem:[#allocation53_spill] sm:$0xff] %v5884_v54  ;;  %1981 = vrot.lane.b32.xlu0 %v5843_v16, %s3964_s30  ;;  %v5931_v48 = vsel %vm124_vm0, %v1913_v6, %v1915_v31 }
 0x21f   :  { %8789 = vst [vmem:[#allocation51_spill] sm:$0xff] %v5849_v2  ;;  %8790 = vst [vmem:[#allocation52_spill] sm:$0xff] %v5854_v36  ;;  %v3915_v46 = vld [vmem:[%s8234_s0 + $0xc0] sm:$0xff]  ;;  %v5868_v43 = vsel %vm1080_vm2, %v3916_v3, %v8792_v15  ;;  %v5889_v15 = vld [vmem:[%s8234_s0 + $0x270] sm:$0xff]  ;;  %v5896_v3 = vsel %vm1080_vm2, %v3919_v13, %v8797_v12  ;;  %v1918_v63 = vrot.slane %v5849_v2, 1  ;;  %v5949_v16 = vpop.permute.xlu1 %925 }
 0x220   :  { %v8791_v25 = vld [vmem:[#allocation58_spill] sm:$0xff]  ;;  %8796 = vst [vmem:[#allocation54_spill] sm:$0xff] %v5889_v15  ;;  %v3922_v13 = vld [vmem:[%s8234_s0 + $0x128] sm:$0xff]  ;;  %v8800_v12 = vld [vmem:[#allocation65_spill] sm:$0xff]  ;;  %v1917_v2 = vrot.slane %v5889_v15, 1  ;;  %v5993_v58 = vpop.permute.xlu0 %923 }
 0x221   :  { %v5861_v14 = vsel %vm1080_vm2, %v3915_v46, %v8791_v25  ;;  %v3918_v46 = vld [vmem:[%s8234_s0 + $0xf8] sm:$0xff]  ;;  %v5917_v1 = vsel %vm1080_vm2, %v3922_v13, %v8800_v12  ;;  %8802 = vst [vmem:[#allocation55_spill] sm:$0xff] %v5931_v48  ;;  %v1920_v13 = vrot.slane %v5854_v36, 1  ;;  %v3924_v12 = vld [vmem:[%s8234_s0 + $0x140] sm:$0xff]  ;;  %v8803_v62 = vld [vmem:[#allocation67_spill] sm:$0xff]  ;;  %v5952_v36 = vsel %vm124_vm0, %v1912_v11, %v1913_v6  ;;  %1987 = vrot.lane.b32.xlu1 %v5931_v48, %s3964_s30 }
 0x222   :  { %v8794_v25 = vld [vmem:[#allocation61_spill] sm:$0xff]  ;;  %v5940_v42 = vsel %vm1080_vm2, %v3924_v12, %v8803_v62  ;;  %8805 = vst [vmem:[#allocation56_spill] sm:$0xff] %v5949_v16  ;;  %8806 = vst [vmem:[#allocation57_spill] sm:$0xff] %v5952_v36  ;;  %v5958_v62 = vld [vmem:[%s8234_s0 + $0x290] sm:$0xff]  ;;  %1985 = vrot.lane.b32.xlu0 %v5952_v36, %s3964_s30  ;;  %v6047_v48 = vsel %vm124_vm0, %v1917_v2, %v1918_v63 }
 0x223   :  { %v5882_v5 = vsel %vm1080_vm2, %v3918_v46, %v8794_v25  ;;  %v3920_v46 = vld [vmem:[%s8234_s0 + $0x110] sm:$0xff]  ;;  %v8798_v25 = vld [vmem:[#allocation63_spill] sm:$0xff]  ;;  %8807 = vst [vmem:[#allocation58_spill] sm:$0xff] %v5958_v62  ;;  %v5963_v12 = vld [vmem:[%s8234_s0 + $0x298] sm:$0x3]  ;;  %v6030_v22 = vsel %vm124_vm0, %v1918_v63, %v1920_v13 }
 0x224   :  { %v5903_v54 = vsel %vm1080_vm2, %v3920_v46, %v8798_v25  ;;  %v3923_v46 = vld [vmem:[%s8234_s0 + $0x120] sm:$0xff]  ;;  %8808 = vst [vmem:[#allocation59_spill] sm:$0xff] %v5963_v12  ;;  %v3927_v6 = vld [vmem:[%s8234_s0 + $0x150] sm:$0xff]  ;;  %8813 = vst [vmem:[#allocation60_spill] sm:$0xff] %v5993_v58 }
 0x225   :  { %v8801_v25 = vld [vmem:[#allocation66_spill] sm:$0xff]  ;;  %8820 = vst [vmem:[#allocation62_spill] sm:$0xff] %v6030_v22  ;;  %8824 = vst [vmem:[#allocation64_spill] sm:$0xff] %v6047_v48  ;;  %v6053_v36 = vld [vmem:[%s8234_s0 + $0x2a8] sm:$0xff]  ;;  %1991 = vrot.lane.b32.xlu1 %v6030_v22, %s3964_s30 }
 0x226   :  { %v5926_v39 = vsel %vm1080_vm2, %v3923_v46, %v8801_v25  ;;  %v3925_v46 = vld [vmem:[%s8234_s0 + $0x138] sm:$0xff]  ;;  %v8804_v25 = vld [vmem:[#allocation68_spill] sm:$0xff]  ;;  %v8810_v15 = vld [vmem:[#allocation70_spill] sm:$0xff]  ;;  %8825 = vst [vmem:[#allocation65_spill] sm:$0xff] %v6053_v36  ;;  %1989 = vrot.lane.b32.xlu0 %v6047_v48, %s3964_s30 }
 0x227   :  { %v5947_v31 = vsel %vm1080_vm2, %v3925_v46, %v8804_v25  ;;  %v3926_v46 = vld [vmem:[%s8234_s0 + $0x158] sm:$0xff]  ;;  %v5977_v16 = vsel %vm1080_vm2, %v3927_v6, %v8810_v15  ;;  %v5998_v15 = vld [vmem:[%s8234_s0 + $0x288] sm:$0xff]  ;;  %v8829_v63 = vld [vmem:[#allocation82_spill] sm:$0xff] }
 0x228   :  { %v8809_v25 = vld [vmem:[#allocation69_spill] sm:$0xff]  ;;  %8814 = vst [vmem:[#allocation61_spill] sm:$0xff] %v5998_v15  ;;  %v1922_v13 = vrot.slane %v5998_v15, 1  ;;  %v6073_v15 = vsel %vm1113_vm3, %v5773_v24, %v8829_v63  ;;  %v6140_v48 = vld [vmem:[%s8234_s0 + $0x2c0] sm:$0xff] }
 0x229   :  { %v5970_v11 = vsel %vm1080_vm2, %v3926_v46, %v8809_v25  ;;  %v3929_v46 = vld [vmem:[%s8234_s0 + $0x168] sm:$0xff]  ;;  %v8812_v25 = vld [vmem:[#allocation72_spill] sm:$0xff]  ;;  %v8815_v6 = vld [vmem:[#allocation73_spill] sm:$0xff] }
 0x22a   :  { %v5991_v32 = vsel %vm1080_vm2, %v3929_v46, %v8812_v25  ;;  %v6003_v18 = vsel %vm1113_vm3, %v5708_v37, %v8815_v6  ;;  %v6013_v46 = vsel %vm1113_vm3, %v5699_v34, %v8817_v47  ;;  %v8818_v25 = vld [vmem:[#allocation76_spill] sm:$0xff]  ;;  %v8819_v37 = vld [vmem:[#allocation77_spill] sm:$0xff]  ;;  %v1923_v34 = vrot.slane %v5958_v62, 1  ;;  %v6080_v62 = vpop.permute.xlu0 %927  ;;  %8843 = vst [vmem:[#allocation72_spill] sm:$0xff] %v6140_v48 }
 0x22b   :  { %v6018_v58 = vsel %vm1113_vm3, %v5685_v33, %v8818_v25  ;;  %v6025_v6 = vsel %vm1113_vm3, %v5722_v0, %v8819_v37  ;;  %v1925_v47 = vrot.slane %v5963_v12, 1  ;;  %v8821_v33 = vld [vmem:[#allocation78_spill] sm:$0xff]  ;;  %v8822_v25 = vld [vmem:[#allocation79_spill] sm:$0xff]  ;;  %v6044_v37 = vpop.permute.xlu1 %929  ;;  %8831 = vst [vmem:[#allocation67_spill] sm:$0xff] %v6080_v62  ;;  %v8835_v63 = vld [vmem:[#allocation85_spill] sm:$0xff] }
 0x22c   :  { %v6037_v9 = vsel %vm1113_vm3, %v5729_v28, %v8821_v33  ;;  %v6042_v0 = vsel %vm1113_vm3, %v5752_v52, %v8822_v25  ;;  %8823 = vst [vmem:[#allocation63_spill] sm:$0xff] %v6044_v37  ;;  %v6058_v28 = vld [vmem:[%s8234_s0 + $0x2b0] sm:$0x3]  ;;  %v8828_v25 = vld [vmem:[#allocation81_spill] sm:$0xff]  ;;  %v8830_v37 = vld [vmem:[#allocation83_spill] sm:$0xff]  ;;  %v6134_v22 = vsel %vm124_vm0, %v1922_v13, %v1923_v34 }
 0x22d   :  { %8826 = vst [vmem:[#allocation66_spill] sm:$0xff] %v6058_v28  ;;  %v8827_v33 = vld [vmem:[#allocation80_spill] sm:$0xff]  ;;  %v6068_v2 = vsel %vm1113_vm3, %v5766_v49, %v8828_v25  ;;  %v6078_v12 = vsel %vm1113_vm3, %v5787_v27, %v8830_v37  ;;  %v8834_v25 = vld [vmem:[#allocation2_spill] sm:$0xff]  ;;  %v6100_v27 = vsel %vm1113_vm3, %v5808_v53, %v8835_v63  ;;  %v1928_v53 = vrot.slane %v6053_v36, 1  ;;  %8842 = vst [vmem:[#allocation71_spill] sm:$0xff] %v6134_v22 }
 0x22e   :  { %v6063_v52 = vsel %vm1113_vm3, %v5759_v17, %v8827_v33  ;;  %v6085_v17 = vld [vmem:[%s8234_s0 + $0x2a0] sm:$0xff]  ;;  %v8833_v33 = vld [vmem:[#allocation84_spill] sm:$0xff]  ;;  %v6095_v24 = vsel %vm1113_vm3, %v5801_v44, %v8834_v25  ;;  %v6117_v44 = vsel %vm124_vm0, %v1923_v34, %v1925_v47  ;;  %v1930_v25 = vrot.slane %v6058_v28, 1  ;;  %v6167_v36 = vpop.permute.xlu0 %931  ;;  %1993 = vrot.lane.b32.xlu0 %v6134_v22, %s3964_s30  ;;  %v6227_v22 = vld [vmem:[%s8234_s0 + $0x2d8] sm:$0xff] }
 0x22f   :  { %8832 = vst [vmem:[#allocation68_spill] sm:$0xff] %v6085_v17  ;;  %v6090_v49 = vsel %vm1113_vm3, %v5794_v4, %v8833_v33  ;;  %v8836_v37 = vld [vmem:[#allocation86_spill] sm:$0xff]  ;;  %v8837_v4 = vld [vmem:[#allocation87_spill] sm:$0xff]  ;;  %8838 = vst [vmem:[#allocation69_spill] sm:$0xff] %v6117_v44  ;;  %v1927_v47 = vrot.slane %v6085_v17, 1  ;;  %1995 = vrot.lane.b32.xlu1 %v6117_v44, %s3964_s30 }
 0x230   :  { %v6105_v62 = vsel %vm1113_vm3, %v5817_v59, %v8836_v37  ;;  %v6112_v33 = vsel %vm1113_vm3, %v5831_v29, %v8837_v4  ;;  %v8839_v59 = vld [vmem:[#allocation88_spill] sm:$0xff]  ;;  %v8840_v37 = vld [vmem:[#allocation89_spill] sm:$0xff]  ;;  %v6131_v4 = vpop.permute.xlu1 %933  ;;  %8849 = vst [vmem:[#allocation74_spill] sm:$0xff] %v6167_v36 }
 0x231   :  { %v6124_v63 = vsel %vm1113_vm3, %v5838_v57, %v8839_v59  ;;  %v6129_v29 = vsel %vm1113_vm3, %v5861_v14, %v8840_v37  ;;  %8841 = vst [vmem:[#allocation70_spill] sm:$0xff] %v6131_v4  ;;  %v6145_v57 = vld [vmem:[%s8234_s0 + $0x2c8] sm:$0x3]  ;;  %v8845_v59 = vld [vmem:[#allocation90_spill] sm:$0xff]  ;;  %v8847_v13 = vld [vmem:[#allocation92_spill] sm:$0xff]  ;;  %v6221_v44 = vsel %vm124_vm0, %v1927_v47, %v1928_v53 }
 0x232   :  { %8844 = vst [vmem:[#allocation73_spill] sm:$0xff] %v6145_v57  ;;  %v6150_v14 = vsel %vm1113_vm3, %v5868_v43, %v8845_v59  ;;  %v8846_v37 = vld [vmem:[#allocation91_spill] sm:$0xff]  ;;  %v6160_v17 = vsel %vm1113_vm3, %v5882_v5, %v8847_v13  ;;  %v8848_v4 = vld [vmem:[#allocation93_spill] sm:$0xff]  ;;  %8860 = vst [vmem:[#allocation78_spill] sm:$0xff] %v6221_v44  ;;  %1997 = vrot.lane.b32.xlu0 %v6221_v44, %s3964_s30 }
 0x233   :  { %v6155_v34 = vsel %vm1113_vm3, %v5875_v55, %v8846_v37  ;;  %v6165_v28 = vsel %vm1113_vm3, %v5896_v3, %v8848_v4  ;;  %v6172_v43 = vld [vmem:[%s8234_s0 + $0x2b8] sm:$0xff]  ;;  %v8851_v55 = vld [vmem:[#allocation94_spill] sm:$0xff]  ;;  %v8852_v5 = vld [vmem:[#allocation95_spill] sm:$0xff] }
 0x234   :  { %8850 = vst [vmem:[#allocation75_spill] sm:$0xff] %v6172_v43  ;;  %v6177_v59 = vsel %vm1113_vm3, %v5903_v54, %v8851_v55  ;;  %v6182_v37 = vsel %vm1113_vm3, %v5910_v30, %v8852_v5  ;;  %v8853_v3 = vld [vmem:[#allocation96_spill] sm:$0xff]  ;;  %v8854_v13 = vld [vmem:[#allocation97_spill] sm:$0xff]  ;;  %v8855_v54 = vld [vmem:[#allocation98_spill] sm:$0xff]  ;;  %v6204_v30 = vsel %vm124_vm0, %v1928_v53, %v1930_v25  ;;  %v1935_v5 = vrot.slane %v6145_v57, 1 }
 0x235   :  { %v6187_v4 = vsel %vm1113_vm3, %v5917_v1, %v8853_v3  ;;  %v6192_v36 = vsel %vm1113_vm3, %v5926_v39, %v8854_v13  ;;  %v6199_v55 = vsel %vm1113_vm3, %v5940_v42, %v8855_v54  ;;  %8856 = vst [vmem:[#allocation76_spill] sm:$0xff] %v6204_v30  ;;  %v1933_v1 = vrot.slane %v6140_v48, 1  ;;  %v8857_v39 = vld [vmem:[#allocation99_spill] sm:$0xff]  ;;  %v8858_v13 = vld [vmem:[#allocation100_spill] sm:$0xff]  ;;  %v6218_v54 = vpop.permute.xlu1 %937  ;;  %v8869_v48 = vld [vmem:[#allocation105_spill] sm:$0xff]  ;;  %1999 = vrot.lane.b32.xlu1 %v6204_v30, %s3964_s30 }
 0x236   :  { %v6211_v3 = vsel %vm1113_vm3, %v5947_v31, %v8857_v39  ;;  %v6216_v42 = vsel %vm1113_vm3, %v5970_v11, %v8858_v13  ;;  %8859 = vst [vmem:[#allocation77_spill] sm:$0xff] %v6218_v54  ;;  %v1932_v25 = vrot.slane %v6172_v43, 1  ;;  %v6232_v31 = vld [vmem:[%s8234_s0 + $0x2e0] sm:$0x3]  ;;  %v8861_v39 = vld [vmem:[#allocation101_spill] sm:$0xff]  ;;  %v8864_v47 = vld [vmem:[#allocation103_spill] sm:$0xff]  ;;  %v6249_v54 = vpop.permute.xlu0 %935 }
 0x237   :  { %v6237_v11 = vsel %vm1113_vm3, %v5977_v16, %v8861_v39  ;;  %v8862_v13 = vld [vmem:[#allocation102_spill] sm:$0xff]  ;;  %v6247_v43 = vsel %vm1113_vm3, %v5991_v32, %v8864_v47  ;;  %8866 = vst [vmem:[#allocation81_spill] sm:$0xff] %v6249_v54  ;;  %v6254_v57 = vld [vmem:[%s8234_s0 + $0x2d0] sm:$0xff]  ;;  %v8871_v47 = vld [vmem:[#allocation107_spill] sm:$0xff] }
 0x238   :  { %v6242_v53 = vsel %vm1113_vm3, %v5984_v21, %v8862_v13  ;;  %8865 = vst [vmem:[#allocation80_spill] sm:$0xff] %v6247_v43  ;;  %8867 = vst [vmem:[#allocation82_spill] sm:$0xff] %v6254_v57  ;;  %v8868_v16 = vld [vmem:[#allocation104_spill] sm:$0xff]  ;;  %v1147_v21 = vsel %vm1146_vm4, %v6008_v23, %v8869_v48  ;;  %v8870_v13 = vld [vmem:[#allocation106_spill] sm:$0xff]  ;;  %v1149_v43 = vsel %vm1146_vm4, %v6018_v58, %v8871_v47  ;;  %v1938_v48 = vrot.slane %v6227_v22, 1 }
 0x239   :  { %8863 = vst [vmem:[#allocation79_spill] sm:$0xff] %v6242_v53  ;;  %v1148_v39 = vsel %vm1146_vm4, %v6003_v18, %v8868_v16  ;;  %v1150_v32 = vsel %vm1146_vm4, %v6013_v46, %v8870_v13  ;;  %v8872_v54 = vld [vmem:[#allocation25_spill] sm:$0xff]  ;;  %v6278_v23 = vsel %vm124_vm0, %v1933_v1, %v1935_v5  ;;  %v1940_v18 = vrot.slane %v6232_v31, 1  ;;  %v8874_v46 = vld [vmem:[#allocation108_spill] sm:$0xff] }
 0x23a   :  { %v6273_v53 = vsel %vm1146_vm4, %v6025_v6, %v8872_v54  ;;  %8873 = vst [vmem:[#allocation83_spill] sm:$0xff] %v6278_v23  ;;  %v6285_v58 = vsel %vm1146_vm4, %v6037_v9, %v8874_v46  ;;  %v8875_v16 = vld [vmem:[#allocation109_spill] sm:$0xff]  ;;  %v6292_v54 = vpop.permute.xlu1 %941  ;;  %v6295_v13 = vsel %vm124_vm0, %v1932_v25, %v1933_v1  ;;  %v1937_v5 = vrot.slane %v6254_v57, 1  ;;  %v6301_v47 = vld [vmem:[%s8234_s0 + $0x2f0] sm:$0xff]  ;;  %v8880_v46 = vld [vmem:[#allocation110_spill] sm:$0xff]  ;;  %2003 = vrot.lane.b32.xlu1 %v6278_v23, %s3964_s30 }
 0x23b   :  { %v6290_v6 = vsel %vm1146_vm4, %v6042_v0, %v8875_v16  ;;  %8876 = vst [vmem:[#allocation84_spill] sm:$0xff] %v6292_v54  ;;  %8877 = vst [vmem:[#allocation2_spill] sm:$0xff] %v6295_v13  ;;  %v6306_v9 = vld [vmem:[%s8234_s0 + $0x2f8] sm:$0x3]  ;;  %v6311_v0 = vsel %vm1146_vm4, %v6063_v52, %v8880_v46  ;;  %v8881_v16 = vld [vmem:[#allocation111_spill] sm:$0xff]  ;;  %v6328_v54 = vpop.permute.xlu0 %939  ;;  %2001 = vrot.lane.b32.xlu0 %v6295_v13, %s3964_s30 }
 0x23c   :  { %8878 = vst [vmem:[#allocation85_spill] sm:$0xff] %v6301_v47  ;;  %8879 = vst [vmem:[#allocation86_spill] sm:$0xff] %v6306_v9  ;;  %v6316_v1 = vsel %vm1146_vm4, %v6068_v2, %v8881_v16  ;;  %v8882_v25 = vld [vmem:[#allocation112_spill] sm:$0xff]  ;;  %v8883_v44 = vld [vmem:[#allocation113_spill] sm:$0xff]  ;;  %v6374_v23 = vsel %vm124_vm0, %v1937_v5, %v1938_v48 }
 0x23d   :  { %v6321_v30 = vsel %vm1146_vm4, %v6073_v15, %v8882_v25  ;;  %v6326_v57 = vsel %vm1146_vm4, %v6078_v12, %v8883_v44  ;;  %8884 = vst [vmem:[#allocation87_spill] sm:$0xff] %v6328_v54  ;;  %v6333_v52 = vld [vmem:[%s8234_s0 + $0x2e8] sm:$0xff]  ;;  %v8886_v46 = vld [vmem:[#allocation114_spill] sm:$0xff]  ;;  %8894 = vst [vmem:[#allocation91_spill] sm:$0xff] %v6374_v23 }
 0x23e   :  { %8885 = vst [vmem:[#allocation88_spill] sm:$0xff] %v6333_v52  ;;  %v6338_v2 = vsel %vm1146_vm4, %v6090_v49, %v8886_v46  ;;  %v8887_v16 = vld [vmem:[#allocation26_spill] sm:$0xff]  ;;  %v8888_v25 = vld [vmem:[#allocation115_spill] sm:$0xff]  ;;  %v6360_v49 = vsel %vm124_vm0, %v1938_v48, %v1940_v18  ;;  %v8891_v46 = vld [vmem:[#allocation116_spill] sm:$0xff]  ;;  %v1942_v18 = vrot.slane %v6333_v52, 1 }
 0x23f   :  { %v6343_v15 = vsel %vm1146_vm4, %v6095_v24, %v8887_v16  ;;  %v6348_v12 = vsel %vm1146_vm4, %v6100_v27, %v8888_v25  ;;  %v8889_v44 = vld [vmem:[#allocation27_spill] sm:$0xff]  ;;  %8890 = vst [vmem:[#allocation89_spill] sm:$0xff] %v6360_v49  ;;  %v1943_v24 = vrot.slane %v6301_v47, 1  ;;  %v1945_v27 = vrot.slane %v6306_v9, 1  ;;  %v6396_v52 = vpop.permute.xlu0 %943  ;;  %v8898_v9 = vld [vmem:[#allocation118_spill] sm:$0xff]  ;;  %2007 = vrot.lane.b32.xlu1 %v6360_v49, %s3964_s30  ;;  %2005 = vrot.lane.b32.xlu0 %v6374_v23, %s3964_s30  ;;  %v6449_v49 = vld [vmem:[%s8234_s0 + $0x318] sm:$0xff] }
 0x240   :  { %v6353_v54 = vsel %vm1146_vm4, %v6105_v62, %v8889_v44  ;;  %v6367_v16 = vsel %vm1146_vm4, %v6112_v33, %v8891_v46  ;;  %v8892_v62 = vld [vmem:[#allocation40_spill] sm:$0xff]  ;;  %v6371_v44 = vpop.permute.xlu1 %945  ;;  %v6380_v13 = vld [vmem:[%s8234_s0 + $0x308] sm:$0xff]  ;;  %v8895_v46 = vld [vmem:[#allocation117_spill] sm:$0xff]  ;;  %v6406_v47 = vsel %vm1146_vm4, %v6129_v29, %v8898_v9 }
 0x241   :  { %v1181_v25 = vsel %vm1179_vm5, %v1148_v39, %v8892_v62  ;;  %8893 = vst [vmem:[#allocation90_spill] sm:$0xff] %v6371_v44  ;;  %v6385_v33 = vld [vmem:[%s8234_s0 + $0x310] sm:$0x3]  ;;  %v6390_v39 = vsel %vm1146_vm4, %v6124_v63, %v8895_v46  ;;  %v6401_v44 = vld [vmem:[%s8234_s0 + $0x300] sm:$0xff]  ;;  %v1948_v29 = vrot.slane %v6380_v13, 1  ;;  %v6426_v46 = vsel %vm124_vm0, %v1942_v18, %v1943_v24  ;;  %v8903_v23 = vld [vmem:[#allocation119_spill] sm:$0xff] }
 0x242   :  { %v8896_v62 = vld [vmem:[#allocation132_spill] sm:$0xff]  ;;  %v1214_v5 = vsel %vm1212_vm6, %v1181_v25, %v5169_v26  ;;  %8897 = vst [vmem:[#allocation92_spill] sm:$0xff] %v6401_v44  ;;  %v6419_v25 = vsel %vm124_vm0, %v1943_v24, %v1945_v27  ;;  %8900 = vst [vmem:[#allocation94_spill] sm:$0xff] %v6426_v46  ;;  %v6437_v27 = vld [vmem:[%s8234_s0 + $0x328] sm:$0x3] }
 0x243   :  { %v1180_v48 = vsel %vm1179_vm5, %v1147_v21, %v8896_v62  ;;  %v1247_v21 = vsel %vm1245_vm7, %v1214_v5, %v5331_v40  ;;  %8899 = vst [vmem:[#allocation93_spill] sm:$0xff] %v6419_v25  ;;  %v6432_v62 = vld [vmem:[%s8234_s0 + $0x320] sm:$0xff]  ;;  %2011 = vrot.lane.b32.xlu1 %v6419_v25, %s3964_s30  ;;  %2009 = vrot.lane.b32.xlu0 %v6426_v46, %s3964_s30  ;;  %v9125_v46 = vld [vmem:[#allocation216_spill] sm:$0xff] }
 0x244   :  { %v1213_v63 = vsel %vm1212_vm6, %v1180_v48, %v5171_v45  ;;  %v1950_v45 = vrot.slane %v6385_v33, 1  ;;  %v1280_v40 = vsel %vm1278_vm8, %v1247_v21, %v5470_v41  ;;  %v987_v9 = vpop.permute.xlu1 %986  ;;  %v8901_v48 = vld [vmem:[#allocation133_spill] sm:$0xff]  ;;  %v8902_v5 = vld [vmem:[#allocation134_spill] sm:$0xff]  ;;  %v985_v21 = vpop.permute.xlu0 %984 }
 0x245   :  { %v1246_v26 = vsel %vm1245_vm7, %v1213_v63, %v5338_v38  ;;  %v1947_v38 = vrot.slane %v6401_v44, 1  ;;  %v1183_v41 = vsel %vm1179_vm5, %v1150_v32, %v8901_v48  ;;  %v1182_v24 = vsel %vm1179_vm5, %v1149_v43, %v8902_v5 }
 0x246   :  { %v1279_v18 = vsel %vm1278_vm8, %v1246_v26, %v5472_v10  ;;  %v1313_v63 = vsel %vm1311_vm9, %v1280_v40, %v987_v9  ;;  %v6454_v44 = vsel %vm1146_vm4, %v6150_v14, %v8903_v23  ;;  %v1216_v32 = vsel %vm1212_vm6, %v1183_v41, %v5177_v20 }
 0x247   :  { %v1215_v43 = vsel %vm1212_vm6, %v1182_v24, %v5179_v8  ;;  %v1312_v10 = vsel %vm1311_vm9, %v1279_v18, %v985_v21  ;;  %v1249_v26 = vsel %vm1245_vm7, %v1216_v32, %v5350_v56  ;;  %v6469_v14 = vsel %vm124_vm0, %v1948_v29, %v1950_v45  ;;  %v8906_v24 = vld [vmem:[#allocation120_spill] sm:$0xff]  ;;  %v8910_v18 = vld [vmem:[#allocation183_spill] sm:$0xff]  ;;  %v8912_v32 = vld [vmem:[#allocation185_spill] sm:$0xff] }
 0x248   :  { %3744 = vmatprep.mubr.msk.f32.mxu0 %vm1344_vm10, %v1312_v10  ;;  %8904 = vst [vmem:[#allocation95_spill] sm:$0xff] %v6469_v14  ;;  %v1953_v20 = vrot.slane %v6432_v62, 1  ;;  %v1955_v8 = vrot.slane %v6437_v27, 1  ;;  %v1248_v23 = vsel %vm1245_vm7, %v1215_v43, %v5352_v19  ;;  %v1282_v40 = vsel %vm1278_vm8, %v1249_v26, %v5481_v35  ;;  %v991_v56 = vpop.permute.xlu1 %990  ;;  %v989_v5 = vpop.permute.xlu0 %988  ;;  %2015 = vrot.lane.b32.xlu1 %v6469_v14, %s3964_s30  ;;  %v9100_v14 = vld [vmem:[#allocation197_spill] sm:$0xff] }
 0x249   :  { %3745 = vmatmul.mubr.msk.f32.vlgmr.msra.gmra.mrb[0].mxu0 %vm1344_vm10, %v1313_v63  ;;  %v6479_v9 = vsel %vm124_vm0, %v1947_v38, %v1948_v29  ;;  %v1952_v48 = vrot.slane %v6449_v49, 1  ;;  %v1185_v45 = vsel %vm1179_vm5, %v6273_v53, %v5054_v7  ;;  %v1184_v41 = vsel %vm1179_vm5, %v6285_v58, %v5059_v51  ;;  %v8907_v51 = vld [vmem:[#allocation23_spill] sm:$0xff]  ;;  %v8911_v63 = vld [vmem:[#allocation24_spill] sm:$0xff] }
 0x24a   :  { %8905 = vst [vmem:[#allocation96_spill] sm:$0xff] %v6479_v9  ;;  %v1281_v19 = vsel %vm1278_vm8, %v1248_v23, %v5493_v60  ;;  %v1315_v35 = vsel %vm1311_vm9, %v1282_v40, %v991_v56  ;;  %v6494_v29 = vsel %vm1146_vm4, %v6155_v34, %v8906_v24  ;;  %v1218_v38 = vsel %vm1212_vm6, %v1185_v45, %v5190_v50  ;;  %v8909_v50 = vld [vmem:[#allocation43_spill] sm:$0xff]  ;;  %v8914_v23 = vld [vmem:[#allocation184_spill] sm:$0xff] }
 0x24b   :  { %v1217_v7 = vsel %vm1212_vm6, %v1184_v41, %v5197_v61  ;;  %v1314_v53 = vsel %vm1311_vm9, %v1281_v19, %v989_v5  ;;  %v1251_v60 = vsel %vm1245_vm7, %v1218_v38, %v8907_v51  ;;  %2013 = vrot.lane.b32.xlu0 %v6479_v9, %s3964_s30  ;;  %v6509_v34 = vsel %vm124_vm0, %v1953_v20, %v1955_v8  ;;  %v8915_v8 = vld [vmem:[#allocation135_spill] sm:$0xff]  ;;  %v8916_v45 = vld [vmem:[#allocation136_spill] sm:$0xff]  ;;  %v8918_v38 = vld [vmem:[#allocation121_spill] sm:$0xff] }
 0x24c   :  { %3747 = vmatprep.mubr.msk.f32.mxu0 %vm1344_vm10, %v1314_v53  ;;  %8908 = vst [vmem:[#allocation97_spill] sm:$0xff] %v6509_v34  ;;  %v2054_v58 = vrot.slane %v8909_v50, 2  ;;  %v2056_v61 = vrot.slane %v8910_v18, 2  ;;  %v1250_v21 = vsel %vm1245_vm7, %v1217_v7, %v8911_v63  ;;  %v1284_v43 = vsel %vm1278_vm8, %v1251_v60, %v8912_v32  ;;  %v995_v10 = vpop.permute.xlu1 %994  ;;  %v8917_v19 = vld [vmem:[#allocation188_spill] sm:$0xff]  ;;  %v8920_v53 = vld [vmem:[#allocation162_spill] sm:$0xff]  ;;  %2019 = vrot.lane.b32.xlu1 %v6509_v34, %s3964_s30  ;;  %v8923_v63 = vld [vmem:[#allocation187_spill] sm:$0xff] }
 0x24d   :  { %3748 = vmatmul.mubr.msk.f32.gmra.mrb[2].mxu0 %vm1344_vm10, %v1315_v35  ;;  %v6519_v26 = vsel %vm124_vm0, %v1952_v48, %v1953_v20  ;;  %v2053_v40 = vrot.slane %v8914_v23, 2  ;;  %v1187_v56 = vsel %vm1179_vm5, %v6290_v6, %v8915_v8  ;;  %v1186_v41 = vsel %vm1179_vm5, %v6311_v0, %v8916_v45  ;;  %v993_v35 = vpop.permute.xlu0 %992  ;;  %v8919_v48 = vld [vmem:[#allocation161_spill] sm:$0xff]  ;;  %v8921_v0 = vld [vmem:[#allocation167_spill] sm:$0xff]  ;;  %v8922_v50 = vld [vmem:[#allocation186_spill] sm:$0xff] }
 0x24e   :  { %8913 = vst [vmem:[#allocation98_spill] sm:$0xff] %v6519_v26  ;;  %v1283_v5 = vsel %vm1278_vm8, %v1250_v21, %v8917_v19  ;;  %v1317_v24 = vsel %vm1311_vm9, %v1284_v43, %v995_v10  ;;  %v6534_v20 = vsel %vm1146_vm4, %v6160_v17, %v8918_v38  ;;  %v1220_v7 = vsel %vm1212_vm6, %v1187_v56, %v8919_v48  ;;  %v8924_v32 = vld [vmem:[#allocation168_spill] sm:$0xff]  ;;  %v8925_v10 = vld [vmem:[#allocation190_spill] sm:$0xff]  ;;  %v8926_v45 = vld [vmem:[#allocation189_spill] sm:$0xff] }
 0x24f   :  { %v1219_v6 = vsel %vm1212_vm6, %v1186_v41, %v8920_v53  ;;  %v1316_v51 = vsel %vm1311_vm9, %v1283_v5, %v993_v35  ;;  %v1253_v60 = vsel %vm1245_vm7, %v1220_v7, %v8921_v0  ;;  %2017 = vrot.lane.b32.xlu0 %v6519_v26, %s3964_s30  ;;  %v2057_v17 = vsel %vm301_vm1, %v2054_v58, %v2056_v61  ;;  %v8927_v19 = vld [vmem:[#allocation137_spill] sm:$0xff]  ;;  %v8928_v5 = vld [vmem:[#allocation138_spill] sm:$0xff] }
 0x250   :  { %3750 = vmatprep.mubr.msk.f32.mxu0 %vm1344_vm10, %v1316_v51  ;;  %v2059_v18 = vrot.slane %v8922_v50, 2  ;;  %v2061_v21 = vrot.slane %v8923_v63, 2  ;;  %v1252_v43 = vsel %vm1245_vm7, %v1219_v6, %v8924_v32  ;;  %v1286_v23 = vsel %vm1278_vm8, %v1253_v60, %v8925_v10  ;;  %v999_v8 = vpop.permute.xlu1 %998  ;;  %v8929_v38 = vld [vmem:[#allocation193_spill] sm:$0xff]  ;;  %v8932_v51 = vld [vmem:[#allocation164_spill] sm:$0xff]  ;;  %2135 = vrot.lane.b32.xlu1 %v2057_v17, %s3965_s4  ;;  %v8934_v50 = vld [vmem:[#allocation191_spill] sm:$0xff] }
 0x251   :  { %3751 = vmatmul.mubr.msk.f32.gmra.mrb[4].mxu0 %vm1344_vm10, %v1317_v24  ;;  %v2055_v56 = vsel %vm301_vm1, %v2053_v40, %v2054_v58  ;;  %v2058_v41 = vrot.slane %v8926_v45, 2  ;;  %v1189_v61 = vsel %vm1179_vm5, %v6316_v1, %v8927_v19  ;;  %v1188_v35 = vsel %vm1179_vm5, %v6321_v30, %v8928_v5  ;;  %v997_v53 = vpop.permute.xlu0 %996  ;;  %v8930_v24 = vld [vmem:[#allocation122_spill] sm:$0xff]  ;;  %v8931_v40 = vld [vmem:[#allocation163_spill] sm:$0xff]  ;;  %v8933_v30 = vld [vmem:[#allocation169_spill] sm:$0xff] }
 0x252   :  { %v1285_v48 = vsel %vm1278_vm8, %v1252_v43, %v8929_v38  ;;  %v1319_v7 = vsel %vm1311_vm9, %v1286_v23, %v999_v8  ;;  %v6570_v58 = vsel %vm1146_vm4, %v6165_v28, %v8930_v24  ;;  %v1222_v6 = vsel %vm1212_vm6, %v1189_v61, %v8931_v40  ;;  %v8935_v32 = vld [vmem:[#allocation192_spill] sm:$0xff]  ;;  %v8936_v10 = vld [vmem:[#allocation170_spill] sm:$0xff]  ;;  %v8942_v40 = vld [vmem:[#allocation123_spill] sm:$0xff] }
 0x253   :  { %v1221_v1 = vsel %vm1212_vm6, %v1188_v35, %v8932_v51  ;;  %v1318_v0 = vsel %vm1311_vm9, %v1285_v48, %v997_v53  ;;  %v1255_v60 = vsel %vm1245_vm7, %v1222_v6, %v8933_v30  ;;  %2133 = vrot.lane.b32.xlu0 %v2055_v56, %s3965_s4  ;;  %v6583_v28 = vsel %vm301_vm1, %v2059_v18, %v2061_v21  ;;  %v8937_v8 = vld [vmem:[#allocation196_spill] sm:$0xff]  ;;  %v8938_v19 = vld [vmem:[#allocation194_spill] sm:$0xff]  ;;  %v8939_v21 = vld [vmem:[#allocation139_spill] sm:$0xff] }
 0x254   :  { %3753 = vmatprep.mubr.msk.f32.mxu0 %vm1344_vm10, %v1318_v0  ;;  %v2064_v63 = vrot.slane %v8934_v50, 2  ;;  %v2066_v43 = vrot.slane %v8935_v32, 2  ;;  %v1254_v23 = vsel %vm1245_vm7, %v1221_v1, %v8936_v10  ;;  %v1288_v17 = vsel %vm1278_vm8, %v1255_v60, %v8937_v8  ;;  %v1003_v45 = vpop.permute.xlu1 %1002  ;;  %v8940_v35 = vld [vmem:[#allocation140_spill] sm:$0xff]  ;;  %v8944_v51 = vld [vmem:[#allocation166_spill] sm:$0xff]  ;;  %2139 = vrot.lane.b32.xlu1 %v6583_v28, %s3965_s4  ;;  %v8947_v50 = vld [vmem:[#allocation199_spill] sm:$0xff] }
 0x255   :  { %3754 = vmatmul.mubr.msk.f32.gmra.mrb[6].mxu0 %vm1344_vm10, %v1319_v7  ;;  %v6593_v56 = vsel %vm301_vm1, %v2058_v41, %v2059_v18  ;;  %v2063_v61 = vrot.slane %v8938_v19, 2  ;;  %v1191_v5 = vsel %vm1179_vm5, %v6326_v57, %v8939_v21  ;;  %v1190_v38 = vsel %vm1179_vm5, %v6338_v2, %v8940_v35  ;;  %v8941_v48 = vld [vmem:[#allocation200_spill] sm:$0xff]  ;;  %v1001_v7 = vpop.permute.xlu0 %1000  ;;  %v8943_v41 = vld [vmem:[#allocation165_spill] sm:$0xff]  ;;  %v8945_v2 = vld [vmem:[#allocation171_spill] sm:$0xff] }
 0x256   :  { %v1287_v53 = vsel %vm1278_vm8, %v1254_v23, %v8941_v48  ;;  %v1321_v24 = vsel %vm1311_vm9, %v1288_v17, %v1003_v45  ;;  %v6608_v18 = vsel %vm1146_vm4, %v6177_v59, %v8942_v40  ;;  %v1224_v6 = vsel %vm1212_vm6, %v1191_v5, %v8943_v41  ;;  %v8946_v30 = vld [vmem:[#allocation198_spill] sm:$0xff]  ;;  %v8948_v10 = vld [vmem:[#allocation172_spill] sm:$0xff]  ;;  %v8949_v8 = vld [vmem:[#allocation203_spill] sm:$0xff] }
 0x257   :  { %v1223_v57 = vsel %vm1212_vm6, %v1190_v38, %v8944_v51  ;;  %v1320_v1 = vsel %vm1311_vm9, %v1287_v53, %v1001_v7  ;;  %v1257_v0 = vsel %vm1245_vm7, %v1224_v6, %v8945_v2  ;;  %2137 = vrot.lane.b32.xlu0 %v6593_v56, %s3965_s4  ;;  %v6623_v59 = vsel %vm301_vm1, %v2064_v63, %v2066_v43  ;;  %v8950_v21 = vld [vmem:[#allocation201_spill] sm:$0xff]  ;;  %v8952_v38 = vld [vmem:[#allocation142_spill] sm:$0xff]  ;;  %v8953_v53 = vld [vmem:[#allocation207_spill] sm:$0xff] }
 0x258   :  { %3756 = vmatprep.mubr.msk.f32.mxu0 %vm1344_vm10, %v1320_v1  ;;  %v2069_v60 = vrot.slane %v8946_v30, 2  ;;  %v2071_v32 = vrot.slane %v8947_v50, 2  ;;  %v1256_v23 = vsel %vm1245_vm7, %v1223_v57, %v8948_v10  ;;  %v1290_v17 = vsel %vm1278_vm8, %v1257_v0, %v8949_v8  ;;  %v1007_v45 = vpop.permute.xlu1 %1006  ;;  %v8951_v43 = vld [vmem:[#allocation141_spill] sm:$0xff]  ;;  %v8954_v41 = vld [vmem:[#allocation124_spill] sm:$0xff]  ;;  %2143 = vrot.lane.b32.xlu1 %v6623_v59, %s3965_s4  ;;  %v8959_v30 = vld [vmem:[#allocation206_spill] sm:$0xff] }
 0x259   :  { %3757 = vmatmul.mubr.msk.f32.gmra.mrb[8].mxu0 %vm1344_vm10, %v1321_v24  ;;  %v6633_v19 = vsel %vm301_vm1, %v2063_v61, %v2064_v63  ;;  %v2068_v5 = vrot.slane %v8950_v21, 2  ;;  %v1193_v35 = vsel %vm1179_vm5, %v6343_v15, %v8951_v43  ;;  %v1192_v48 = vsel %vm1179_vm5, %v6348_v12, %v8952_v38  ;;  %v1005_v24 = vpop.permute.xlu0 %1004  ;;  %v8955_v61 = vld [vmem:[#allocation3_spill] sm:$0xff]  ;;  %v8956_v51 = vld [vmem:[#allocation4_spill] sm:$0xff]  ;;  %v8957_v12 = vld [vmem:[#allocation173_spill] sm:$0xff] }
 0x25a   :  { %v1289_v7 = vsel %vm1278_vm8, %v1256_v23, %v8953_v53  ;;  %v1323_v40 = vsel %vm1311_vm9, %v1290_v17, %v1007_v45  ;;  %v6648_v63 = vsel %vm1146_vm4, %v6182_v37, %v8954_v41  ;;  %v1226_v6 = vsel %vm1212_vm6, %v1193_v35, %v8955_v61  ;;  %v8958_v2 = vld [vmem:[#allocation205_spill] sm:$0xff]  ;;  %v8960_v10 = vld [vmem:[#allocation174_spill] sm:$0xff]  ;;  %v8962_v43 = vld [vmem:[#allocation208_spill] sm:$0xff] }
 0x25b   :  { %v1225_v15 = vsel %vm1212_vm6, %v1192_v48, %v8956_v51  ;;  %v1322_v57 = vsel %vm1311_vm9, %v1289_v7, %v1005_v24  ;;  %v1259_v1 = vsel %vm1245_vm7, %v1226_v6, %v8957_v12  ;;  %2141 = vrot.lane.b32.xlu0 %v6633_v19, %s3965_s4  ;;  %v6663_v37 = vsel %vm301_vm1, %v2069_v60, %v2071_v32  ;;  %v8961_v8 = vld [vmem:[#allocation210_spill] sm:$0xff]  ;;  %v8963_v32 = vld [vmem:[#allocation143_spill] sm:$0xff]  ;;  %v8964_v48 = vld [vmem:[#allocation144_spill] sm:$0xff] }
 0x25c   :  { %3759 = vmatprep.mubr.msk.f32.mxu0 %vm1344_vm10, %v1322_v57  ;;  %v2074_v0 = vrot.slane %v8958_v2, 2  ;;  %v2076_v50 = vrot.slane %v8959_v30, 2  ;;  %v1258_v23 = vsel %vm1245_vm7, %v1225_v15, %v8960_v10  ;;  %v1292_v17 = vsel %vm1278_vm8, %v1259_v1, %v8961_v8  ;;  %v1011_v45 = vpop.permute.xlu1 %1010  ;;  %v8965_v7 = vld [vmem:[#allocation214_spill] sm:$0xff]  ;;  %v8966_v61 = vld [vmem:[#allocation125_spill] sm:$0xff]  ;;  %2147 = vrot.lane.b32.xlu1 %v6663_v37, %s3965_s4  ;;  %v8970_v12 = vld [vmem:[#allocation212_spill] sm:$0xff] }
 0x25d   :  { %3760 = vmatmul.mubr.msk.f32.gmra.mrb[10].mxu0 %vm1344_vm10, %v1323_v40  ;;  %v6673_v21 = vsel %vm301_vm1, %v2068_v5, %v2069_v60  ;;  %v2073_v35 = vrot.slane %v8962_v43, 2  ;;  %v1195_v38 = vsel %vm1179_vm5, %v6353_v54, %v8963_v32  ;;  %v1194_v53 = vsel %vm1179_vm5, %v6367_v16, %v8964_v48  ;;  %v1009_v40 = vpop.permute.xlu0 %1008  ;;  %v8967_v5 = vld [vmem:[#allocation5_spill] sm:$0xff]  ;;  %v8968_v51 = vld [vmem:[#allocation6_spill] sm:$0xff]  ;;  %v8969_v16 = vld [vmem:[#allocation28_spill] sm:$0xff] }
 0x25e   :  { %v1291_v24 = vsel %vm1278_vm8, %v1258_v23, %v8965_v7  ;;  %v1325_v41 = vsel %vm1311_vm9, %v1292_v17, %v1011_v45  ;;  %v6688_v60 = vsel %vm1146_vm4, %v6187_v4, %v8966_v61  ;;  %v1228_v6 = vsel %vm1212_vm6, %v1195_v38, %v8967_v5  ;;  %v8971_v2 = vld [vmem:[#allocation213_spill] sm:$0xff]  ;;  %v8972_v10 = vld [vmem:[#allocation175_spill] sm:$0xff]  ;;  %v8978_v5 = vld [vmem:[#allocation126_spill] sm:$0xff] }
 0x25f   :  { %v1227_v54 = vsel %vm1212_vm6, %v1194_v53, %v8968_v51  ;;  %v1324_v15 = vsel %vm1311_vm9, %v1291_v24, %v1009_v40  ;;  %v1261_v57 = vsel %vm1245_vm7, %v1228_v6, %v8969_v16  ;;  %2145 = vrot.lane.b32.xlu0 %v6673_v21, %s3965_s4  ;;  %v6703_v4 = vsel %vm301_vm1, %v2074_v0, %v2076_v50  ;;  %v8973_v8 = vld [vmem:[#allocation217_spill] sm:$0xff]  ;;  %v8974_v32 = vld [vmem:[#allocation215_spill] sm:$0xff]  ;;  %v8976_v53 = vld [vmem:[#allocation146_spill] sm:$0xff] }
 0x260   :  { %3762 = vmatprep.mubr.msk.f32.mxu0 %vm1344_vm10, %v1324_v15  ;;  %v2079_v1 = vrot.slane %v8970_v12, 2  ;;  %v2081_v30 = vrot.slane %v8971_v2, 2  ;;  %v1260_v23 = vsel %vm1245_vm7, %v1227_v54, %v8972_v10  ;;  %v1294_v17 = vsel %vm1278_vm8, %v1261_v57, %v8973_v8  ;;  %v1015_v45 = vpop.permute.xlu1 %1014  ;;  %v8975_v50 = vld [vmem:[#allocation145_spill] sm:$0xff]  ;;  %v8980_v51 = vld [vmem:[#allocation8_spill] sm:$0xff]  ;;  %2151 = vrot.lane.b32.xlu1 %v6703_v4, %s3965_s4  ;;  %v8982_v16 = vld [vmem:[#allocation219_spill] sm:$0xff] }
 0x261   :  { %3763 = vmatmul.mubr.msk.f32.gmra.mrb[12].mxu0 %vm1344_vm10, %v1325_v41  ;;  %v6713_v43 = vsel %vm301_vm1, %v2073_v35, %v2074_v0  ;;  %v2078_v38 = vrot.slane %v8974_v32, 2  ;;  %v1197_v48 = vsel %vm1179_vm5, %v6390_v39, %v8975_v50  ;;  %v1196_v7 = vsel %vm1179_vm5, %v6406_v47, %v8976_v53  ;;  %v8977_v24 = vld [vmem:[#allocation221_spill] sm:$0xff]  ;;  %v1013_v41 = vpop.permute.xlu0 %1012  ;;  %v8979_v35 = vld [vmem:[#allocation7_spill] sm:$0xff]  ;;  %v8983_v12 = vld [vmem:[#allocation220_spill] sm:$0xff] }
 0x262   :  { %v1293_v40 = vsel %vm1278_vm8, %v1260_v23, %v8977_v24  ;;  %v1327_v61 = vsel %vm1311_vm9, %v1294_v17, %v1015_v45  ;;  %v6728_v0 = vsel %vm1146_vm4, %v6192_v36, %v8978_v5  ;;  %v1230_v6 = vsel %vm1212_vm6, %v1197_v48, %v8979_v35  ;;  %v8981_v47 = vld [vmem:[#allocation29_spill] sm:$0xff]  ;;  %v8984_v10 = vld [vmem:[#allocation176_spill] sm:$0xff]  ;;  %v8986_v50 = vld [vmem:[#allocation222_spill] sm:$0xff] }
 0x263   :  { %v1229_v39 = vsel %vm1212_vm6, %v1196_v7, %v8980_v51  ;;  %v1326_v54 = vsel %vm1311_vm9, %v1293_v40, %v1013_v41  ;;  %v1263_v15 = vsel %vm1245_vm7, %v1230_v6, %v8981_v47  ;;  %2149 = vrot.lane.b32.xlu0 %v6713_v43, %s3965_s4  ;;  %v6743_v36 = vsel %vm301_vm1, %v2079_v1, %v2081_v30  ;;  %v8985_v8 = vld [vmem:[#allocation41_spill] sm:$0xff]  ;;  %v8987_v30 = vld [vmem:[#allocation147_spill] sm:$0xff]  ;;  %v8988_v7 = vld [vmem:[#allocation148_spill] sm:$0xff] }
 0x264   :  { %3765 = vmatprep.mubr.msk.f32.mxu0 %vm1344_vm10, %v1326_v54  ;;  %v2084_v57 = vrot.slane %v8982_v16, 2  ;;  %v2086_v2 = vrot.slane %v8983_v12, 2  ;;  %v1262_v23 = vsel %vm1245_vm7, %v1229_v39, %v8984_v10  ;;  %v1296_v17 = vsel %vm1278_vm8, %v1263_v15, %v8985_v8  ;;  %v1019_v45 = vpop.permute.xlu1 %1018  ;;  %v8989_v40 = vld [vmem:[#allocation46_spill] sm:$0xff]  ;;  %v8990_v35 = vld [vmem:[#allocation127_spill] sm:$0xff]  ;;  %2155 = vrot.lane.b32.xlu1 %v6743_v36, %s3965_s4  ;;  %v8994_v47 = vld [vmem:[#allocation44_spill] sm:$0xff] }
 0x265   :  { %3766 = vmatmul.mubr.msk.f32.gmra.mrb[14].mxu0 %vm1344_vm10, %v1327_v61  ;;  %v6753_v32 = vsel %vm301_vm1, %v2078_v38, %v2079_v1  ;;  %v2083_v48 = vrot.slane %v8986_v50, 2  ;;  %v1199_v53 = vsel %vm1179_vm5, %v6454_v44, %v8987_v30  ;;  %v1198_v24 = vsel %vm1179_vm5, %v6494_v29, %v8988_v7  ;;  %v1017_v61 = vpop.permute.xlu0 %1016  ;;  %v8991_v38 = vld [vmem:[#allocation9_spill] sm:$0xff]  ;;  %v8992_v51 = vld [vmem:[#allocation10_spill] sm:$0xff]  ;;  %v8998_v30 = vld [vmem:[#allocation47_spill] sm:$0xff] }
 0x266   :  { %v1295_v41 = vsel %vm1278_vm8, %v1262_v23, %v8989_v40  ;;  %v1329_v5 = vsel %vm1311_vm9, %v1296_v17, %v1019_v45  ;;  %v6768_v1 = vsel %vm1146_vm4, %v6199_v55, %v8990_v35  ;;  %v1232_v6 = vsel %vm1212_vm6, %v1199_v53, %v8991_v38  ;;  %v8993_v29 = vld [vmem:[#allocation30_spill] sm:$0xff]  ;;  %v8995_v16 = vld [vmem:[#allocation45_spill] sm:$0xff]  ;;  %v9002_v38 = vld [vmem:[#allocation128_spill] sm:$0xff] }
 0x267   :  { %v1231_v44 = vsel %vm1212_vm6, %v1198_v24, %v8992_v51  ;;  %v1328_v39 = vsel %vm1311_vm9, %v1295_v41, %v1017_v61  ;;  %v1265_v54 = vsel %vm1245_vm7, %v1232_v6, %v8993_v29  ;;  %2153 = vrot.lane.b32.xlu0 %v6753_v32, %s3965_s4  ;;  %v6783_v55 = vsel %vm301_vm1, %v2084_v57, %v2086_v2  ;;  %v8996_v10 = vld [vmem:[#allocation177_spill] sm:$0xff]  ;;  %v9000_v24 = vld [vmem:[#allocation150_spill] sm:$0xff]  ;;  %v9004_v51 = vld [vmem:[#allocation12_spill] sm:$0xff] }
 0x268   :  { %3768 = vmatprep.mubr.msk.f32.mxu0 %vm1344_vm10, %v1328_v39  ;;  %v2089_v15 = vrot.slane %v8994_v47, 2  ;;  %v2091_v12 = vrot.slane %v8995_v16, 2  ;;  %v1264_v23 = vsel %vm1245_vm7, %v1231_v44, %v8996_v10  ;;  %v8997_v8 = vld [vmem:[#allocation49_spill] sm:$0xff]  ;;  %v1023_v45 = vpop.permute.xlu1 %1022  ;;  %v6793_v50 = vsel %vm301_vm1, %v2083_v48, %v2084_v57  ;;  %v9003_v48 = vld [vmem:[#allocation11_spill] sm:$0xff]  ;;  %2159 = vrot.lane.b32.xlu1 %v6783_v55, %s3965_s4  ;;  %v9007_v47 = vld [vmem:[#allocation52_spill] sm:$0xff] }
 0x269   :  { %v1298_v17 = vsel %vm1278_vm8, %v1265_v54, %v8997_v8  ;;  %3769 = vmatmul.mubr.msk.f32.gmra.mrb[16].mxu0 %vm1344_vm10, %v1329_v5  ;;  %v2088_v53 = vrot.slane %v8998_v30, 2  ;;  %v8999_v2 = vld [vmem:[#allocation149_spill] sm:$0xff]  ;;  %v1200_v40 = vsel %vm1179_vm5, %v6570_v58, %v9000_v24  ;;  %v1021_v5 = vpop.permute.xlu0 %1020  ;;  %v6808_v57 = vsel %vm1146_vm4, %v6211_v3, %v9002_v38  ;;  %v9005_v58 = vld [vmem:[#allocation31_spill] sm:$0xff]  ;;  %v9008_v10 = vld [vmem:[#allocation178_spill] sm:$0xff] }
 0x26a   :  { %v1201_v7 = vsel %vm1179_vm5, %v6534_v20, %v8999_v2  ;;  %v9001_v41 = vld [vmem:[#allocation53_spill] sm:$0xff]  ;;  %v1331_v35 = vsel %vm1311_vm9, %v1298_v17, %v1023_v45  ;;  %v1233_v20 = vsel %vm1212_vm6, %v1200_v40, %v9004_v51  ;;  %v6823_v3 = vsel %vm301_vm1, %v2089_v15, %v2091_v12  ;;  %v9006_v29 = vld [vmem:[#allocation51_spill] sm:$0xff]  ;;  %v9009_v8 = vld [vmem:[#allocation56_spill] sm:$0xff] }
 0x26b   :  { %v1297_v61 = vsel %vm1278_vm8, %v1264_v23, %v9001_v41  ;;  %v1234_v6 = vsel %vm1212_vm6, %v1201_v7, %v9003_v48  ;;  %2157 = vrot.lane.b32.xlu0 %v6793_v50, %s3965_s4  ;;  %v2094_v54 = vrot.slane %v9006_v29, 2  ;;  %v2096_v16 = vrot.slane %v9007_v47, 2  ;;  %v9010_v2 = vld [vmem:[#allocation54_spill] sm:$0xff]  ;;  %v9011_v12 = vld [vmem:[#allocation151_spill] sm:$0xff]  ;;  %v9012_v40 = vld [vmem:[#allocation152_spill] sm:$0xff] }
 0x26c   :  { %v1330_v44 = vsel %vm1311_vm9, %v1297_v61, %v1021_v5  ;;  %v1267_v39 = vsel %vm1245_vm7, %v1234_v6, %v9005_v58  ;;  %v1266_v23 = vsel %vm1245_vm7, %v1233_v20, %v9008_v10  ;;  %v1027_v45 = vpop.permute.xlu1 %1026  ;;  %v6833_v30 = vsel %vm301_vm1, %v2088_v53, %v2089_v15  ;;  %v9013_v61 = vld [vmem:[#allocation60_spill] sm:$0xff]  ;;  %v9014_v48 = vld [vmem:[#allocation35_spill] sm:$0xff]  ;;  %v9015_v53 = vld [vmem:[#allocation13_spill] sm:$0xff]  ;;  %2163 = vrot.lane.b32.xlu1 %v6823_v3, %s3965_s4 }
 0x26d   :  { %3771 = vmatprep.mubr.msk.f32.mxu0 %vm1344_vm10, %v1330_v44  ;;  %v1300_v17 = vsel %vm1278_vm8, %v1267_v39, %v9009_v8  ;;  %v2093_v7 = vrot.slane %v9010_v2, 2  ;;  %v1203_v24 = vsel %vm1179_vm5, %v6608_v18, %v9011_v12  ;;  %v1202_v41 = vsel %vm1179_vm5, %v6648_v63, %v9012_v40  ;;  %v9016_v51 = vld [vmem:[#allocation14_spill] sm:$0xff]  ;;  %v9017_v63 = vld [vmem:[#allocation32_spill] sm:$0xff]  ;;  %v9019_v29 = vld [vmem:[#allocation59_spill] sm:$0xff] }
 0x26e   :  { %3772 = vmatmul.mubr.msk.f32.gmra.mrb[18].mxu0 %vm1344_vm10, %v1331_v35  ;;  %v1299_v5 = vsel %vm1278_vm8, %v1266_v23, %v9013_v61  ;;  %v1333_v38 = vsel %vm1311_vm9, %v1300_v17, %v1027_v45  ;;  %v1025_v35 = vpop.permute.xlu0 %1024  ;;  %v1176_v15 = vsel %vm1146_vm4, %v6216_v42, %v9014_v48  ;;  %v1236_v6 = vsel %vm1212_vm6, %v1203_v24, %v9015_v53  ;;  %v9018_v58 = vld [vmem:[#allocation58_spill] sm:$0xff]  ;;  %v9020_v10 = vld [vmem:[#allocation33_spill] sm:$0xff]  ;;  %v9021_v8 = vld [vmem:[#allocation63_spill] sm:$0xff] }
 0x26f   :  { %v1235_v18 = vsel %vm1212_vm6, %v1202_v41, %v9016_v51  ;;  %v1332_v20 = vsel %vm1311_vm9, %v1299_v5, %v1025_v35  ;;  %v1269_v44 = vsel %vm1245_vm7, %v1236_v6, %v9017_v63  ;;  %2161 = vrot.lane.b32.xlu0 %v6833_v30, %s3965_s4  ;;  %v6861_v42 = vsel %vm301_vm1, %v2094_v54, %v2096_v16  ;;  %v9022_v12 = vld [vmem:[#allocation61_spill] sm:$0xff]  ;;  %v9024_v41 = vld [vmem:[#allocation154_spill] sm:$0xff]  ;;  %v9025_v5 = vld [vmem:[#allocation67_spill] sm:$0xff] }
 0x270   :  { %3774 = vmatprep.mubr.msk.f32.mxu0 %vm1344_vm10, %v1332_v20  ;;  %v2099_v39 = vrot.slane %v9018_v58, 2  ;;  %v2101_v47 = vrot.slane %v9019_v29, 2  ;;  %v1268_v23 = vsel %vm1245_vm7, %v1235_v18, %v9020_v10  ;;  %v1302_v17 = vsel %vm1278_vm8, %v1269_v44, %v9021_v8  ;;  %v1031_v45 = vpop.permute.xlu1 %1030  ;;  %v9023_v16 = vld [vmem:[#allocation153_spill] sm:$0xff]  ;;  %v9028_v51 = vld [vmem:[#allocation16_spill] sm:$0xff]  ;;  %2167 = vrot.lane.b32.xlu1 %v6861_v42, %s3965_s4  ;;  %v9031_v58 = vld [vmem:[#allocation66_spill] sm:$0xff] }
 0x271   :  { %v6871_v2 = vsel %vm301_vm1, %v2093_v7, %v2094_v54  ;;  %v2098_v24 = vrot.slane %v9022_v12, 2  ;;  %v1205_v40 = vsel %vm1179_vm5, %v6688_v60, %v9023_v16  ;;  %v1204_v61 = vsel %vm1179_vm5, %v6728_v0, %v9024_v41  ;;  %v9026_v53 = vld [vmem:[#allocation129_spill] sm:$0xff]  ;;  %v9027_v7 = vld [vmem:[#allocation15_spill] sm:$0xff]  ;;  %v9029_v0 = vld [vmem:[#allocation34_spill] sm:$0xff] }
 0x272   :  { %3775 = vmatmul.mubr.msk.f32.gmra.mrb[20].mxu0 %vm1344_vm10, %v1333_v38  ;;  %v1301_v35 = vsel %vm1278_vm8, %v1268_v23, %v9025_v5  ;;  %v1335_v48 = vsel %vm1311_vm9, %v1302_v17, %v1031_v45  ;;  %v1029_v38 = vpop.permute.xlu0 %1028  ;;  %v1175_v54 = vsel %vm1146_vm4, %v6237_v11, %v9026_v53  ;;  %v1238_v6 = vsel %vm1212_vm6, %v1205_v40, %v9027_v7  ;;  %v9030_v63 = vld [vmem:[#allocation65_spill] sm:$0xff]  ;;  %v9032_v10 = vld [vmem:[#allocation179_spill] sm:$0xff]  ;;  %v9033_v8 = vld [vmem:[#allocation70_spill] sm:$0xff] }
 0x273   :  { %v1237_v60 = vsel %vm1212_vm6, %v1204_v61, %v9028_v51  ;;  %v1334_v18 = vsel %vm1311_vm9, %v1301_v35, %v1029_v38  ;;  %v1271_v20 = vsel %vm1245_vm7, %v1238_v6, %v9029_v0  ;;  %2165 = vrot.lane.b32.xlu0 %v6871_v2, %s3965_s4  ;;  %v6899_v11 = vsel %vm301_vm1, %v2099_v39, %v2101_v47  ;;  %v9034_v16 = vld [vmem:[#allocation68_spill] sm:$0xff]  ;;  %v9035_v47 = vld [vmem:[#allocation155_spill] sm:$0xff]  ;;  %v9037_v35 = vld [vmem:[#allocation74_spill] sm:$0xff] }
 0x274   :  { %3777 = vmatprep.mubr.msk.f32.mxu0 %vm1344_vm10, %v1334_v18  ;;  %v2104_v44 = vrot.slane %v9030_v63, 2  ;;  %v2106_v29 = vrot.slane %v9031_v58, 2  ;;  %v1270_v23 = vsel %vm1245_vm7, %v1237_v60, %v9032_v10  ;;  %v1304_v17 = vsel %vm1278_vm8, %v1271_v20, %v9033_v8  ;;  %v1035_v45 = vpop.permute.xlu1 %1034  ;;  %v9036_v61 = vld [vmem:[#allocation156_spill] sm:$0xff]  ;;  %v9038_v7 = vld [vmem:[#allocation130_spill] sm:$0xff]  ;;  %v9039_v6 = vld [vmem:[#allocation79_spill] sm:$0xff]  ;;  %2171 = vrot.lane.b32.xlu1 %v6899_v11, %s3965_s4 }
 0x275   :  { %v6909_v12 = vsel %vm301_vm1, %v2098_v24, %v2099_v39  ;;  %v2103_v40 = vrot.slane %v9034_v16, 2  ;;  %v1207_v41 = vsel %vm1179_vm5, %v6768_v1, %v9035_v47  ;;  %v1206_v5 = vsel %vm1179_vm5, %v6808_v57, %v9036_v61  ;;  %v9040_v24 = vld [vmem:[#allocation17_spill] sm:$0xff]  ;;  %v9041_v60 = vld [vmem:[#allocation18_spill] sm:$0xff]  ;;  %v9042_v57 = vld [vmem:[#allocation36_spill] sm:$0xff] }
 0x276   :  { %3778 = vmatmul.mubr.msk.f32.gmra.mrb[22].mxu0 %vm1344_vm10, %v1335_v48  ;;  %v1303_v38 = vsel %vm1278_vm8, %v1270_v23, %v9037_v35  ;;  %v1337_v53 = vsel %vm1311_vm9, %v1304_v17, %v1035_v45  ;;  %v1033_v48 = vpop.permute.xlu0 %1032  ;;  %v1178_v39 = vsel %vm1146_vm4, %v9039_v6, %v9038_v7  ;;  %v1240_v51 = vsel %vm1212_vm6, %v1207_v41, %v9040_v24  ;;  %v9043_v63 = vld [vmem:[#allocation72_spill] sm:$0xff]  ;;  %v9044_v10 = vld [vmem:[#allocation73_spill] sm:$0xff]  ;;  %v9047_v61 = vld [vmem:[#allocation75_spill] sm:$0xff] }
 0x277   :  { %v1239_v1 = vsel %vm1212_vm6, %v1206_v5, %v9041_v60  ;;  %v1336_v18 = vsel %vm1311_vm9, %v1303_v38, %v1033_v48  ;;  %v1273_v0 = vsel %vm1245_vm7, %v1240_v51, %v9042_v57  ;;  %2169 = vrot.lane.b32.xlu0 %v6909_v12, %s3965_s4  ;;  %v6937_v20 = vsel %vm301_vm1, %v2104_v44, %v2106_v29  ;;  %v9045_v8 = vld [vmem:[#allocation180_spill] sm:$0xff]  ;;  %v9046_v45 = vld [vmem:[#allocation77_spill] sm:$0xff]  ;;  %v9049_v38 = vld [vmem:[#allocation158_spill] sm:$0xff] }
 0x278   :  { %3780 = vmatprep.mubr.msk.f32.mxu0 %vm1344_vm10, %v1336_v18  ;;  %v2109_v58 = vrot.slane %v9043_v63, 2  ;;  %v2111_v23 = vrot.slane %v9044_v10, 2  ;;  %v1272_v17 = vsel %vm1245_vm7, %v1239_v1, %v9045_v8  ;;  %v1306_v16 = vsel %vm1278_vm8, %v1273_v0, %v9046_v45  ;;  %v1039_v47 = vpop.permute.xlu1 %1038  ;;  %v9048_v29 = vld [vmem:[#allocation157_spill] sm:$0xff]  ;;  %v9051_v60 = vld [vmem:[#allocation131_spill] sm:$0xff]  ;;  %v9054_v18 = vld [vmem:[#allocation20_spill] sm:$0xff]  ;;  %2175 = vrot.lane.b32.xlu1 %v6937_v20, %s3965_s4 }
 0x279   :  { %v6947_v41 = vsel %vm301_vm1, %v2103_v40, %v2104_v44  ;;  %v2108_v5 = vrot.slane %v9047_v61, 2  ;;  %v1209_v35 = vsel %vm1179_vm5, %v1176_v15, %v9048_v29  ;;  %v1208_v48 = vsel %vm1179_vm5, %v1175_v54, %v9049_v38  ;;  %v9050_v7 = vld [vmem:[#allocation81_spill] sm:$0xff]  ;;  %v9053_v44 = vld [vmem:[#allocation19_spill] sm:$0xff]  ;;  %v7181_v34 = vld [vmem:[%s8234_s0 + $0x240] sm:$0xff] }
 0x27a   :  { %3781 = vmatmul.mubr.msk.f32.gmra.mrb[24].mxu0 %vm1344_vm10, %v1337_v53  ;;  %v1305_v6 = vsel %vm1278_vm8, %v1272_v17, %v9050_v7  ;;  %v1339_v24 = vsel %vm1311_vm9, %v1306_v16, %v1039_v47  ;;  %v1037_v51 = vpop.permute.xlu0 %1036  ;;  %v9052_v53 = vld [vmem:[#allocation80_spill] sm:$0xff]  ;;  %v1242_v40 = vsel %vm1212_vm6, %v1209_v35, %v9053_v44  ;;  %v1241_v57 = vsel %vm1212_vm6, %v1208_v48, %v9054_v18  ;;  %v9055_v54 = vld [vmem:[#allocation37_spill] sm:$0xff]  ;;  %v9060_v35 = vld [vmem:[#allocation82_spill] sm:$0xff] }
 0x27b   :  { %v1177_v1 = vsel %vm1146_vm4, %v9052_v53, %v9051_v60  ;;  %v1338_v15 = vsel %vm1311_vm9, %v1305_v6, %v1037_v51  ;;  %v1275_v0 = vsel %vm1245_vm7, %v1242_v40, %v9055_v54  ;;  %2173 = vrot.lane.b32.xlu0 %v6947_v41, %s3965_s4  ;;  %v6973_v63 = vsel %vm301_vm1, %v2109_v58, %v2111_v23  ;;  %v9057_v17 = vld [vmem:[#allocation181_spill] sm:$0xff]  ;;  %v9058_v16 = vld [vmem:[#allocation84_spill] sm:$0xff]  ;;  %v9061_v23 = vld [vmem:[#allocation159_spill] sm:$0xff] }
 0x27c   :  { %3783 = vmatprep.mubr.msk.f32.mxu0 %vm1344_vm10, %v1338_v15  ;;  %9056 = vst [vmem:[#allocation99_spill] sm:$0xff] %v6973_v63  ;;  %v2114_v10 = vrot.slane %v6227_v22, 2  ;;  %v2116_v8 = vrot.slane %v6232_v31, 2  ;;  %v1274_v45 = vsel %vm1245_vm7, %v1241_v57, %v9057_v17  ;;  %v1308_v47 = vsel %vm1278_vm8, %v1275_v0, %v9058_v16  ;;  %v1043_v61 = vpop.permute.xlu1 %1042  ;;  %v9062_v22 = vld [vmem:[#allocation160_spill] sm:$0xff]  ;;  %v9063_v7 = vld [vmem:[#allocation87_spill] sm:$0xff]  ;;  %v9064_v53 = vld [vmem:[#allocation21_spill] sm:$0xff]  ;;  %2179 = vrot.lane.b32.xlu1 %v6973_v63, %s3965_s4 }
 0x27d   :  { %v6983_v29 = vsel %vm301_vm1, %v2108_v5, %v2109_v58  ;;  %v2113_v38 = vrot.slane %v9060_v35, 2  ;;  %v1211_v48 = vsel %vm1179_vm5, %v1178_v39, %v9061_v23  ;;  %v1210_v31 = vsel %vm1179_vm5, %v1177_v1, %v9062_v22  ;;  %v9065_v44 = vld [vmem:[#allocation22_spill] sm:$0xff]  ;;  %v9068_v18 = vld [vmem:[#allocation85_spill] sm:$0xff]  ;;  %v9073_v35 = vld [vmem:[#allocation88_spill] sm:$0xff]  ;;  %9094 = vst [vmem:[#allocation132_spill] sm:$0xff] %v7181_v34 }
 0x27e   :  { %3784 = vmatmul.mubr.msk.f32.gmra.mrb[26].mxu0 %vm1344_vm10, %v1339_v24  ;;  %9059 = vst [vmem:[#allocation100_spill] sm:$0xff] %v6983_v29  ;;  %v1307_v6 = vsel %vm1278_vm8, %v1274_v45, %v9063_v7  ;;  %v1341_v51 = vsel %vm1311_vm9, %v1308_v47, %v1043_v61  ;;  %v1041_v60 = vpop.permute.xlu0 %1040  ;;  %v1244_v24 = vsel %vm1212_vm6, %v1211_v48, %v9064_v53  ;;  %v9066_v39 = vld [vmem:[#allocation38_spill] sm:$0xff]  ;;  %v2119_v57 = vrot.slane %v9068_v18, 2 }
 0x27f   :  { %v1243_v58 = vsel %vm1212_vm6, %v1210_v31, %v9065_v44  ;;  %v1340_v5 = vsel %vm1311_vm9, %v1307_v6, %v1041_v60  ;;  %v1277_v1 = vsel %vm1245_vm7, %v1244_v24, %v9066_v39  ;;  %2177 = vrot.lane.b32.xlu0 %v6983_v29, %s3965_s4  ;;  %v7006_v40 = vsel %vm301_vm1, %v2114_v10, %v2116_v8  ;;  %v9069_v15 = vld [vmem:[#allocation86_spill] sm:$0xff] }
 0x280   :  { %3786 = vmatprep.mubr.msk.f32.mxu0 %vm1344_vm10, %v1340_v5  ;;  %9067 = vst [vmem:[#allocation101_spill] sm:$0xff] %v7006_v40  ;;  %v2121_v54 = vrot.slane %v9069_v15, 2  ;;  %v9070_v0 = vld [vmem:[#allocation182_spill] sm:$0xff]  ;;  %v1047_v47 = vpop.permute.xlu1 %1046  ;;  %v7016_v61 = vsel %vm301_vm1, %v2113_v38, %v2114_v10  ;;  %v2118_v23 = vrot.slane %v9073_v35, 2  ;;  %2183 = vrot.lane.b32.xlu1 %v7006_v40, %s3965_s4  ;;  %v2124_v38 = vrot.slane %v6380_v13, 2  ;;  %v7084_v15 = vld [vmem:[%s8234_s0 + $0x1d0] sm:$0xff] }
 0x281   :  { %v1276_v17 = vsel %vm1245_vm7, %v1243_v58, %v9070_v0  ;;  %v9071_v45 = vld [vmem:[#allocation90_spill] sm:$0xff]  ;;  %9072 = vst [vmem:[#allocation102_spill] sm:$0xff] %v7016_v61  ;;  %v2131_v24 = vrot.slane %v6437_v27, 2  ;;  %v2128_v5 = vrot.slane %v6449_v49, 2 }
 0x282   :  { %v1310_v16 = vsel %vm1278_vm8, %v1277_v1, %v9071_v45  ;;  %3787 = vmatmul.mubr.msk.f32.gmra.mrb[28].mxu0 %vm1344_vm10, %v1341_v51  ;;  %v1309_v8 = vsel %vm1278_vm8, %v1276_v17, %v6396_v52  ;;  %v1045_v22 = vpop.permute.xlu0 %1044  ;;  %v7029_v10 = vsel %vm301_vm1, %v2119_v57, %v2121_v54  ;;  %v2126_v52 = vrot.slane %v6385_v33, 2  ;;  %v9076_v51 = vld [vmem:[#allocation92_spill] sm:$0xff]  ;;  %v7091_v54 = vld [vmem:[%s8234_s0 + $0x1c8] sm:$0xff]  ;;  %v7192_v26 = vld [vmem:[%s8234_s0 + $0x260] sm:$0xff] }
 0x283   :  { %v1343_v48 = vsel %vm1311_vm9, %v1310_v16, %v1047_v47  ;;  %v1342_v31 = vsel %vm1311_vm9, %v1309_v8, %v1045_v22  ;;  %2181 = vrot.lane.b32.xlu0 %v7016_v61, %s3965_s4  ;;  %9074 = vst [vmem:[#allocation103_spill] sm:$0xff] %v7029_v10  ;;  %v7037_v6 = vsel %vm301_vm1, %v2118_v23, %v2119_v57  ;;  %v2123_v60 = vrot.slane %v9076_v51, 2  ;;  %v7102_v45 = vld [vmem:[%s8234_s0 + $0x1e8] sm:$0xff]  ;;  %v7109_v16 = vld [vmem:[%s8234_s0 + $0x1e0] sm:$0xff]  ;;  %v7127_v8 = vld [vmem:[%s8234_s0 + $0x1f8] sm:$0xff] }
 0x284   :  { %3789 = vmatprep.mubr.msk.f32.mxu0 %vm1344_vm10, %v1342_v31  ;;  %v7034_v7 = vpop.permute.xlu1 %1959  ;;  %9075 = vst [vmem:[#allocation104_spill] sm:$0xff] %v7037_v6  ;;  %2187 = vrot.lane.b32.xlu1 %v7029_v10, %s3965_s4  ;;  %v7047_v13 = vsel %vm301_vm1, %v2124_v38, %v2126_v52  ;;  %v2129_v33 = vrot.slane %v6432_v62, 2  ;;  %v7120_v23 = vld [vmem:[%s8234_s0 + $0x200] sm:$0xff]  ;;  %v7138_v31 = vld [vmem:[%s8234_s0 + $0x218] sm:$0xff] }
 0x285   :  { %9077 = vst [vmem:[#allocation105_spill] sm:$0xff] %v7047_v13  ;;  %v7054_v58 = vsel %vm301_vm1, %v2123_v60, %v2124_v38  ;;  %9086 = vst [vmem:[#allocation113_spill] sm:$0xff] %v7138_v31  ;;  %v7145_v38 = vld [vmem:[%s8234_s0 + $0x210] sm:$0xff] }
 0x286   :  { %3790 = vmatmul.mubr.msk.f32.gmra.mrb[30].mxu0 %vm1344_vm10, %v1343_v48  ;;  %v7040_v53 = vpop.permute.xlu0 %1957  ;;  %9078 = vst [vmem:[#allocation106_spill] sm:$0xff] %v7054_v58  ;;  %v7064_v1 = vsel %vm301_vm1, %v2129_v33, %v2131_v24  ;;  %v7069_v27 = vsel %vm301_vm1, %v2128_v5, %v2129_v33  ;;  %v7156_v60 = vld [vmem:[%s8234_s0 + $0x230] sm:$0xff]  ;;  %v7163_v33 = vld [vmem:[%s8234_s0 + $0x228] sm:$0xff] }
 0x287   :  { %2185 = vrot.lane.b32.xlu0 %v7037_v6, %s3965_s4  ;;  %9079 = vst [vmem:[#allocation107_spill] sm:$0xff] %v7064_v1  ;;  %9080 = vst [vmem:[#allocation25_spill] sm:$0xff] %v7069_v27 }
 0x288   :  { %v7051_v44 = vpop.permute.xlu1 %1963  ;;  %2191 = vrot.lane.b32.xlu1 %v7047_v13, %s3965_s4  ;;  %9089 = vst [vmem:[#allocation115_spill] sm:$0xff] %v7156_v60  ;;  %9090 = vst [vmem:[#allocation27_spill] sm:$0xff] %v7163_v33 }
 0x28a   :  { %v7057_v39 = vpop.permute.xlu0 %1961 }
 0x28b   :  { %2189 = vrot.lane.b32.xlu0 %v7054_v58, %s3965_s4 }
 0x28c   :  { %v7066_v62 = vpop.permute.xlu1 %1967  ;;  %2195 = vrot.lane.b32.xlu1 %v7064_v1, %s3965_s4  ;;  %v7174_v1 = vld [vmem:[%s8234_s0 + $0x248] sm:$0xff] }
 0x28d   :  { %9093 = vst [vmem:[#allocation117_spill] sm:$0xff] %v7174_v1 }
 0x28e   :  { %v7071_v18 = vpop.permute.xlu0 %1965 }
 0x28f   :  { %2193 = vrot.lane.b32.xlu0 %v7069_v27, %s3965_s4 }
 0x290   :  { %v7077_v49 = vpop.permute.xlu1 %1971  ;;  %2233 = vrot.lane.b32.xlu1 %v7084_v15, %s3966_s5 }
 0x292   :  { %v7079_v57 = vpop.permute.xlu0 %1969 }
 0x293   :  { %2231 = vrot.lane.b32.xlu0 %v7091_v54, %s3966_s5 }
 0x294   :  { %v7095_v0 = vpop.permute.xlu1 %1975  ;;  %2237 = vrot.lane.b32.xlu1 %v7102_v45, %s3966_s5 }
 0x295   :  { %9081 = vst [vmem:[#allocation108_spill] sm:$0xff] %v7095_v0 }
 0x296   :  { %v7097_v17 = vpop.permute.xlu0 %1973 }
 0x297   :  { %2235 = vrot.lane.b32.xlu0 %v7109_v16, %s3966_s5 }
 0x298   :  { %v7113_v47 = vpop.permute.xlu1 %1979  ;;  %2241 = vrot.lane.b32.xlu1 %v7120_v23, %s3966_s5 }
 0x299   :  { %9082 = vst [vmem:[#allocation109_spill] sm:$0xff] %v7113_v47 }
 0x29a   :  { %v7115_v35 = vpop.permute.xlu0 %1977 }
 0x29b   :  { %9083 = vst [vmem:[#allocation110_spill] sm:$0xff] %v7115_v35  ;;  %2239 = vrot.lane.b32.xlu0 %v7127_v8, %s3966_s5 }
 0x29c   :  { %v7131_v48 = vpop.permute.xlu1 %1983  ;;  %2245 = vrot.lane.b32.xlu1 %v7138_v31, %s3966_s5 }
 0x29d   :  { %9084 = vst [vmem:[#allocation111_spill] sm:$0xff] %v7131_v48  ;;  %v9122_v48 = vld [vmem:[#allocation218_spill] sm:$0xff] }
 0x29e   :  { %v7133_v22 = vpop.permute.xlu0 %1981 }
 0x29f   :  { %9085 = vst [vmem:[#allocation112_spill] sm:$0xff] %v7133_v22  ;;  %2243 = vrot.lane.b32.xlu0 %v7145_v38, %s3966_s5 }
 0x2a0   :  { %v7149_v52 = vpop.permute.xlu1 %1987  ;;  %2249 = vrot.lane.b32.xlu1 %v7156_v60, %s3966_s5 }
 0x2a1   :  { %9087 = vst [vmem:[#allocation114_spill] sm:$0xff] %v7149_v52 }
 0x2a2   :  { %v7151_v51 = vpop.permute.xlu0 %1985 }
 0x2a3   :  { %9088 = vst [vmem:[#allocation26_spill] sm:$0xff] %v7151_v51  ;;  %2247 = vrot.lane.b32.xlu0 %v7163_v33, %s3966_s5 }
 0x2a4   :  { %v7167_v24 = vpop.permute.xlu1 %1991  ;;  %2253 = vrot.lane.b32.xlu1 %v7174_v1, %s3966_s5 }
 0x2a5   :  { %9091 = vst [vmem:[#allocation116_spill] sm:$0xff] %v7167_v24 }
 0x2a6   :  { %v7169_v5 = vpop.permute.xlu0 %1989 }
 0x2a7   :  { %9092 = vst [vmem:[#allocation40_spill] sm:$0xff] %v7169_v5  ;;  %2251 = vrot.lane.b32.xlu0 %v7181_v34, %s3966_s5  ;;  %v7199_v5 = vld [vmem:[%s8234_s0 + $0x258] sm:$0xff] }
 0x2a8   :  { %v7185_v27 = vpop.permute.xlu1 %1995  ;;  %2257 = vrot.lane.b32.xlu1 %v7192_v26, %s3966_s5 }
 0x2a9   :  { %9095 = vst [vmem:[#allocation118_spill] sm:$0xff] %v7185_v27 }
 0x2aa   :  { %v7187_v24 = vpop.permute.xlu0 %1993 }
 0x2ab   :  { %9096 = vst [vmem:[#allocation133_spill] sm:$0xff] %v7187_v24  ;;  %2255 = vrot.lane.b32.xlu0 %v7199_v5, %s3966_s5  ;;  %v9099_v24 = vld [vmem:[#allocation195_spill] sm:$0xff] }
 0x2ac   :  { %v7203_v13 = vpop.permute.xlu1 %1999  ;;  %2335 = vrot.lane.b32.xlu1 %v9099_v24, %s3967_s10 }
 0x2ad   :  { %9097 = vst [vmem:[#allocation134_spill] sm:$0xff] %v7203_v13 }
 0x2ae   :  { %v7205_v27 = vpop.permute.xlu0 %1997 }
 0x2af   :  { %9098 = vst [vmem:[#allocation119_spill] sm:$0xff] %v7205_v27  ;;  %2333 = vrot.lane.b32.xlu0 %v9100_v14, %s3967_s10 }
 0x2b0   :  { %v7211_v58 = vpop.permute.xlu1 %2003  ;;  %2436 = vrot.lane.b32.xlu1 %v6583_v28, %s3968_s13 }
 0x2b1   :  { %9101 = vst [vmem:[#allocation120_spill] sm:$0xff] %v7211_v58  ;;  %v9107_v58 = vld [vmem:[#allocation204_spill] sm:$0xff] }
 0x2b2   :  { %v7213_v52 = vpop.permute.xlu0 %2001 }
 0x2b3   :  { %9102 = vst [vmem:[#allocation23_spill] sm:$0xff] %v7213_v52  ;;  %2434 = vrot.lane.b32.xlu0 %v6593_v56, %s3968_s13  ;;  %v9114_v52 = vld [vmem:[#allocation209_spill] sm:$0xff] }
 0x2b4   :  { %v7219_v9 = vpop.permute.xlu1 %2007  ;;  %2534 = vrot.lane.b32.xlu1 %v7102_v45, %s3969_s14 }
 0x2b5   :  { %9103 = vst [vmem:[#allocation43_spill] sm:$0xff] %v7219_v9  ;;  %v9110_v9 = vld [vmem:[#allocation202_spill] sm:$0xff] }
 0x2b6   :  { %v7221_v13 = vpop.permute.xlu0 %2005 }
 0x2b7   :  { %9104 = vst [vmem:[#allocation183_spill] sm:$0xff] %v7221_v13  ;;  %2532 = vrot.lane.b32.xlu0 %v7109_v16, %s3969_s14 }
 0x2b8   :  { %v7227_v14 = vpop.permute.xlu1 %2011  ;;  %2337 = vrot.lane.b32.xlu1 %v9107_v58, %s3967_s10 }
 0x2b9   :  { %9105 = vst [vmem:[#allocation24_spill] sm:$0xff] %v7227_v14 }
 0x2ba   :  { %v7229_v24 = vpop.permute.xlu0 %2009 }
 0x2bb   :  { %9106 = vst [vmem:[#allocation185_spill] sm:$0xff] %v7229_v24  ;;  %2634 = vrot.lane.b32.xlu0 %v9107_v58, %s3970_s19 }
 0x2bc   :  { %v7235_v28 = vpop.permute.xlu1 %2015  ;;  %2735 = vrot.lane.b32.xlu1 %v6633_v19, %s3971_s1 }
 0x2bd   :  { %9108 = vst [vmem:[#allocation184_spill] sm:$0xff] %v7235_v28 }
 0x2be   :  { %v7237_v56 = vpop.permute.xlu0 %2013 }
 0x2bf   :  { %9109 = vst [vmem:[#allocation135_spill] sm:$0xff] %v7237_v56  ;;  %2636 = vrot.lane.b32.xlu0 %v9110_v9, %s3970_s19 }
 0x2c0   :  { %v7243_v13 = vpop.permute.xlu1 %2019  ;;  %2438 = vrot.lane.b32.xlu1 %v6633_v19, %s3968_s13 }
 0x2c1   :  { %9111 = vst [vmem:[#allocation136_spill] sm:$0xff] %v7243_v13 }
 0x2c2   :  { %v7245_v14 = vpop.permute.xlu0 %2017 }
 0x2c3   :  { %9112 = vst [vmem:[#allocation188_spill] sm:$0xff] %v7245_v14  ;;  %2339 = vrot.lane.b32.xlu0 %v9110_v9, %s3967_s10  ;;  %v9113_v14 = vld [vmem:[#allocation211_spill] sm:$0xff] }
 0x2c4   :  { %v7251_v58 = vpop.permute.xlu1 %2135  ;;  %2440 = vrot.lane.b32.xlu1 %v6623_v59, %s3968_s13 }
 0x2c6   :  { %v7253_v28 = vpop.permute.xlu0 %2133 }
 0x2c7   :  { %2737 = vrot.lane.b32.xlu0 %v6623_v59, %s3971_s1 }
 0x2c8   :  { %v7259_v56 = vpop.permute.xlu1 %2139  ;;  %2538 = vrot.lane.b32.xlu1 %v7120_v23, %s3969_s14 }
 0x2ca   :  { %v7261_v13 = vpop.permute.xlu0 %2137 }
 0x2cb   :  { %2536 = vrot.lane.b32.xlu0 %v7127_v8, %s3969_s14 }
 0x2cc   :  { %v7267_v9 = vpop.permute.xlu1 %2143  ;;  %2341 = vrot.lane.b32.xlu1 %v9113_v14, %s3967_s10 }
 0x2ce   :  { %v7269_v19 = vpop.permute.xlu0 %2141 }
 0x2cf   :  { %2638 = vrot.lane.b32.xlu0 %v9113_v14, %s3970_s19 }
 0x2d0   :  { %v7275_v59 = vpop.permute.xlu1 %2147  ;;  %2739 = vrot.lane.b32.xlu1 %v6673_v21, %s3971_s1 }
 0x2d2   :  { %v7277_v24 = vpop.permute.xlu0 %2145 }
 0x2d3   :  { %2640 = vrot.lane.b32.xlu0 %v9114_v52, %s3970_s19 }
 0x2d4   :  { %v7283_v27 = vpop.permute.xlu1 %2151  ;;  %2442 = vrot.lane.b32.xlu1 %v6673_v21, %s3968_s13 }
 0x2d5   :  { %9115 = vst [vmem:[#allocation121_spill] sm:$0xff] %v7283_v27 }
 0x2d6   :  { %v7285_v51 = vpop.permute.xlu0 %2149 }
 0x2d7   :  { %2343 = vrot.lane.b32.xlu0 %v9114_v52, %s3967_s10 }
 0x2d8   :  { %v7291_v14 = vpop.permute.xlu1 %2155  ;;  %2444 = vrot.lane.b32.xlu1 %v6663_v37, %s3968_s13 }
 0x2d9   :  { %9116 = vst [vmem:[#allocation161_spill] sm:$0xff] %v7291_v14 }
 0x2da   :  { %v7293_v10 = vpop.permute.xlu0 %2153 }
 0x2db   :  { %9117 = vst [vmem:[#allocation162_spill] sm:$0xff] %v7293_v10  ;;  %2741 = vrot.lane.b32.xlu0 %v6663_v37, %s3971_s1 }
 0x2dc   :  { %v7299_v25 = vpop.permute.xlu1 %2159  ;;  %2542 = vrot.lane.b32.xlu1 %v7138_v31, %s3969_s14 }
 0x2dd   :  { %9118 = vst [vmem:[#allocation167_spill] sm:$0xff] %v7299_v25 }
 0x2de   :  { %v7301_v6 = vpop.permute.xlu0 %2157 }
 0x2df   :  { %9119 = vst [vmem:[#allocation186_spill] sm:$0xff] %v7301_v6  ;;  %2540 = vrot.lane.b32.xlu0 %v7145_v38, %s3969_s14 }
 0x2e0   :  { %v7307_v21 = vpop.permute.xlu1 %2163  ;;  %2345 = vrot.lane.b32.xlu1 %v9122_v48, %s3967_s10 }
 0x2e1   :  { %9120 = vst [vmem:[#allocation187_spill] sm:$0xff] %v7307_v21 }
 0x2e2   :  { %v7309_v52 = vpop.permute.xlu0 %2161 }
 0x2e3   :  { %9121 = vst [vmem:[#allocation168_spill] sm:$0xff] %v7309_v52  ;;  %2642 = vrot.lane.b32.xlu0 %v9122_v48, %s3970_s19 }
 0x2e4   :  { %v7315_v37 = vpop.permute.xlu1 %2167  ;;  %2743 = vrot.lane.b32.xlu1 %v6713_v43, %s3971_s1 }
 0x2e5   :  { %9123 = vst [vmem:[#allocation190_spill] sm:$0xff] %v7315_v37 }
 0x2e6   :  { %v7317_v25 = vpop.permute.xlu0 %2165 }
 0x2e7   :  { %9124 = vst [vmem:[#allocation189_spill] sm:$0xff] %v7317_v25  ;;  %2644 = vrot.lane.b32.xlu0 %v9125_v46, %s3970_s19 }
 0x2e8   :  { %v7323_v6 = vpop.permute.xlu1 %2171  ;;  %2446 = vrot.lane.b32.xlu1 %v6713_v43, %s3968_s13 }
 0x2e9   :  { %9126 = vst [vmem:[#allocation137_spill] sm:$0xff] %v7323_v6 }
 0x2ea   :  { %v7325_v21 = vpop.permute.xlu0 %2169 }
 0x2eb   :  { %9127 = vst [vmem:[#allocation138_spill] sm:$0xff] %v7325_v21  ;;  %2347 = vrot.lane.b32.xlu0 %v9125_v46, %s3967_s10 }
 0x2ec   :  { %v7331_v48 = vpop.permute.xlu1 %2175  ;;  %2448 = vrot.lane.b32.xlu1 %v6703_v4, %s3968_s13 }
 0x2ed   :  { %9128 = vst [vmem:[#allocation193_spill] sm:$0xff] %v7331_v48  ;;  %v9134_v48 = vld [vmem:[#allocation42_spill] sm:$0xff] }
 0x2ee   :  { %v7333_v37 = vpop.permute.xlu0 %2173 }
 0x2ef   :  { %9129 = vst [vmem:[#allocation122_spill] sm:$0xff] %v7333_v37  ;;  %2745 = vrot.lane.b32.xlu0 %v6703_v4, %s3971_s1 }
 0x2f0   :  { %v7339_v25 = vpop.permute.xlu1 %2179  ;;  %2546 = vrot.lane.b32.xlu1 %v7156_v60, %s3969_s14 }
 0x2f1   :  { %9130 = vst [vmem:[#allocation163_spill] sm:$0xff] %v7339_v25 }
 0x2f2   :  { %v7341_v6 = vpop.permute.xlu0 %2177 }
 0x2f3   :  { %9131 = vst [vmem:[#allocation164_spill] sm:$0xff] %v7341_v6  ;;  %2544 = vrot.lane.b32.xlu0 %v7163_v33, %s3969_s14  ;;  %v9137_v6 = vld [vmem:[#allocation39_spill] sm:$0xff] }
 0x2f4   :  { %v7347_v46 = vpop.permute.xlu1 %2183  ;;  %2349 = vrot.lane.b32.xlu1 %v9134_v48, %s3967_s10 }
 0x2f5   :  { %9132 = vst [vmem:[#allocation169_spill] sm:$0xff] %v7347_v46 }
 0x2f6   :  { %v7349_v43 = vpop.permute.xlu0 %2181 }
 0x2f7   :  { %9133 = vst [vmem:[#allocation191_spill] sm:$0xff] %v7349_v43  ;;  %2646 = vrot.lane.b32.xlu0 %v9134_v48, %s3970_s19 }
 0x2f8   :  { %v7355_v4 = vpop.permute.xlu1 %2187  ;;  %2747 = vrot.lane.b32.xlu1 %v6753_v32, %s3971_s1 }
 0x2f9   :  { %9135 = vst [vmem:[#allocation192_spill] sm:$0xff] %v7355_v4 }
 0x2fa   :  { %v7357_v25 = vpop.permute.xlu0 %2185 }
 0x2fb   :  { %9136 = vst [vmem:[#allocation170_spill] sm:$0xff] %v7357_v25  ;;  %2648 = vrot.lane.b32.xlu0 %v9137_v6, %s3970_s19 }
 0x2fc   :  { %v7363_v37 = vpop.permute.xlu1 %2191  ;;  %2450 = vrot.lane.b32.xlu1 %v6753_v32, %s3968_s13 }
 0x2fd   :  { %9138 = vst [vmem:[#allocation196_spill] sm:$0xff] %v7363_v37 }
 0x2fe   :  { %v7365_v46 = vpop.permute.xlu0 %2189 }
 0x2ff   :  { %9139 = vst [vmem:[#allocation194_spill] sm:$0xff] %v7365_v46  ;;  %2351 = vrot.lane.b32.xlu0 %v9137_v6, %s3967_s10  ;;  %v9143_v46 = vld [vmem:[#allocation48_spill] sm:$0xff] }
 0x300   :  { %v7371_v48 = vpop.permute.xlu1 %2195  ;;  %2452 = vrot.lane.b32.xlu1 %v6743_v36, %s3968_s13 }
 0x301   :  { %9140 = vst [vmem:[#allocation139_spill] sm:$0xff] %v7371_v48 }
 0x302   :  { %v7373_v4 = vpop.permute.xlu0 %2193 }
 0x303   :  { %9141 = vst [vmem:[#allocation140_spill] sm:$0xff] %v7373_v4  ;;  %2749 = vrot.lane.b32.xlu0 %v6743_v36, %s3971_s1  ;;  %v9142_v4 = vld [vmem:[#allocation50_spill] sm:$0xff] }
 0x304   :  { %v7379_v25 = vpop.permute.xlu1 %2233  ;;  %2550 = vrot.lane.b32.xlu1 %v7174_v1, %s3969_s14 }
 0x306   :  { %v7381_v37 = vpop.permute.xlu0 %2231 }
 0x307   :  { %2548 = vrot.lane.b32.xlu0 %v7181_v34, %s3969_s14 }
 0x308   :  { %v7387_v32 = vpop.permute.xlu1 %2237  ;;  %2353 = vrot.lane.b32.xlu1 %v9142_v4, %s3967_s10 }
 0x30a   :  { %v7389_v6 = vpop.permute.xlu0 %2235 }
 0x30b   :  { %2650 = vrot.lane.b32.xlu0 %v9142_v4, %s3970_s19 }
 0x30c   :  { %v7395_v36 = vpop.permute.xlu1 %2241  ;;  %2751 = vrot.lane.b32.xlu1 %v6793_v50, %s3971_s1 }
 0x30e   :  { %v7397_v48 = vpop.permute.xlu0 %2239 }
 0x30f   :  { %2652 = vrot.lane.b32.xlu0 %v9143_v46, %s3970_s19 }
 0x310   :  { %v7403_v43 = vpop.permute.xlu1 %2245  ;;  %2454 = vrot.lane.b32.xlu1 %v6793_v50, %s3968_s13 }
 0x312   :  { %v7405_v21 = vpop.permute.xlu0 %2243 }
 0x313   :  { %2355 = vrot.lane.b32.xlu0 %v9143_v46, %s3967_s10 }
 0x314   :  { %v7411_v4 = vpop.permute.xlu1 %2249  ;;  %2456 = vrot.lane.b32.xlu1 %v6783_v55, %s3968_s13 }
 0x315   :  { %9144 = vst [vmem:[#allocation200_spill] sm:$0xff] %v7411_v4 }
 0x316   :  { %v7413_v52 = vpop.permute.xlu0 %2247 }
 0x317   :  { %2753 = vrot.lane.b32.xlu0 %v6783_v55, %s3971_s1  ;;  %v9149_v55 = vld [vmem:[#allocation57_spill] sm:$0xff] }
 0x318   :  { %v7419_v1 = vpop.permute.xlu1 %2253  ;;  %2554 = vrot.lane.b32.xlu1 %v7192_v26, %s3969_s14 }
 0x319   :  { %9145 = vst [vmem:[#allocation123_spill] sm:$0xff] %v7419_v1 }
 0x31a   :  { %v7421_v34 = vpop.permute.xlu0 %2251 }
 0x31b   :  { %9146 = vst [vmem:[#allocation165_spill] sm:$0xff] %v7421_v34  ;;  %2552 = vrot.lane.b32.xlu0 %v7199_v5, %s3969_s14 }
 0x31c   :  { %v3746_v50 = vpop.f32.mrb[0].mxu0  ;;  %v7427_v40 = vpop.permute.xlu1 %2257  ;;  %2357 = vrot.lane.b32.xlu1 %v9149_v55, %s3967_s10 }
 0x31d   :  { %v1705_v46 = vmul.f32 %v3746_v50, %v3746_v50  ;;  %v1507_v22 = vpop.f32.mrb[1].mxu0  ;;  %9147 = vst [vmem:[#allocation166_spill] sm:$0xff] %v7427_v40 }
 0x31e   :  { %v1666_v61 = vadd.f32 %v3746_v50, %v1507_v22  ;;  %v1704_v14 = vmul.f32 %v1507_v22, %v1507_v22  ;;  %v7429_v60 = vpop.permute.xlu0 %2255 }
 0x31f   :  { %9148 = vst [vmem:[#allocation171_spill] sm:$0xff] %v7429_v60  ;;  %2654 = vrot.lane.b32.xlu0 %v9149_v55, %s3970_s19  ;;  %v9150_v60 = vld [vmem:[#allocation55_spill] sm:$0xff] }
 0x320   :  { %v1736_v1 = vadd.f32 %v1705_v46, %v1704_v14  ;;  %v3749_v47 = vpop.f32.mrb[2].mxu0  ;;  %v7435_v34 = vpop.permute.xlu1 %2335  ;;  %2755 = vrot.lane.b32.xlu1 %v6833_v30, %s3971_s1 }
 0x321   :  { %v1517_v26 = vpop.f32.mrb[3].mxu0  ;;  %v1707_v22 = vmul.f32 %v3749_v47, %v3749_v47 }
 0x322   :  { %v1667_v5 = vadd.f32 %v1666_v61, %v1517_v26  ;;  %v1706_v10 = vmul.f32 %v1517_v26, %v1517_v26  ;;  %v2334_v33 = vpop.permute.xlu0 %2333 }
 0x323   :  { %2656 = vrot.lane.b32.xlu0 %v9150_v60, %s3970_s19 }
 0x324   :  { %v1737_v50 = vadd.f32 %v1736_v1, %v1706_v10  ;;  %v3752_v40 = vpop.f32.mrb[4].mxu0  ;;  %v1668_v14 = vadd.f32 %v3749_v47, %v1667_v5  ;;  %v7441_v35 = vpop.permute.xlu1 %2436  ;;  %2458 = vrot.lane.b32.xlu1 %v6833_v30, %s3968_s13 }
 0x325   :  { %v1527_v46 = vpop.f32.mrb[5].mxu0  ;;  %v1709_v61 = vmul.f32 %v3752_v40, %v3752_v40 }
 0x326   :  { %v1669_v55 = vadd.f32 %v1668_v14, %v1527_v46  ;;  %v1708_v63 = vmul.f32 %v1527_v46, %v1527_v46  ;;  %v1738_v4 = vadd.f32 %v1737_v50, %v1707_v22  ;;  %v2435_v27 = vpop.permute.xlu0 %2434  ;;  %v3944_v22 = vld [vmem:[%s8234_s0 + $0x1b0] sm:$0xff] }
 0x327   :  { %2359 = vrot.lane.b32.xlu0 %v9150_v60, %s3967_s10  ;;  %v2831_v30 = vsel %vm1080_vm2, %v3944_v22, %v7040_v53 }
 0x328   :  { %v1739_v26 = vadd.f32 %v1738_v4, %v1708_v63  ;;  %v3755_v31 = vpop.f32.mrb[6].mxu0  ;;  %v1670_v10 = vadd.f32 %v3752_v40, %v1669_v55  ;;  %v7447_v0 = vpop.permute.xlu1 %2534  ;;  %2460 = vrot.lane.b32.xlu1 %v6823_v3, %s3968_s13  ;;  %v2863_v63 = vsel %vm1113_vm3, %v2831_v30, %v7253_v28 }
 0x329   :  { %v1537_v1 = vpop.f32.mrb[7].mxu0  ;;  %v1711_v40 = vmul.f32 %v3755_v31, %v3755_v31  ;;  %v2895_v46 = vsel %vm1146_vm4, %v2863_v63, %v7381_v37 }
 0x32a   :  { %v1671_v47 = vadd.f32 %v1670_v10, %v1537_v1  ;;  %v1710_v5 = vmul.f32 %v1537_v1, %v1537_v1  ;;  %v1740_v29 = vadd.f32 %v1739_v26, %v1709_v61  ;;  %v2533_v14 = vpop.permute.xlu0 %2532  ;;  %v2927_v53 = vsel %vm1179_vm5, %v2895_v46, %v2334_v33 }
 0x32b   :  { %2757 = vrot.lane.b32.xlu0 %v6823_v3, %s3971_s1  ;;  %v2959_v28 = vsel %vm1212_vm6, %v2927_v53, %v2435_v27 }
 0x32c   :  { %v1741_v60 = vadd.f32 %v1740_v29, %v1710_v5  ;;  %v3758_v4 = vpop.f32.mrb[8].mxu0  ;;  %v1672_v50 = vadd.f32 %v3755_v31, %v1671_v47  ;;  %v7462_v61 = vpop.permute.xlu1 %2337  ;;  %v7469_v29 = vld [vmem:[%s8234_s0 + $0x270] sm:$0xff]  ;;  %v2991_v3 = vsel %vm1245_vm7, %v2959_v28, %v2533_v14  ;;  %v3946_v14 = vld [vmem:[%s8234_s0 + $0x1b8] sm:$0xff] }
 0x32d   :  { %v1547_v55 = vpop.f32.mrb[9].mxu0  ;;  %2259 = vrot.lane.b32.xlu1 %v7469_v29, %s3966_s5  ;;  %v1713_v31 = vmul.f32 %v3758_v4, %v3758_v4 }
 0x32e   :  { %v1673_v26 = vadd.f32 %v1672_v50, %v1547_v55  ;;  %v1712_v10 = vmul.f32 %v1547_v55, %v1547_v55  ;;  %v1742_v1 = vadd.f32 %v1741_v60, %v1711_v40  ;;  %v2635_v22 = vpop.permute.xlu0 %2634  ;;  %v9151_v55 = vld [vmem:[#allocation64_spill] sm:$0xff] }
 0x32f   :  { %2556 = vrot.lane.b32.xlu0 %v7469_v29, %s3969_s14  ;;  %v3023_v5 = vsel %vm1278_vm8, %v2991_v3, %v2635_v22 }
 0x330   :  { %v1743_v37 = vadd.f32 %v1742_v1, %v1712_v10  ;;  %v3761_v47 = vpop.f32.mrb[10].mxu0  ;;  %v1674_v33 = vadd.f32 %v3758_v4, %v1673_v26  ;;  %v2736_v30 = vpop.permute.xlu1 %2735  ;;  %v2832_v4 = vsel %vm1080_vm2, %v3946_v14, %v7034_v7  ;;  %v7489_v1 = vld [vmem:[%s8234_s0 + $0x278] sm:$0xff] }
 0x331   :  { %v1557_v27 = vpop.f32.mrb[11].mxu0  ;;  %v3055_v46 = vsel %vm1311_vm9, %v3023_v5, %v2736_v30  ;;  %2658 = vrot.lane.b32.xlu1 %v9151_v55, %s3970_s19  ;;  %v1715_v53 = vmul.f32 %v3761_v47, %v3761_v47  ;;  %v2864_v28 = vsel %vm1113_vm3, %v2832_v4, %v7251_v58 }
 0x332   :  { %v1675_v63 = vadd.f32 %v1674_v33, %v1557_v27  ;;  %v1714_v40 = vmul.f32 %v1557_v27, %v1557_v27  ;;  %v1744_v60 = vadd.f32 %v1743_v37, %v1713_v31  ;;  %v2637_v50 = vpop.permute.xlu0 %2636  ;;  %3810 = vmatprep.mubr.msk.f32.mxu1 %vm1344_vm10, %v3055_v46  ;;  %v2896_v7 = vsel %vm1146_vm4, %v2864_v28, %v7379_v25 }
 0x333   :  { %2558 = vrot.lane.b32.xlu0 %v7489_v1, %s3969_s14  ;;  %v2928_v30 = vsel %vm1179_vm5, %v2896_v7, %v7435_v34 }
 0x334   :  { %v1745_v26 = vadd.f32 %v1744_v60, %v1714_v40  ;;  %v3764_v10 = vpop.f32.mrb[12].mxu0  ;;  %v1676_v22 = vadd.f32 %v3761_v47, %v1675_v63  ;;  %v2439_v31 = vpop.permute.xlu1 %2438  ;;  %v2960_v47 = vsel %vm1212_vm6, %v2928_v30, %v7441_v35 }
 0x335   :  { %v1567_v3 = vpop.f32.mrb[13].mxu0  ;;  %2361 = vrot.lane.b32.xlu1 %v9151_v55, %s3967_s10  ;;  %v1717_v58 = vmul.f32 %v3764_v10, %v3764_v10  ;;  %v2992_v60 = vsel %vm1245_vm7, %v2960_v47, %v7447_v0  ;;  %v2833_v47 = vsel %vm1080_vm2, %v7091_v54, %v7057_v39 }
 0x336   :  { %v1677_v37 = vadd.f32 %v1676_v22, %v1567_v3  ;;  %v1716_v33 = vmul.f32 %v1567_v3, %v1567_v3  ;;  %v1746_v5 = vadd.f32 %v1745_v26, %v1715_v53  ;;  %v7497_v27 = vpop.permute.xlu0 %2339  ;;  %v3024_v34 = vsel %vm1278_vm8, %v2992_v60, %v2637_v50  ;;  %v9152_v3 = vld [vmem:[#allocation62_spill] sm:$0xff] }
 0x337   :  { %2261 = vrot.lane.b32.xlu0 %v7489_v1, %s3966_s5 }
 0x338   :  { %v1747_v63 = vadd.f32 %v1746_v5, %v1716_v33  ;;  %v3767_v40 = vpop.f32.mrb[14].mxu0  ;;  %v1678_v25 = vadd.f32 %v3764_v10, %v1677_v37  ;;  %v7509_v14 = vpop.permute.xlu1 %2440 }
 0x339   :  { %v1577_v46 = vpop.f32.mrb[15].mxu0  ;;  %2759 = vrot.lane.b32.xlu1 %v6871_v2, %s3971_s1  ;;  %v1719_v22 = vmul.f32 %v3767_v40, %v3767_v40 }
 0x33a   :  { %v1679_v4 = vadd.f32 %v1678_v25, %v1577_v46  ;;  %v1718_v55 = vmul.f32 %v1577_v46, %v1577_v46  ;;  %v1748_v53 = vadd.f32 %v1747_v63, %v1717_v58  ;;  %v2738_v26 = vpop.permute.xlu0 %2737  ;;  %v2865_v58 = vsel %vm1113_vm3, %v2833_v47, %v7261_v13 }
 0x33b   :  { %v3056_v35 = vsel %vm1311_vm9, %v3024_v34, %v2738_v26  ;;  %2660 = vrot.lane.b32.xlu0 %v9152_v3, %s3970_s19  ;;  %v2897_v46 = vsel %vm1146_vm4, %v2865_v58, %v7389_v6 }
 0x33c   :  { %v1749_v28 = vadd.f32 %v1748_v53, %v1718_v55  ;;  %v3770_v10 = vpop.f32.mrb[16].mxu0  ;;  %3811 = vmatmul.mubr.msk.f32.vlgmr.msra.gmra.mrb[0].mxu1 %vm1344_vm10, %v3056_v35  ;;  %v1680_v0 = vadd.f32 %v3767_v40, %v1679_v4  ;;  %v7518_v50 = vpop.permute.xlu1 %2538  ;;  %v2929_v39 = vsel %vm1179_vm5, %v2897_v46, %v7462_v61 }
 0x33d   :  { %v1587_v7 = vpop.f32.mrb[17].mxu0  ;;  %2462 = vrot.lane.b32.xlu1 %v6871_v2, %s3968_s13  ;;  %v1721_v63 = vmul.f32 %v3770_v10, %v3770_v10  ;;  %v2961_v53 = vsel %vm1212_vm6, %v2929_v39, %v2439_v31 }
 0x33e   :  { %v1681_v37 = vadd.f32 %v1680_v0, %v1587_v7  ;;  %v1720_v33 = vmul.f32 %v1587_v7, %v1587_v7  ;;  %v1750_v5 = vadd.f32 %v1749_v28, %v1719_v22  ;;  %v2537_v30 = vpop.permute.xlu0 %2536 }
 0x33f   :  { %2363 = vrot.lane.b32.xlu0 %v9152_v3, %s3967_s10  ;;  %v2993_v26 = vsel %vm1245_vm7, %v2961_v53, %v2537_v30 }
 0x340   :  { %v1751_v25 = vadd.f32 %v1750_v5, %v1720_v33  ;;  %v1682_v60 = vadd.f32 %v3770_v10, %v1681_v37  ;;  %v7531_v4 = vpop.permute.xlu1 %2341  ;;  %v7546_v5 = vld [vmem:[%s8234_s0 + $0x288] sm:$0xff] }
 0x341   :  { %v3773_v40 = vpop.f32.mrb[18].mxu0  ;;  %2464 = vrot.lane.b32.xlu1 %v6861_v42, %s3968_s13 }
 0x342   :  { %v1597_v34 = vpop.f32.mrb[19].mxu0  ;;  %v1752_v55 = vadd.f32 %v1751_v25, %v1721_v63  ;;  %v2639_v13 = vpop.permute.xlu0 %2638  ;;  %v1723_v35 = vmul.f32 %v3773_v40, %v3773_v40 }
 0x343   :  { %v1683_v2 = vadd.f32 %v1682_v60, %v1597_v34  ;;  %v1722_v54 = vmul.f32 %v1597_v34, %v1597_v34  ;;  %2761 = vrot.lane.b32.xlu0 %v6861_v42, %s3971_s1  ;;  %v3025_v61 = vsel %vm1278_vm8, %v2993_v26, %v2639_v13  ;;  %v2834_v42 = vsel %vm1080_vm2, %v7084_v15, %v7051_v44  ;;  %v9153_v15 = vld [vmem:[#allocation71_spill] sm:$0xff] }
 0x344   :  { %v2740_v3 = vpop.permute.xlu1 %2739  ;;  %v2866_v25 = vsel %vm1113_vm3, %v2834_v42, %v7259_v56 }
 0x345   :  { %v1753_v22 = vadd.f32 %v1752_v55, %v1722_v54  ;;  %v3776_v6 = vpop.f32.mrb[20].mxu0  ;;  %v1684_v28 = vadd.f32 %v3773_v40, %v1683_v2  ;;  %v3057_v31 = vsel %vm1311_vm9, %v3025_v61, %v2740_v3  ;;  %2263 = vrot.lane.b32.xlu1 %v7546_v5, %s3966_s5  ;;  %v2898_v46 = vsel %vm1146_vm4, %v2866_v25, %v7387_v32  ;;  %v7571_v32 = vld [vmem:[%s8234_s0 + $0x290] sm:$0xff] }
 0x346   :  { %v1607_v10 = vpop.f32.mrb[21].mxu0  ;;  %v2641_v33 = vpop.permute.xlu0 %2640  ;;  %3813 = vmatprep.mubr.msk.f32.mxu1 %vm1344_vm10, %v3057_v31  ;;  %v1725_v30 = vmul.f32 %v3776_v6, %v3776_v6  ;;  %v2930_v44 = vsel %vm1179_vm5, %v2898_v46, %v7497_v27 }
 0x347   :  { %v1685_v0 = vadd.f32 %v1684_v28, %v1607_v10  ;;  %v1724_v7 = vmul.f32 %v1607_v10, %v1607_v10  ;;  %v1754_v37 = vadd.f32 %v1753_v22, %v1723_v35  ;;  %2560 = vrot.lane.b32.xlu0 %v7546_v5, %s3969_s14  ;;  %v2962_v55 = vsel %vm1212_vm6, %v2930_v44, %v7509_v14 }
 0x348   :  { %v2443_v60 = vpop.permute.xlu1 %2442  ;;  %v2994_v27 = vsel %vm1245_vm7, %v2962_v55, %v7518_v50 }
 0x349   :  { %v1755_v47 = vadd.f32 %v1754_v37, %v1724_v7  ;;  %v3779_v58 = vpop.f32.mrb[22].mxu0  ;;  %v1686_v63 = vadd.f32 %v3776_v6, %v1685_v0  ;;  %2662 = vrot.lane.b32.xlu1 %v9153_v15, %s3970_s19  ;;  %v3026_v14 = vsel %vm1278_vm8, %v2994_v27, %v2641_v33 }
 0x34a   :  { %v1617_v40 = vpop.f32.mrb[23].mxu0  ;;  %v7560_v54 = vpop.permute.xlu0 %2343  ;;  %v1727_v56 = vmul.f32 %v3779_v58, %v3779_v58 }
 0x34b   :  { %v1687_v34 = vadd.f32 %v1686_v63, %v1617_v40  ;;  %v1726_v39 = vmul.f32 %v1617_v40, %v1617_v40  ;;  %v1756_v2 = vadd.f32 %v1755_v47, %v1725_v30  ;;  %2562 = vrot.lane.b32.xlu0 %v7571_v32, %s3969_s14  ;;  %v2835_v63 = vsel %vm1080_vm2, %v7109_v16, %v7071_v18 }
 0x34c   :  { %v7577_v22 = vpop.permute.xlu1 %2444  ;;  %v2867_v25 = vsel %vm1113_vm3, %v2835_v63, %v7269_v19 }
 0x34d   :  { %v1757_v13 = vadd.f32 %v1756_v2, %v1726_v39  ;;  %v3782_v53 = vpop.f32.mrb[24].mxu0  ;;  %v1688_v26 = vadd.f32 %v3779_v58, %v1687_v34  ;;  %2365 = vrot.lane.b32.xlu1 %v9153_v15, %s3967_s10  ;;  %v9154_v39 = vld [vmem:[#allocation69_spill] sm:$0xff]  ;;  %v2899_v44 = vsel %vm1146_vm4, %v2867_v25, %v7397_v48 }
 0x34e   :  { %v1627_v35 = vpop.f32.mrb[25].mxu0  ;;  %v2742_v10 = vpop.permute.xlu0 %2741  ;;  %v1729_v0 = vmul.f32 %v3782_v53, %v3782_v53  ;;  %v2931_v18 = vsel %vm1179_vm5, %v2899_v44, %v7531_v4 }
 0x34f   :  { %v1689_v6 = vadd.f32 %v1688_v26, %v1627_v35  ;;  %v1728_v28 = vmul.f32 %v1627_v35, %v1627_v35  ;;  %v1758_v61 = vadd.f32 %v1757_v13, %v1727_v56  ;;  %v3058_v3 = vsel %vm1311_vm9, %v3026_v14, %v2742_v10  ;;  %2265 = vrot.lane.b32.xlu0 %v7571_v32, %s3966_s5 }
 0x350   :  { %3814 = vmatmul.mubr.msk.f32.gmra.mrb[2].mxu1 %vm1344_vm10, %v3058_v3  ;;  %v2543_v33 = vpop.permute.xlu1 %2542  ;;  %v2963_v19 = vsel %vm1212_vm6, %v2931_v18, %v2443_v60 }
 0x351   :  { %v1759_v7 = vadd.f32 %v1758_v61, %v1728_v28  ;;  %v3785_v37 = vpop.f32.mrb[26].mxu0  ;;  %v1690_v50 = vadd.f32 %v3782_v53, %v1689_v6  ;;  %2763 = vrot.lane.b32.xlu1 %v6909_v12, %s3971_s1 }
 0x352   :  { %v1637_v31 = vpop.f32.mrb[27].mxu0  ;;  %v2541_v58 = vpop.permute.xlu0 %2540  ;;  %v1731_v40 = vmul.f32 %v3785_v37, %v3785_v37 }
 0x353   :  { %v1691_v42 = vadd.f32 %v1690_v50, %v1637_v31  ;;  %v1730_v30 = vmul.f32 %v1637_v31, %v1637_v31  ;;  %v1760_v47 = vadd.f32 %v1759_v7, %v1729_v0  ;;  %2664 = vrot.lane.b32.xlu0 %v9154_v39, %s3970_s19  ;;  %v2995_v26 = vsel %vm1245_vm7, %v2963_v19, %v2541_v58 }
 0x354   :  { %v2346_v55 = vpop.permute.xlu1 %2345 }
 0x355   :  { %v1761_v46 = vadd.f32 %v1760_v47, %v1730_v30  ;;  %v3788_v34 = vpop.f32.mrb[28].mxu0  ;;  %v1692_v2 = vadd.f32 %v3785_v37, %v1691_v42  ;;  %2466 = vrot.lane.b32.xlu1 %v6909_v12, %s3968_s13  ;;  %v2836_v12 = vsel %vm1080_vm2, %v7102_v45, %v7066_v62  ;;  %v7628_v45 = vld [vmem:[%s8234_s0 + $0x2a0] sm:$0xff] }
 0x356   :  { %v1647_v15 = vpop.f32.mrb[29].mxu0  ;;  %v2643_v53 = vpop.permute.xlu0 %2642  ;;  %v1733_v27 = vmul.f32 %v3788_v34, %v3788_v34  ;;  %v2868_v31 = vsel %vm1113_vm3, %v2836_v12, %v7267_v9 }
 0x357   :  { %v1693_v16 = vadd.f32 %v1692_v2, %v1647_v15  ;;  %v1732_v56 = vmul.f32 %v1647_v15, %v1647_v15  ;;  %v1762_v13 = vadd.f32 %v1761_v46, %v1731_v40  ;;  %2367 = vrot.lane.b32.xlu0 %v9154_v39, %s3967_s10  ;;  %v3027_v4 = vsel %vm1278_vm8, %v2995_v26, %v2643_v53  ;;  %v9155_v40 = vld [vmem:[#allocation78_spill] sm:$0xff]  ;;  %v7644_v46 = vld [vmem:[%s8234_s0 + $0x2a8] sm:$0xff] }
 0x358   :  { %v2744_v28 = vpop.permute.xlu1 %2743  ;;  %v2900_v30 = vsel %vm1146_vm4, %v2868_v31, %v7395_v36  ;;  %v9158_v31 = vld [vmem:[#allocation100_spill] sm:$0xff] }
 0x359   :  { %v1763_v35 = vadd.f32 %v1762_v13, %v1732_v56  ;;  %v3791_v14 = vpop.f32.mrb[30].mxu0  ;;  %v1694_v48 = vadd.f32 %v3788_v34, %v1693_v16  ;;  %v3059_v60 = vsel %vm1311_vm9, %v3027_v4, %v2744_v28  ;;  %2468 = vrot.lane.b32.xlu1 %v6899_v11, %s3968_s13  ;;  %v2932_v62 = vsel %vm1179_vm5, %v2900_v30, %v7560_v54  ;;  %v9157_v28 = vld [vmem:[#allocation2_spill] sm:$0xff]  ;;  %v9160_v30 = vld [vmem:[#allocation113_spill] sm:$0xff] }
 0x35a   :  { %v1657_v6 = vpop.f32.mrb[31].mxu0  ;;  %v2645_v0 = vpop.permute.xlu0 %2644  ;;  %3816 = vmatprep.mubr.msk.f32.mxu1 %vm1344_vm10, %v3059_v60  ;;  %v1735_v7 = vmul.f32 %v3791_v14, %v3791_v14  ;;  %v2837_v34 = vsel %vm1080_vm2, %v7127_v8, %v7079_v57  ;;  %v9156_v8 = vld [vmem:[#allocation76_spill] sm:$0xff] }
 0x35b   :  { %v1695_v61 = vadd.f32 %v1694_v48, %v1657_v6  ;;  %v1734_v10 = vmul.f32 %v1657_v6, %v1657_v6  ;;  %v1764_v3 = vadd.f32 %v1763_v35, %v1733_v27  ;;  %2765 = vrot.lane.b32.xlu0 %v6899_v11, %s3971_s1  ;;  %v2964_v11 = vsel %vm1212_vm6, %v2932_v62, %v7577_v22  ;;  %v9161_v62 = vld [vmem:[#allocation83_spill] sm:$0xff] }
 0x35c   :  { %v2447_v42 = vpop.permute.xlu1 %2446  ;;  %v2996_v9 = vsel %vm1245_vm7, %v2964_v11, %v2543_v33  ;;  %v2869_v39 = vsel %vm1113_vm3, %v2837_v34, %v7277_v24  ;;  %v2839_v6 = vsel %vm1080_vm2, %v7145_v38, %v7097_v17  ;;  %v9162_v11 = vld [vmem:[#allocation121_spill] sm:$0xff] }
 0x35d   :  { %v7613_v37 = vadd.f32 %v3791_v14, %v1695_v61  ;;  %v1765_v50 = vadd.f32 %v1764_v3, %v1734_v10  ;;  %2267 = vrot.lane.b32.xlu1 %v7628_v45, %s3966_s5  ;;  %v3028_v63 = vsel %vm1278_vm8, %v2996_v9, %v2645_v0  ;;  %v2901_v2 = vsel %vm1146_vm4, %v2869_v39, %v7405_v21  ;;  %v7710_v10 = vld [vmem:[%s8234_s0 + $0x2c0] sm:$0xff] }
 0x35e   :  { %v2348_v58 = vpop.permute.xlu0 %2347  ;;  %v2933_v15 = vsel %vm1179_vm5, %v2901_v2, %v2346_v55  ;;  %v2838_v55 = vsel %vm1080_vm2, %v7120_v23, %v7077_v49  ;;  %v2871_v61 = vsel %vm1113_vm3, %v2839_v6, %v7285_v51  ;;  %v9171_v6 = vld [vmem:[#allocation115_spill] sm:$0xff] }
 0x35f   :  { %v7621_v47 = vadd.f32 %v1765_v50, %v1735_v7  ;;  %2564 = vrot.lane.b32.xlu0 %v7628_v45, %s3969_s14  ;;  %v2965_v16 = vsel %vm1212_vm6, %v2933_v15, %v2447_v42  ;;  %v2870_v53 = vsel %vm1113_vm3, %v2838_v55, %v7275_v59  ;;  %v2903_v3 = vsel %vm1146_vm4, %v2871_v61, %v7413_v52  ;;  %v9159_v42 = vld [vmem:[#allocation108_spill] sm:$0xff]  ;;  %v9164_v15 = vld [vmem:[#allocation99_spill] sm:$0xff]  ;;  %v9168_v55 = vld [vmem:[#allocation165_spill] sm:$0xff] }
 0x360   :  { %v2449_v36 = vpop.permute.xlu1 %2448  ;;  %v2902_v26 = vsel %vm1146_vm4, %v2870_v53, %v7403_v43  ;;  %v7693_v43 = vld [vmem:[%s8234_s0 + $0x2b8] sm:$0xff] }
 0x361   :  { %2666 = vrot.lane.b32.xlu1 %v9155_v40, %s3970_s19  ;;  %v2934_v35 = vsel %vm1179_vm5, %v2902_v26, %v2348_v58  ;;  %v2840_v58 = vsel %vm1080_vm2, %v9160_v30, %v9159_v42  ;;  %v9172_v61 = vld [vmem:[#allocation161_spill] sm:$0xff] }
 0x362   :  { %v2746_v54 = vpop.permute.xlu0 %2745  ;;  %v2872_v9 = vsel %vm1113_vm3, %v2840_v58, %v9162_v11 }
 0x363   :  { %v3060_v25 = vsel %vm1311_vm9, %v3028_v63, %v2746_v54  ;;  %2566 = vrot.lane.b32.xlu0 %v7644_v46, %s3969_s14  ;;  %v9163_v63 = vld [vmem:[#allocation200_spill] sm:$0xff] }
 0x364   :  { %3817 = vmatmul.mubr.msk.f32.gmra.mrb[4].mxu1 %vm1344_vm10, %v3060_v25  ;;  %v2547_v22 = vpop.permute.xlu1 %2546  ;;  %v2904_v54 = vsel %vm1146_vm4, %v2872_v9, %v9163_v63  ;;  %v9176_v9 = vld [vmem:[#allocation101_spill] sm:$0xff] }
 0x365   :  { %2369 = vrot.lane.b32.xlu1 %v9155_v40, %s3967_s10 }
 0x366   :  { %v2545_v33 = vpop.permute.xlu0 %2544 }
 0x367   :  { %2269 = vrot.lane.b32.xlu0 %v7644_v46, %s3966_s5  ;;  %v2997_v57 = vsel %vm1245_vm7, %v2965_v16, %v2545_v33 }
 0x368   :  { %v2350_v44 = vpop.permute.xlu1 %2349 }
 0x369   :  { %2767 = vrot.lane.b32.xlu1 %v6947_v41, %s3971_s1  ;;  %v2935_v17 = vsel %vm1179_vm5, %v2903_v3, %v2350_v44 }
 0x36a   :  { %v2647_v18 = vpop.permute.xlu0 %2646 }
 0x36b   :  { %2668 = vrot.lane.b32.xlu0 %v9156_v8, %s3970_s19  ;;  %v3029_v24 = vsel %vm1278_vm8, %v2997_v57, %v2647_v18  ;;  %v9165_v57 = vld [vmem:[#allocation110_spill] sm:$0xff] }
 0x36c   :  { %v2748_v56 = vpop.permute.xlu1 %2747 }
 0x36d   :  { %v3061_v13 = vsel %vm1311_vm9, %v3029_v24, %v2748_v56  ;;  %2470 = vrot.lane.b32.xlu1 %v6947_v41, %s3968_s13  ;;  %v2966_v41 = vsel %vm1212_vm6, %v2934_v35, %v2449_v36  ;;  %v7757_v56 = vld [vmem:[%s8234_s0 + $0x2d0] sm:$0xff] }
 0x36e   :  { %v2649_v21 = vpop.permute.xlu0 %2648  ;;  %3819 = vmatprep.mubr.msk.f32.mxu1 %vm1344_vm10, %v3061_v13  ;;  %v2998_v49 = vsel %vm1245_vm7, %v2966_v41, %v2547_v22  ;;  %v9167_v13 = vld [vmem:[#allocation162_spill] sm:$0xff]  ;;  %v9169_v41 = vld [vmem:[#allocation91_spill] sm:$0xff] }
 0x36f   :  { %2371 = vrot.lane.b32.xlu0 %v9156_v8, %s3967_s10  ;;  %v3030_v59 = vsel %vm1278_vm8, %v2998_v49, %v2649_v21  ;;  %v9166_v8 = vld [vmem:[#allocation27_spill] sm:$0xff] }
 0x370   :  { %v2451_v19 = vpop.permute.xlu1 %2450  ;;  %v2841_v24 = vsel %vm1080_vm2, %v9166_v8, %v9165_v57  ;;  %v9181_v57 = vld [vmem:[#allocation94_spill] sm:$0xff] }
 0x371   :  { %2472 = vrot.lane.b32.xlu1 %v6937_v20, %s3968_s13  ;;  %v2967_v0 = vsel %vm1212_vm6, %v2935_v17, %v2451_v19  ;;  %v2873_v21 = vsel %vm1113_vm3, %v2841_v24, %v9167_v13  ;;  %v9173_v17 = vld [vmem:[#allocation123_spill] sm:$0xff]  ;;  %v7837_v24 = vld [vmem:[%s8234_s0 + $0x2f0] sm:$0xff] }
 0x372   :  { %v2352_v27 = vpop.permute.xlu0 %2351  ;;  %v2905_v53 = vsel %vm1146_vm4, %v2873_v21, %v9168_v55 }
 0x373   :  { %2769 = vrot.lane.b32.xlu0 %v6937_v20, %s3971_s1  ;;  %v2936_v40 = vsel %vm1179_vm5, %v2904_v54, %v2352_v27  ;;  %v9177_v54 = vld [vmem:[#allocation112_spill] sm:$0xff] }
 0x374   :  { %v2453_v23 = vpop.permute.xlu1 %2452 }
 0x375   :  { %2271 = vrot.lane.b32.xlu1 %v7693_v43, %s3966_s5  ;;  %v2968_v22 = vsel %vm1212_vm6, %v2936_v40, %v2453_v23  ;;  %v7775_v23 = vld [vmem:[%s8234_s0 + $0x2d8] sm:$0xff] }
 0x376   :  { %v2750_v14 = vpop.permute.xlu0 %2749 }
 0x377   :  { %v3062_v48 = vsel %vm1311_vm9, %v3030_v59, %v2750_v14  ;;  %2568 = vrot.lane.b32.xlu0 %v7693_v43, %s3969_s14 }
 0x378   :  { %3820 = vmatmul.mubr.msk.f32.gmra.mrb[6].mxu1 %vm1344_vm10, %v3062_v48  ;;  %v2551_v20 = vpop.permute.xlu1 %2550 }
 0x379   :  { %2670 = vrot.lane.b32.xlu1 %v9157_v28, %s3970_s19  ;;  %v3000_v33 = vsel %vm1245_vm7, %v2968_v22, %v2551_v20  ;;  %v7817_v22 = vld [vmem:[%s8234_s0 + $0x2e8] sm:$0xff] }
 0x37a   :  { %v2549_v4 = vpop.permute.xlu0 %2548 }
 0x37b   :  { %2570 = vrot.lane.b32.xlu0 %v7710_v10, %s3969_s14  ;;  %v2999_v51 = vsel %vm1245_vm7, %v2967_v0, %v2549_v4  ;;  %v9170_v4 = vld [vmem:[#allocation109_spill] sm:$0xff] }
 0x37c   :  { %v2354_v60 = vpop.permute.xlu1 %2353 }
 0x37d   :  { %2373 = vrot.lane.b32.xlu1 %v9157_v28, %s3967_s10  ;;  %v2937_v26 = vsel %vm1179_vm5, %v2905_v53, %v2354_v60  ;;  %v2842_v28 = vsel %vm1080_vm2, %v9171_v6, %v9170_v4  ;;  %v9186_v4 = vld [vmem:[#allocation104_spill] sm:$0xff] }
 0x37e   :  { %v2651_v38 = vpop.permute.xlu0 %2650  ;;  %v2874_v3 = vsel %vm1113_vm3, %v2842_v28, %v9172_v61  ;;  %v9187_v28 = vld [vmem:[#allocation93_spill] sm:$0xff] }
 0x37f   :  { %2273 = vrot.lane.b32.xlu0 %v7710_v10, %s3966_s5  ;;  %v3031_v12 = vsel %vm1278_vm8, %v2999_v51, %v2651_v38  ;;  %v2906_v38 = vsel %vm1146_vm4, %v2874_v3, %v9173_v17 }
 0x380   :  { %v2752_v7 = vpop.permute.xlu1 %2751 }
 0x381   :  { %v3063_v50 = vsel %vm1311_vm9, %v3031_v12, %v2752_v7  ;;  %2771 = vrot.lane.b32.xlu1 %v9158_v31, %s3971_s1  ;;  %v9174_v12 = vld [vmem:[#allocation102_spill] sm:$0xff] }
 0x382   :  { %v2653_v52 = vpop.permute.xlu0 %2652  ;;  %3822 = vmatprep.mubr.msk.f32.mxu1 %vm1344_vm10, %v3063_v50  ;;  %v9175_v50 = vld [vmem:[#allocation89_spill] sm:$0xff] }
 0x383   :  { %2672 = vrot.lane.b32.xlu0 %v9161_v62, %s3970_s19  ;;  %v3032_v39 = vsel %vm1278_vm8, %v3000_v33, %v2653_v52  ;;  %v9179_v33 = vld [vmem:[#allocation186_spill] sm:$0xff] }
 0x384   :  { %v2455_v36 = vpop.permute.xlu1 %2454 }
 0x385   :  { %2474 = vrot.lane.b32.xlu1 %v9158_v31, %s3968_s13  ;;  %v2969_v35 = vsel %vm1212_vm6, %v2937_v26, %v2455_v36  ;;  %v9183_v26 = vld [vmem:[#allocation117_spill] sm:$0xff] }
 0x386   :  { %v2356_v25 = vpop.permute.xlu0 %2355 }
 0x387   :  { %2375 = vrot.lane.b32.xlu0 %v9161_v62, %s3967_s10  ;;  %v2938_v51 = vsel %vm1179_vm5, %v2906_v38, %v2356_v25  ;;  %v9178_v25 = vld [vmem:[#allocation132_spill] sm:$0xff] }
 0x388   :  { %v2457_v34 = vpop.permute.xlu1 %2456  ;;  %v2843_v40 = vsel %vm1080_vm2, %v9178_v25, %v9177_v54 }
 0x389   :  { %2476 = vrot.lane.b32.xlu1 %v9164_v15, %s3968_s13  ;;  %v2970_v7 = vsel %vm1212_vm6, %v2938_v51, %v2457_v34  ;;  %v2875_v34 = vsel %vm1113_vm3, %v2843_v40, %v9179_v33  ;;  %v9191_v40 = vld [vmem:[#allocation96_spill] sm:$0xff] }
 0x38a   :  { %v2754_v2 = vpop.permute.xlu0 %2753 }
 0x38b   :  { %v3064_v44 = vsel %vm1311_vm9, %v3032_v39, %v2754_v2  ;;  %2773 = vrot.lane.b32.xlu0 %v9164_v15, %s3971_s1  ;;  %v9180_v39 = vld [vmem:[#allocation171_spill] sm:$0xff] }
 0x38c   :  { %3823 = vmatmul.mubr.msk.f32.gmra.mrb[8].mxu1 %vm1344_vm10, %v3064_v44  ;;  %v2555_v18 = vpop.permute.xlu1 %2554  ;;  %v2907_v2 = vsel %vm1146_vm4, %v2875_v34, %v9180_v39  ;;  %v7898_v34 = vld [vmem:[%s8234_s0 + $0x308] sm:$0xff] }
 0x38d   :  { %2275 = vrot.lane.b32.xlu1 %v7757_v56, %s3966_s5  ;;  %v3002_v52 = vsel %vm1245_vm7, %v2970_v7, %v2555_v18 }
 0x38e   :  { %v2553_v16 = vpop.permute.xlu0 %2552 }
 0x38f   :  { %2572 = vrot.lane.b32.xlu0 %v7757_v56, %s3969_s14  ;;  %v3001_v49 = vsel %vm1245_vm7, %v2969_v35, %v2553_v16  ;;  %v9184_v35 = vld [vmem:[#allocation167_spill] sm:$0xff] }
 0x390   :  { %v2358_v19 = vpop.permute.xlu1 %2357 }
 0x391   :  { %2674 = vrot.lane.b32.xlu1 %v9169_v41, %s3970_s19  ;;  %v2939_v15 = vsel %vm1179_vm5, %v2907_v2, %v2358_v19  ;;  %v9182_v19 = vld [vmem:[#allocation111_spill] sm:$0xff] }
 0x392   :  { %v2655_v27 = vpop.permute.xlu0 %2654 }
 0x393   :  { %2574 = vrot.lane.b32.xlu0 %v7775_v23, %s3969_s14  ;;  %v3033_v59 = vsel %vm1278_vm8, %v3001_v49, %v2655_v27  ;;  %v2844_v27 = vsel %vm1080_vm2, %v9183_v26, %v9182_v19  ;;  %v9194_v26 = vld [vmem:[#allocation106_spill] sm:$0xff] }
 0x394   :  { %v2756_v14 = vpop.permute.xlu1 %2755 }
 0x395   :  { %v3065_v48 = vsel %vm1311_vm9, %v3033_v59, %v2756_v14  ;;  %2377 = vrot.lane.b32.xlu1 %v9169_v41, %s3967_s10  ;;  %v2876_v41 = vsel %vm1113_vm3, %v2844_v27, %v9184_v35  ;;  %v9185_v59 = vld [vmem:[#allocation166_spill] sm:$0xff]  ;;  %v9195_v35 = vld [vmem:[#allocation95_spill] sm:$0xff] }
 0x396   :  { %v2657_v20 = vpop.permute.xlu0 %2656  ;;  %3825 = vmatprep.mubr.msk.f32.mxu1 %vm1344_vm10, %v3065_v48  ;;  %v2908_v14 = vsel %vm1146_vm4, %v2876_v41, %v9185_v59 }
 0x397   :  { %2277 = vrot.lane.b32.xlu0 %v7775_v23, %s3966_s5  ;;  %v3034_v42 = vsel %vm1278_vm8, %v3002_v52, %v2657_v20  ;;  %v3958_v52 = vld [vmem:[%s8234_s0 + $0x258] sm:$0xff] }
 0x398   :  { %v2459_v60 = vpop.permute.xlu1 %2458 }
 0x399   :  { %2775 = vrot.lane.b32.xlu1 %v9174_v12, %s3971_s1  ;;  %v2971_v16 = vsel %vm1212_vm6, %v2939_v15, %v2459_v60  ;;  %v3961_v15 = vld [vmem:[%s8234_s0 + $0x260] sm:$0xff] }
 0x39a   :  { %v2360_v0 = vpop.permute.xlu0 %2359 }
 0x39b   :  { %2676 = vrot.lane.b32.xlu0 %v9175_v50, %s3970_s19  ;;  %v2940_v20 = vsel %vm1179_vm5, %v2908_v14, %v2360_v0 }
 0x39c   :  { %v2461_v31 = vpop.permute.xlu1 %2460 }
 0x39d   :  { %2478 = vrot.lane.b32.xlu1 %v9174_v12, %s3968_s13  ;;  %v2972_v6 = vsel %vm1212_vm6, %v2940_v20, %v2461_v31  ;;  %v9188_v12 = vld [vmem:[#allocation103_spill] sm:$0xff]  ;;  %v9189_v31 = vld [vmem:[#allocation26_spill] sm:$0xff] }
 0x39e   :  { %v2758_v30 = vpop.permute.xlu0 %2757 }
 0x39f   :  { %v3066_v58 = vsel %vm1311_vm9, %v3034_v42, %v2758_v30  ;;  %2379 = vrot.lane.b32.xlu0 %v9175_v50, %s3967_s10  ;;  %v2845_v42 = vsel %vm1080_vm2, %v3958_v52, %v9189_v31  ;;  %v7881_v30 = vld [vmem:[%s8234_s0 + $0x300] sm:$0xff] }
 0x3a0   :  { %3826 = vmatmul.mubr.msk.f32.gmra.mrb[10].mxu1 %vm1344_vm10, %v3066_v58  ;;  %v2260_v62 = vpop.permute.xlu1 %2259  ;;  %v9190_v58 = vld [vmem:[#allocation168_spill] sm:$0xff]  ;;  %v9199_v52 = vld [vmem:[#allocation98_spill] sm:$0xff] }
 0x3a1   :  { %2480 = vrot.lane.b32.xlu1 %v9176_v9, %s3968_s13 }
 0x3a2   :  { %v2557_v11 = vpop.permute.xlu0 %2556 }
 0x3a3   :  { %2777 = vrot.lane.b32.xlu0 %v9176_v9, %s3971_s1  ;;  %v3003_v8 = vsel %vm1245_vm7, %v2971_v16, %v2557_v11  ;;  %v2877_v11 = vsel %vm1113_vm3, %v2845_v42, %v9190_v58  ;;  %v9192_v16 = vld [vmem:[#allocation114_spill] sm:$0xff] }
 0x3a4   :  { %v2659_v36 = vpop.permute.xlu1 %2658  ;;  %v2909_v9 = vsel %vm1146_vm4, %v2877_v11, %v2260_v62  ;;  %v7961_v42 = vld [vmem:[%s8234_s0 + $0x320] sm:$0xff] }
 0x3a5   :  { %2279 = vrot.lane.b32.xlu1 %v7817_v22, %s3966_s5  ;;  %v3035_v13 = vsel %vm1278_vm8, %v3003_v8, %v2659_v36  ;;  %v9193_v8 = vld [vmem:[#allocation187_spill] sm:$0xff] }
 0x3a6   :  { %v2559_v63 = vpop.permute.xlu0 %2558 }
 0x3a7   :  { %2576 = vrot.lane.b32.xlu0 %v7817_v22, %s3969_s14  ;;  %v3004_v61 = vsel %vm1245_vm7, %v2972_v6, %v2559_v63 }
 0x3a8   :  { %v2362_v44 = vpop.permute.xlu1 %2361 }
 0x3a9   :  { %2678 = vrot.lane.b32.xlu1 %v9181_v57, %s3970_s19  ;;  %v2941_v63 = vsel %vm1179_vm5, %v2909_v9, %v2362_v44 }
 0x3aa   :  { %v7828_v18 = vpop.permute.xlu0 %2261 }
 0x3ab   :  { %2578 = vrot.lane.b32.xlu0 %v7837_v24, %s3969_s14 }
 0x3ac   :  { %v2760_v21 = vpop.permute.xlu1 %2759 }
 0x3ad   :  { %v3067_v55 = vsel %vm1311_vm9, %v3035_v13, %v2760_v21  ;;  %2381 = vrot.lane.b32.xlu1 %v9181_v57, %s3967_s10  ;;  %v2846_v57 = vsel %vm1080_vm2, %v3961_v15, %v9192_v16  ;;  %v9203_v16 = vld [vmem:[#allocation97_spill] sm:$0xff] }
 0x3ae   :  { %v2661_v53 = vpop.permute.xlu0 %2660  ;;  %3828 = vmatprep.mubr.msk.f32.mxu1 %vm1344_vm10, %v3067_v55  ;;  %v2878_v13 = vsel %vm1113_vm3, %v2846_v57, %v9193_v8 }
 0x3af   :  { %2281 = vrot.lane.b32.xlu0 %v7837_v24, %s3966_s5  ;;  %v3036_v60 = vsel %vm1278_vm8, %v3004_v61, %v2661_v53  ;;  %v2910_v55 = vsel %vm1146_vm4, %v2878_v13, %v7828_v18  ;;  %v9197_v61 = vld [vmem:[#allocation40_spill] sm:$0xff] }
 0x3b0   :  { %v2463_v49 = vpop.permute.xlu1 %2462 }
 0x3b1   :  { %2779 = vrot.lane.b32.xlu1 %v9186_v4, %s3971_s1  ;;  %v2973_v25 = vsel %vm1212_vm6, %v2941_v63, %v2463_v49 }
 0x3b2   :  { %v2364_v48 = vpop.permute.xlu0 %2363 }
 0x3b3   :  { %2680 = vrot.lane.b32.xlu0 %v9187_v28, %s3970_s19  ;;  %v2942_v19 = vsel %vm1179_vm5, %v2910_v55, %v2364_v48  ;;  %v3606_v55 = vld [vmem:[%s8234_s0 + $0x330] sm:$0xff] }
 0x3b4   :  { %v2465_v3 = vpop.permute.xlu1 %2464 }
 0x3b5   :  { %2482 = vrot.lane.b32.xlu1 %v9186_v4, %s3968_s13  ;;  %v2974_v27 = vsel %vm1212_vm6, %v2942_v19, %v2465_v3  ;;  %v9196_v4 = vld [vmem:[#allocation105_spill] sm:$0xff]  ;;  %v2847_v3 = vsel %vm1080_vm2, %v7469_v29, %v9197_v61 }
 0x3b6   :  { %v2762_v17 = vpop.permute.xlu0 %2761 }
 0x3b7   :  { %v3068_v38 = vsel %vm1311_vm9, %v3036_v60, %v2762_v17  ;;  %2383 = vrot.lane.b32.xlu0 %v9187_v28, %s3967_s10  ;;  %v7942_v60 = vld [vmem:[%s8234_s0 + $0x318] sm:$0xff] }
 0x3b8   :  { %3829 = vmatmul.mubr.msk.f32.gmra.mrb[12].mxu1 %vm1344_vm10, %v3068_v38  ;;  %v2264_v0 = vpop.permute.xlu1 %2263  ;;  %v9198_v17 = vld [vmem:[#allocation189_spill] sm:$0xff] }
 0x3b9   :  { %2484 = vrot.lane.b32.xlu1 %v9188_v12, %s3968_s13  ;;  %v2879_v38 = vsel %vm1113_vm3, %v2847_v3, %v9198_v17 }
 0x3ba   :  { %v2561_v51 = vpop.permute.xlu0 %2560 }
 0x3bb   :  { %2781 = vrot.lane.b32.xlu0 %v9188_v12, %s3971_s1  ;;  %v3005_v33 = vsel %vm1245_vm7, %v2973_v25, %v2561_v51  ;;  %v2911_v51 = vsel %vm1146_vm4, %v2879_v38, %v2264_v0  ;;  %v9201_v25 = vld [vmem:[#allocation190_spill] sm:$0xff] }
 0x3bc   :  { %v2663_v7 = vpop.permute.xlu1 %2662 }
 0x3bd   :  { %2283 = vrot.lane.b32.xlu1 %v7881_v30, %s3966_s5  ;;  %v3037_v62 = vsel %vm1278_vm8, %v3005_v33, %v2663_v7 }
 0x3be   :  { %v2563_v50 = vpop.permute.xlu0 %2562 }
 0x3bf   :  { %2580 = vrot.lane.b32.xlu0 %v7881_v30, %s3969_s14  ;;  %v3006_v41 = vsel %vm1245_vm7, %v2974_v27, %v2563_v50  ;;  %v2328_v27 = vrot.slane %v3606_v55, 1 }
 0x3c0   :  { %v2366_v36 = vpop.permute.xlu1 %2365 }
 0x3c1   :  { %2682 = vrot.lane.b32.xlu1 %v9191_v40, %s3970_s19  ;;  %v2943_v7 = vsel %vm1179_vm5, %v2911_v51, %v2366_v36  ;;  %v9200_v36 = vld [vmem:[#allocation116_spill] sm:$0xff]  ;;  %v2429_v51 = vrot.slane %v3606_v55, 2 }
 0x3c2   :  { %v2266_v54 = vpop.permute.xlu0 %2265  ;;  %v2848_v63 = vsel %vm1080_vm2, %v7489_v1, %v9200_v36 }
 0x3c3   :  { %2582 = vrot.lane.b32.xlu0 %v7898_v34, %s3969_s14 }
 0x3c4   :  { %v2764_v39 = vpop.permute.xlu1 %2763 }
 0x3c5   :  { %v3069_v2 = vsel %vm1311_vm9, %v3037_v62, %v2764_v39  ;;  %2385 = vrot.lane.b32.xlu1 %v9191_v40, %s3967_s10  ;;  %v2880_v40 = vsel %vm1113_vm3, %v2848_v63, %v9201_v25 }
 0x3c6   :  { %v2665_v44 = vpop.permute.xlu0 %2664  ;;  %3831 = vmatprep.mubr.msk.f32.mxu1 %vm1344_vm10, %v3069_v2  ;;  %v2912_v62 = vsel %vm1146_vm4, %v2880_v40, %v2266_v54 }
 0x3c7   :  { %2285 = vrot.lane.b32.xlu0 %v7898_v34, %s3966_s5  ;;  %v3038_v59 = vsel %vm1278_vm8, %v3006_v41, %v2665_v44  ;;  %v9202_v44 = vld [vmem:[#allocation25_spill] sm:$0xff] }
 0x3c8   :  { %v2467_v21 = vpop.permute.xlu1 %2466 }
 0x3c9   :  { %2783 = vrot.lane.b32.xlu1 %v9194_v26, %s3971_s1  ;;  %v2975_v50 = vsel %vm1212_vm6, %v2943_v7, %v2467_v21 }
 0x3ca   :  { %v2368_v53 = vpop.permute.xlu0 %2367 }
 0x3cb   :  { %2684 = vrot.lane.b32.xlu0 %v9195_v35, %s3970_s19  ;;  %v2944_v2 = vsel %vm1179_vm5, %v2912_v62, %v2368_v53  ;;  %v3607_v53 = vld [vmem:[%s8234_s0 + $0x338] sm:$0xff] }
 0x3cc   :  { %v2469_v49 = vpop.permute.xlu1 %2468 }
 0x3cd   :  { %2486 = vrot.lane.b32.xlu1 %v9194_v26, %s3968_s13  ;;  %v2976_v15 = vsel %vm1212_vm6, %v2944_v2, %v2469_v49  ;;  %v9204_v26 = vld [vmem:[#allocation107_spill] sm:$0xff] }
 0x3ce   :  { %v2766_v14 = vpop.permute.xlu0 %2765 }
 0x3cf   :  { %v3070_v20 = vsel %vm1311_vm9, %v3038_v59, %v2766_v14  ;;  %2387 = vrot.lane.b32.xlu0 %v9195_v35, %s3967_s10  ;;  %v2329_v35 = vrot.slane %v3607_v53, 1  ;;  %v9205_v59 = vld [vmem:[#allocation133_spill] sm:$0xff] }
 0x3d0   :  { %3832 = vmatmul.mubr.msk.f32.gmra.mrb[14].mxu1 %vm1344_vm10, %v3070_v20  ;;  %v2268_v18 = vpop.permute.xlu1 %2267  ;;  %v2849_v14 = vsel %vm1080_vm2, %v7546_v5, %v9205_v59  ;;  %v9206_v20 = vld [vmem:[#allocation138_spill] sm:$0xff] }
 0x3d1   :  { %2488 = vrot.lane.b32.xlu1 %v9196_v4, %s3968_s13  ;;  %v3608_v5 = vld [vmem:[%s8234_s0 + $0x340] sm:$0x3] }
 0x3d2   :  { %v2565_v48 = vpop.permute.xlu0 %2564  ;;  %v2432_v2 = vrot.slane %v3608_v5, 2  ;;  %v9210_v59 = vld [vmem:[#allocation122_spill] sm:$0xff] }
 0x3d3   :  { %2785 = vrot.lane.b32.xlu0 %v9196_v4, %s3971_s1  ;;  %v3007_v31 = vsel %vm1245_vm7, %v2975_v50, %v2565_v48  ;;  %v2881_v48 = vsel %vm1113_vm3, %v2849_v14, %v9206_v20  ;;  %v2330_v4 = vsel %vm124_vm0, %v2328_v27, %v2329_v35 }
 0x3d4   :  { %v2667_v6 = vpop.permute.xlu1 %2666 }
 0x3d5   :  { %2287 = vrot.lane.b32.xlu1 %v7942_v60, %s3966_s5  ;;  %v3039_v0 = vsel %vm1278_vm8, %v3007_v31, %v2667_v6  ;;  %v2913_v6 = vsel %vm1146_vm4, %v2881_v48, %v2268_v18  ;;  %v2430_v18 = vrot.slane %v3607_v53, 2 }
 0x3d6   :  { %v2567_v28 = vpop.permute.xlu0 %2566 }
 0x3d7   :  { %2584 = vrot.lane.b32.xlu0 %v7942_v60, %s3969_s14  ;;  %v3008_v1 = vsel %vm1245_vm7, %v2976_v15, %v2567_v28 }
 0x3d8   :  { %v2370_v12 = vpop.permute.xlu1 %2369 }
 0x3d9   :  { %2686 = vrot.lane.b32.xlu1 %v9199_v52, %s3970_s19  ;;  %v2945_v61 = vsel %vm1179_vm5, %v2913_v6, %v2370_v12  ;;  %v2331_v12 = vrot.slane %v3608_v5, 1 }
 0x3da   :  { %v7952_v29 = vpop.permute.xlu0 %2269 }
 0x3db   :  { %2586 = vrot.lane.b32.xlu0 %v7961_v42, %s3969_s14  ;;  %v2332_v25 = vsel %vm124_vm0, %v2329_v35, %v2331_v12 }
 0x3dc   :  { %v2768_v58 = vpop.permute.xlu1 %2767 }
 0x3dd   :  { %v3071_v11 = vsel %vm1311_vm9, %v3039_v0, %v2768_v58  ;;  %2389 = vrot.lane.b32.xlu1 %v9199_v52, %s3967_s10  ;;  %v9207_v0 = vld [vmem:[#allocation118_spill] sm:$0xff] }
 0x3de   :  { %v2669_v9 = vpop.permute.xlu0 %2668  ;;  %3834 = vmatprep.mubr.msk.f32.mxu1 %vm1344_vm10, %v3071_v11  ;;  %v2850_v58 = vsel %vm1080_vm2, %v7571_v32, %v9207_v0  ;;  %v2431_v11 = vsel %vm301_vm1, %v2429_v51, %v2430_v18  ;;  %v9211_v0 = vld [vmem:[#allocation134_spill] sm:$0xff] }
 0x3df   :  { %2289 = vrot.lane.b32.xlu0 %v7961_v42, %s3966_s5  ;;  %v3040_v8 = vsel %vm1278_vm8, %v3008_v1, %v2669_v9  ;;  %v9208_v9 = vld [vmem:[#allocation137_spill] sm:$0xff] }
 0x3e0   :  { %v2471_v33 = vpop.permute.xlu1 %2470  ;;  %v2882_v36 = vsel %vm1113_vm3, %v2850_v58, %v9208_v9  ;;  %v2852_v58 = vsel %vm1080_vm2, %v7644_v46, %v9211_v0 }
 0x3e1   :  { %2787 = vrot.lane.b32.xlu1 %v9202_v44, %s3971_s1  ;;  %v2977_v17 = vsel %vm1212_vm6, %v2945_v61, %v2471_v33  ;;  %v2914_v40 = vsel %vm1146_vm4, %v2882_v36, %v7952_v29  ;;  %v2433_v29 = vsel %vm301_vm1, %v2430_v18, %v2432_v2  ;;  %v9212_v36 = vld [vmem:[#allocation193_spill] sm:$0xff] }
 0x3e2   :  { %v2372_v39 = vpop.permute.xlu0 %2371 }
 0x3e3   :  { %2688 = vrot.lane.b32.xlu0 %v9203_v16, %s3970_s19  ;;  %v2946_v62 = vsel %vm1179_vm5, %v2914_v40, %v2372_v39 }
 0x3e4   :  { %v2473_v57 = vpop.permute.xlu1 %2472 }
 0x3e5   :  { %2490 = vrot.lane.b32.xlu1 %v9202_v44, %s3968_s13  ;;  %v2978_v32 = vsel %vm1212_vm6, %v2946_v62, %v2473_v57  ;;  %v3610_v57 = vld [vmem:[%s8234_s0 + $0x350] sm:$0xff] }
 0x3e6   :  { %v2770_v13 = vpop.permute.xlu0 %2769  ;;  %v2731_v20 = vrot.slane %v3610_v57, 2 }
 0x3e7   :  { %v3072_v21 = vsel %vm1311_vm9, %v3040_v8, %v2770_v13  ;;  %2391 = vrot.lane.b32.xlu0 %v9203_v16, %s3967_s10  ;;  %v3611_v13 = vld [vmem:[%s8234_s0 + $0x358] sm:$0x3] }
 0x3e8   :  { %3835 = vmatmul.mubr.msk.f32.gmra.mrb[16].mxu1 %vm1344_vm10, %v3072_v21  ;;  %v7992_v54 = vpop.permute.xlu1 %2271 }
 0x3e9   :  { %2492 = vrot.lane.b32.xlu1 %v9204_v26, %s3968_s13 }
 0x3ea   :  { %v2569_v19 = vpop.permute.xlu0 %2568 }
 0x3eb   :  { %2789 = vrot.lane.b32.xlu0 %v9204_v26, %s3971_s1  ;;  %v3009_v38 = vsel %vm1245_vm7, %v2977_v17, %v2569_v19  ;;  %v2632_v19 = vrot.slane %v3611_v13, 1 }
 0x3ec   :  { %v2671_v41 = vpop.permute.xlu1 %2670 }
 0x3ed   :  { %2291 = vrot.lane.b32.xlu1 %v3606_v55, %s3966_s5  ;;  %v3041_v7 = vsel %vm1278_vm8, %v3009_v38, %v2671_v41  ;;  %v9209_v41 = vld [vmem:[#allocation119_spill] sm:$0xff] }
 0x3ee   :  { %v2571_v49 = vpop.permute.xlu0 %2570 }
 0x3ef   :  { %2588 = vrot.lane.b32.xlu0 %v3606_v55, %s3969_s14  ;;  %v3010_v44 = vsel %vm1245_vm7, %v2978_v32, %v2571_v49  ;;  %v3609_v55 = vld [vmem:[%s8234_s0 + $0x348] sm:$0xff]  ;;  %v2851_v49 = vsel %vm1080_vm2, %v7628_v45, %v9209_v41 }
 0x3f0   :  { %v8013_v28 = vpop.permute.xlu1 %2373  ;;  %v2629_v27 = vrot.slane %v3609_v55, 1  ;;  %v2883_v14 = vsel %vm1113_vm3, %v2851_v49, %v9210_v59  ;;  %v2730_v61 = vrot.slane %v3609_v55, 2 }
 0x3f1   :  { %2690 = vrot.lane.b32.xlu1 %v2330_v4, %s3970_s19  ;;  %v2915_v6 = vsel %vm1146_vm4, %v2883_v14, %v7992_v54 }
 0x3f2   :  { %v8016_v3 = vpop.permute.xlu0 %2273  ;;  %v2947_v45 = vsel %vm1179_vm5, %v2915_v6, %v8013_v28  ;;  %v2732_v12 = vsel %vm301_vm1, %v2730_v61, %v2731_v20 }
 0x3f3   :  { %2590 = vrot.lane.b32.xlu0 %v3607_v53, %s3969_s14 }
 0x3f4   :  { %v2772_v50 = vpop.permute.xlu1 %2771 }
 0x3f5   :  { %v3073_v52 = vsel %vm1311_vm9, %v3041_v7, %v2772_v50  ;;  %2393 = vrot.lane.b32.xlu1 %v2330_v4, %s3967_s10  ;;  %v2733_v4 = vrot.slane %v3611_v13, 2 }
 0x3f6   :  { %v2673_v31 = vpop.permute.xlu0 %2672  ;;  %3837 = vmatprep.mubr.msk.f32.mxu1 %vm1344_vm10, %v3073_v52 }
 0x3f7   :  { %2293 = vrot.lane.b32.xlu0 %v3607_v53, %s3966_s5  ;;  %v3042_v16 = vsel %vm1278_vm8, %v3010_v44, %v2673_v31  ;;  %v2630_v53 = vrot.slane %v3610_v57, 1  ;;  %v2734_v7 = vsel %vm301_vm1, %v2731_v20, %v2733_v4 }
 0x3f8   :  { %v2475_v63 = vpop.permute.xlu1 %2474 }
 0x3f9   :  { %2791 = vrot.lane.b32.xlu1 %v2431_v11, %s3971_s1  ;;  %v2633_v48 = vsel %vm124_vm0, %v2630_v53, %v2632_v19  ;;  %v2631_v17 = vsel %vm124_vm0, %v2629_v27, %v2630_v53  ;;  %v2979_v51 = vsel %vm1212_vm6, %v2947_v45, %v2475_v63  ;;  %v2884_v63 = vsel %vm1113_vm3, %v2852_v58, %v9212_v36  ;;  %v9213_v19 = vld [vmem:[#allocation23_spill] sm:$0xff] }
 0x3fa   :  { %v8039_v33 = vpop.permute.xlu0 %2375  ;;  %v2916_v32 = vsel %vm1146_vm4, %v2884_v63, %v8016_v3 }
 0x3fb   :  { %2692 = vrot.lane.b32.xlu0 %v2332_v25, %s3970_s19  ;;  %v2948_v44 = vsel %vm1179_vm5, %v2916_v32, %v8039_v33  ;;  %v2853_v33 = vsel %vm1080_vm2, %v7693_v43, %v9213_v19 }
 0x3fc   :  { %v2477_v15 = vpop.permute.xlu1 %2476 }
 0x3fd   :  { %2494 = vrot.lane.b32.xlu1 %v2431_v11, %s3968_s13  ;;  %v2980_v46 = vsel %vm1212_vm6, %v2948_v44, %v2477_v15 }
 0x3fe   :  { %v2774_v1 = vpop.permute.xlu0 %2773 }
 0x3ff   :  { %v3074_v8 = vsel %vm1311_vm9, %v3042_v16, %v2774_v1  ;;  %2395 = vrot.lane.b32.xlu0 %v2332_v25, %s3967_s10 }
 0x400   :  { %3838 = vmatmul.mubr.msk.f32.gmra.mrb[18].mxu1 %vm1344_vm10, %v3074_v8  ;;  %v8052_v39 = vpop.permute.xlu1 %2275 }
 0x401   :  { %2496 = vrot.lane.b32.xlu1 %v2433_v29, %s3968_s13 }
 0x402   :  { %v2573_v21 = vpop.permute.xlu0 %2572 }
 0x403   :  { %2793 = vrot.lane.b32.xlu0 %v2433_v29, %s3971_s1  ;;  %v3011_v18 = vsel %vm1245_vm7, %v2979_v51, %v2573_v21 }
 0x404   :  { %v2675_v26 = vpop.permute.xlu1 %2674 }
 0x405   :  { %2594 = vrot.lane.b32.xlu1 %v3610_v57, %s3969_s14  ;;  %v3043_v54 = vsel %vm1278_vm8, %v3011_v18, %v2675_v26  ;;  %v9214_v26 = vld [vmem:[#allocation164_spill] sm:$0xff] }
 0x406   :  { %v2575_v35 = vpop.permute.xlu0 %2574  ;;  %v2885_v15 = vsel %vm1113_vm3, %v2853_v33, %v9214_v26  ;;  %v9215_v18 = vld [vmem:[#allocation120_spill] sm:$0xff] }
 0x407   :  { %2592 = vrot.lane.b32.xlu0 %v3609_v55, %s3969_s14  ;;  %v3012_v1 = vsel %vm1245_vm7, %v2980_v46, %v2575_v35  ;;  %v2917_v27 = vsel %vm1146_vm4, %v2885_v15, %v8052_v39 }
 0x408   :  { %v2378_v5 = vpop.permute.xlu1 %2377 }
 0x409   :  { %2696 = vrot.lane.b32.xlu1 %v2633_v48, %s3970_s19  ;;  %v2949_v41 = vsel %vm1179_vm5, %v2917_v27, %v2378_v5 }
 0x40a   :  { %v2278_v38 = vpop.permute.xlu0 %2277 }
 0x40b   :  { %2694 = vrot.lane.b32.xlu0 %v2631_v17, %s3970_s19 }
 0x40c   :  { %v2776_v50 = vpop.permute.xlu1 %2775 }
 0x40d   :  { %v3075_v52 = vsel %vm1311_vm9, %v3043_v54, %v2776_v50  ;;  %2797 = vrot.lane.b32.xlu1 %v2734_v7, %s3971_s1  ;;  %v2854_v7 = vsel %vm1080_vm2, %v7710_v10, %v9215_v18  ;;  %v9216_v54 = vld [vmem:[#allocation163_spill] sm:$0xff] }
 0x40e   :  { %v2677_v31 = vpop.permute.xlu0 %2676  ;;  %3840 = vmatprep.mubr.msk.f32.mxu1 %vm1344_vm10, %v3075_v52  ;;  %v2886_v50 = vsel %vm1113_vm3, %v2854_v7, %v9216_v54 }
 0x40f   :  { %v3812_v28 = vpop.f32.mrb[0].mxu1  ;;  %2795 = vrot.lane.b32.xlu0 %v2732_v12, %s3971_s1  ;;  %v3044_v29 = vsel %vm1278_vm8, %v3012_v1, %v2677_v31  ;;  %v2918_v31 = vsel %vm1146_vm4, %v2886_v50, %v2278_v38  ;;  %v9217_v38 = vld [vmem:[#allocation183_spill] sm:$0xff] }
 0x410   :  { %v3447_v11 = vmul.f32 %v3812_v28, %v3812_v28  ;;  %v3249_v9 = vpop.f32.mrb[1].mxu1  ;;  %v2479_v62 = vpop.permute.xlu1 %2478 }
 0x411   :  { %v3408_v25 = vadd.f32 %v3812_v28, %v3249_v9  ;;  %v3446_v40 = vmul.f32 %v3249_v9, %v3249_v9  ;;  %v2981_v59 = vsel %vm1212_vm6, %v2949_v41, %v2479_v62 }
 0x412   :  { %v2380_v2 = vpop.permute.xlu0 %2379 }
 0x413   :  { %v3478_v16 = vadd.f32 %v3447_v11, %v3446_v40  ;;  %v2950_v0 = vsel %vm1179_vm5, %v2918_v31, %v2380_v2  ;;  %v2855_v2 = vsel %vm1080_vm2, %v7757_v56, %v9217_v38 }
 0x414   :  { %v2481_v8 = vpop.permute.xlu1 %2480 }
 0x415   :  { %v2982_v58 = vsel %vm1212_vm6, %v2950_v0, %v2481_v8 }
 0x416   :  { %v2778_v57 = vpop.permute.xlu0 %2777 }
 0x417   :  { %v3076_v13 = vsel %vm1311_vm9, %v3044_v29, %v2778_v57 }
 0x418   :  { %3841 = vmatmul.mubr.msk.f32.gmra.mrb[20].mxu1 %vm1344_vm10, %v3076_v13  ;;  %v2280_v21 = vpop.permute.xlu1 %2279 }
 0x41a   :  { %v2577_v55 = vpop.permute.xlu0 %2576 }
 0x41b   :  { %v3013_v20 = vsel %vm1245_vm7, %v2981_v59, %v2577_v55 }
 0x41c   :  { %v2679_v3 = vpop.permute.xlu1 %2678 }
 0x41d   :  { %v3045_v4 = vsel %vm1278_vm8, %v3013_v20, %v2679_v3  ;;  %v9220_v20 = vld [vmem:[#allocation169_spill] sm:$0xff] }
 0x41e   :  { %v2579_v53 = vpop.permute.xlu0 %2578 }
 0x41f   :  { %v3014_v11 = vsel %vm1245_vm7, %v2982_v58, %v2579_v53 }
 0x420   :  { %v2382_v35 = vpop.permute.xlu1 %2381 }
 0x422   :  { %v2282_v49 = vpop.permute.xlu0 %2281 }
 0x423   :  { %v3815_v14 = vpop.f32.mrb[2].mxu1 }
 0x424   :  { %v3259_v48 = vpop.f32.mrb[3].mxu1  ;;  %v2780_v61 = vpop.permute.xlu1 %2779  ;;  %v3449_v51 = vmul.f32 %v3815_v14, %v3815_v14 }
 0x425   :  { %v3409_v6 = vadd.f32 %v3408_v25, %v3259_v48  ;;  %v3448_v43 = vmul.f32 %v3259_v48, %v3259_v48  ;;  %v3077_v17 = vsel %vm1311_vm9, %v3045_v4, %v2780_v61 }
 0x426   :  { %v2681_v45 = vpop.permute.xlu0 %2680  ;;  %3843 = vmatprep.mubr.msk.f32.mxu1 %vm1344_vm10, %v3077_v17 }
 0x427   :  { %v3479_v39 = vadd.f32 %v3478_v16, %v3448_v43  ;;  %v3410_v5 = vadd.f32 %v3815_v14, %v3409_v6  ;;  %v3046_v36 = vsel %vm1278_vm8, %v3014_v11, %v2681_v45  ;;  %v9218_v16 = vld [vmem:[#allocation191_spill] sm:$0xff] }
 0x428   :  { %v2483_v12 = vpop.permute.xlu1 %2482  ;;  %v2887_v46 = vsel %vm1113_vm3, %v2855_v2, %v9218_v16  ;;  %v9219_v14 = vld [vmem:[#allocation43_spill] sm:$0xff] }
 0x429   :  { %v3480_v52 = vadd.f32 %v3479_v39, %v3449_v51  ;;  %v2919_v8 = vsel %vm1146_vm4, %v2887_v46, %v2280_v21 }
 0x42a   :  { %v2384_v28 = vpop.permute.xlu0 %2383  ;;  %v2951_v55 = vsel %vm1179_vm5, %v2919_v8, %v2382_v35  ;;  %v2856_v35 = vsel %vm1080_vm2, %v7775_v23, %v9219_v14  ;;  %v9223_v8 = vld [vmem:[#allocation24_spill] sm:$0xff] }
 0x42b   :  { %v2983_v53 = vsel %vm1212_vm6, %v2951_v55, %v2483_v12  ;;  %v2888_v48 = vsel %vm1113_vm3, %v2856_v35, %v9220_v20 }
 0x42c   :  { %v2485_v9 = vpop.permute.xlu1 %2484  ;;  %v2920_v6 = vsel %vm1146_vm4, %v2888_v48, %v2282_v49 }
 0x42d   :  { %v2952_v61 = vsel %vm1179_vm5, %v2920_v6, %v2384_v28  ;;  %v9221_v28 = vld [vmem:[#allocation185_spill] sm:$0xff] }
 0x42e   :  { %v2782_v63 = vpop.permute.xlu0 %2781  ;;  %v2984_v17 = vsel %vm1212_vm6, %v2952_v61, %v2485_v9  ;;  %v2857_v0 = vsel %vm1080_vm2, %v7817_v22, %v9221_v28 }
 0x42f   :  { %v3078_v10 = vsel %vm1311_vm9, %v3046_v36, %v2782_v63  ;;  %v9222_v36 = vld [vmem:[#allocation170_spill] sm:$0xff] }
 0x430   :  { %3844 = vmatmul.mubr.msk.f32.gmra.mrb[22].mxu1 %vm1344_vm10, %v3078_v10  ;;  %v2284_v25 = vpop.permute.xlu1 %2283  ;;  %v2889_v63 = vsel %vm1113_vm3, %v2857_v0, %v9222_v36  ;;  %v9228_v0 = vld [vmem:[#allocation196_spill] sm:$0xff] }
 0x431   :  { %v2921_v10 = vsel %vm1146_vm4, %v2889_v63, %v2284_v25  ;;  %v2858_v25 = vsel %vm1080_vm2, %v7837_v24, %v9223_v8 }
 0x432   :  { %v2581_v40 = vpop.permute.xlu0 %2580 }
 0x433   :  { %v3015_v56 = vsel %vm1245_vm7, %v2983_v53, %v2581_v40 }
 0x434   :  { %v2683_v62 = vpop.permute.xlu1 %2682 }
 0x435   :  { %v3047_v15 = vsel %vm1278_vm8, %v3015_v56, %v2683_v62 }
 0x436   :  { %v2583_v32 = vpop.permute.xlu0 %2582 }
 0x437   :  { %v3818_v44 = vpop.f32.mrb[4].mxu1  ;;  %v3016_v45 = vsel %vm1245_vm7, %v2984_v17, %v2583_v32  ;;  %v9225_v17 = vld [vmem:[#allocation135_spill] sm:$0xff] }
 0x438   :  { %v3269_v1 = vpop.f32.mrb[5].mxu1  ;;  %v2386_v13 = vpop.permute.xlu1 %2385  ;;  %v3451_v19 = vmul.f32 %v3818_v44, %v3818_v44 }
 0x439   :  { %v3411_v29 = vadd.f32 %v3410_v5, %v3269_v1  ;;  %v3450_v57 = vmul.f32 %v3269_v1, %v3269_v1  ;;  %v2953_v32 = vsel %vm1179_vm5, %v2921_v10, %v2386_v13 }
 0x43a   :  { %v2286_v3 = vpop.permute.xlu0 %2285 }
 0x43b   :  { %v3481_v33 = vadd.f32 %v3480_v52, %v3450_v57  ;;  %v3412_v26 = vadd.f32 %v3818_v44, %v3411_v29  ;;  %v9224_v29 = vld [vmem:[#allocation192_spill] sm:$0xff] }
 0x43c   :  { %v2784_v27 = vpop.permute.xlu1 %2783  ;;  %v2890_v57 = vsel %vm1113_vm3, %v2858_v25, %v9224_v29 }
 0x43d   :  { %v3482_v41 = vadd.f32 %v3481_v33, %v3451_v19  ;;  %v3079_v59 = vsel %vm1311_vm9, %v3047_v15, %v2784_v27  ;;  %v2922_v55 = vsel %vm1146_vm4, %v2890_v57, %v2286_v3 }
 0x43e   :  { %v2685_v21 = vpop.permute.xlu0 %2684  ;;  %3846 = vmatprep.mubr.msk.f32.mxu1 %vm1344_vm10, %v3079_v59 }
 0x43f   :  { %v3048_v39 = vsel %vm1278_vm8, %v3016_v45, %v2685_v21  ;;  %v2859_v45 = vsel %vm1080_vm2, %v7881_v30, %v9225_v17  ;;  %v9227_v30 = vld [vmem:[#allocation184_spill] sm:$0xff] }
 0x440   :  { %v2487_v4 = vpop.permute.xlu1 %2486 }
 0x441   :  { %v2985_v2 = vsel %vm1212_vm6, %v2953_v32, %v2487_v4 }
 0x442   :  { %v2388_v43 = vpop.permute.xlu0 %2387 }
 0x443   :  { %v2954_v19 = vsel %vm1179_vm5, %v2922_v55, %v2388_v43 }
 0x444   :  { %v2489_v51 = vpop.permute.xlu1 %2488 }
 0x445   :  { %v2986_v33 = vsel %vm1212_vm6, %v2954_v19, %v2489_v51  ;;  %v9226_v51 = vld [vmem:[#allocation194_spill] sm:$0xff] }
 0x446   :  { %v2786_v5 = vpop.permute.xlu0 %2785 }
 0x447   :  { %v3080_v18 = vsel %vm1311_vm9, %v3048_v39, %v2786_v5  ;;  %v2891_v39 = vsel %vm1113_vm3, %v2859_v45, %v9226_v51 }
 0x448   :  { %3847 = vmatmul.mubr.msk.f32.gmra.mrb[24].mxu1 %vm1344_vm10, %v3080_v18  ;;  %v2288_v23 = vpop.permute.xlu1 %2287 }
 0x449   :  { %v2923_v5 = vsel %vm1146_vm4, %v2891_v39, %v2288_v23  ;;  %v2860_v23 = vsel %vm1080_vm2, %v7898_v34, %v9227_v30 }
 0x44a   :  { %v2585_v7 = vpop.permute.xlu0 %2584 }
 0x44b   :  { %v3821_v54 = vpop.f32.mrb[6].mxu1  ;;  %v3017_v44 = vsel %vm1245_vm7, %v2985_v2, %v2585_v7 }
 0x44c   :  { %v3279_v50 = vpop.f32.mrb[7].mxu1  ;;  %v2687_v52 = vpop.permute.xlu1 %2686  ;;  %v3453_v58 = vmul.f32 %v3821_v54, %v3821_v54 }
 0x44d   :  { %v3413_v49 = vadd.f32 %v3412_v26, %v3279_v50  ;;  %v3452_v12 = vmul.f32 %v3279_v50, %v3279_v50  ;;  %v3049_v16 = vsel %vm1278_vm8, %v3017_v44, %v2687_v52 }
 0x44e   :  { %v2587_v31 = vpop.permute.xlu0 %2586 }
 0x44f   :  { %v3483_v11 = vadd.f32 %v3482_v41, %v3452_v12  ;;  %v3414_v9 = vadd.f32 %v3821_v54, %v3413_v49  ;;  %v3018_v26 = vsel %vm1245_vm7, %v2986_v33, %v2587_v31  ;;  %v9231_v33 = vld [vmem:[#allocation139_spill] sm:$0xff] }
 0x450   :  { %v2390_v40 = vpop.permute.xlu1 %2389 }
 0x451   :  { %v3484_v62 = vadd.f32 %v3483_v11, %v3453_v58  ;;  %v2955_v7 = vsel %vm1179_vm5, %v2923_v5, %v2390_v40  ;;  %v2892_v58 = vsel %vm1113_vm3, %v2860_v23, %v9228_v0 }
 0x452   :  { %v2290_v38 = vpop.permute.xlu0 %2289 }
 0x454   :  { %v2788_v22 = vpop.permute.xlu1 %2787 }
 0x455   :  { %v3081_v46 = vsel %vm1311_vm9, %v3049_v16, %v2788_v22 }
 0x456   :  { %v2689_v1 = vpop.permute.xlu0 %2688  ;;  %3849 = vmatprep.mubr.msk.f32.mxu1 %vm1344_vm10, %v3081_v46 }
 0x457   :  { %v3050_v15 = vsel %vm1278_vm8, %v3018_v26, %v2689_v1 }
 0x458   :  { %v2491_v13 = vpop.permute.xlu1 %2490 }
 0x459   :  { %v2987_v50 = vsel %vm1212_vm6, %v2955_v7, %v2491_v13  ;;  %v9229_v13 = vld [vmem:[#allocation136_spill] sm:$0xff] }
 0x45a   :  { %v2392_v53 = vpop.permute.xlu0 %2391  ;;  %v2862_v55 = vsel %vm1080_vm2, %v7961_v42, %v9229_v13 }
 0x45b   :  { %v2894_v26 = vsel %vm1113_vm3, %v2862_v55, %v9231_v33 }
 0x45c   :  { %v2493_v56 = vpop.permute.xlu1 %2492 }
 0x45e   :  { %v2790_v27 = vpop.permute.xlu0 %2789 }
 0x45f   :  { %v3082_v41 = vsel %vm1311_vm9, %v3050_v15, %v2790_v27  ;;  %v3824_v24 = vpop.f32.mrb[8].mxu1 }
 0x460   :  { %v3289_v59 = vpop.f32.mrb[9].mxu1  ;;  %3850 = vmatmul.mubr.msk.f32.gmra.mrb[26].mxu1 %vm1344_vm10, %v3082_v41  ;;  %v2292_v3 = vpop.permute.xlu1 %2291  ;;  %v3455_v20 = vmul.f32 %v3824_v24, %v3824_v24 }
 0x461   :  { %v3415_v21 = vadd.f32 %v3414_v9, %v3289_v59  ;;  %v3454_v14 = vmul.f32 %v3289_v59, %v3289_v59  ;;  %v2924_v9 = vsel %vm1146_vm4, %v2892_v58, %v2290_v38 }
 0x462   :  { %v2589_v35 = vpop.permute.xlu0 %2588  ;;  %v2956_v63 = vsel %vm1179_vm5, %v2924_v9, %v2392_v53  ;;  %v9230_v53 = vld [vmem:[#allocation188_spill] sm:$0xff] }
 0x463   :  { %v3485_v48 = vadd.f32 %v3484_v62, %v3454_v14  ;;  %v3416_v4 = vadd.f32 %v3824_v24, %v3415_v21  ;;  %v3019_v49 = vsel %vm1245_vm7, %v2987_v50, %v2589_v35  ;;  %v2988_v40 = vsel %vm1212_vm6, %v2956_v63, %v2493_v56  ;;  %v9232_v56 = vld [vmem:[#allocation140_spill] sm:$0xff] }
 0x464   :  { %v2691_v6 = vpop.permute.xlu1 %2690  ;;  %v2861_v19 = vsel %vm1080_vm2, %v7942_v60, %v9230_v53 }
 0x465   :  { %v3486_v43 = vadd.f32 %v3485_v48, %v3455_v20  ;;  %v3051_v12 = vsel %vm1278_vm8, %v3019_v49, %v2691_v6  ;;  %v2893_v15 = vsel %vm1113_vm3, %v2861_v19, %v9232_v56 }
 0x466   :  { %v2591_v61 = vpop.permute.xlu0 %2590  ;;  %v2925_v24 = vsel %vm1146_vm4, %v2893_v15, %v2292_v3 }
 0x467   :  { %v3020_v32 = vsel %vm1245_vm7, %v2988_v40, %v2591_v61 }
 0x468   :  { %v2394_v18 = vpop.permute.xlu1 %2393 }
 0x469   :  { %v2957_v42 = vsel %vm1179_vm5, %v2925_v24, %v2394_v18 }
 0x46a   :  { %v2294_v54 = vpop.permute.xlu0 %2293 }
 0x46b   :  { %v2926_v27 = vsel %vm1146_vm4, %v2894_v26, %v2294_v54 }
 0x46c   :  { %v2792_v52 = vpop.permute.xlu1 %2791 }
 0x46d   :  { %v3083_v31 = vsel %vm1311_vm9, %v3051_v12, %v2792_v52 }
 0x46e   :  { %v2693_v28 = vpop.permute.xlu0 %2692  ;;  %3852 = vmatprep.mubr.msk.f32.mxu1 %vm1344_vm10, %v3083_v31 }
 0x46f   :  { %v3052_v34 = vsel %vm1278_vm8, %v3020_v32, %v2693_v28 }
 0x470   :  { %v2495_v11 = vpop.permute.xlu1 %2494 }
 0x471   :  { %v2989_v60 = vsel %vm1212_vm6, %v2957_v42, %v2495_v11 }
 0x472   :  { %v2396_v36 = vpop.permute.xlu0 %2395 }
 0x473   :  { %v3827_v10 = vpop.f32.mrb[10].mxu1  ;;  %v2958_v59 = vsel %vm1179_vm5, %v2926_v27, %v2396_v36 }
 0x474   :  { %v3299_v62 = vpop.f32.mrb[11].mxu1  ;;  %v2497_v16 = vpop.permute.xlu1 %2496  ;;  %v3457_v46 = vmul.f32 %v3827_v10, %v3827_v10 }
 0x475   :  { %v3417_v2 = vadd.f32 %v3416_v4, %v3299_v62  ;;  %v3456_v44 = vmul.f32 %v3299_v62, %v3299_v62  ;;  %v2990_v14 = vsel %vm1212_vm6, %v2958_v59, %v2497_v16 }
 0x476   :  { %v2794_v22 = vpop.permute.xlu0 %2793 }
 0x477   :  { %v3487_v1 = vadd.f32 %v3486_v43, %v3456_v44  ;;  %v3084_v8 = vsel %vm1311_vm9, %v3052_v34, %v2794_v22  ;;  %v3418_v38 = vadd.f32 %v3827_v10, %v3417_v2 }
 0x478   :  { %3853 = vmatmul.mubr.msk.f32.gmra.mrb[28].mxu1 %vm1344_vm10, %v3084_v8  ;;  %v2595_v25 = vpop.permute.xlu1 %2594 }
 0x479   :  { %v3488_v29 = vadd.f32 %v3487_v1, %v3457_v46  ;;  %v3022_v35 = vsel %vm1245_vm7, %v2990_v14, %v2595_v25 }
 0x47a   :  { %v2593_v57 = vpop.permute.xlu0 %2592 }
 0x47b   :  { %v3021_v20 = vsel %vm1245_vm7, %v2989_v60, %v2593_v57 }
 0x47c   :  { %v2697_v41 = vpop.permute.xlu1 %2696 }
 0x47d   :  { %v3054_v48 = vsel %vm1278_vm8, %v3022_v35, %v2697_v41 }
 0x47e   :  { %v2695_v21 = vpop.permute.xlu0 %2694 }
 0x47f   :  { %v3053_v6 = vsel %vm1278_vm8, %v3021_v20, %v2695_v21 }
 0x480   :  { %v2798_v4 = vpop.permute.xlu1 %2797 }
 0x481   :  { %v3086_v3 = vsel %vm1311_vm9, %v3054_v48, %v2798_v4 }
 0x482   :  { %v2796_v43 = vpop.permute.xlu0 %2795 }
 0x483   :  { %v3085_v61 = vsel %vm1311_vm9, %v3053_v6, %v2796_v43 }
 0x484   :  { %3855 = vmatprep.mubr.msk.f32.mxu1 %vm1344_vm10, %v3085_v61 }
 0x485   :  { %3856 = vmatmul.mubr.msk.f32.gmra.mrb[30].mxu1 %vm1344_vm10, %v3086_v3 }
 0x48b   :  { %v3830_v17 = vpop.f32.mrb[12].mxu1 }
 0x48c   :  { %v3309_v45 = vpop.f32.mrb[13].mxu1  ;;  %v3459_v5 = vmul.f32 %v3830_v17, %v3830_v17 }
 0x48d   :  { %v3419_v51 = vadd.f32 %v3418_v38, %v3309_v45  ;;  %v3458_v39 = vmul.f32 %v3309_v45, %v3309_v45 }
 0x48f   :  { %v3489_v18 = vadd.f32 %v3488_v29, %v3458_v39  ;;  %v3420_v7 = vadd.f32 %v3830_v17, %v3419_v51 }
 0x491   :  { %v3490_v54 = vadd.f32 %v3489_v18, %v3459_v5 }
 0x4a3   :  { %v3833_v50 = vpop.f32.mrb[14].mxu1 }
 0x4a4   :  { %v3319_v49 = vpop.f32.mrb[15].mxu1  ;;  %v3461_v31 = vmul.f32 %v3833_v50, %v3833_v50 }
 0x4a5   :  { %v3421_v12 = vadd.f32 %v3420_v7, %v3319_v49  ;;  %v3460_v52 = vmul.f32 %v3319_v49, %v3319_v49 }
 0x4a7   :  { %v3491_v28 = vadd.f32 %v3490_v54, %v3460_v52  ;;  %v3422_v30 = vadd.f32 %v3833_v50, %v3421_v12  ;;  %v1697_v12 = vrot.slane %v7613_v37, 4  ;;  %v1767_v52 = vrot.slane %v7621_v47, 4 }
 0x4a9   :  { %v3492_v23 = vadd.f32 %v3491_v28, %v3461_v31  ;;  %v1698_v31 = vadd.f32 %v1697_v12, %v7613_v37 }
 0x4bb   :  { %v3836_v0 = vpop.f32.mrb[16].mxu1 }
 0x4bc   :  { %v3329_v58 = vpop.f32.mrb[17].mxu1  ;;  %v3463_v36 = vmul.f32 %v3836_v0, %v3836_v0 }
 0x4bd   :  { %v3423_v11 = vadd.f32 %v3422_v30, %v3329_v58  ;;  %v3462_v9 = vmul.f32 %v3329_v58, %v3329_v58 }
 0x4bf   :  { %v3493_v63 = vadd.f32 %v3492_v23, %v3462_v9  ;;  %v3424_v10 = vadd.f32 %v3836_v0, %v3423_v11  ;;  %v1768_v23 = vadd.f32 %v1767_v52, %v7621_v47  ;;  %v1699_v11 = vrot.slane %v1698_v31, 2 }
 0x4c1   :  { %v3494_v40 = vadd.f32 %v3493_v63, %v3463_v36 }
 0x4d3   :  { %v3839_v62 = vpop.f32.mrb[18].mxu1 }
 0x4d4   :  { %v3339_v32 = vpop.f32.mrb[19].mxu1  ;;  %v3465_v16 = vmul.f32 %v3839_v62, %v3839_v62 }
 0x4d5   :  { %v3425_v2 = vadd.f32 %v3424_v10, %v3339_v32  ;;  %v3464_v44 = vmul.f32 %v3339_v32, %v3339_v32  ;;  %v1769_v10 = vrot.slane %v1768_v23, 2  ;;  %v1700_v32 = vadd.f32 %v1699_v11, %v1698_v31 }
 0x4d7   :  { %v3495_v34 = vadd.f32 %v3494_v40, %v3464_v44  ;;  %v3426_v22 = vadd.f32 %v3839_v62, %v3425_v2  ;;  %v1701_v37 = vrot.slane %v1700_v32, 1 }
 0x4d9   :  { %v3496_v46 = vadd.f32 %v3495_v34, %v3465_v16  ;;  %v1770_v16 = vadd.f32 %v1769_v10, %v1768_v23 }
 0x4eb   :  { %v3842_v1 = vpop.f32.mrb[20].mxu1 }
 0x4ec   :  { %v3349_v8 = vpop.f32.mrb[21].mxu1  ;;  %v3467_v29 = vmul.f32 %v3842_v1, %v3842_v1 }
 0x4ed   :  { %v3427_v38 = vadd.f32 %v3426_v22, %v3349_v8  ;;  %v3466_v25 = vmul.f32 %v3349_v8, %v3349_v8  ;;  %v1771_v8 = vrot.slane %v1770_v16, 1 }
 0x4ef   :  { %v3497_v57 = vadd.f32 %v3496_v46, %v3466_v25  ;;  %v3428_v13 = vadd.f32 %v3842_v1, %v3427_v38  ;;  %v1702_v25 = vadd.f32 %v1701_v37, %v1700_v32 }
 0x4f1   :  { %v3498_v55 = vadd.f32 %v3497_v57, %v3467_v29 }
 0x503   :  { %v3845_v53 = vpop.f32.mrb[22].mxu1 }
 0x504   :  { %v3359_v19 = vpop.f32.mrb[23].mxu1  ;;  %v3469_v56 = vmul.f32 %v3845_v53, %v3845_v53 }
 0x505   :  { %v3429_v33 = vadd.f32 %v3428_v13, %v3359_v19  ;;  %v3468_v26 = vmul.f32 %v3359_v19, %v3359_v19  ;;  %v1772_v13 = vadd.f32 %v1771_v8, %v1770_v16 }
 0x507   :  { %v3499_v15 = vadd.f32 %v3498_v55, %v3468_v26  ;;  %v3430_v27 = vadd.f32 %v3845_v53, %v3429_v33 }
 0x509   :  { %v3500_v41 = vadd.f32 %v3499_v15, %v3469_v56 }
 0x51b   :  { %v3848_v24 = vpop.f32.mrb[24].mxu1 }
 0x51c   :  { %v3369_v59 = vpop.f32.mrb[25].mxu1  ;;  %v3471_v14 = vmul.f32 %v3848_v24, %v3848_v24 }
 0x51d   :  { %v3431_v21 = vadd.f32 %v3430_v27, %v3369_v59  ;;  %v3470_v42 = vmul.f32 %v3369_v59, %v3369_v59 }
 0x51f   :  { %v3501_v60 = vadd.f32 %v3500_v41, %v3470_v42  ;;  %v3432_v35 = vadd.f32 %v3848_v24, %v3431_v21 }
 0x521   :  { %v3502_v20 = vadd.f32 %v3501_v60, %v3471_v14 }
 0x533   :  { %v3851_v48 = vpop.f32.mrb[26].mxu1 }
 0x534   :  { %v3379_v4 = vpop.f32.mrb[27].mxu1  ;;  %v3473_v43 = vmul.f32 %v3851_v48, %v3851_v48 }
 0x535   :  { %v3433_v6 = vadd.f32 %v3432_v35, %v3379_v4  ;;  %v3472_v3 = vmul.f32 %v3379_v4, %v3379_v4 }
 0x537   :  { %v3503_v61 = vadd.f32 %v3502_v20, %v3472_v3  ;;  %v3434_v17 = vadd.f32 %v3851_v48, %v3433_v6 }
 0x539   :  { %v3504_v45 = vadd.f32 %v3503_v61, %v3473_v43 }
 0x54b   :  { %v3854_v51 = vpop.f32.mrb[28].mxu1 }
 0x54c   :  { %v3389_v39 = vpop.f32.mrb[29].mxu1  ;;  %v3475_v7 = vmul.f32 %v3854_v51, %v3854_v51 }
 0x54d   :  { %v3435_v5 = vadd.f32 %v3434_v17, %v3389_v39  ;;  %v3474_v18 = vmul.f32 %v3389_v39, %v3389_v39 }
 0x54f   :  { %v3505_v54 = vadd.f32 %v3504_v45, %v3474_v18  ;;  %v3436_v50 = vadd.f32 %v3854_v51, %v3435_v5 }
 0x551   :  { %v3506_v49 = vadd.f32 %v3505_v54, %v3475_v7 }
 0x558   :  { %v3857_v28 = vpop.f32.mrb[30].mxu1 }
 0x559   :  { %v3399_v30 = vpop.f32.mrb[31].mxu1  ;;  %v3477_v9 = vmul.f32 %v3857_v28, %v3857_v28 }
 0x55a   :  { %v3437_v0 = vadd.f32 %v3436_v50, %v3399_v30  ;;  %v3476_v58 = vmul.f32 %v3399_v30, %v3399_v30 }
 0x55c   :  { %v3438_v36 = vadd.f32 %v3857_v28, %v3437_v0  ;;  %v3507_v63 = vadd.f32 %v3506_v49, %v3476_v58 }
 0x55e   :  { %v3439_v40 = vrot.slane %v3438_v36, 4  ;;  %v3508_v62 = vadd.f32 %v3507_v63, %v3477_v9 }
 0x560   :  { %v3440_v2 = vadd.f32 %v3439_v40, %v3438_v36  ;;  %v3509_v44 = vrot.slane %v3508_v62, 4 }
 0x562   :  { %v3441_v34 = vrot.slane %v3440_v2, 2  ;;  %v3510_v22 = vadd.f32 %v3509_v44, %v3508_v62 }
 0x564   :  { %v3442_v46 = vadd.f32 %v3441_v34, %v3440_v2  ;;  %v3511_v1 = vrot.slane %v3510_v22, 2 }
 0x566   :  { %v3443_v47 = vrot.slane %v3442_v46, 1  ;;  %v3512_v38 = vadd.f32 %v3511_v1, %v3510_v22 }
 0x568   :  { %v3444_v29 = vadd.f32 %v3443_v47, %v3442_v46  ;;  %v3513_v57 = vrot.slane %v3512_v38, 1 }
 0x56a   :  { %v3445_v55 = vadd.f32 %v3444_v29, %v1702_v25  ;;  %v3514_v53 = vadd.f32 %v3513_v57, %v3512_v38 }
 0x56c   :  { %v3515_v19 = vadd.f32 %v3514_v53, %v1772_v13  ;;  %3516 = vst [vmem:[%s8236_s2] sm:$0x1] %v3445_v55 }
 0x56e   :  { %3517 = vst [vmem:[%s8237_s3] sm:$0x1] %v3515_v19 }

// kernel: my_conv_forward.3
= control target key start
LH: loop header
LB: loop body
LE: loop exit
PB: predicated region body
PF: predicated region fallthrough
CT: control target
= control target key end

     0   :  { %vm132_vm0 = vcmask 1046528   ;;  %s3938_s7 = smov 8   ;;  %vm309_vm1 = vcmask 1045504   ;;  %s3939_s11 = smov 16   ;;  %vm1088_vm2 = vcmask 64512   ;;  %vm1121_vm3 = vcmask 130048   ;;  %s8398_s0 = inlined_call_operand.vmem [shape: f32[2,18,18,8], index: 0, kind: input, shape index: {}]   ;;  %s8399_s1 = inlined_call_operand.vmem [shape: f32[72,128], index: 1, kind: input, shape index: {}]   ;;  %s8400_s2 = inlined_call_operand.vmem [shape: f32[16,1], index: 2, kind: input, shape index: {}]   ;;  %s8401_s3 = inlined_call_operand.vmem [shape: f32[16,1], index: 3, kind: input, shape index: {}]   ;;  %s8402_s4 = inlined_call_operand.vmem [shape: f32[2,16,256], index: 4, kind: output, shape index: {}]  }
   0x1   :  { %v3975_v0 = vld [vmem:[%s8398_s0 + $0x18] sm:$0xff]  ;;  %v3980_v1 = vld [vmem:[%s8398_s0 + $0x20] sm:$0xff]  ;;  %v3992_v5 = vld [vmem:[%s8398_s0 + $0x8] sm:$0xff]  ;;  %s3940_s12 = smov 24   ;;  %s3941_s17 = smov 32   ;;  %vm1154_vm4 = vcmask 195584  }
   0x2   :  { %v3985_v2 = vld [vmem:[%s8398_s0] sm:$0xff]  ;;  %v138_v3 = vrot.slane %v3975_v0, 1  ;;  %v139_v4 = vrot.slane %v3980_v1, 1  ;;  %v3998_v7 = vld [vmem:[%s8398_s0 + $0x28] sm:$0x3]  ;;  %v134_v8 = vrot.slane %v3992_v5, 1 }
   0x3   :  { %v133_v6 = vrot.slane %v3985_v2, 1  ;;  %v141_v9 = vrot.slane %v3998_v7, 1  ;;  %v4005_v10 = vld [vmem:[%s8398_s0 + $0x10] sm:$0x3]  ;;  %v4010_v11 = vld [vmem:[%s8398_s0 + $0x38] sm:$0xff]  ;;  %v4050_v24 = vld [vmem:[%s8398_s0 + $0x48] sm:$0xff] }
   0x4   :  { %v4013_v12 = vsel %vm132_vm0, %v138_v3, %v139_v4  ;;  %v136_v13 = vrot.slane %v4005_v10, 1  ;;  %v4019_v14 = vld [vmem:[%s8398_s0 + $0x40] sm:$0x3]  ;;  %v4024_v15 = vld [vmem:[%s8398_s0 + $0x30] sm:$0xff]  ;;  %v144_v18 = vrot.slane %v4010_v11, 1  ;;  %v148_v29 = vrot.slane %v4050_v24, 1 }
   0x5   :  { %217 = vrot.lane.b32.xlu1 %v4013_v12, %s3938_s7  ;;  %v135_v16 = vsel %vm132_vm0, %v133_v6, %v134_v8  ;;  %v4031_v17 = vsel %vm132_vm0, %v139_v4, %v141_v9  ;;  %v146_v19 = vrot.slane %v4019_v14, 1  ;;  %v143_v21 = vrot.slane %v4024_v15, 1  ;;  %v4040_v22 = vld [vmem:[%s8398_s0 + $0x50] sm:$0xff]  ;;  %v4045_v23 = vld [vmem:[%s8398_s0 + $0x58] sm:$0x3]  ;;  %v4067_v30 = vld [vmem:[%s8398_s0 + $0x68] sm:$0xff] }
   0x6   :  { %213 = vrot.lane.b32.xlu0 %v135_v16, %s3938_s7  ;;  %v137_v20 = vsel %vm132_vm0, %v134_v8, %v136_v13  ;;  %v149_v26 = vrot.slane %v4040_v22, 1  ;;  %v151_v27 = vrot.slane %v4045_v23, 1  ;;  %v4072_v31 = vld [vmem:[%s8398_s0 + $0x70] sm:$0x3]  ;;  %v4077_v32 = vld [vmem:[%s8398_s0 + $0x60] sm:$0xff]  ;;  %v154_v34 = vrot.slane %v4067_v30, 1 }
   0x7   :  { %v4056_v25 = vsel %vm132_vm0, %v144_v18, %v146_v19  ;;  %v4061_v28 = vsel %vm132_vm0, %v143_v21, %v144_v18  ;;  %v156_v35 = vrot.slane %v4072_v31, 1  ;;  %v153_v37 = vrot.slane %v4077_v32, 1  ;;  %v4095_v38 = vld [vmem:[%s8398_s0 + $0x80] sm:$0xff]  ;;  %v4100_v39 = vld [vmem:[%s8398_s0 + $0x88] sm:$0x3]  ;;  %v4105_v40 = vld [vmem:[%s8398_s0 + $0x78] sm:$0xff] }
   0x8   :  { %v4084_v33 = vsel %vm132_vm0, %v149_v26, %v151_v27  ;;  %v4089_v36 = vsel %vm132_vm0, %v148_v29, %v149_v26  ;;  %v159_v42 = vrot.slane %v4095_v38, 1  ;;  %v161_v43 = vrot.slane %v4100_v39, 1  ;;  %v4123_v46 = vld [vmem:[%s8398_s0 + $0x98] sm:$0xff]  ;;  %v4128_v47 = vld [vmem:[%s8398_s0 + $0xa0] sm:$0x3]  ;;  %v4133_v48 = vld [vmem:[%s8398_s0 + $0x90] sm:$0xff] }
   0x9   :  { %219 = vrot.lane.b32.xlu1 %v4031_v17, %s3938_s7  ;;  %8606 = vst [vmem:[#allocation2_spill] sm:$0xff] %v4089_v36  ;;  %v4112_v41 = vsel %vm132_vm0, %v154_v34, %v156_v35  ;;  %v4117_v44 = vsel %vm132_vm0, %v153_v37, %v154_v34  ;;  %v158_v45 = vrot.slane %v4105_v40, 1  ;;  %v164_v50 = vrot.slane %v4123_v46, 1  ;;  %v4151_v54 = vld [vmem:[%s8398_s0 + $0xb0] sm:$0xff]  ;;  %v4156_v55 = vld [vmem:[%s8398_s0 + $0xb8] sm:$0x3] }
   0xa   :  { %215 = vrot.lane.b32.xlu0 %v137_v20, %s3938_s7  ;;  %8607 = vst [vmem:[#allocation3_spill] sm:$0xff] %v4112_v41  ;;  %8608 = vst [vmem:[#allocation4_spill] sm:$0xff] %v4117_v44  ;;  %v4140_v49 = vsel %vm132_vm0, %v159_v42, %v161_v43  ;;  %v166_v51 = vrot.slane %v4128_v47, 1  ;;  %v163_v53 = vrot.slane %v4133_v48, 1  ;;  %v4161_v56 = vld [vmem:[%s8398_s0 + $0xa8] sm:$0xff]  ;;  %v169_v58 = vrot.slane %v4151_v54, 1 }
   0xb   :  { %8609 = vst [vmem:[#allocation5_spill] sm:$0xff] %v4140_v49  ;;  %v4145_v52 = vsel %vm132_vm0, %v158_v45, %v159_v42  ;;  %v171_v59 = vrot.slane %v4156_v55, 1  ;;  %v168_v61 = vrot.slane %v4161_v56, 1  ;;  %v4179_v62 = vld [vmem:[%s8398_s0 + $0xc8] sm:$0xff]  ;;  %v4184_v63 = vld [vmem:[%s8398_s0 + $0xd0] sm:$0x3] }
   0xc   :  { %8610 = vst [vmem:[#allocation6_spill] sm:$0xff] %v4145_v52  ;;  %v4168_v57 = vsel %vm132_vm0, %v164_v50, %v166_v51  ;;  %v4173_v60 = vsel %vm132_vm0, %v163_v53, %v164_v50  ;;  %v4189_v3 = vld [vmem:[%s8398_s0 + $0xc0] sm:$0xff]  ;;  %v174_v6 = vrot.slane %v4179_v62, 1  ;;  %v176_v8 = vrot.slane %v4184_v63, 1  ;;  %v4212_v18 = vld [vmem:[%s8398_s0 + $0xe8] sm:$0x3] }
   0xd   :  { %223 = vrot.lane.b32.xlu1 %v4056_v25, %s3938_s7  ;;  %8611 = vst [vmem:[#allocation7_spill] sm:$0xff] %v4168_v57  ;;  %8612 = vst [vmem:[#allocation8_spill] sm:$0xff] %v4173_v60  ;;  %v4196_v4 = vsel %vm132_vm0, %v169_v58, %v171_v59  ;;  %v4201_v9 = vsel %vm132_vm0, %v168_v61, %v169_v58  ;;  %v173_v13 = vrot.slane %v4189_v3, 1  ;;  %v4207_v16 = vld [vmem:[%s8398_s0 + $0xe0] sm:$0xff]  ;;  %v4217_v19 = vld [vmem:[%s8398_s0 + $0xd8] sm:$0xff]  ;;  %v181_v26 = vrot.slane %v4212_v18, 1 }
   0xe   :  { %221 = vrot.lane.b32.xlu0 %v4061_v28, %s3938_s7  ;;  %8613 = vst [vmem:[#allocation9_spill] sm:$0xff] %v4196_v4  ;;  %8614 = vst [vmem:[#allocation10_spill] sm:$0xff] %v4201_v9  ;;  %v4224_v20 = vsel %vm132_vm0, %v174_v6, %v176_v8  ;;  %v179_v21 = vrot.slane %v4207_v16, 1  ;;  %v178_v29 = vrot.slane %v4217_v19, 1  ;;  %v4235_v34 = vld [vmem:[%s8398_s0 + $0xf8] sm:$0xff]  ;;  %v4245_v37 = vld [vmem:[%s8398_s0 + $0xf0] sm:$0xff] }
   0xf   :  { %8615 = vst [vmem:[#allocation11_spill] sm:$0xff] %v4224_v20  ;;  %v4229_v27 = vsel %vm132_vm0, %v173_v13, %v174_v6  ;;  %v4240_v35 = vld [vmem:[%s8398_s0 + $0x100] sm:$0x3]  ;;  %v184_v43 = vrot.slane %v4235_v34, 1  ;;  %v183_v51 = vrot.slane %v4245_v37, 1  ;;  %v4263_v53 = vld [vmem:[%s8398_s0 + $0x110] sm:$0xff] }
  0x10   :  { %8616 = vst [vmem:[#allocation12_spill] sm:$0xff] %v4229_v27  ;;  %v4252_v42 = vsel %vm132_vm0, %v179_v21, %v181_v26  ;;  %v186_v45 = vrot.slane %v4240_v35, 1  ;;  %v4257_v50 = vsel %vm132_vm0, %v178_v29, %v179_v21  ;;  %v4268_v58 = vld [vmem:[%s8398_s0 + $0x118] sm:$0x3]  ;;  %v4273_v59 = vld [vmem:[%s8398_s0 + $0x108] sm:$0xff]  ;;  %v189_v6 = vrot.slane %v4263_v53, 1 }
  0x11   :  { %227 = vrot.lane.b32.xlu1 %v4084_v33, %s3938_s7  ;;  %8617 = vst [vmem:[#allocation13_spill] sm:$0xff] %v4252_v42  ;;  %8618 = vst [vmem:[#allocation14_spill] sm:$0xff] %v4257_v50  ;;  %v191_v8 = vrot.slane %v4268_v58, 1  ;;  %v4285_v13 = vsel %vm132_vm0, %v183_v51, %v184_v43  ;;  %v188_v21 = vrot.slane %v4273_v59, 1  ;;  %v4291_v26 = vld [vmem:[%s8398_s0 + $0x128] sm:$0xff]  ;;  %s3942_s20 = smov 40  }
  0x12   :  { %225 = vrot.lane.b32.xlu0 %v4089_v36, %s3938_s7  ;;  %v4280_v61 = vsel %vm132_vm0, %v184_v43, %v186_v45  ;;  %8620 = vst [vmem:[#allocation16_spill] sm:$0xff] %v4285_v13  ;;  %v4296_v29 = vld [vmem:[%s8398_s0 + $0x130] sm:$0x3]  ;;  %v4301_v45 = vld [vmem:[%s8398_s0 + $0x120] sm:$0xff]  ;;  %v194_v51 = vrot.slane %v4291_v26, 1  ;;  %s3943_s21 = smov 48  }
  0x13   :  { %8619 = vst [vmem:[#allocation15_spill] sm:$0xff] %v4280_v61  ;;  %v4308_v43 = vsel %vm132_vm0, %v189_v6, %v191_v8  ;;  %v4329_v8 = vld [vmem:[%s8398_s0 + $0x138] sm:$0xff]  ;;  %s3944_s26 = smov 56   ;;  %vm1187_vm5 = vcmask 261120   ;;  %vm1220_vm6 = vcmask 326656   ;;  %vm1253_vm7 = vcmask 392192  }
  0x14   :  { %8621 = vst [vmem:[#allocation17_spill] sm:$0xff] %v4308_v43  ;;  %vm1286_vm8 = vcmask 457728   ;;  %vm1319_vm9 = vcmask 523264   ;;  %vm1352_vm10 = vcmask 588800  }
  0x15   :  { %231 = vrot.lane.b32.xlu1 %v4112_v41, %s3938_s7 }
  0x16   :  { %229 = vrot.lane.b32.xlu0 %v4117_v44, %s3938_s7 }
  0x19   :  { %235 = vrot.lane.b32.xlu1 %v4140_v49, %s3938_s7  ;;  %v4375_v49 = vld [vmem:[%s8398_s0 + $0x170] sm:$0xff] }
  0x1a   :  { %233 = vrot.lane.b32.xlu0 %v4145_v52, %s3938_s7 }
  0x1d   :  { %239 = vrot.lane.b32.xlu1 %v4168_v57, %s3938_s7 }
  0x1e   :  { %237 = vrot.lane.b32.xlu0 %v4173_v60, %s3938_s7  ;;  %v4347_v60 = vld [vmem:[%s8398_s0 + $0x158] sm:$0xff] }
  0x21   :  { %243 = vrot.lane.b32.xlu1 %v4196_v4, %s3938_s7  ;;  %v198_v4 = vrot.slane %v4329_v8, 1 }
  0x22   :  { %241 = vrot.lane.b32.xlu0 %v4201_v9, %s3938_s7 }
  0x25   :  { %247 = vrot.lane.b32.xlu1 %v4224_v20, %s3938_s7  ;;  %v4319_v20 = vld [vmem:[%s8398_s0 + $0x140] sm:$0xff] }
  0x26   :  { %245 = vrot.lane.b32.xlu0 %v4229_v27, %s3938_s7  ;;  %v193_v27 = vrot.slane %v4301_v45, 1 }
  0x28   :  { %v4341_v9 = vsel %vm132_vm0, %v193_v27, %v194_v51 }
  0x29   :  { %251 = vrot.lane.b32.xlu1 %v4252_v42, %s3938_s7  ;;  %v4313_v42 = vsel %vm132_vm0, %v188_v21, %v189_v6  ;;  %v199_v21 = vrot.slane %v4319_v20, 1  ;;  %8624 = vst [vmem:[#allocation20_spill] sm:$0xff] %v4341_v9 }
  0x2a   :  { %249 = vrot.lane.b32.xlu0 %v4257_v50, %s3938_s7  ;;  %v196_v50 = vrot.slane %v4296_v29, 1  ;;  %8622 = vst [vmem:[#allocation18_spill] sm:$0xff] %v4313_v42 }
  0x2b   :  { %v4369_v57 = vsel %vm132_vm0, %v198_v4, %v199_v21 }
  0x2c   :  { %v4336_v6 = vsel %vm132_vm0, %v194_v51, %v196_v50  ;;  %v4357_v50 = vld [vmem:[%s8398_s0 + $0x150] sm:$0xff]  ;;  %v204_v51 = vrot.slane %v4347_v60, 1  ;;  %8626 = vst [vmem:[#allocation22_spill] sm:$0xff] %v4369_v57 }
  0x2d   :  { %255 = vrot.lane.b32.xlu1 %v4280_v61, %s3938_s7  ;;  %8623 = vst [vmem:[#allocation19_spill] sm:$0xff] %v4336_v6  ;;  %v203_v52 = vrot.slane %v4357_v50, 1 }
  0x2e   :  { %253 = vrot.lane.b32.xlu0 %v4285_v13, %s3938_s7  ;;  %v4324_v13 = vld [vmem:[%s8398_s0 + $0x148] sm:$0x3] }
  0x2f   :  { %v201_v61 = vrot.slane %v4324_v13, 1  ;;  %v4397_v44 = vsel %vm132_vm0, %v203_v52, %v204_v51  ;;  %v310_v52 = vrot.slane %v3985_v2, 2 }
  0x30   :  { %8628 = vst [vmem:[#allocation24_spill] sm:$0xff] %v4397_v44 }
  0x31   :  { %259 = vrot.lane.b32.xlu1 %v4308_v43, %s3938_s7  ;;  %v4364_v27 = vsel %vm132_vm0, %v199_v21, %v201_v61  ;;  %v4385_v61 = vld [vmem:[%s8398_s0 + $0x168] sm:$0xff]  ;;  %v209_v21 = vrot.slane %v4375_v49, 1 }
  0x32   :  { %257 = vrot.lane.b32.xlu0 %v4313_v42, %s3938_s7  ;;  %v4352_v42 = vld [vmem:[%s8398_s0 + $0x160] sm:$0x3]  ;;  %8625 = vst [vmem:[#allocation21_spill] sm:$0xff] %v4364_v27  ;;  %v208_v41 = vrot.slane %v4385_v61, 1 }
  0x33   :  { %v206_v43 = vrot.slane %v4352_v42, 1 }
  0x34   :  { %v4410_v36 = vsel %vm132_vm0, %v208_v41, %v209_v21  ;;  %v315_v41 = vrot.slane %v3975_v0, 2 }
  0x35   :  { %263 = vrot.lane.b32.xlu1 %v4336_v6, %s3938_s7  ;;  %v4392_v4 = vsel %vm132_vm0, %v204_v51, %v206_v43  ;;  %v311_v43 = vrot.slane %v3992_v5, 2  ;;  %8629 = vst [vmem:[#allocation25_spill] sm:$0xff] %v4410_v36  ;;  %v318_v5 = vrot.slane %v3998_v7, 2  ;;  %v320_v7 = vrot.slane %v4024_v15, 2 }
  0x36   :  { %261 = vrot.lane.b32.xlu0 %v4341_v9, %s3938_s7  ;;  %v4380_v9 = vld [vmem:[%s8398_s0 + $0x178] sm:$0x3]  ;;  %8627 = vst [vmem:[#allocation23_spill] sm:$0xff] %v4392_v4 }
  0x37   :  { %v211_v6 = vrot.slane %v4380_v9, 1 }
  0x39   :  { %267 = vrot.lane.b32.xlu1 %v4364_v27, %s3938_s7  ;;  %v313_v27 = vrot.slane %v4005_v10, 2  ;;  %v312_v10 = vsel %vm309_vm1, %v310_v52, %v311_v43  ;;  %v326_v52 = vrot.slane %v4040_v22, 2 }
  0x3a   :  { %265 = vrot.lane.b32.xlu0 %v4369_v57, %s3938_s7  ;;  %v4405_v57 = vsel %vm132_vm0, %v209_v21, %v211_v6  ;;  %v316_v6 = vrot.slane %v3980_v1, 2  ;;  %v321_v21 = vrot.slane %v4010_v11, 2 }
  0x3b   :  { %v314_v51 = vsel %vm309_vm1, %v311_v43, %v313_v27  ;;  %v323_v27 = vrot.slane %v4019_v14, 2 }
  0x3c   :  { %v4425_v2 = vsel %vm309_vm1, %v316_v6, %v318_v5  ;;  %v4443_v14 = vsel %vm309_vm1, %v320_v7, %v321_v21  ;;  %v336_v7 = vrot.slane %v4095_v38, 2 }
  0x3d   :  { %271 = vrot.lane.b32.xlu1 %v4392_v4, %s3938_s7  ;;  %v4438_v43 = vsel %vm309_vm1, %v321_v21, %v323_v27  ;;  %v330_v21 = vrot.slane %v4077_v32, 2 }
  0x3e   :  { %269 = vrot.lane.b32.xlu0 %v4397_v44, %s3938_s7 }
  0x41   :  { %275 = vrot.lane.b32.xlu1 %v4405_v57, %s3938_s7 }
  0x42   :  { %273 = vrot.lane.b32.xlu0 %v4410_v36, %s3938_s7  ;;  %v4430_v36 = vsel %vm309_vm1, %v315_v41, %v316_v6  ;;  %v325_v6 = vrot.slane %v4050_v24, 2  ;;  %v333_v41 = vrot.slane %v4072_v31, 2 }
  0x45   :  { %392 = vrot.lane.b32.xlu1 %v314_v51, %s3939_s11  ;;  %v328_v51 = vrot.slane %v4045_v23, 2  ;;  %v4456_v23 = vsel %vm309_vm1, %v325_v6, %v326_v52 }
  0x46   :  { %390 = vrot.lane.b32.xlu0 %v312_v10, %s3939_s11  ;;  %v331_v10 = vrot.slane %v4067_v30, 2  ;;  %8630 = vst [vmem:[#allocation26_spill] sm:$0xff] %v4456_v23 }
  0x47   :  { %v4451_v5 = vsel %vm309_vm1, %v326_v52, %v328_v51  ;;  %v338_v51 = vrot.slane %v4100_v39, 2  ;;  %v335_v52 = vrot.slane %v4105_v40, 2 }
  0x48   :  { %v4464_v27 = vsel %vm309_vm1, %v331_v10, %v333_v41  ;;  %v4469_v31 = vsel %vm309_vm1, %v330_v21, %v331_v10  ;;  %v341_v41 = vrot.slane %v4123_v46, 2  ;;  %v340_v10 = vrot.slane %v4133_v48, 2 }
  0x49   :  { %396 = vrot.lane.b32.xlu1 %v4425_v2, %s3939_s11  ;;  %8631 = vst [vmem:[#allocation27_spill] sm:$0xff] %v4469_v31  ;;  %v4477_v6 = vsel %vm309_vm1, %v336_v7, %v338_v51  ;;  %v4482_v39 = vsel %vm309_vm1, %v335_v52, %v336_v7  ;;  %v346_v51 = vrot.slane %v4151_v54, 2  ;;  %v345_v7 = vrot.slane %v4161_v56, 2 }
  0x4a   :  { %394 = vrot.lane.b32.xlu0 %v4430_v36, %s3939_s11  ;;  %8632 = vst [vmem:[#allocation28_spill] sm:$0xff] %v4482_v39 }
  0x4d   :  { %400 = vrot.lane.b32.xlu1 %v4438_v43, %s3939_s11 }
  0x4e   :  { %398 = vrot.lane.b32.xlu0 %v4443_v14, %s3939_s11 }
  0x51   :  { %404 = vrot.lane.b32.xlu1 %v4451_v5, %s3939_s11 }
  0x52   :  { %402 = vrot.lane.b32.xlu0 %v4456_v23, %s3939_s11  ;;  %v343_v23 = vrot.slane %v4128_v47, 2  ;;  %v4495_v47 = vsel %vm309_vm1, %v340_v10, %v341_v41 }
  0x53   :  { %8633 = vst [vmem:[#allocation29_spill] sm:$0xff] %v4495_v47 }
  0x54   :  { %v4490_v21 = vsel %vm309_vm1, %v341_v41, %v343_v23  ;;  %v351_v23 = vrot.slane %v4179_v62, 2  ;;  %v350_v41 = vrot.slane %v4189_v3, 2 }
  0x55   :  { %408 = vrot.lane.b32.xlu1 %v4464_v27, %s3939_s11 }
  0x56   :  { %406 = vrot.lane.b32.xlu0 %v4469_v31, %s3939_s11  ;;  %v348_v31 = vrot.slane %v4156_v55, 2  ;;  %v4508_v55 = vsel %vm309_vm1, %v345_v7, %v346_v51 }
  0x57   :  { %8634 = vst [vmem:[#allocation30_spill] sm:$0xff] %v4508_v55 }
  0x58   :  { %v4503_v52 = vsel %vm309_vm1, %v346_v51, %v348_v31  ;;  %v356_v31 = vrot.slane %v4207_v16, 2  ;;  %v355_v51 = vrot.slane %v4217_v19, 2 }
  0x59   :  { %412 = vrot.lane.b32.xlu1 %v4477_v6, %s3939_s11 }
  0x5a   :  { %410 = vrot.lane.b32.xlu0 %v4482_v39, %s3939_s11  ;;  %v353_v39 = vrot.slane %v4184_v63, 2  ;;  %v4521_v63 = vsel %vm309_vm1, %v350_v41, %v351_v23 }
  0x5b   :  { %8635 = vst [vmem:[#allocation31_spill] sm:$0xff] %v4521_v63 }
  0x5c   :  { %v4516_v10 = vsel %vm309_vm1, %v351_v23, %v353_v39  ;;  %v361_v39 = vrot.slane %v4235_v34, 2  ;;  %v360_v23 = vrot.slane %v4245_v37, 2 }
  0x5d   :  { %416 = vrot.lane.b32.xlu1 %v4490_v21, %s3939_s11 }
  0x5e   :  { %414 = vrot.lane.b32.xlu0 %v4495_v47, %s3939_s11  ;;  %v358_v47 = vrot.slane %v4212_v18, 2  ;;  %v4534_v18 = vsel %vm309_vm1, %v355_v51, %v356_v31 }
  0x5f   :  { %8637 = vst [vmem:[#allocation33_spill] sm:$0xff] %v4534_v18 }
  0x60   :  { %v4529_v7 = vsel %vm309_vm1, %v356_v31, %v358_v47  ;;  %v366_v47 = vrot.slane %v4263_v53, 2  ;;  %v365_v31 = vrot.slane %v4273_v59, 2 }
  0x61   :  { %420 = vrot.lane.b32.xlu1 %v4503_v52, %s3939_s11  ;;  %8636 = vst [vmem:[#allocation32_spill] sm:$0xff] %v4529_v7 }
  0x62   :  { %418 = vrot.lane.b32.xlu0 %v4508_v55, %s3939_s11  ;;  %v363_v55 = vrot.slane %v4240_v35, 2  ;;  %v4547_v35 = vsel %vm309_vm1, %v360_v23, %v361_v39 }
  0x63   :  { %8638 = vst [vmem:[#allocation34_spill] sm:$0xff] %v4547_v35 }
  0x64   :  { %v4542_v41 = vsel %vm309_vm1, %v361_v39, %v363_v55  ;;  %v371_v55 = vrot.slane %v4291_v26, 2  ;;  %v370_v39 = vrot.slane %v4301_v45, 2 }
  0x65   :  { %424 = vrot.lane.b32.xlu1 %v4516_v10, %s3939_s11 }
  0x66   :  { %422 = vrot.lane.b32.xlu0 %v4521_v63, %s3939_s11  ;;  %v368_v63 = vrot.slane %v4268_v58, 2  ;;  %v4560_v58 = vsel %vm309_vm1, %v365_v31, %v366_v47 }
  0x67   :  { %8640 = vst [vmem:[#allocation36_spill] sm:$0xff] %v4560_v58 }
  0x68   :  { %v4555_v51 = vsel %vm309_vm1, %v366_v47, %v368_v63  ;;  %v376_v63 = vrot.slane %v4319_v20, 2  ;;  %v375_v47 = vrot.slane %v4329_v8, 2 }
  0x69   :  { %428 = vrot.lane.b32.xlu1 %v4529_v7, %s3939_s11  ;;  %8639 = vst [vmem:[#allocation35_spill] sm:$0xff] %v4555_v51 }
  0x6a   :  { %426 = vrot.lane.b32.xlu0 %v4534_v18, %s3939_s11  ;;  %v373_v18 = vrot.slane %v4296_v29, 2  ;;  %v4573_v29 = vsel %vm309_vm1, %v370_v39, %v371_v55 }
  0x6b   :  { %8641 = vst [vmem:[#allocation37_spill] sm:$0xff] %v4573_v29 }
  0x6c   :  { %v4568_v23 = vsel %vm309_vm1, %v371_v55, %v373_v18  ;;  %v381_v18 = vrot.slane %v4347_v60, 2  ;;  %v380_v55 = vrot.slane %v4357_v50, 2 }
  0x6d   :  { %432 = vrot.lane.b32.xlu1 %v4542_v41, %s3939_s11 }
  0x6e   :  { %430 = vrot.lane.b32.xlu0 %v4547_v35, %s3939_s11  ;;  %v378_v35 = vrot.slane %v4324_v13, 2  ;;  %v4588_v13 = vsel %vm309_vm1, %v375_v47, %v376_v63  ;;  %v385_v47 = vrot.slane %v4385_v61, 2 }
  0x6f   :  { %8644 = vst [vmem:[#allocation40_spill] sm:$0xff] %v4588_v13 }
  0x70   :  { %v4581_v31 = vsel %vm309_vm1, %v376_v63, %v378_v35  ;;  %v4605_v63 = vsel %vm309_vm1, %v380_v55, %v381_v18 }
  0x71   :  { %436 = vrot.lane.b32.xlu1 %v4555_v51, %s3939_s11  ;;  %8642 = vst [vmem:[#allocation38_spill] sm:$0xff] %v4581_v31  ;;  %8647 = vst [vmem:[#allocation43_spill] sm:$0xff] %v4605_v63 }
  0x72   :  { %434 = vrot.lane.b32.xlu0 %v4560_v58, %s3939_s11  ;;  %v383_v58 = vrot.slane %v4352_v42, 2  ;;  %v386_v42 = vrot.slane %v4375_v49, 2 }
  0x74   :  { %v4598_v35 = vsel %vm309_vm1, %v381_v18, %v383_v58 }
  0x75   :  { %440 = vrot.lane.b32.xlu1 %v4568_v23, %s3939_s11 }
  0x76   :  { %438 = vrot.lane.b32.xlu0 %v4573_v29, %s3939_s11 }
  0x77   :  { %v4585_v51 = vpop.permute.xlu1 %217 }
  0x78   :  { %8643 = vst [vmem:[#allocation39_spill] sm:$0xff] %v4585_v51  ;;  %v4591_v39 = vpop.permute.xlu0 %213  ;;  %v388_v51 = vrot.slane %v4380_v9, 2  ;;  %v4620_v9 = vsel %vm309_vm1, %v385_v47, %v386_v42 }
  0x79   :  { %8645 = vst [vmem:[#allocation41_spill] sm:$0xff] %v4591_v39  ;;  %444 = vrot.lane.b32.xlu1 %v4581_v31, %s3939_s11 }
  0x7a   :  { %442 = vrot.lane.b32.xlu0 %v4588_v13, %s3939_s11  ;;  %v4615_v58 = vsel %vm309_vm1, %v386_v42, %v388_v51 }
  0x7b   :  { %v4602_v29 = vpop.permute.xlu1 %219 }
  0x7c   :  { %8646 = vst [vmem:[#allocation42_spill] sm:$0xff] %v4602_v29  ;;  %v4608_v39 = vpop.permute.xlu0 %215 }
  0x7d   :  { %8648 = vst [vmem:[#allocation44_spill] sm:$0xff] %v4608_v39  ;;  %448 = vrot.lane.b32.xlu1 %v4598_v35, %s3939_s11 }
  0x7e   :  { %446 = vrot.lane.b32.xlu0 %v4605_v63, %s3939_s11 }
  0x7f   :  { %v4617_v13 = vpop.permute.xlu1 %223 }
  0x80   :  { %8649 = vst [vmem:[#allocation45_spill] sm:$0xff] %v4617_v13  ;;  %v4622_v18 = vpop.permute.xlu0 %221  ;;  %v8697_v13 = vld [vmem:[#allocation6_spill] sm:$0xff] }
  0x81   :  { %8650 = vst [vmem:[#allocation46_spill] sm:$0xff] %v4622_v18  ;;  %452 = vrot.lane.b32.xlu1 %v4615_v58, %s3939_s11 }
  0x82   :  { %450 = vrot.lane.b32.xlu0 %v4620_v9, %s3939_s11 }
  0x83   :  { %v4628_v55 = vpop.permute.xlu1 %227 }
  0x84   :  { %8651 = vst [vmem:[#allocation47_spill] sm:$0xff] %v4628_v55  ;;  %v4630_v39 = vpop.permute.xlu0 %225  ;;  %v8693_v55 = vld [vmem:[#allocation4_spill] sm:$0xff] }
  0x85   :  { %8652 = vst [vmem:[#allocation48_spill] sm:$0xff] %v4630_v39  ;;  %490 = vrot.lane.b32.xlu1 %v3980_v1, %s3940_s12 }
  0x86   :  { %488 = vrot.lane.b32.xlu0 %v3975_v0, %s3940_s12 }
  0x87   :  { %v4636_v51 = vpop.permute.xlu1 %231 }
  0x88   :  { %8653 = vst [vmem:[#allocation49_spill] sm:$0xff] %v4636_v51  ;;  %v4638_v42 = vpop.permute.xlu0 %229 }
  0x89   :  { %8654 = vst [vmem:[#allocation50_spill] sm:$0xff] %v4638_v42  ;;  %494 = vrot.lane.b32.xlu1 %v4010_v11, %s3940_s12 }
  0x8a   :  { %492 = vrot.lane.b32.xlu0 %v4024_v15, %s3940_s12 }
  0x8b   :  { %v4644_v47 = vpop.permute.xlu1 %235 }
  0x8c   :  { %8655 = vst [vmem:[#allocation51_spill] sm:$0xff] %v4644_v47  ;;  %v4646_v39 = vpop.permute.xlu0 %233 }
  0x8d   :  { %8656 = vst [vmem:[#allocation52_spill] sm:$0xff] %v4646_v39  ;;  %498 = vrot.lane.b32.xlu1 %v4040_v22, %s3940_s12 }
  0x8e   :  { %496 = vrot.lane.b32.xlu0 %v4050_v24, %s3940_s12 }
  0x8f   :  { %v4652_v0 = vpop.permute.xlu1 %239 }
  0x90   :  { %8657 = vst [vmem:[#allocation53_spill] sm:$0xff] %v4652_v0  ;;  %v4654_v1 = vpop.permute.xlu0 %237 }
  0x91   :  { %8658 = vst [vmem:[#allocation54_spill] sm:$0xff] %v4654_v1  ;;  %502 = vrot.lane.b32.xlu1 %v4067_v30, %s3940_s12 }
  0x92   :  { %500 = vrot.lane.b32.xlu0 %v4077_v32, %s3940_s12 }
  0x93   :  { %v4660_v42 = vpop.permute.xlu1 %243 }
  0x94   :  { %8659 = vst [vmem:[#allocation55_spill] sm:$0xff] %v4660_v42  ;;  %v4662_v47 = vpop.permute.xlu0 %241 }
  0x95   :  { %8660 = vst [vmem:[#allocation56_spill] sm:$0xff] %v4662_v47  ;;  %506 = vrot.lane.b32.xlu1 %v4095_v38, %s3940_s12 }
  0x96   :  { %504 = vrot.lane.b32.xlu0 %v4105_v40, %s3940_s12 }
  0x97   :  { %v4668_v39 = vpop.permute.xlu1 %247 }
  0x98   :  { %8661 = vst [vmem:[#allocation57_spill] sm:$0xff] %v4668_v39  ;;  %v4670_v0 = vpop.permute.xlu0 %245 }
  0x99   :  { %8662 = vst [vmem:[#allocation58_spill] sm:$0xff] %v4670_v0  ;;  %510 = vrot.lane.b32.xlu1 %v4123_v46, %s3940_s12 }
  0x9a   :  { %508 = vrot.lane.b32.xlu0 %v4133_v48, %s3940_s12 }
  0x9b   :  { %v4676_v1 = vpop.permute.xlu1 %251 }
  0x9c   :  { %8663 = vst [vmem:[#allocation59_spill] sm:$0xff] %v4676_v1  ;;  %v4678_v42 = vpop.permute.xlu0 %249 }
  0x9d   :  { %8664 = vst [vmem:[#allocation60_spill] sm:$0xff] %v4678_v42  ;;  %514 = vrot.lane.b32.xlu1 %v4151_v54, %s3940_s12 }
  0x9e   :  { %512 = vrot.lane.b32.xlu0 %v4161_v56, %s3940_s12 }
  0x9f   :  { %v4684_v47 = vpop.permute.xlu1 %255 }
  0xa0   :  { %8665 = vst [vmem:[#allocation61_spill] sm:$0xff] %v4684_v47  ;;  %v4686_v39 = vpop.permute.xlu0 %253 }
  0xa1   :  { %8666 = vst [vmem:[#allocation62_spill] sm:$0xff] %v4686_v39  ;;  %518 = vrot.lane.b32.xlu1 %v4179_v62, %s3940_s12 }
  0xa2   :  { %516 = vrot.lane.b32.xlu0 %v4189_v3, %s3940_s12 }
  0xa3   :  { %v4692_v0 = vpop.permute.xlu1 %259 }
  0xa4   :  { %8667 = vst [vmem:[#allocation63_spill] sm:$0xff] %v4692_v0  ;;  %v4694_v1 = vpop.permute.xlu0 %257 }
  0xa5   :  { %8668 = vst [vmem:[#allocation64_spill] sm:$0xff] %v4694_v1  ;;  %522 = vrot.lane.b32.xlu1 %v4207_v16, %s3940_s12 }
  0xa6   :  { %520 = vrot.lane.b32.xlu0 %v4217_v19, %s3940_s12 }
  0xa7   :  { %v4700_v42 = vpop.permute.xlu1 %263 }
  0xa8   :  { %8669 = vst [vmem:[#allocation65_spill] sm:$0xff] %v4700_v42  ;;  %v4702_v47 = vpop.permute.xlu0 %261 }
  0xa9   :  { %8670 = vst [vmem:[#allocation66_spill] sm:$0xff] %v4702_v47  ;;  %526 = vrot.lane.b32.xlu1 %v4235_v34, %s3940_s12 }
  0xaa   :  { %524 = vrot.lane.b32.xlu0 %v4245_v37, %s3940_s12 }
  0xab   :  { %v4708_v39 = vpop.permute.xlu1 %267 }
  0xac   :  { %8671 = vst [vmem:[#allocation67_spill] sm:$0xff] %v4708_v39  ;;  %v4710_v0 = vpop.permute.xlu0 %265 }
  0xad   :  { %8672 = vst [vmem:[#allocation68_spill] sm:$0xff] %v4710_v0  ;;  %530 = vrot.lane.b32.xlu1 %v4263_v53, %s3940_s12 }
  0xae   :  { %528 = vrot.lane.b32.xlu0 %v4273_v59, %s3940_s12 }
  0xaf   :  { %v4716_v1 = vpop.permute.xlu1 %271 }
  0xb0   :  { %8673 = vst [vmem:[#allocation69_spill] sm:$0xff] %v4716_v1  ;;  %v4718_v42 = vpop.permute.xlu0 %269 }
  0xb1   :  { %8674 = vst [vmem:[#allocation70_spill] sm:$0xff] %v4718_v42  ;;  %534 = vrot.lane.b32.xlu1 %v4291_v26, %s3940_s12 }
  0xb2   :  { %532 = vrot.lane.b32.xlu0 %v4301_v45, %s3940_s12 }
  0xb3   :  { %v4724_v47 = vpop.permute.xlu1 %275 }
  0xb4   :  { %8675 = vst [vmem:[#allocation71_spill] sm:$0xff] %v4724_v47  ;;  %v4726_v39 = vpop.permute.xlu0 %273 }
  0xb5   :  { %8676 = vst [vmem:[#allocation72_spill] sm:$0xff] %v4726_v39  ;;  %538 = vrot.lane.b32.xlu1 %v4319_v20, %s3940_s12  ;;  %v4758_v39 = vld [vmem:[%s8398_s0 + $0x180] sm:$0xff] }
  0xb6   :  { %536 = vrot.lane.b32.xlu0 %v4329_v8, %s3940_s12 }
  0xb7   :  { %v4732_v0 = vpop.permute.xlu1 %392 }
  0xb8   :  { %8677 = vst [vmem:[#allocation73_spill] sm:$0xff] %v4732_v0  ;;  %v4734_v1 = vpop.permute.xlu0 %390 }
  0xb9   :  { %8678 = vst [vmem:[#allocation74_spill] sm:$0xff] %v4734_v1  ;;  %542 = vrot.lane.b32.xlu1 %v4347_v60, %s3940_s12  ;;  %v4751_v1 = vld [vmem:[%s8398_s0 + $0x188] sm:$0xff] }
  0xba   :  { %540 = vrot.lane.b32.xlu0 %v4357_v50, %s3940_s12 }
  0xbb   :  { %v4740_v42 = vpop.permute.xlu1 %396 }
  0xbc   :  { %8679 = vst [vmem:[#allocation75_spill] sm:$0xff] %v4740_v42  ;;  %v4742_v47 = vpop.permute.xlu0 %394 }
  0xbd   :  { %8680 = vst [vmem:[#allocation76_spill] sm:$0xff] %v4742_v47  ;;  %546 = vrot.lane.b32.xlu1 %v4375_v49, %s3940_s12 }
  0xbe   :  { %544 = vrot.lane.b32.xlu0 %v4385_v61, %s3940_s12 }
  0xbf   :  { %v4753_v0 = vpop.permute.xlu1 %400 }
  0xc0   :  { %8681 = vst [vmem:[#allocation77_spill] sm:$0xff] %v4753_v0  ;;  %v4760_v42 = vpop.permute.xlu0 %398 }
  0xc1   :  { %8682 = vst [vmem:[#allocation78_spill] sm:$0xff] %v4760_v42  ;;  %550 = vrot.lane.b32.xlu1 %v4751_v1, %s3940_s12 }
  0xc2   :  { %548 = vrot.lane.b32.xlu0 %v4758_v39, %s3940_s12 }
  0xc3   :  { %v4766_v47 = vpop.permute.xlu1 %404 }
  0xc4   :  { %8683 = vst [vmem:[#allocation79_spill] sm:$0xff] %v4766_v47  ;;  %v4768_v51 = vpop.permute.xlu0 %402 }
  0xc5   :  { %8684 = vst [vmem:[#allocation80_spill] sm:$0xff] %v4768_v51  ;;  %592 = vrot.lane.b32.xlu1 %v4031_v17, %s3941_s17  ;;  %v8689_v17 = vld [vmem:[#allocation2_spill] sm:$0xff] }
  0xc6   :  { %590 = vrot.lane.b32.xlu0 %v4013_v12, %s3941_s17 }
  0xc7   :  { %v4774_v0 = vpop.permute.xlu1 %408 }
  0xc8   :  { %8685 = vst [vmem:[#allocation81_spill] sm:$0xff] %v4774_v0  ;;  %v4776_v42 = vpop.permute.xlu0 %406 }
  0xc9   :  { %8686 = vst [vmem:[#allocation82_spill] sm:$0xff] %v4776_v42  ;;  %596 = vrot.lane.b32.xlu1 %v4056_v25, %s3941_s17  ;;  %v8692_v42 = vld [vmem:[#allocation3_spill] sm:$0xff] }
  0xca   :  { %594 = vrot.lane.b32.xlu0 %v4061_v28, %s3941_s17 }
  0xcb   :  { %v4782_v47 = vpop.permute.xlu1 %412 }
  0xcc   :  { %8687 = vst [vmem:[#allocation83_spill] sm:$0xff] %v4782_v47  ;;  %v4784_v51 = vpop.permute.xlu0 %410 }
  0xcd   :  { %8688 = vst [vmem:[#allocation84_spill] sm:$0xff] %v4784_v51  ;;  %600 = vrot.lane.b32.xlu1 %v4084_v33, %s3941_s17  ;;  %v8696_v51 = vld [vmem:[#allocation5_spill] sm:$0xff] }
  0xce   :  { %598 = vrot.lane.b32.xlu0 %v8689_v17, %s3941_s17 }
  0xcf   :  { %v4790_v12 = vpop.permute.xlu1 %416 }
  0xd0   :  { %8690 = vst [vmem:[#allocation2_spill] sm:$0xff] %v4790_v12  ;;  %v4792_v0 = vpop.permute.xlu0 %414 }
  0xd1   :  { %8691 = vst [vmem:[#allocation85_spill] sm:$0xff] %v4792_v0  ;;  %604 = vrot.lane.b32.xlu1 %v8692_v42, %s3941_s17  ;;  %v8700_v0 = vld [vmem:[#allocation7_spill] sm:$0xff]  ;;  %v8701_v42 = vld [vmem:[#allocation8_spill] sm:$0xff] }
  0xd2   :  { %602 = vrot.lane.b32.xlu0 %v8693_v55, %s3941_s17 }
  0xd3   :  { %v4798_v18 = vpop.permute.xlu1 %420 }
  0xd4   :  { %8694 = vst [vmem:[#allocation86_spill] sm:$0xff] %v4798_v18  ;;  %v4800_v47 = vpop.permute.xlu0 %418 }
  0xd5   :  { %8695 = vst [vmem:[#allocation87_spill] sm:$0xff] %v4800_v47  ;;  %608 = vrot.lane.b32.xlu1 %v8696_v51, %s3941_s17  ;;  %v8704_v47 = vld [vmem:[#allocation9_spill] sm:$0xff]  ;;  %v8705_v51 = vld [vmem:[#allocation10_spill] sm:$0xff] }
  0xd6   :  { %606 = vrot.lane.b32.xlu0 %v8697_v13, %s3941_s17 }
  0xd7   :  { %v4806_v29 = vpop.permute.xlu1 %424 }
  0xd8   :  { %8698 = vst [vmem:[#allocation88_spill] sm:$0xff] %v4806_v29  ;;  %v4808_v12 = vpop.permute.xlu0 %422 }
  0xd9   :  { %8699 = vst [vmem:[#allocation89_spill] sm:$0xff] %v4808_v12  ;;  %612 = vrot.lane.b32.xlu1 %v8700_v0, %s3941_s17  ;;  %v8708_v12 = vld [vmem:[#allocation11_spill] sm:$0xff]  ;;  %v8709_v0 = vld [vmem:[#allocation12_spill] sm:$0xff] }
  0xda   :  { %610 = vrot.lane.b32.xlu0 %v8701_v42, %s3941_s17 }
  0xdb   :  { %v4814_v55 = vpop.permute.xlu1 %428 }
  0xdc   :  { %8702 = vst [vmem:[#allocation90_spill] sm:$0xff] %v4814_v55  ;;  %v4816_v18 = vpop.permute.xlu0 %426 }
  0xdd   :  { %8703 = vst [vmem:[#allocation91_spill] sm:$0xff] %v4816_v18  ;;  %616 = vrot.lane.b32.xlu1 %v8704_v47, %s3941_s17  ;;  %v8712_v18 = vld [vmem:[#allocation13_spill] sm:$0xff]  ;;  %v8713_v47 = vld [vmem:[#allocation14_spill] sm:$0xff] }
  0xde   :  { %614 = vrot.lane.b32.xlu0 %v8705_v51, %s3941_s17 }
  0xdf   :  { %v4822_v13 = vpop.permute.xlu1 %432 }
  0xe0   :  { %8706 = vst [vmem:[#allocation92_spill] sm:$0xff] %v4822_v13  ;;  %v4824_v29 = vpop.permute.xlu0 %430 }
  0xe1   :  { %8707 = vst [vmem:[#allocation93_spill] sm:$0xff] %v4824_v29  ;;  %620 = vrot.lane.b32.xlu1 %v8708_v12, %s3941_s17  ;;  %v8716_v29 = vld [vmem:[#allocation15_spill] sm:$0xff]  ;;  %v8717_v12 = vld [vmem:[#allocation16_spill] sm:$0xff] }
  0xe2   :  { %618 = vrot.lane.b32.xlu0 %v8709_v0, %s3941_s17 }
  0xe3   :  { %v4830_v42 = vpop.permute.xlu1 %436 }
  0xe4   :  { %8710 = vst [vmem:[#allocation94_spill] sm:$0xff] %v4830_v42  ;;  %v4832_v55 = vpop.permute.xlu0 %434 }
  0xe5   :  { %8711 = vst [vmem:[#allocation95_spill] sm:$0xff] %v4832_v55  ;;  %624 = vrot.lane.b32.xlu1 %v8712_v18, %s3941_s17  ;;  %v8720_v55 = vld [vmem:[#allocation17_spill] sm:$0xff]  ;;  %v8721_v18 = vld [vmem:[#allocation18_spill] sm:$0xff] }
  0xe6   :  { %622 = vrot.lane.b32.xlu0 %v8713_v47, %s3941_s17 }
  0xe7   :  { %v4838_v51 = vpop.permute.xlu1 %440 }
  0xe8   :  { %8714 = vst [vmem:[#allocation96_spill] sm:$0xff] %v4838_v51  ;;  %v4840_v13 = vpop.permute.xlu0 %438 }
  0xe9   :  { %8715 = vst [vmem:[#allocation97_spill] sm:$0xff] %v4840_v13  ;;  %628 = vrot.lane.b32.xlu1 %v8716_v29, %s3941_s17  ;;  %v8724_v13 = vld [vmem:[#allocation19_spill] sm:$0xff]  ;;  %v8725_v29 = vld [vmem:[#allocation20_spill] sm:$0xff] }
  0xea   :  { %626 = vrot.lane.b32.xlu0 %v8717_v12, %s3941_s17 }
  0xeb   :  { %v4846_v0 = vpop.permute.xlu1 %444 }
  0xec   :  { %8718 = vst [vmem:[#allocation98_spill] sm:$0xff] %v4846_v0  ;;  %v4848_v42 = vpop.permute.xlu0 %442 }
  0xed   :  { %8719 = vst [vmem:[#allocation99_spill] sm:$0xff] %v4848_v42  ;;  %632 = vrot.lane.b32.xlu1 %v8720_v55, %s3941_s17  ;;  %v8728_v42 = vld [vmem:[#allocation21_spill] sm:$0xff]  ;;  %v8729_v55 = vld [vmem:[#allocation22_spill] sm:$0xff] }
  0xee   :  { %630 = vrot.lane.b32.xlu0 %v8721_v18, %s3941_s17 }
  0xef   :  { %v4854_v47 = vpop.permute.xlu1 %448 }
  0xf0   :  { %8722 = vst [vmem:[#allocation100_spill] sm:$0xff] %v4854_v47  ;;  %v4856_v51 = vpop.permute.xlu0 %446 }
  0xf1   :  { %8723 = vst [vmem:[#allocation101_spill] sm:$0xff] %v4856_v51  ;;  %636 = vrot.lane.b32.xlu1 %v8724_v13, %s3941_s17  ;;  %v4875_v51 = vld [vmem:[%s8398_s0 + $0x190] sm:$0x3] }
  0xf2   :  { %634 = vrot.lane.b32.xlu0 %v8725_v29, %s3941_s17 }
  0xf3   :  { %v4862_v12 = vpop.permute.xlu1 %452 }
  0xf4   :  { %8726 = vst [vmem:[#allocation102_spill] sm:$0xff] %v4862_v12  ;;  %v4864_v0 = vpop.permute.xlu0 %450  ;;  %v588_v12 = vrot.slane %v4875_v51, 1 }
  0xf5   :  { %8727 = vst [vmem:[#allocation103_spill] sm:$0xff] %v4864_v0  ;;  %640 = vrot.lane.b32.xlu1 %v8728_v42, %s3941_s17  ;;  %v586_v0 = vrot.slane %v4751_v1, 1 }
  0xf6   :  { %638 = vrot.lane.b32.xlu0 %v8729_v55, %s3941_s17  ;;  %v585_v55 = vrot.slane %v4758_v39, 1 }
  0xf7   :  { %v4870_v18 = vpop.permute.xlu1 %490 }
  0xf8   :  { %8730 = vst [vmem:[#allocation104_spill] sm:$0xff] %v4870_v18  ;;  %v4877_v47 = vpop.permute.xlu0 %488 }
  0xf9   :  { %8731 = vst [vmem:[#allocation105_spill] sm:$0xff] %v4877_v47  ;;  %644 = vrot.lane.b32.xlu1 %v4392_v4, %s3941_s17  ;;  %v8734_v47 = vld [vmem:[#allocation25_spill] sm:$0xff]  ;;  %v4895_v4 = vsel %vm132_vm0, %v586_v0, %v588_v12 }
  0xfa   :  { %642 = vrot.lane.b32.xlu0 %v4397_v44, %s3941_s17  ;;  %v4900_v44 = vsel %vm132_vm0, %v585_v55, %v586_v0 }
  0xfb   :  { %v4886_v18 = vpop.permute.xlu1 %494 }
  0xfc   :  { %8732 = vst [vmem:[#allocation106_spill] sm:$0xff] %v4886_v18  ;;  %v4888_v42 = vpop.permute.xlu0 %492 }
  0xfd   :  { %8733 = vst [vmem:[#allocation107_spill] sm:$0xff] %v4888_v42  ;;  %648 = vrot.lane.b32.xlu1 %v4405_v57, %s3941_s17 }
  0xfe   :  { %646 = vrot.lane.b32.xlu0 %v8734_v47, %s3941_s17 }
  0xff   :  { %v4897_v29 = vpop.permute.xlu1 %498 }
 0x100   :  { %8735 = vst [vmem:[#allocation25_spill] sm:$0xff] %v4897_v29  ;;  %v4902_v13 = vpop.permute.xlu0 %496 }
 0x101   :  { %8736 = vst [vmem:[#allocation108_spill] sm:$0xff] %v4902_v13  ;;  %652 = vrot.lane.b32.xlu1 %v4895_v4, %s3941_s17 }
 0x102   :  { %650 = vrot.lane.b32.xlu0 %v4900_v44, %s3941_s17 }
 0x103   :  { %v4908_v42 = vpop.permute.xlu1 %502 }
 0x104   :  { %8737 = vst [vmem:[#allocation109_spill] sm:$0xff] %v4908_v42  ;;  %v4910_v18 = vpop.permute.xlu0 %500 }
 0x105   :  { %8738 = vst [vmem:[#allocation110_spill] sm:$0xff] %v4910_v18  ;;  %693 = vrot.lane.b32.xlu1 %v4425_v2, %s3942_s20  ;;  %v8743_v2 = vld [vmem:[#allocation26_spill] sm:$0xff] }
 0x106   :  { %691 = vrot.lane.b32.xlu0 %v4430_v36, %s3942_s20 }
 0x107   :  { %v4916_v55 = vpop.permute.xlu1 %506 }
 0x108   :  { %8739 = vst [vmem:[#allocation111_spill] sm:$0xff] %v4916_v55  ;;  %v4918_v0 = vpop.permute.xlu0 %504 }
 0x109   :  { %8740 = vst [vmem:[#allocation112_spill] sm:$0xff] %v4918_v0  ;;  %697 = vrot.lane.b32.xlu1 %v4438_v43, %s3942_s20  ;;  %v8746_v0 = vld [vmem:[#allocation27_spill] sm:$0xff] }
 0x10a   :  { %695 = vrot.lane.b32.xlu0 %v4443_v14, %s3942_s20 }
 0x10b   :  { %v4924_v12 = vpop.permute.xlu1 %510 }
 0x10c   :  { %8741 = vst [vmem:[#allocation113_spill] sm:$0xff] %v4924_v12  ;;  %v4926_v18 = vpop.permute.xlu0 %508 }
 0x10d   :  { %8742 = vst [vmem:[#allocation114_spill] sm:$0xff] %v4926_v18  ;;  %701 = vrot.lane.b32.xlu1 %v4451_v5, %s3942_s20  ;;  %v8749_v18 = vld [vmem:[#allocation28_spill] sm:$0xff] }
 0x10e   :  { %699 = vrot.lane.b32.xlu0 %v8743_v2, %s3942_s20 }
 0x10f   :  { %v4932_v36 = vpop.permute.xlu1 %514 }
 0x110   :  { %8744 = vst [vmem:[#allocation26_spill] sm:$0xff] %v4932_v36  ;;  %v4934_v55 = vpop.permute.xlu0 %512 }
 0x111   :  { %8745 = vst [vmem:[#allocation115_spill] sm:$0xff] %v4934_v55  ;;  %705 = vrot.lane.b32.xlu1 %v4464_v27, %s3942_s20  ;;  %v8752_v55 = vld [vmem:[#allocation29_spill] sm:$0xff] }
 0x112   :  { %703 = vrot.lane.b32.xlu0 %v8746_v0, %s3942_s20 }
 0x113   :  { %v4940_v42 = vpop.permute.xlu1 %518 }
 0x114   :  { %8747 = vst [vmem:[#allocation27_spill] sm:$0xff] %v4940_v42  ;;  %v4942_v12 = vpop.permute.xlu0 %516 }
 0x115   :  { %8748 = vst [vmem:[#allocation116_spill] sm:$0xff] %v4942_v12  ;;  %709 = vrot.lane.b32.xlu1 %v4477_v6, %s3942_s20  ;;  %v8755_v12 = vld [vmem:[#allocation30_spill] sm:$0xff] }
 0x116   :  { %707 = vrot.lane.b32.xlu0 %v8749_v18, %s3942_s20 }
 0x117   :  { %v4948_v13 = vpop.permute.xlu1 %522 }
 0x118   :  { %8750 = vst [vmem:[#allocation117_spill] sm:$0xff] %v4948_v13  ;;  %v4950_v36 = vpop.permute.xlu0 %520 }
 0x119   :  { %8751 = vst [vmem:[#allocation118_spill] sm:$0xff] %v4950_v36  ;;  %713 = vrot.lane.b32.xlu1 %v4490_v21, %s3942_s20  ;;  %v8758_v36 = vld [vmem:[#allocation31_spill] sm:$0xff] }
 0x11a   :  { %711 = vrot.lane.b32.xlu0 %v8752_v55, %s3942_s20 }
 0x11b   :  { %v4956_v29 = vpop.permute.xlu1 %526 }
 0x11c   :  { %8753 = vst [vmem:[#allocation119_spill] sm:$0xff] %v4956_v29  ;;  %v4958_v42 = vpop.permute.xlu0 %524 }
 0x11d   :  { %8754 = vst [vmem:[#allocation120_spill] sm:$0xff] %v4958_v42  ;;  %717 = vrot.lane.b32.xlu1 %v4503_v52, %s3942_s20  ;;  %v8761_v42 = vld [vmem:[#allocation33_spill] sm:$0xff] }
 0x11e   :  { %715 = vrot.lane.b32.xlu0 %v8755_v12, %s3942_s20 }
 0x11f   :  { %v4964_v18 = vpop.permute.xlu1 %530 }
 0x120   :  { %8756 = vst [vmem:[#allocation121_spill] sm:$0xff] %v4964_v18  ;;  %v4966_v13 = vpop.permute.xlu0 %528 }
 0x121   :  { %8757 = vst [vmem:[#allocation122_spill] sm:$0xff] %v4966_v13  ;;  %721 = vrot.lane.b32.xlu1 %v4516_v10, %s3942_s20  ;;  %v8764_v13 = vld [vmem:[#allocation34_spill] sm:$0xff] }
 0x122   :  { %719 = vrot.lane.b32.xlu0 %v8758_v36, %s3942_s20 }
 0x123   :  { %v4972_v55 = vpop.permute.xlu1 %534 }
 0x124   :  { %8759 = vst [vmem:[#allocation123_spill] sm:$0xff] %v4972_v55  ;;  %v4974_v29 = vpop.permute.xlu0 %532 }
 0x125   :  { %8760 = vst [vmem:[#allocation124_spill] sm:$0xff] %v4974_v29  ;;  %725 = vrot.lane.b32.xlu1 %v4529_v7, %s3942_s20  ;;  %v8767_v29 = vld [vmem:[#allocation35_spill] sm:$0xff]  ;;  %v8768_v7 = vld [vmem:[#allocation36_spill] sm:$0xff] }
 0x126   :  { %723 = vrot.lane.b32.xlu0 %v8761_v42, %s3942_s20 }
 0x127   :  { %v4980_v12 = vpop.permute.xlu1 %538 }
 0x128   :  { %8762 = vst [vmem:[#allocation125_spill] sm:$0xff] %v4980_v12  ;;  %v4982_v18 = vpop.permute.xlu0 %536 }
 0x129   :  { %8763 = vst [vmem:[#allocation126_spill] sm:$0xff] %v4982_v18  ;;  %729 = vrot.lane.b32.xlu1 %v4542_v41, %s3942_s20  ;;  %v8771_v18 = vld [vmem:[#allocation37_spill] sm:$0xff] }
 0x12a   :  { %727 = vrot.lane.b32.xlu0 %v8764_v13, %s3942_s20 }
 0x12b   :  { %v4988_v36 = vpop.permute.xlu1 %542 }
 0x12c   :  { %8765 = vst [vmem:[#allocation127_spill] sm:$0xff] %v4988_v36  ;;  %v4990_v55 = vpop.permute.xlu0 %540 }
 0x12d   :  { %8766 = vst [vmem:[#allocation128_spill] sm:$0xff] %v4990_v55  ;;  %733 = vrot.lane.b32.xlu1 %v8767_v29, %s3942_s20  ;;  %v8774_v55 = vld [vmem:[#allocation40_spill] sm:$0xff] }
 0x12e   :  { %731 = vrot.lane.b32.xlu0 %v8768_v7, %s3942_s20 }
 0x12f   :  { %v4996_v42 = vpop.permute.xlu1 %546 }
 0x130   :  { %8769 = vst [vmem:[#allocation35_spill] sm:$0xff] %v4996_v42  ;;  %v4998_v12 = vpop.permute.xlu0 %544 }
 0x131   :  { %8770 = vst [vmem:[#allocation129_spill] sm:$0xff] %v4998_v12  ;;  %737 = vrot.lane.b32.xlu1 %v4568_v23, %s3942_s20  ;;  %v687_v12 = vrot.slane %v4751_v1, 2 }
 0x132   :  { %735 = vrot.lane.b32.xlu0 %v8771_v18, %s3942_s20 }
 0x133   :  { %v5004_v13 = vpop.permute.xlu1 %550 }
 0x134   :  { %8772 = vst [vmem:[#allocation130_spill] sm:$0xff] %v5004_v13  ;;  %v5006_v36 = vpop.permute.xlu0 %548  ;;  %v686_v13 = vrot.slane %v4758_v39, 2 }
 0x135   :  { %8773 = vst [vmem:[#allocation131_spill] sm:$0xff] %v5006_v36  ;;  %741 = vrot.lane.b32.xlu1 %v4581_v31, %s3942_s20  ;;  %v689_v36 = vrot.slane %v4875_v51, 2 }
 0x136   :  { %739 = vrot.lane.b32.xlu0 %v8774_v55, %s3942_s20 }
 0x137   :  { %v5012_v7 = vpop.permute.xlu1 %592 }
 0x138   :  { %8775 = vst [vmem:[#allocation40_spill] sm:$0xff] %v5012_v7  ;;  %v5014_v42 = vpop.permute.xlu0 %590 }
 0x139   :  { %8776 = vst [vmem:[#allocation132_spill] sm:$0xff] %v5014_v42  ;;  %745 = vrot.lane.b32.xlu1 %v4598_v35, %s3942_s20  ;;  %v5032_v42 = vsel %vm309_vm1, %v687_v12, %v689_v36 }
 0x13a   :  { %743 = vrot.lane.b32.xlu0 %v4605_v63, %s3942_s20  ;;  %v5037_v63 = vsel %vm309_vm1, %v686_v13, %v687_v12 }
 0x13b   :  { %v5023_v31 = vpop.permute.xlu1 %596 }
 0x13c   :  { %8777 = vst [vmem:[#allocation133_spill] sm:$0xff] %v5023_v31  ;;  %v5025_v18 = vpop.permute.xlu0 %594 }
 0x13d   :  { %8778 = vst [vmem:[#allocation134_spill] sm:$0xff] %v5025_v18  ;;  %749 = vrot.lane.b32.xlu1 %v4615_v58, %s3942_s20 }
 0x13e   :  { %747 = vrot.lane.b32.xlu0 %v4620_v9, %s3942_s20 }
 0x13f   :  { %v5034_v7 = vpop.permute.xlu1 %600 }
 0x140   :  { %v5039_v51 = vpop.permute.xlu0 %598 }
 0x141   :  { %753 = vrot.lane.b32.xlu1 %v5032_v42, %s3942_s20 }
 0x142   :  { %751 = vrot.lane.b32.xlu0 %v5037_v63, %s3942_s20 }
 0x143   :  { %v5045_v18 = vpop.permute.xlu1 %604 }
 0x144   :  { %8779 = vst [vmem:[#allocation135_spill] sm:$0xff] %v5045_v18  ;;  %v5047_v31 = vpop.permute.xlu0 %602 }
 0x145   :  { %8780 = vst [vmem:[#allocation136_spill] sm:$0xff] %v5047_v31  ;;  %791 = vrot.lane.b32.xlu1 %v4010_v11, %s3943_s21 }
 0x146   :  { %789 = vrot.lane.b32.xlu0 %v4024_v15, %s3943_s21 }
 0x147   :  { %v5053_v13 = vpop.permute.xlu1 %608 }
 0x148   :  { %8781 = vst [vmem:[#allocation137_spill] sm:$0xff] %v5053_v13  ;;  %v5055_v12 = vpop.permute.xlu0 %606 }
 0x149   :  { %8782 = vst [vmem:[#allocation138_spill] sm:$0xff] %v5055_v12  ;;  %795 = vrot.lane.b32.xlu1 %v4040_v22, %s3943_s21  ;;  %v8960_v12 = vld [vmem:[#allocation64_spill] sm:$0xff] }
 0x14a   :  { %793 = vrot.lane.b32.xlu0 %v4050_v24, %s3943_s21 }
 0x14b   :  { %v5061_v36 = vpop.permute.xlu1 %612 }
 0x14c   :  { %8783 = vst [vmem:[#allocation139_spill] sm:$0xff] %v5061_v36  ;;  %v5063_v31 = vpop.permute.xlu0 %610 }
 0x14d   :  { %8784 = vst [vmem:[#allocation140_spill] sm:$0xff] %v5063_v31  ;;  %799 = vrot.lane.b32.xlu1 %v4067_v30, %s3943_s21  ;;  %v8942_v31 = vld [vmem:[#allocation53_spill] sm:$0xff] }
 0x14e   :  { %797 = vrot.lane.b32.xlu0 %v4077_v32, %s3943_s21 }
 0x14f   :  { %v5069_v11 = vpop.permute.xlu1 %616 }
 0x150   :  { %8785 = vst [vmem:[#allocation141_spill] sm:$0xff] %v5069_v11  ;;  %v5071_v15 = vpop.permute.xlu0 %614  ;;  %v8925_v11 = vld [vmem:[#allocation42_spill] sm:$0xff] }
 0x151   :  { %8786 = vst [vmem:[#allocation142_spill] sm:$0xff] %v5071_v15  ;;  %803 = vrot.lane.b32.xlu1 %v4095_v38, %s3943_s21  ;;  %v3874_v15 = vld [vmem:[%s8398_s0 + $0x20] sm:$0xff] }
 0x152   :  { %801 = vrot.lane.b32.xlu0 %v4105_v40, %s3943_s21 }
 0x153   :  { %v5077_v22 = vpop.permute.xlu1 %620 }
 0x154   :  { %8787 = vst [vmem:[#allocation143_spill] sm:$0xff] %v5077_v22  ;;  %v5079_v24 = vpop.permute.xlu0 %618 }
 0x155   :  { %8788 = vst [vmem:[#allocation144_spill] sm:$0xff] %v5079_v24  ;;  %807 = vrot.lane.b32.xlu1 %v4123_v46, %s3943_s21 }
 0x156   :  { %805 = vrot.lane.b32.xlu0 %v4133_v48, %s3943_s21 }
 0x157   :  { %v5085_v30 = vpop.permute.xlu1 %624 }
 0x158   :  { %8789 = vst [vmem:[#allocation145_spill] sm:$0xff] %v5085_v30  ;;  %v5087_v32 = vpop.permute.xlu0 %622 }
 0x159   :  { %8790 = vst [vmem:[#allocation146_spill] sm:$0xff] %v5087_v32  ;;  %811 = vrot.lane.b32.xlu1 %v4151_v54, %s3943_s21 }
 0x15a   :  { %809 = vrot.lane.b32.xlu0 %v4161_v56, %s3943_s21 }
 0x15b   :  { %v5093_v38 = vpop.permute.xlu1 %628 }
 0x15c   :  { %8791 = vst [vmem:[#allocation147_spill] sm:$0xff] %v5093_v38  ;;  %v5095_v40 = vpop.permute.xlu0 %626 }
 0x15d   :  { %8792 = vst [vmem:[#allocation148_spill] sm:$0xff] %v5095_v40  ;;  %815 = vrot.lane.b32.xlu1 %v4179_v62, %s3943_s21  ;;  %v8827_v40 = vld [vmem:[#allocation11_spill] sm:$0xff] }
 0x15e   :  { %813 = vrot.lane.b32.xlu0 %v4189_v3, %s3943_s21 }
 0x15f   :  { %v5101_v46 = vpop.permute.xlu1 %632 }
 0x160   :  { %8793 = vst [vmem:[#allocation149_spill] sm:$0xff] %v5101_v46  ;;  %v5103_v48 = vpop.permute.xlu0 %630 }
 0x161   :  { %8794 = vst [vmem:[#allocation150_spill] sm:$0xff] %v5103_v48  ;;  %819 = vrot.lane.b32.xlu1 %v4207_v16, %s3943_s21  ;;  %v8823_v48 = vld [vmem:[#allocation9_spill] sm:$0xff] }
 0x162   :  { %817 = vrot.lane.b32.xlu0 %v4217_v19, %s3943_s21 }
 0x163   :  { %v5109_v54 = vpop.permute.xlu1 %636 }
 0x164   :  { %8795 = vst [vmem:[#allocation151_spill] sm:$0xff] %v5109_v54  ;;  %v5111_v56 = vpop.permute.xlu0 %634 }
 0x165   :  { %8796 = vst [vmem:[#allocation152_spill] sm:$0xff] %v5111_v56  ;;  %823 = vrot.lane.b32.xlu1 %v4235_v34, %s3943_s21  ;;  %v8819_v56 = vld [vmem:[#allocation7_spill] sm:$0xff] }
 0x166   :  { %821 = vrot.lane.b32.xlu0 %v4245_v37, %s3943_s21 }
 0x167   :  { %v5117_v62 = vpop.permute.xlu1 %640 }
 0x168   :  { %8797 = vst [vmem:[#allocation153_spill] sm:$0xff] %v5117_v62  ;;  %v5119_v3 = vpop.permute.xlu0 %638 }
 0x169   :  { %8798 = vst [vmem:[#allocation154_spill] sm:$0xff] %v5119_v3  ;;  %827 = vrot.lane.b32.xlu1 %v4263_v53, %s3943_s21  ;;  %v8815_v3 = vld [vmem:[#allocation5_spill] sm:$0xff] }
 0x16a   :  { %825 = vrot.lane.b32.xlu0 %v4273_v59, %s3943_s21 }
 0x16b   :  { %v5125_v16 = vpop.permute.xlu1 %644 }
 0x16c   :  { %8799 = vst [vmem:[#allocation155_spill] sm:$0xff] %v5125_v16  ;;  %v5127_v19 = vpop.permute.xlu0 %642 }
 0x16d   :  { %8800 = vst [vmem:[#allocation156_spill] sm:$0xff] %v5127_v19  ;;  %831 = vrot.lane.b32.xlu1 %v4291_v26, %s3943_s21 }
 0x16e   :  { %829 = vrot.lane.b32.xlu0 %v4301_v45, %s3943_s21 }
 0x16f   :  { %v5133_v34 = vpop.permute.xlu1 %648 }
 0x170   :  { %8801 = vst [vmem:[#allocation157_spill] sm:$0xff] %v5133_v34  ;;  %v5135_v37 = vpop.permute.xlu0 %646 }
 0x171   :  { %8802 = vst [vmem:[#allocation158_spill] sm:$0xff] %v5135_v37  ;;  %835 = vrot.lane.b32.xlu1 %v4319_v20, %s3943_s21 }
 0x172   :  { %833 = vrot.lane.b32.xlu0 %v4329_v8, %s3943_s21 }
 0x173   :  { %v5141_v53 = vpop.permute.xlu1 %652 }
 0x174   :  { %8803 = vst [vmem:[#allocation159_spill] sm:$0xff] %v5141_v53  ;;  %v5143_v59 = vpop.permute.xlu0 %650 }
 0x175   :  { %8804 = vst [vmem:[#allocation160_spill] sm:$0xff] %v5143_v59  ;;  %839 = vrot.lane.b32.xlu1 %v4347_v60, %s3943_s21  ;;  %v5168_v60 = vld [vmem:[%s8398_s0 + $0x1a0] sm:$0xff]  ;;  %v3945_v59 = vmov 0  }
 0x176   :  { %837 = vrot.lane.b32.xlu0 %v4357_v50, %s3943_s21  ;;  %3871 = vset.pattern.permute.xlu1 %v3945_v59 }
 0x177   :  { %v5149_v26 = vpop.permute.xlu1 %693  ;;  %3870 = vset.pattern.permute.xlu0 %v3945_v59 }
 0x178   :  { %v5151_v45 = vpop.permute.xlu0 %691 }
 0x179   :  { %843 = vrot.lane.b32.xlu1 %v4375_v49, %s3943_s21  ;;  %v5175_v49 = vld [vmem:[%s8398_s0 + $0x198] sm:$0xff] }
 0x17a   :  { %841 = vrot.lane.b32.xlu0 %v4385_v61, %s3943_s21 }
 0x17b   :  { %v5157_v20 = vpop.permute.xlu1 %697 }
 0x17c   :  { %v5159_v8 = vpop.permute.xlu0 %695 }
 0x17d   :  { %847 = vrot.lane.b32.xlu1 %v4751_v1, %s3943_s21 }
 0x17e   :  { %845 = vrot.lane.b32.xlu0 %v4758_v39, %s3943_s21 }
 0x17f   :  { %v5170_v50 = vpop.permute.xlu1 %701 }
 0x180   :  { %v5177_v61 = vpop.permute.xlu0 %699 }
 0x181   :  { %851 = vrot.lane.b32.xlu1 %v5168_v60, %s3943_s21 }
 0x182   :  { %849 = vrot.lane.b32.xlu0 %v5175_v49, %s3943_s21 }
 0x183   :  { %v5183_v39 = vpop.permute.xlu1 %705 }
 0x184   :  { %8805 = vst [vmem:[#allocation161_spill] sm:$0xff] %v5183_v39  ;;  %v5185_v1 = vpop.permute.xlu0 %703  ;;  %v8972_v39 = vld [vmem:[#allocation71_spill] sm:$0xff] }
 0x185   :  { %8806 = vst [vmem:[#allocation162_spill] sm:$0xff] %v5185_v1  ;;  %893 = vrot.lane.b32.xlu1 %v4056_v25, %s3944_s26  ;;  %v8811_v25 = vld [vmem:[#allocation3_spill] sm:$0xff]  ;;  %v3902_v1 = vld [vmem:[%s8398_s0 + $0x170] sm:$0xff] }
 0x186   :  { %891 = vrot.lane.b32.xlu0 %v4061_v28, %s3944_s26  ;;  %v8812_v28 = vld [vmem:[#allocation4_spill] sm:$0xff] }
 0x187   :  { %v5191_v53 = vpop.permute.xlu1 %709 }
 0x188   :  { %8807 = vst [vmem:[#allocation163_spill] sm:$0xff] %v5191_v53  ;;  %v5193_v37 = vpop.permute.xlu0 %707 }
 0x189   :  { %8808 = vst [vmem:[#allocation164_spill] sm:$0xff] %v5193_v37  ;;  %897 = vrot.lane.b32.xlu1 %v4084_v33, %s3944_s26  ;;  %v8816_v33 = vld [vmem:[#allocation6_spill] sm:$0xff] }
 0x18a   :  { %895 = vrot.lane.b32.xlu0 %v8689_v17, %s3944_s26 }
 0x18b   :  { %v5199_v34 = vpop.permute.xlu1 %713 }
 0x18c   :  { %8809 = vst [vmem:[#allocation165_spill] sm:$0xff] %v5199_v34  ;;  %v5201_v19 = vpop.permute.xlu0 %711 }
 0x18d   :  { %8810 = vst [vmem:[#allocation166_spill] sm:$0xff] %v5201_v19  ;;  %901 = vrot.lane.b32.xlu1 %v8811_v25, %s3944_s26  ;;  %v8820_v25 = vld [vmem:[#allocation8_spill] sm:$0xff] }
 0x18e   :  { %899 = vrot.lane.b32.xlu0 %v8812_v28, %s3944_s26 }
 0x18f   :  { %v5207_v59 = vpop.permute.xlu1 %717 }
 0x190   :  { %8813 = vst [vmem:[#allocation3_spill] sm:$0xff] %v5207_v59  ;;  %v5209_v16 = vpop.permute.xlu0 %715 }
 0x191   :  { %8814 = vst [vmem:[#allocation4_spill] sm:$0xff] %v5209_v16  ;;  %905 = vrot.lane.b32.xlu1 %v8815_v3, %s3944_s26  ;;  %v8824_v3 = vld [vmem:[#allocation10_spill] sm:$0xff] }
 0x192   :  { %903 = vrot.lane.b32.xlu0 %v8816_v33, %s3944_s26 }
 0x193   :  { %v5215_v17 = vpop.permute.xlu1 %721 }
 0x194   :  { %8817 = vst [vmem:[#allocation5_spill] sm:$0xff] %v5215_v17  ;;  %v5217_v62 = vpop.permute.xlu0 %719 }
 0x195   :  { %8818 = vst [vmem:[#allocation6_spill] sm:$0xff] %v5217_v62  ;;  %909 = vrot.lane.b32.xlu1 %v8819_v56, %s3944_s26  ;;  %v8828_v56 = vld [vmem:[#allocation12_spill] sm:$0xff] }
 0x196   :  { %907 = vrot.lane.b32.xlu0 %v8820_v25, %s3944_s26 }
 0x197   :  { %v5223_v28 = vpop.permute.xlu1 %725 }
 0x198   :  { %8821 = vst [vmem:[#allocation7_spill] sm:$0xff] %v5223_v28  ;;  %v5225_v54 = vpop.permute.xlu0 %723  ;;  %v5316_v28 = vld [vmem:[%s8398_s0 + $0x1a8] sm:$0x3] }
 0x199   :  { %8822 = vst [vmem:[#allocation8_spill] sm:$0xff] %v5225_v54  ;;  %913 = vrot.lane.b32.xlu1 %v8823_v48, %s3944_s26  ;;  %v8831_v54 = vld [vmem:[#allocation13_spill] sm:$0xff]  ;;  %v8832_v48 = vld [vmem:[#allocation14_spill] sm:$0xff] }
 0x19a   :  { %911 = vrot.lane.b32.xlu0 %v8824_v3, %s3944_s26 }
 0x19b   :  { %v5231_v33 = vpop.permute.xlu1 %729 }
 0x19c   :  { %8825 = vst [vmem:[#allocation9_spill] sm:$0xff] %v5231_v33  ;;  %v5233_v46 = vpop.permute.xlu0 %727 }
 0x19d   :  { %8826 = vst [vmem:[#allocation10_spill] sm:$0xff] %v5233_v46  ;;  %917 = vrot.lane.b32.xlu1 %v8827_v40, %s3944_s26  ;;  %v8835_v46 = vld [vmem:[#allocation15_spill] sm:$0xff]  ;;  %v8836_v40 = vld [vmem:[#allocation16_spill] sm:$0xff] }
 0x19e   :  { %915 = vrot.lane.b32.xlu0 %v8828_v56, %s3944_s26  ;;  %v17_v56 = vld [vmem:[%s8399_s1] sm:$0xff] }
 0x19f   :  { %v5239_v25 = vpop.permute.xlu1 %733 }
 0x1a0   :  { %8829 = vst [vmem:[#allocation11_spill] sm:$0xff] %v5239_v25  ;;  %v5241_v38 = vpop.permute.xlu0 %731  ;;  %v20_v25 = vld [vmem:[%s8399_s1 + $0x18] sm:$0xff] }
 0x1a1   :  { %8830 = vst [vmem:[#allocation12_spill] sm:$0xff] %v5241_v38  ;;  %921 = vrot.lane.b32.xlu1 %v8831_v54, %s3944_s26  ;;  %v18_v54 = vld [vmem:[%s8399_s1 + $0x8] sm:$0xff] }
 0x1a2   :  { %919 = vrot.lane.b32.xlu0 %v8832_v48, %s3944_s26  ;;  %v3829_v48 = vpack.c.bf16 %v18_v54, %v17_v56 }
 0x1a3   :  { %v5247_v3 = vpop.permute.xlu1 %737 }
 0x1a4   :  { %8833 = vst [vmem:[#allocation13_spill] sm:$0xff] %v5247_v3  ;;  %v5249_v33 = vpop.permute.xlu0 %735  ;;  %3830 = vmatprep.subr.bf16.mxu0 %v3829_v48  ;;  %3846 = vmatprep.subr.bf16.mxu1 %v3829_v48 }
 0x1a5   :  { %8834 = vst [vmem:[#allocation14_spill] sm:$0xff] %v5249_v33  ;;  %925 = vrot.lane.b32.xlu1 %v8835_v46, %s3944_s26  ;;  %v8839_v33 = vld [vmem:[#allocation17_spill] sm:$0xff]  ;;  %v8840_v46 = vld [vmem:[#allocation18_spill] sm:$0xff]  ;;  %3832 = vmatpush3.bf16.msra.mxu0 %v3829_v48 }
 0x1a6   :  { %923 = vrot.lane.b32.xlu0 %v8836_v40, %s3944_s26  ;;  %v19_v40 = vld [vmem:[%s8399_s1 + $0x10] sm:$0xff]  ;;  %3848 = vmatpush3.bf16.msra.mxu1 %v3829_v48 }
 0x1a7   :  { %v5261_v38 = vpop.permute.xlu1 %741  ;;  %v3833_v56 = vpack.c.bf16 %v20_v25, %v19_v40  ;;  %v22_v25 = vld [vmem:[%s8399_s1 + $0x28] sm:$0xff] }
 0x1a8   :  { %8837 = vst [vmem:[#allocation15_spill] sm:$0xff] %v5261_v38  ;;  %v5263_v3 = vpop.permute.xlu0 %739 }
 0x1a9   :  { %8838 = vst [vmem:[#allocation16_spill] sm:$0xff] %v5263_v3  ;;  %929 = vrot.lane.b32.xlu1 %v8839_v33, %s3944_s26  ;;  %v8843_v33 = vld [vmem:[#allocation19_spill] sm:$0xff]  ;;  %3834 = vmatprep.subr.bf16.mxu0 %v3833_v56  ;;  %v21_v3 = vld [vmem:[%s8399_s1 + $0x20] sm:$0xff] }
 0x1aa   :  { %927 = vrot.lane.b32.xlu0 %v8840_v46, %s3944_s26  ;;  %v8844_v46 = vld [vmem:[#allocation20_spill] sm:$0xff]  ;;  %3836 = vmatpush3.bf16.msra.mxu0 %v3833_v56 }
 0x1ab   :  { %v5275_v38 = vpop.permute.xlu1 %745  ;;  %3850 = vmatprep.subr.bf16.mxu1 %v3833_v56 }
 0x1ac   :  { %8841 = vst [vmem:[#allocation17_spill] sm:$0xff] %v5275_v38  ;;  %v5277_v54 = vpop.permute.xlu0 %743  ;;  %3852 = vmatpush3.bf16.msra.mxu1 %v3833_v56  ;;  %v23_v38 = vld [vmem:[%s8399_s1 + $0x30] sm:$0xff] }
 0x1ad   :  { %8842 = vst [vmem:[#allocation18_spill] sm:$0xff] %v5277_v54  ;;  %933 = vrot.lane.b32.xlu1 %v8843_v33, %s3944_s26  ;;  %v3837_v54 = vpack.c.bf16 %v22_v25, %v21_v3  ;;  %v8847_v33 = vld [vmem:[#allocation21_spill] sm:$0xff] }
 0x1ae   :  { %931 = vrot.lane.b32.xlu0 %v8844_v46, %s3944_s26  ;;  %v8848_v46 = vld [vmem:[#allocation22_spill] sm:$0xff]  ;;  %v24_v3 = vld [vmem:[%s8399_s1 + $0x38] sm:$0xff] }
 0x1af   :  { %v5289_v40 = vpop.permute.xlu1 %749  ;;  %3838 = vmatprep.subr.bf16.mxu0 %v3837_v54  ;;  %3854 = vmatprep.subr.bf16.mxu1 %v3837_v54 }
 0x1b0   :  { %8845 = vst [vmem:[#allocation19_spill] sm:$0xff] %v5289_v40  ;;  %v5291_v48 = vpop.permute.xlu0 %747  ;;  %3840 = vmatpush3.bf16.msra.mxu0 %v3837_v54  ;;  %3856 = vmatpush3.bf16.msra.mxu1 %v3837_v54  ;;  %v25_v54 = vld [vmem:[%s8399_s1 + $0x40] sm:$0xff]  ;;  %s3946_s1 = smov 64  }
 0x1b1   :  { %8846 = vst [vmem:[#allocation20_spill] sm:$0xff] %v5291_v48  ;;  %937 = vrot.lane.b32.xlu1 %v8847_v33, %s3944_s26  ;;  %v3841_v48 = vpack.c.bf16 %v24_v3, %v23_v38  ;;  %v8851_v33 = vld [vmem:[#allocation23_spill] sm:$0xff]  ;;  %v887_v3 = vrot.slane %v5168_v60, 1 }
 0x1b2   :  { %935 = vrot.lane.b32.xlu0 %v8848_v46, %s3944_s26  ;;  %v8852_v46 = vld [vmem:[#allocation24_spill] sm:$0xff] }
 0x1b3   :  { %v5303_v25 = vpop.permute.xlu1 %753  ;;  %3842 = vmatprep.subr.bf16.mxu0 %v3841_v48  ;;  %3858 = vmatprep.subr.bf16.mxu1 %v3841_v48 }
 0x1b4   :  { %8849 = vst [vmem:[#allocation21_spill] sm:$0xff] %v5303_v25  ;;  %v5305_v56 = vpop.permute.xlu0 %751  ;;  %3844 = vmatpush3.bf16.msra.mxu0 %v3841_v48  ;;  %3860 = vmatpush3.bf16.msra.mxu1 %v3841_v48 }
 0x1b5   :  { %8850 = vst [vmem:[#allocation22_spill] sm:$0xff] %v5305_v56  ;;  %941 = vrot.lane.b32.xlu1 %v8851_v33, %s3944_s26  ;;  %3713 = vmatprep.subr.mxu0 %v25_v54  ;;  %v889_v33 = vrot.slane %v5316_v28, 1 }
 0x1b6   :  { %939 = vrot.lane.b32.xlu0 %v8852_v46, %s3944_s26  ;;  %v886_v46 = vrot.slane %v5175_v49, 1  ;;  %3779 = vmatprep.subr.mxu1 %v25_v54 }
 0x1b7   :  { %v5311_v40 = vpop.permute.xlu1 %791 }
 0x1b8   :  { %v5318_v38 = vpop.permute.xlu0 %789  ;;  %3714 = vmatpush3.msra.mxu0 %v25_v54  ;;  %3780 = vmatpush3.msra.mxu1 %v25_v54  ;;  %v888_v48 = vsel %vm132_vm0, %v886_v46, %v887_v3 }
 0x1b9   :  { %945 = vrot.lane.b32.xlu1 %v4405_v57, %s3944_s26  ;;  %v890_v57 = vsel %vm132_vm0, %v887_v3, %v889_v33 }
 0x1ba   :  { %943 = vrot.lane.b32.xlu0 %v8734_v47, %s3944_s26 }
 0x1bb   :  { %v5330_v56 = vpop.permute.xlu1 %795 }
 0x1bc   :  { %v5332_v25 = vpop.permute.xlu0 %793 }
 0x1bd   :  { %949 = vrot.lane.b32.xlu1 %v4895_v4, %s3944_s26 }
 0x1be   :  { %947 = vrot.lane.b32.xlu0 %v4900_v44, %s3944_s26 }
 0x1bf   :  { %v5339_v47 = vpop.permute.xlu1 %799 }
 0x1c0   :  { %8853 = vst [vmem:[#allocation23_spill] sm:$0xff] %v5339_v47  ;;  %v5342_v32 = vpop.permute.xlu0 %797  ;;  %v8978_v47 = vld [vmem:[#allocation75_spill] sm:$0xff] }
 0x1c1   :  { %8854 = vst [vmem:[#allocation24_spill] sm:$0xff] %v5342_v32  ;;  %953 = vrot.lane.b32.xlu1 %v890_v57, %s3944_s26 }
 0x1c2   :  { %951 = vrot.lane.b32.xlu0 %v888_v48, %s3944_s26 }
 0x1c3   :  { %v5346_v30 = vpop.permute.xlu1 %803 }
 0x1c4   :  { %8855 = vst [vmem:[#allocation167_spill] sm:$0xff] %v5346_v30  ;;  %v5348_v54 = vpop.permute.xlu0 %801 }
 0x1c5   :  { %8856 = vst [vmem:[#allocation168_spill] sm:$0xff] %v5348_v54  ;;  %994 = vrot.lane.b32.xlu1 %v4438_v43, %s3946_s1 }
 0x1c6   :  { %992 = vrot.lane.b32.xlu0 %v4443_v14, %s3946_s1 }
 0x1c7   :  { %v5354_v44 = vpop.permute.xlu1 %807 }
 0x1c8   :  { %8857 = vst [vmem:[#allocation169_spill] sm:$0xff] %v5354_v44  ;;  %v5356_v4 = vpop.permute.xlu0 %805 }
 0x1c9   :  { %8858 = vst [vmem:[#allocation170_spill] sm:$0xff] %v5356_v4  ;;  %998 = vrot.lane.b32.xlu1 %v4451_v5, %s3946_s1  ;;  %v8863_v5 = vld [vmem:[#allocation28_spill] sm:$0xff] }
 0x1ca   :  { %996 = vrot.lane.b32.xlu0 %v8743_v2, %s3946_s1 }
 0x1cb   :  { %v5362_v3 = vpop.permute.xlu1 %811 }
 0x1cc   :  { %8859 = vst [vmem:[#allocation171_spill] sm:$0xff] %v5362_v3  ;;  %v5364_v33 = vpop.permute.xlu0 %809 }
 0x1cd   :  { %8860 = vst [vmem:[#allocation172_spill] sm:$0xff] %v5364_v33  ;;  %1002 = vrot.lane.b32.xlu1 %v4464_v27, %s3946_s1  ;;  %v8866_v27 = vld [vmem:[#allocation29_spill] sm:$0xff] }
 0x1ce   :  { %1000 = vrot.lane.b32.xlu0 %v8746_v0, %s3946_s1 }
 0x1cf   :  { %v5370_v43 = vpop.permute.xlu1 %815 }
 0x1d0   :  { %8861 = vst [vmem:[#allocation173_spill] sm:$0xff] %v5370_v43  ;;  %v5372_v14 = vpop.permute.xlu0 %813 }
 0x1d1   :  { %8862 = vst [vmem:[#allocation174_spill] sm:$0xff] %v5372_v14  ;;  %1006 = vrot.lane.b32.xlu1 %v4477_v6, %s3946_s1  ;;  %v8869_v6 = vld [vmem:[#allocation30_spill] sm:$0xff]  ;;  %v5540_v14 = vld [vmem:[%s8398_s0 + $0x1e8] sm:$0xff] }
 0x1d2   :  { %1004 = vrot.lane.b32.xlu0 %v8863_v5, %s3946_s1  ;;  %8905 = vst [vmem:[#allocation195_spill] sm:$0xff] %v5540_v14 }
 0x1d3   :  { %v5378_v2 = vpop.permute.xlu1 %819 }
 0x1d4   :  { %8864 = vst [vmem:[#allocation28_spill] sm:$0xff] %v5378_v2  ;;  %v5380_v46 = vpop.permute.xlu0 %817 }
 0x1d5   :  { %8865 = vst [vmem:[#allocation175_spill] sm:$0xff] %v5380_v46  ;;  %1010 = vrot.lane.b32.xlu1 %v4490_v21, %s3946_s1  ;;  %v8872_v21 = vld [vmem:[#allocation31_spill] sm:$0xff] }
 0x1d6   :  { %1008 = vrot.lane.b32.xlu0 %v8866_v27, %s3946_s1 }
 0x1d7   :  { %v5386_v0 = vpop.permute.xlu1 %823 }
 0x1d8   :  { %8867 = vst [vmem:[#allocation29_spill] sm:$0xff] %v5386_v0  ;;  %v5388_v57 = vpop.permute.xlu0 %821 }
 0x1d9   :  { %8868 = vst [vmem:[#allocation176_spill] sm:$0xff] %v5388_v57  ;;  %1014 = vrot.lane.b32.xlu1 %v4503_v52, %s3946_s1  ;;  %v8875_v57 = vld [vmem:[#allocation32_spill] sm:$0xff]  ;;  %v8876_v52 = vld [vmem:[#allocation33_spill] sm:$0xff] }
 0x1da   :  { %1012 = vrot.lane.b32.xlu0 %v8869_v6, %s3946_s1 }
 0x1db   :  { %v5394_v48 = vpop.permute.xlu1 %827 }
 0x1dc   :  { %8870 = vst [vmem:[#allocation30_spill] sm:$0xff] %v5394_v48  ;;  %v5396_v5 = vpop.permute.xlu0 %825 }
 0x1dd   :  { %8871 = vst [vmem:[#allocation177_spill] sm:$0xff] %v5396_v5  ;;  %1018 = vrot.lane.b32.xlu1 %v4516_v10, %s3946_s1  ;;  %v8879_v10 = vld [vmem:[#allocation34_spill] sm:$0xff]  ;;  %v5528_v5 = vld [vmem:[%s8398_s0 + $0x1c8] sm:$0xff] }
 0x1de   :  { %1016 = vrot.lane.b32.xlu0 %v8872_v21, %s3946_s1  ;;  %8903 = vst [vmem:[#allocation193_spill] sm:$0xff] %v5528_v5  ;;  %v1882_v22 = vrot.slane %v5528_v5, 1  ;;  %v5635_v5 = vsel %vm1088_vm2, %v3874_v15, %v8925_v11 }
 0x1df   :  { %v5402_v27 = vpop.permute.xlu1 %831 }
 0x1e0   :  { %8873 = vst [vmem:[#allocation31_spill] sm:$0xff] %v5402_v27  ;;  %v5404_v0 = vpop.permute.xlu0 %829 }
 0x1e1   :  { %8874 = vst [vmem:[#allocation178_spill] sm:$0xff] %v5404_v0  ;;  %1022 = vrot.lane.b32.xlu1 %v8875_v57, %s3946_s1  ;;  %v8882_v57 = vld [vmem:[#allocation36_spill] sm:$0xff] }
 0x1e2   :  { %1020 = vrot.lane.b32.xlu0 %v8876_v52, %s3946_s1 }
 0x1e3   :  { %v5410_v6 = vpop.permute.xlu1 %835 }
 0x1e4   :  { %8877 = vst [vmem:[#allocation32_spill] sm:$0xff] %v5410_v6  ;;  %v5412_v48 = vpop.permute.xlu0 %833 }
 0x1e5   :  { %8878 = vst [vmem:[#allocation33_spill] sm:$0xff] %v5412_v48  ;;  %1026 = vrot.lane.b32.xlu1 %v4542_v41, %s3946_s1  ;;  %v8885_v41 = vld [vmem:[#allocation37_spill] sm:$0xff] }
 0x1e6   :  { %1024 = vrot.lane.b32.xlu0 %v8879_v10, %s3946_s1 }
 0x1e7   :  { %v5418_v21 = vpop.permute.xlu1 %839 }
 0x1e8   :  { %8880 = vst [vmem:[#allocation34_spill] sm:$0xff] %v5418_v21  ;;  %v5420_v27 = vpop.permute.xlu0 %837 }
 0x1e9   :  { %8881 = vst [vmem:[#allocation179_spill] sm:$0xff] %v5420_v27  ;;  %1030 = vrot.lane.b32.xlu1 %v8767_v29, %s3946_s1  ;;  %v8888_v27 = vld [vmem:[#allocation38_spill] sm:$0xff] }
 0x1ea   :  { %1028 = vrot.lane.b32.xlu0 %v8882_v57, %s3946_s1 }
 0x1eb   :  { %v5426_v52 = vpop.permute.xlu1 %843 }
 0x1ec   :  { %8883 = vst [vmem:[#allocation36_spill] sm:$0xff] %v5426_v52  ;;  %v5428_v6 = vpop.permute.xlu0 %841  ;;  %v28_v52 = vld [vmem:[%s8401_s3] sm:$0xff] }
 0x1ed   :  { %8884 = vst [vmem:[#allocation180_spill] sm:$0xff] %v5428_v6  ;;  %1034 = vrot.lane.b32.xlu1 %v4568_v23, %s3946_s1  ;;  %v8891_v23 = vld [vmem:[#allocation43_spill] sm:$0xff] }
 0x1ee   :  { %1032 = vrot.lane.b32.xlu0 %v8885_v41, %s3946_s1 }
 0x1ef   :  { %v5434_v10 = vpop.permute.xlu1 %847 }
 0x1f0   :  { %8886 = vst [vmem:[#allocation37_spill] sm:$0xff] %v5434_v10  ;;  %v5436_v21 = vpop.permute.xlu0 %845 }
 0x1f1   :  { %8887 = vst [vmem:[#allocation181_spill] sm:$0xff] %v5436_v21  ;;  %1038 = vrot.lane.b32.xlu1 %v8888_v27, %s3946_s1  ;;  %v988_v27 = vrot.slane %v5168_v60, 2 }
 0x1f2   :  { %1036 = vrot.lane.b32.xlu0 %v8774_v55, %s3946_s1  ;;  %v990_v55 = vrot.slane %v5316_v28, 2  ;;  %v5488_v28 = vld [vmem:[%s8398_s0 + $0x1b8] sm:$0xff] }
 0x1f3   :  { %v5442_v29 = vpop.permute.xlu1 %851  ;;  %8895 = vst [vmem:[#allocation185_spill] sm:$0xff] %v5488_v28 }
 0x1f4   :  { %8889 = vst [vmem:[#allocation38_spill] sm:$0xff] %v5442_v29  ;;  %v5444_v57 = vpop.permute.xlu0 %849 }
 0x1f5   :  { %8890 = vst [vmem:[#allocation182_spill] sm:$0xff] %v5444_v57  ;;  %1042 = vrot.lane.b32.xlu1 %v4598_v35, %s3946_s1  ;;  %v987_v57 = vrot.slane %v5175_v49, 2  ;;  %v27_v49 = vld [vmem:[%s8400_s2 + $0x8] sm:$0xff] }
 0x1f6   :  { %1040 = vrot.lane.b32.xlu0 %v8891_v23, %s3946_s1 }
 0x1f7   :  { %v5450_v41 = vpop.permute.xlu1 %893 }
 0x1f8   :  { %v5452_v10 = vpop.permute.xlu0 %891 }
 0x1f9   :  { %1046 = vrot.lane.b32.xlu1 %v4615_v58, %s3946_s1  ;;  %v991_v58 = vsel %vm309_vm1, %v988_v27, %v990_v55  ;;  %v5500_v55 = vld [vmem:[%s8398_s0 + $0x1b0] sm:$0xff] }
 0x1fa   :  { %1044 = vrot.lane.b32.xlu0 %v4620_v9, %s3946_s1  ;;  %v989_v9 = vsel %vm309_vm1, %v987_v57, %v988_v27  ;;  %v5493_v57 = vld [vmem:[%s8398_s0 + $0x1c0] sm:$0x3]  ;;  %8898 = vst [vmem:[#allocation188_spill] sm:$0xff] %v5500_v55  ;;  %v1877_v48 = vrot.slane %v5500_v55, 1 }
 0x1fb   :  { %v5461_v35 = vpop.permute.xlu1 %897  ;;  %8896 = vst [vmem:[#allocation186_spill] sm:$0xff] %v5493_v57  ;;  %v1880_v21 = vrot.slane %v5493_v57, 1  ;;  %v3891_v57 = vld [vmem:[%s8398_s0 + $0xd8] sm:$0xff] }
 0x1fc   :  { %v5463_v29 = vpop.permute.xlu0 %895 }
 0x1fd   :  { %1050 = vrot.lane.b32.xlu1 %v5032_v42, %s3946_s1 }
 0x1fe   :  { %1048 = vrot.lane.b32.xlu0 %v5037_v63, %s3946_s1  ;;  %v26_v63 = vld [vmem:[%s8400_s2] sm:$0xff] }
 0x1ff   :  { %v5470_v60 = vpop.permute.xlu1 %901 }
 0x200   :  { %8892 = vst [vmem:[#allocation43_spill] sm:$0xff] %v5470_v60  ;;  %v5473_v23 = vpop.permute.xlu0 %899 }
 0x201   :  { %8893 = vst [vmem:[#allocation183_spill] sm:$0xff] %v5473_v23  ;;  %1054 = vrot.lane.b32.xlu1 %v991_v58, %s3946_s1  ;;  %v29_v58 = vld [vmem:[%s8401_s3 + $0x8] sm:$0xff]  ;;  %v5920_v23 = vsel %vm1088_vm2, %v3902_v1, %v8972_v39  ;;  %v8977_v1 = vld [vmem:[#allocation74_spill] sm:$0xff] }
 0x202   :  { %1052 = vrot.lane.b32.xlu0 %v989_v9, %s3946_s1  ;;  %v1878_v9 = vrot.slane %v5488_v28, 1  ;;  %v8954_v28 = vld [vmem:[#allocation60_spill] sm:$0xff] }
 0x203   :  { %v5480_v42 = vpop.permute.xlu1 %905  ;;  %v5811_v44 = vsel %vm1088_vm2, %v3891_v57, %v8954_v28  ;;  %v3893_v28 = vld [vmem:[%s8398_s0 + $0xf0] sm:$0xff]  ;;  %v8958_v57 = vld [vmem:[#allocation62_spill] sm:$0xff] }
 0x204   :  { %8894 = vst [vmem:[#allocation184_spill] sm:$0xff] %v5480_v42  ;;  %v5495_v27 = vpop.permute.xlu0 %903  ;;  %v1881_v46 = vsel %vm132_vm0, %v1878_v9, %v1880_v21  ;;  %v1879_v24 = vsel %vm132_vm0, %v1877_v48, %v1878_v9  ;;  %v1888_v9 = vrot.slane %v5540_v14, 1 }
 0x205   :  { %8897 = vst [vmem:[#allocation187_spill] sm:$0xff] %v5495_v27  ;;  %1745 = vperm.xlu1 %3871, %v27_v49   ;;  %v5516_v49 = vld [vmem:[%s8398_s0 + $0x1d0] sm:$0xff]  ;;  %v3895_v27 = vld [vmem:[%s8398_s0 + $0x108] sm:$0xff] }
 0x206   :  { %1740 = vperm.xlu0 %3870, %v26_v63   ;;  %8900 = vst [vmem:[#allocation190_spill] sm:$0xff] %v5516_v49  ;;  %v5521_v63 = vld [vmem:[%s8398_s0 + $0x1d8] sm:$0x3]  ;;  %v1883_v2 = vrot.slane %v5516_v49, 1  ;;  %v5846_v13 = vsel %vm1088_vm2, %v3895_v27, %v8960_v12 }
 0x207   :  { %v5507_v6 = vpop.permute.xlu1 %909  ;;  %8901 = vst [vmem:[#allocation191_spill] sm:$0xff] %v5521_v63  ;;  %v1885_v62 = vrot.slane %v5521_v63, 1  ;;  %v3880_v63 = vld [vmem:[%s8398_s0 + $0x68] sm:$0xff]  ;;  %v8936_v49 = vld [vmem:[#allocation49_spill] sm:$0xff] }
 0x208   :  { %8899 = vst [vmem:[#allocation189_spill] sm:$0xff] %v5507_v6  ;;  %v5523_v0 = vpop.permute.xlu0 %907  ;;  %v5564_v59 = vsel %vm132_vm0, %v1882_v22, %v1883_v2  ;;  %v5702_v3 = vsel %vm1088_vm2, %v3880_v63, %v8936_v49  ;;  %v3882_v49 = vld [vmem:[%s8398_s0 + $0x80] sm:$0xff]  ;;  %v8940_v63 = vld [vmem:[#allocation51_spill] sm:$0xff] }
 0x209   :  { %8902 = vst [vmem:[#allocation192_spill] sm:$0xff] %v5523_v0  ;;  %1759 = vperm.xlu1 %3871, %v29_v58   ;;  %v5552_v58 = vld [vmem:[%s8398_s0 + $0x1e0] sm:$0xff]  ;;  %v5557_v48 = vsel %vm132_vm0, %v1883_v2, %v1885_v62  ;;  %8911 = vst [vmem:[#allocation201_spill] sm:$0xff] %v5564_v59  ;;  %v3884_v0 = vld [vmem:[%s8398_s0 + $0x98] sm:$0xff] }
 0x20a   :  { %1754 = vperm.xlu0 %3870, %v28_v52   ;;  %v5545_v52 = vld [vmem:[%s8398_s0 + $0x1f0] sm:$0x3]  ;;  %8908 = vst [vmem:[#allocation198_spill] sm:$0xff] %v5552_v58  ;;  %8909 = vst [vmem:[#allocation199_spill] sm:$0xff] %v5557_v48  ;;  %v5737_v36 = vsel %vm1088_vm2, %v3884_v0, %v8942_v31 }
 0x20b   :  { %v5533_v17 = vpop.permute.xlu1 %913  ;;  %8906 = vst [vmem:[#allocation196_spill] sm:$0xff] %v5545_v52  ;;  %v1890_v43 = vrot.slane %v5545_v52, 1 }
 0x20c   :  { %8904 = vst [vmem:[#allocation194_spill] sm:$0xff] %v5533_v17  ;;  %v5547_v21 = vpop.permute.xlu0 %911 }
 0x20d   :  { %8907 = vst [vmem:[#allocation197_spill] sm:$0xff] %v5547_v21  ;;  %1959 = vrot.lane.b32.xlu1 %v1881_v46, %s3938_s7  ;;  %v1887_v21 = vrot.slane %v5552_v58, 1  ;;  %v5570_v46 = vld [vmem:[%s8398_s0 + $0x200] sm:$0xff]  ;;  %v5589_v22 = vsel %vm132_vm0, %v1888_v9, %v1890_v43 }
 0x20e   :  { %1957 = vrot.lane.b32.xlu0 %v1879_v24, %s3938_s7  ;;  %8912 = vst [vmem:[#allocation202_spill] sm:$0xff] %v5570_v46  ;;  %v5575_v24 = vld [vmem:[%s8398_s0 + $0x208] sm:$0x3]  ;;  %8916 = vst [vmem:[#allocation206_spill] sm:$0xff] %v5589_v22  ;;  %v1893_v2 = vrot.slane %v5570_v46, 1  ;;  %v8924_v46 = vld [vmem:[#allocation41_spill] sm:$0xff] }
 0x20f   :  { %v5561_v16 = vpop.permute.xlu1 %917  ;;  %8913 = vst [vmem:[#allocation203_spill] sm:$0xff] %v5575_v24  ;;  %v1895_v58 = vrot.slane %v5575_v24, 1  ;;  %v5596_v52 = vsel %vm132_vm0, %v1887_v21, %v1888_v9  ;;  %v5607_v43 = vld [vmem:[%s8398_s0 + $0x220] sm:$0x3]  ;;  %v3872_v21 = vld [vmem:[%s8398_s0 + $0x18] sm:$0xff]  ;;  %v8923_v9 = vld [vmem:[#allocation39_spill] sm:$0xff] }
 0x210   :  { %8910 = vst [vmem:[#allocation200_spill] sm:$0xff] %v5561_v16  ;;  %v5577_v62 = vpop.permute.xlu0 %915  ;;  %v5582_v16 = vld [vmem:[%s8398_s0 + $0x1f8] sm:$0xff]  ;;  %8918 = vst [vmem:[#allocation208_spill] sm:$0xff] %v5596_v52  ;;  %v3873_v24 = vld [vmem:[%s8398_s0] sm:$0xff]  ;;  %v1900_v15 = vrot.slane %v5607_v43, 1 }
 0x211   :  { %8914 = vst [vmem:[#allocation204_spill] sm:$0xff] %v5577_v62  ;;  %8915 = vst [vmem:[#allocation205_spill] sm:$0xff] %v5582_v16  ;;  %1963 = vrot.lane.b32.xlu1 %v5557_v48, %s3938_s7  ;;  %v1892_v14 = vrot.slane %v5582_v16, 1  ;;  %v5602_v48 = vld [vmem:[%s8398_s0 + $0x218] sm:$0xff]  ;;  %v5621_v16 = vsel %vm1088_vm2, %v3872_v21, %v8923_v9  ;;  %v3875_v21 = vld [vmem:[%s8398_s0 + $0x8] sm:$0xff] }
 0x212   :  { %1961 = vrot.lane.b32.xlu0 %v5564_v59, %s3938_s7  ;;  %8919 = vst [vmem:[#allocation209_spill] sm:$0xff] %v5602_v48  ;;  %8920 = vst [vmem:[#allocation210_spill] sm:$0xff] %v5607_v43  ;;  %v8926_v9 = vld [vmem:[#allocation44_spill] sm:$0xff]  ;;  %v1898_v11 = vrot.slane %v5602_v48, 1 }
 0x213   :  { %v5593_v62 = vpop.permute.xlu1 %921  ;;  %v5644_v17 = vsel %vm1088_vm2, %v3875_v21, %v8926_v9  ;;  %v3877_v21 = vld [vmem:[%s8398_s0 + $0x30] sm:$0xff]  ;;  %v8929_v9 = vld [vmem:[#allocation46_spill] sm:$0xff]  ;;  %v5670_v43 = vsel %vm132_vm0, %v1892_v14, %v1893_v2 }
 0x214   :  { %8917 = vst [vmem:[#allocation207_spill] sm:$0xff] %v5593_v62  ;;  %v5609_v59 = vpop.permute.xlu0 %919  ;;  %v5614_v62 = vld [vmem:[%s8398_s0 + $0x210] sm:$0xff]  ;;  %8931 = vst [vmem:[#allocation42_spill] sm:$0xff] %v5670_v43  ;;  %v5758_v31 = vsel %vm132_vm0, %v1898_v11, %v1900_v15 }
 0x215   :  { %8921 = vst [vmem:[#allocation211_spill] sm:$0xff] %v5609_v59  ;;  %8922 = vst [vmem:[#allocation212_spill] sm:$0xff] %v5614_v62  ;;  %v5628_v59 = vsel %vm1088_vm2, %v3873_v24, %v8924_v46  ;;  %1967 = vrot.lane.b32.xlu1 %v5589_v22, %s3938_s7  ;;  %v5649_v46 = vsel %vm132_vm0, %v1893_v2, %v1895_v58  ;;  %v3876_v24 = vld [vmem:[%s8398_s0 + $0x38] sm:$0xff]  ;;  %v5665_v58 = vsel %vm1088_vm2, %v3877_v21, %v8929_v9  ;;  %v3878_v21 = vld [vmem:[%s8398_s0 + $0x50] sm:$0xff] }
 0x216   :  { %1965 = vrot.lane.b32.xlu0 %v5596_v52, %s3938_s7  ;;  %8927 = vst [vmem:[#allocation39_spill] sm:$0xff] %v5649_v46  ;;  %v8928_v22 = vld [vmem:[#allocation45_spill] sm:$0xff]  ;;  %v1897_v48 = vrot.slane %v5614_v62, 1  ;;  %v8934_v9 = vld [vmem:[#allocation47_spill] sm:$0xff]  ;;  %v8935_v62 = vld [vmem:[#allocation48_spill] sm:$0xff]  ;;  %v5944_v32 = vsel %vm1121_vm3, %v5628_v59, %v8977_v1 }
 0x217   :  { %v5658_v33 = vsel %vm1088_vm2, %v3876_v24, %v8928_v22  ;;  %v5667_v52 = vpop.permute.xlu1 %925  ;;  %v5676_v22 = vld [vmem:[%s8398_s0 + $0x230] sm:$0xff]  ;;  %v5681_v24 = vld [vmem:[%s8398_s0 + $0x238] sm:$0x3]  ;;  %v5688_v14 = vsel %vm1088_vm2, %v3878_v21, %v8934_v9  ;;  %v3879_v2 = vld [vmem:[%s8398_s0 + $0x48] sm:$0xff]  ;;  %8945 = vst [vmem:[#allocation48_spill] sm:$0xff] %v5758_v31 }
 0x218   :  { %8930 = vst [vmem:[#allocation41_spill] sm:$0xff] %v5667_v52  ;;  %8932 = vst [vmem:[#allocation44_spill] sm:$0xff] %v5676_v22  ;;  %v5695_v52 = vsel %vm1088_vm2, %v3879_v2, %v8935_v62  ;;  %v3881_v21 = vld [vmem:[%s8398_s0 + $0x60] sm:$0xff]  ;;  %v5711_v34 = vpop.permute.xlu0 %923  ;;  %v5716_v62 = vld [vmem:[%s8398_s0 + $0x228] sm:$0xff]  ;;  %v5723_v2 = vsel %vm1088_vm2, %v3882_v49, %v8940_v63  ;;  %v1903_v0 = vrot.slane %v5676_v22, 1 }
 0x219   :  { %8933 = vst [vmem:[#allocation45_spill] sm:$0xff] %v5681_v24  ;;  %v8937_v9 = vld [vmem:[#allocation50_spill] sm:$0xff]  ;;  %8938 = vst [vmem:[#allocation46_spill] sm:$0xff] %v5711_v34  ;;  %v3885_v49 = vld [vmem:[%s8398_s0 + $0x90] sm:$0xff]  ;;  %1971 = vrot.lane.b32.xlu1 %v5649_v46, %s3938_s7  ;;  %v1902_v22 = vrot.slane %v5716_v62, 1 }
 0x21a   :  { %v5709_v19 = vsel %vm1088_vm2, %v3881_v21, %v8937_v9  ;;  %8939 = vst [vmem:[#allocation47_spill] sm:$0xff] %v5716_v62  ;;  %v3883_v21 = vld [vmem:[%s8398_s0 + $0x78] sm:$0xff]  ;;  %v8941_v9 = vld [vmem:[#allocation52_spill] sm:$0xff]  ;;  %v8943_v63 = vld [vmem:[#allocation54_spill] sm:$0xff]  ;;  %1969 = vrot.lane.b32.xlu0 %v5670_v43, %s3938_s7 }
 0x21b   :  { %v5730_v34 = vsel %vm1088_vm2, %v3883_v21, %v8941_v9  ;;  %v5744_v55 = vsel %vm1088_vm2, %v3885_v49, %v8943_v63  ;;  %v3886_v21 = vld [vmem:[%s8398_s0 + $0xb0] sm:$0xff]  ;;  %v8944_v9 = vld [vmem:[#allocation55_spill] sm:$0xff]  ;;  %v1905_v49 = vrot.slane %v5681_v24, 1  ;;  %v5776_v43 = vpop.permute.xlu1 %929  ;;  %v5779_v24 = vsel %vm132_vm0, %v1897_v48, %v1898_v11  ;;  %v3890_v11 = vld [vmem:[%s8398_s0 + $0xe0] sm:$0xff] }
 0x21c   :  { %v5753_v6 = vsel %vm1088_vm2, %v3886_v21, %v8944_v9  ;;  %v3887_v63 = vld [vmem:[%s8398_s0 + $0xa8] sm:$0xff]  ;;  %v8946_v46 = vld [vmem:[#allocation56_spill] sm:$0xff]  ;;  %v8947_v9 = vld [vmem:[#allocation57_spill] sm:$0xff]  ;;  %8948 = vst [vmem:[#allocation49_spill] sm:$0xff] %v5776_v43  ;;  %v5820_v53 = vpop.permute.xlu0 %927 }
 0x21d   :  { %v5767_v4 = vsel %vm1088_vm2, %v3887_v63, %v8946_v46  ;;  %v3888_v21 = vld [vmem:[%s8398_s0 + $0xc8] sm:$0xff]  ;;  %8949 = vst [vmem:[#allocation50_spill] sm:$0xff] %v5779_v24  ;;  %v5790_v63 = vld [vmem:[%s8398_s0 + $0x250] sm:$0x3]  ;;  %8956 = vst [vmem:[#allocation53_spill] sm:$0xff] %v5820_v53  ;;  %1975 = vrot.lane.b32.xlu1 %v5758_v31, %s3938_s7  ;;  %v5867_v12 = vsel %vm132_vm0, %v1903_v0, %v1905_v49 }
 0x21e   :  { %v5774_v15 = vsel %vm1088_vm2, %v3888_v21, %v8947_v9  ;;  %v5785_v46 = vld [vmem:[%s8398_s0 + $0x248] sm:$0xff]  ;;  %8951 = vst [vmem:[#allocation52_spill] sm:$0xff] %v5790_v63  ;;  %v3889_v21 = vld [vmem:[%s8398_s0 + $0xc0] sm:$0xff]  ;;  %1973 = vrot.lane.b32.xlu0 %v5779_v24, %s3938_s7  ;;  %8963 = vst [vmem:[#allocation55_spill] sm:$0xff] %v5867_v12 }
 0x21f   :  { %8950 = vst [vmem:[#allocation51_spill] sm:$0xff] %v5785_v46  ;;  %v8952_v9 = vld [vmem:[#allocation58_spill] sm:$0xff]  ;;  %v8953_v62 = vld [vmem:[#allocation59_spill] sm:$0xff]  ;;  %v1908_v27 = vrot.slane %v5785_v46, 1  ;;  %v5885_v24 = vpop.permute.xlu1 %933 }
 0x220   :  { %v5797_v48 = vsel %vm1088_vm2, %v3889_v21, %v8952_v9  ;;  %v5804_v43 = vsel %vm1088_vm2, %v3890_v11, %v8953_v62  ;;  %v3892_v21 = vld [vmem:[%s8398_s0 + $0xf8] sm:$0xff]  ;;  %v5825_v62 = vld [vmem:[%s8398_s0 + $0x240] sm:$0xff]  ;;  %v5832_v11 = vsel %vm1088_vm2, %v3893_v28, %v8958_v57  ;;  %v3896_v28 = vld [vmem:[%s8398_s0 + $0x128] sm:$0xff]  ;;  %8966 = vst [vmem:[#allocation56_spill] sm:$0xff] %v5885_v24  ;;  %v5929_v60 = vpop.permute.xlu0 %931 }
 0x221   :  { %v8955_v9 = vld [vmem:[#allocation61_spill] sm:$0xff]  ;;  %8957 = vst [vmem:[#allocation54_spill] sm:$0xff] %v5825_v62  ;;  %v8964_v31 = vld [vmem:[#allocation67_spill] sm:$0xff]  ;;  %v1907_v46 = vrot.slane %v5825_v62, 1  ;;  %v8971_v62 = vld [vmem:[#allocation70_spill] sm:$0xff]  ;;  %1979 = vrot.lane.b32.xlu1 %v5867_v12, %s3938_s7 }
 0x222   :  { %v5818_v37 = vsel %vm1088_vm2, %v3892_v21, %v8955_v9  ;;  %v3894_v21 = vld [vmem:[%s8398_s0 + $0x110] sm:$0xff]  ;;  %v8959_v9 = vld [vmem:[#allocation63_spill] sm:$0xff]  ;;  %v8961_v57 = vld [vmem:[#allocation65_spill] sm:$0xff]  ;;  %8974 = vst [vmem:[#allocation60_spill] sm:$0xff] %v5929_v60 }
 0x223   :  { %v5839_v53 = vsel %vm1088_vm2, %v3894_v21, %v8959_v9  ;;  %v5853_v42 = vsel %vm1088_vm2, %v3896_v28, %v8961_v57  ;;  %v3897_v21 = vld [vmem:[%s8398_s0 + $0x120] sm:$0xff]  ;;  %v1910_v28 = vrot.slane %v5790_v63, 1  ;;  %v5888_v63 = vsel %vm132_vm0, %v1902_v22, %v1903_v0  ;;  %v3901_v0 = vld [vmem:[%s8398_s0 + $0x150] sm:$0xff] }
 0x224   :  { %v8962_v9 = vld [vmem:[#allocation66_spill] sm:$0xff]  ;;  %8967 = vst [vmem:[#allocation57_spill] sm:$0xff] %v5888_v63  ;;  %v5913_v24 = vsel %vm1088_vm2, %v3901_v0, %v8971_v62  ;;  %v5934_v62 = vld [vmem:[%s8398_s0 + $0x258] sm:$0xff]  ;;  %1977 = vrot.lane.b32.xlu0 %v5888_v63, %s3938_s7  ;;  %v5983_v12 = vsel %vm132_vm0, %v1907_v46, %v1908_v27 }
 0x225   :  { %v5862_v54 = vsel %vm1088_vm2, %v3897_v21, %v8962_v9  ;;  %v3898_v57 = vld [vmem:[%s8398_s0 + $0x140] sm:$0xff]  ;;  %v3899_v21 = vld [vmem:[%s8398_s0 + $0x138] sm:$0xff]  ;;  %v8965_v9 = vld [vmem:[#allocation68_spill] sm:$0xff]  ;;  %8975 = vst [vmem:[#allocation61_spill] sm:$0xff] %v5934_v62  ;;  %v5966_v59 = vsel %vm132_vm0, %v1908_v27, %v1910_v28  ;;  %v1912_v28 = vrot.slane %v5934_v62, 1 }
 0x226   :  { %v5876_v30 = vsel %vm1088_vm2, %v3898_v57, %v8964_v31  ;;  %v5883_v49 = vsel %vm1088_vm2, %v3899_v21, %v8965_v9  ;;  %v5894_v31 = vld [vmem:[%s8398_s0 + $0x260] sm:$0xff]  ;;  %v5899_v57 = vld [vmem:[%s8398_s0 + $0x268] sm:$0x3]  ;;  %v3900_v21 = vld [vmem:[%s8398_s0 + $0x158] sm:$0xff]  ;;  %8981 = vst [vmem:[#allocation62_spill] sm:$0xff] %v5966_v59  ;;  %1983 = vrot.lane.b32.xlu1 %v5966_v59, %s3938_s7 }
 0x227   :  { %8968 = vst [vmem:[#allocation58_spill] sm:$0xff] %v5894_v31  ;;  %8969 = vst [vmem:[#allocation59_spill] sm:$0xff] %v5899_v57  ;;  %v8970_v9 = vld [vmem:[#allocation69_spill] sm:$0xff]  ;;  %v8990_v27 = vld [vmem:[#allocation82_spill] sm:$0xff] }
 0x228   :  { %v5906_v22 = vsel %vm1088_vm2, %v3900_v21, %v8970_v9  ;;  %v3903_v21 = vld [vmem:[%s8398_s0 + $0x168] sm:$0xff]  ;;  %v8973_v9 = vld [vmem:[#allocation72_spill] sm:$0xff]  ;;  %v8976_v0 = vld [vmem:[#allocation73_spill] sm:$0xff]  ;;  %8985 = vst [vmem:[#allocation64_spill] sm:$0xff] %v5983_v12  ;;  %v6009_v62 = vsel %vm1121_vm3, %v5709_v19, %v8990_v27  ;;  %1981 = vrot.lane.b32.xlu0 %v5983_v12, %s3938_s7 }
 0x229   :  { %v5927_v18 = vsel %vm1088_vm2, %v3903_v21, %v8973_v9  ;;  %v5939_v39 = vsel %vm1121_vm3, %v5644_v17, %v8976_v0  ;;  %v5949_v21 = vsel %vm1121_vm3, %v5635_v5, %v8978_v47  ;;  %v8979_v9 = vld [vmem:[#allocation76_spill] sm:$0xff]  ;;  %v8980_v17 = vld [vmem:[#allocation77_spill] sm:$0xff]  ;;  %v1913_v47 = vrot.slane %v5894_v31, 1  ;;  %v8982_v5 = vld [vmem:[#allocation78_spill] sm:$0xff]  ;;  %v6016_v31 = vpop.permute.xlu0 %935 }
 0x22a   :  { %v5954_v60 = vsel %vm1121_vm3, %v5621_v16, %v8979_v9  ;;  %v5961_v0 = vsel %vm1121_vm3, %v5658_v33, %v8980_v17  ;;  %v1915_v16 = vrot.slane %v5899_v57, 1  ;;  %v5973_v1 = vsel %vm1121_vm3, %v5665_v58, %v8982_v5  ;;  %v8983_v9 = vld [vmem:[#allocation79_spill] sm:$0xff]  ;;  %v5980_v17 = vpop.permute.xlu1 %937  ;;  %v5989_v63 = vld [vmem:[%s8398_s0 + $0x278] sm:$0xff]  ;;  %v5994_v58 = vld [vmem:[%s8398_s0 + $0x280] sm:$0x3]  ;;  %8992 = vst [vmem:[#allocation67_spill] sm:$0xff] %v6016_v31 }
 0x22b   :  { %v5978_v33 = vsel %vm1121_vm3, %v5688_v14, %v8983_v9  ;;  %8984 = vst [vmem:[#allocation63_spill] sm:$0xff] %v5980_v17  ;;  %8986 = vst [vmem:[#allocation65_spill] sm:$0xff] %v5989_v63  ;;  %v8988_v5 = vld [vmem:[#allocation80_spill] sm:$0xff]  ;;  %v8989_v9 = vld [vmem:[#allocation81_spill] sm:$0xff]  ;;  %v6070_v59 = vsel %vm132_vm0, %v1912_v28, %v1913_v47 }
 0x22c   :  { %8987 = vst [vmem:[#allocation66_spill] sm:$0xff] %v5994_v58  ;;  %v5999_v14 = vsel %vm1121_vm3, %v5695_v52, %v8988_v5  ;;  %v6004_v46 = vsel %vm1121_vm3, %v5702_v3, %v8989_v9  ;;  %v8991_v17 = vld [vmem:[#allocation83_spill] sm:$0xff]  ;;  %v6021_v52 = vld [vmem:[%s8398_s0 + $0x270] sm:$0xff]  ;;  %v8995_v9 = vld [vmem:[#allocation2_spill] sm:$0xff]  ;;  %1985 = vrot.lane.b32.xlu0 %v6070_v59, %s3938_s7 }
 0x22d   :  { %v6014_v57 = vsel %vm1121_vm3, %v5723_v2, %v8991_v17  ;;  %8993 = vst [vmem:[#allocation68_spill] sm:$0xff] %v6021_v52  ;;  %v8994_v5 = vld [vmem:[#allocation84_spill] sm:$0xff]  ;;  %v6031_v19 = vsel %vm1121_vm3, %v5737_v36, %v8995_v9  ;;  %v8996_v27 = vld [vmem:[#allocation85_spill] sm:$0xff]  ;;  %v8997_v17 = vld [vmem:[#allocation86_spill] sm:$0xff]  ;;  %v6053_v36 = vsel %vm132_vm0, %v1913_v47, %v1915_v16  ;;  %v1920_v9 = vrot.slane %v5994_v58, 1 }
 0x22e   :  { %v6026_v3 = vsel %vm1121_vm3, %v5730_v34, %v8994_v5  ;;  %v6036_v2 = vsel %vm1121_vm3, %v5744_v55, %v8996_v27  ;;  %v6041_v31 = vsel %vm1121_vm3, %v5753_v6, %v8997_v17  ;;  %v8998_v34 = vld [vmem:[#allocation87_spill] sm:$0xff]  ;;  %8999 = vst [vmem:[#allocation69_spill] sm:$0xff] %v6053_v36  ;;  %v1918_v55 = vrot.slane %v5989_v63, 1  ;;  %v9000_v6 = vld [vmem:[#allocation88_spill] sm:$0xff]  ;;  %v9001_v17 = vld [vmem:[#allocation89_spill] sm:$0xff]  ;;  %v6103_v63 = vpop.permute.xlu0 %939  ;;  %1987 = vrot.lane.b32.xlu1 %v6053_v36, %s3938_s7 }
 0x22f   :  { %v6048_v5 = vsel %vm1121_vm3, %v5767_v4, %v8998_v34  ;;  %v6060_v27 = vsel %vm1121_vm3, %v5774_v15, %v9000_v6  ;;  %v6065_v4 = vsel %vm1121_vm3, %v5797_v48, %v9001_v17  ;;  %v6067_v34 = vpop.permute.xlu1 %941  ;;  %9003 = vst [vmem:[#allocation71_spill] sm:$0xff] %v6070_v59  ;;  %v1917_v16 = vrot.slane %v6021_v52, 1  ;;  %v6076_v12 = vld [vmem:[%s8398_s0 + $0x290] sm:$0xff]  ;;  %v6081_v15 = vld [vmem:[%s8398_s0 + $0x298] sm:$0x3]  ;;  %v9006_v6 = vld [vmem:[#allocation90_spill] sm:$0xff] }
 0x230   :  { %9002 = vst [vmem:[#allocation70_spill] sm:$0xff] %v6067_v34  ;;  %9004 = vst [vmem:[#allocation72_spill] sm:$0xff] %v6076_v12  ;;  %v6086_v48 = vsel %vm1121_vm3, %v5804_v43, %v9006_v6  ;;  %v9007_v17 = vld [vmem:[#allocation91_spill] sm:$0xff]  ;;  %v9008_v28 = vld [vmem:[#allocation92_spill] sm:$0xff] }
 0x231   :  { %9005 = vst [vmem:[#allocation73_spill] sm:$0xff] %v6081_v15  ;;  %v6091_v47 = vsel %vm1121_vm3, %v5811_v44, %v9007_v17  ;;  %v6096_v52 = vsel %vm1121_vm3, %v5818_v37, %v9008_v28  ;;  %v9009_v34 = vld [vmem:[#allocation93_spill] sm:$0xff]  ;;  %9010 = vst [vmem:[#allocation74_spill] sm:$0xff] %v6103_v63  ;;  %v6108_v43 = vld [vmem:[%s8398_s0 + $0x288] sm:$0xff]  ;;  %v6157_v36 = vsel %vm132_vm0, %v1917_v16, %v1918_v55 }
 0x232   :  { %v6101_v58 = vsel %vm1121_vm3, %v5832_v11, %v9009_v34  ;;  %9011 = vst [vmem:[#allocation75_spill] sm:$0xff] %v6108_v43  ;;  %v9012_v44 = vld [vmem:[#allocation94_spill] sm:$0xff]  ;;  %v9013_v37 = vld [vmem:[#allocation95_spill] sm:$0xff]  ;;  %v9014_v11 = vld [vmem:[#allocation96_spill] sm:$0xff]  ;;  %1989 = vrot.lane.b32.xlu0 %v6157_v36, %s3938_s7 }
 0x233   :  { %v6113_v6 = vsel %vm1121_vm3, %v5839_v53, %v9012_v44  ;;  %v6118_v17 = vsel %vm1121_vm3, %v5846_v13, %v9013_v37  ;;  %v6123_v34 = vsel %vm1121_vm3, %v5853_v42, %v9014_v11  ;;  %v9015_v28 = vld [vmem:[#allocation97_spill] sm:$0xff]  ;;  %v9016_v53 = vld [vmem:[#allocation98_spill] sm:$0xff]  ;;  %v6140_v13 = vsel %vm132_vm0, %v1918_v55, %v1920_v9  ;;  %9021 = vst [vmem:[#allocation78_spill] sm:$0xff] %v6157_v36  ;;  %v6163_v59 = vld [vmem:[%s8398_s0 + $0x2a8] sm:$0xff] }
 0x234   :  { %v6128_v63 = vsel %vm1121_vm3, %v5862_v54, %v9015_v28  ;;  %v6135_v44 = vsel %vm1121_vm3, %v5876_v30, %v9016_v53  ;;  %9017 = vst [vmem:[#allocation76_spill] sm:$0xff] %v6140_v13  ;;  %v1923_v42 = vrot.slane %v6076_v12, 1  ;;  %v1925_v37 = vrot.slane %v6081_v15, 1  ;;  %v9018_v54 = vld [vmem:[#allocation99_spill] sm:$0xff]  ;;  %v9019_v28 = vld [vmem:[#allocation100_spill] sm:$0xff]  ;;  %v6154_v53 = vpop.permute.xlu1 %945  ;;  %v6190_v15 = vld [vmem:[%s8398_s0 + $0x2a0] sm:$0xff]  ;;  %1991 = vrot.lane.b32.xlu1 %v6140_v13, %s3938_s7 }
 0x235   :  { %v6147_v11 = vsel %vm1121_vm3, %v5883_v49, %v9018_v54  ;;  %v6152_v30 = vsel %vm1121_vm3, %v5906_v22, %v9019_v28  ;;  %9020 = vst [vmem:[#allocation77_spill] sm:$0xff] %v6154_v53  ;;  %v1922_v9 = vrot.slane %v6108_v43, 1  ;;  %v6168_v49 = vld [vmem:[%s8398_s0 + $0x2b0] sm:$0x3]  ;;  %v9022_v54 = vld [vmem:[#allocation101_spill] sm:$0xff]  ;;  %v9023_v28 = vld [vmem:[#allocation102_spill] sm:$0xff]  ;;  %v6185_v53 = vpop.permute.xlu0 %943 }
 0x236   :  { %v6173_v22 = vsel %vm1121_vm3, %v5913_v24, %v9022_v54  ;;  %v6178_v55 = vsel %vm1121_vm3, %v5920_v23, %v9023_v28  ;;  %v9025_v16 = vld [vmem:[#allocation103_spill] sm:$0xff]  ;;  %9027 = vst [vmem:[#allocation81_spill] sm:$0xff] %v6185_v53  ;;  %9028 = vst [vmem:[#allocation82_spill] sm:$0xff] %v6190_v15  ;;  %v9029_v24 = vld [vmem:[#allocation104_spill] sm:$0xff] }
 0x237   :  { %9024 = vst [vmem:[#allocation79_spill] sm:$0xff] %v6178_v55  ;;  %v6183_v43 = vsel %vm1121_vm3, %v5927_v18, %v9025_v16  ;;  %v1156_v54 = vsel %vm1154_vm4, %v5939_v39, %v9029_v24  ;;  %v9030_v12 = vld [vmem:[#allocation105_spill] sm:$0xff]  ;;  %v9031_v28 = vld [vmem:[#allocation106_spill] sm:$0xff]  ;;  %v9032_v16 = vld [vmem:[#allocation107_spill] sm:$0xff]  ;;  %v1930_v39 = vrot.slane %v6168_v49, 1 }
 0x238   :  { %9026 = vst [vmem:[#allocation80_spill] sm:$0xff] %v6183_v43  ;;  %v1155_v23 = vsel %vm1154_vm4, %v5944_v32, %v9030_v12  ;;  %v1158_v18 = vsel %vm1154_vm4, %v5949_v21, %v9031_v28  ;;  %v1157_v43 = vsel %vm1154_vm4, %v5954_v60, %v9032_v16  ;;  %v9033_v53 = vld [vmem:[#allocation25_spill] sm:$0xff]  ;;  %v6214_v32 = vsel %vm132_vm0, %v1923_v42, %v1925_v37  ;;  %v9035_v21 = vld [vmem:[#allocation108_spill] sm:$0xff]  ;;  %v6237_v16 = vld [vmem:[%s8398_s0 + $0x2c0] sm:$0xff] }
 0x239   :  { %v6209_v55 = vsel %vm1154_vm4, %v5961_v0, %v9033_v53  ;;  %9034 = vst [vmem:[#allocation83_spill] sm:$0xff] %v6214_v32  ;;  %v1928_v12 = vrot.slane %v6163_v59, 1  ;;  %v6221_v60 = vsel %vm1154_vm4, %v5973_v1, %v9035_v21  ;;  %v9036_v24 = vld [vmem:[#allocation109_spill] sm:$0xff]  ;;  %v6228_v53 = vpop.permute.xlu1 %949  ;;  %v6231_v28 = vsel %vm132_vm0, %v1922_v9, %v1923_v42  ;;  %9039 = vst [vmem:[#allocation85_spill] sm:$0xff] %v6237_v16  ;;  %v6242_v1 = vld [vmem:[%s8398_s0 + $0x2c8] sm:$0x3] }
 0x23a   :  { %v6226_v0 = vsel %vm1154_vm4, %v5978_v33, %v9036_v24  ;;  %9037 = vst [vmem:[#allocation84_spill] sm:$0xff] %v6228_v53  ;;  %9038 = vst [vmem:[#allocation2_spill] sm:$0xff] %v6231_v28  ;;  %v1927_v37 = vrot.slane %v6190_v15, 1  ;;  %v9041_v21 = vld [vmem:[#allocation110_spill] sm:$0xff]  ;;  %v9042_v24 = vld [vmem:[#allocation111_spill] sm:$0xff]  ;;  %v6264_v53 = vpop.permute.xlu0 %947  ;;  %1995 = vrot.lane.b32.xlu1 %v6214_v32, %s3938_s7  ;;  %1993 = vrot.lane.b32.xlu0 %v6231_v28, %s3938_s7 }
 0x23b   :  { %9040 = vst [vmem:[#allocation86_spill] sm:$0xff] %v6242_v1  ;;  %v6247_v33 = vsel %vm1154_vm4, %v5999_v14, %v9041_v21  ;;  %v6252_v42 = vsel %vm1154_vm4, %v6004_v46, %v9042_v24  ;;  %v9043_v9 = vld [vmem:[#allocation112_spill] sm:$0xff]  ;;  %v9044_v36 = vld [vmem:[#allocation113_spill] sm:$0xff]  ;;  %9045 = vst [vmem:[#allocation87_spill] sm:$0xff] %v6264_v53 }
 0x23c   :  { %v6257_v13 = vsel %vm1154_vm4, %v6009_v62, %v9043_v9  ;;  %v6262_v15 = vsel %vm1154_vm4, %v6014_v57, %v9044_v36  ;;  %v6269_v14 = vld [vmem:[%s8398_s0 + $0x2b8] sm:$0xff]  ;;  %v9047_v21 = vld [vmem:[#allocation114_spill] sm:$0xff]  ;;  %v9049_v9 = vld [vmem:[#allocation115_spill] sm:$0xff]  ;;  %v6310_v32 = vsel %vm132_vm0, %v1927_v37, %v1928_v12 }
 0x23d   :  { %9046 = vst [vmem:[#allocation88_spill] sm:$0xff] %v6269_v14  ;;  %v6274_v46 = vsel %vm1154_vm4, %v6026_v3, %v9047_v21  ;;  %v9048_v24 = vld [vmem:[#allocation26_spill] sm:$0xff]  ;;  %v6284_v57 = vsel %vm1154_vm4, %v6036_v2, %v9049_v9  ;;  %v9050_v36 = vld [vmem:[#allocation27_spill] sm:$0xff]  ;;  %v6296_v3 = vsel %vm132_vm0, %v1928_v12, %v1930_v39  ;;  %v1935_v2 = vrot.slane %v6242_v1, 1  ;;  %v9052_v21 = vld [vmem:[#allocation116_spill] sm:$0xff] }
 0x23e   :  { %v6279_v62 = vsel %vm1154_vm4, %v6031_v19, %v9048_v24  ;;  %v6289_v53 = vsel %vm1154_vm4, %v6041_v31, %v9050_v36  ;;  %9051 = vst [vmem:[#allocation89_spill] sm:$0xff] %v6296_v3  ;;  %v1933_v19 = vrot.slane %v6237_v16, 1  ;;  %v6303_v24 = vsel %vm1154_vm4, %v6048_v5, %v9052_v21  ;;  %v9053_v31 = vld [vmem:[#allocation40_spill] sm:$0xff]  ;;  %v6307_v36 = vpop.permute.xlu1 %953  ;;  %9055 = vst [vmem:[#allocation91_spill] sm:$0xff] %v6310_v32  ;;  %v6316_v28 = vld [vmem:[%s8398_s0 + $0x2d8] sm:$0xff] }
 0x23f   :  { %v1189_v9 = vsel %vm1187_vm5, %v1156_v54, %v9053_v31  ;;  %9054 = vst [vmem:[#allocation90_spill] sm:$0xff] %v6307_v36  ;;  %v1932_v39 = vrot.slane %v6269_v14, 1  ;;  %v6321_v5 = vld [vmem:[%s8398_s0 + $0x2e0] sm:$0x3]  ;;  %v9056_v21 = vld [vmem:[#allocation117_spill] sm:$0xff]  ;;  %v9057_v31 = vld [vmem:[#allocation132_spill] sm:$0xff]  ;;  %v6332_v14 = vpop.permute.xlu0 %951  ;;  %1999 = vrot.lane.b32.xlu1 %v6296_v3, %s3938_s7  ;;  %1997 = vrot.lane.b32.xlu0 %v6310_v32, %s3938_s7 }
 0x240   :  { %v6326_v54 = vsel %vm1154_vm4, %v6060_v27, %v9056_v21  ;;  %v1188_v12 = vsel %vm1187_vm5, %v1155_v23, %v9057_v31  ;;  %v1222_v37 = vsel %vm1220_vm6, %v1189_v9, %v5149_v26  ;;  %v6337_v36 = vld [vmem:[%s8398_s0 + $0x2d0] sm:$0xff]  ;;  %v9059_v1 = vld [vmem:[#allocation118_spill] sm:$0xff]  ;;  %v6355_v9 = vsel %vm132_vm0, %v1933_v19, %v1935_v2  ;;  %v6373_v2 = vld [vmem:[%s8398_s0 + $0x2f8] sm:$0x3] }
 0x241   :  { %9058 = vst [vmem:[#allocation92_spill] sm:$0xff] %v6337_v36  ;;  %v6342_v16 = vsel %vm1154_vm4, %v6065_v4, %v9059_v1  ;;  %v1221_v27 = vsel %vm1220_vm6, %v1188_v12, %v5151_v45  ;;  %v1255_v23 = vsel %vm1253_vm7, %v1222_v37, %v5311_v40  ;;  %9060 = vst [vmem:[#allocation93_spill] sm:$0xff] %v6355_v9  ;;  %v1938_v4 = vrot.slane %v6316_v28, 1  ;;  %v6368_v31 = vld [vmem:[%s8398_s0 + $0x2f0] sm:$0xff]  ;;  %v9061_v12 = vld [vmem:[#allocation133_spill] sm:$0xff] }
 0x242   :  { %v1254_v26 = vsel %vm1253_vm7, %v1221_v27, %v5318_v38  ;;  %v1940_v45 = vrot.slane %v6321_v5, 1  ;;  %v1288_v40 = vsel %vm1286_vm8, %v1255_v23, %v5450_v41  ;;  %v995_v1 = vpop.permute.xlu1 %994  ;;  %v6362_v21 = vsel %vm132_vm0, %v1932_v39, %v1933_v19  ;;  %v9062_v37 = vld [vmem:[#allocation134_spill] sm:$0xff]  ;;  %v6385_v3 = vld [vmem:[%s8398_s0 + $0x2e8] sm:$0xff] }
 0x243   :  { %v1937_v38 = vrot.slane %v6337_v36, 1  ;;  %v1191_v41 = vsel %vm1187_vm5, %v1158_v18, %v9061_v12  ;;  %v1190_v19 = vsel %vm1187_vm5, %v1157_v43, %v9062_v37  ;;  %v1287_v39 = vsel %vm1286_vm8, %v1254_v26, %v5452_v10  ;;  %v993_v23 = vpop.permute.xlu0 %992  ;;  %v9063_v32 = vld [vmem:[#allocation119_spill] sm:$0xff]  ;;  %2003 = vrot.lane.b32.xlu1 %v6355_v9, %s3938_s7  ;;  %2001 = vrot.lane.b32.xlu0 %v6362_v21, %s3938_s7 }
 0x244   :  { %v1321_v27 = vsel %vm1319_vm9, %v1288_v40, %v995_v1  ;;  %v6390_v36 = vsel %vm1154_vm4, %v6086_v48, %v9063_v32  ;;  %v1224_v18 = vsel %vm1220_vm6, %v1191_v41, %v5157_v20  ;;  %v1223_v43 = vsel %vm1220_vm6, %v1190_v19, %v5159_v8  ;;  %v6440_v19 = vld [vmem:[%s8398_s0 + $0x300] sm:$0xff] }
 0x245   :  { %v1320_v10 = vsel %vm1319_vm9, %v1287_v39, %v993_v23  ;;  %v1257_v26 = vsel %vm1253_vm7, %v1224_v18, %v5330_v56  ;;  %v6405_v48 = vsel %vm132_vm0, %v1938_v4, %v1940_v45  ;;  %v1943_v20 = vrot.slane %v6368_v31, 1  ;;  %v6421_v45 = vld [vmem:[%s8398_s0 + $0x308] sm:$0xff]  ;;  %v9066_v39 = vld [vmem:[#allocation120_spill] sm:$0xff] }
 0x246   :  { %3715 = vmatprep.mubr.msk.f32.mxu0 %vm1352_vm10, %v1320_v10  ;;  %9064 = vst [vmem:[#allocation94_spill] sm:$0xff] %v6405_v48  ;;  %v1945_v8 = vrot.slane %v6373_v2, 1  ;;  %v1256_v32 = vsel %vm1253_vm7, %v1223_v43, %v5332_v25  ;;  %v1290_v40 = vsel %vm1286_vm8, %v1257_v26, %v5461_v35  ;;  %v999_v56 = vpop.permute.xlu1 %998  ;;  %v6415_v1 = vsel %vm132_vm0, %v1937_v38, %v1938_v4  ;;  %v6426_v25 = vld [vmem:[%s8398_s0 + $0x310] sm:$0x3]  ;;  %v9070_v43 = vld [vmem:[#allocation43_spill] sm:$0xff] }
 0x247   :  { %3716 = vmatmul.mubr.msk.f32.vlgmr.msra.gmra.mrb[0].mxu0 %vm1352_vm10, %v1321_v27  ;;  %9065 = vst [vmem:[#allocation95_spill] sm:$0xff] %v6415_v1  ;;  %v1942_v12 = vrot.slane %v6385_v3, 1  ;;  %v1193_v35 = vsel %vm1187_vm5, %v6209_v55, %v5034_v7  ;;  %v1192_v4 = vsel %vm1187_vm5, %v6221_v60, %v5039_v51  ;;  %v1289_v38 = vsel %vm1286_vm8, %v1256_v32, %v5463_v29  ;;  %v997_v37 = vpop.permute.xlu0 %996  ;;  %v9067_v55 = vld [vmem:[#allocation23_spill] sm:$0xff]  ;;  %v9069_v23 = vld [vmem:[#allocation24_spill] sm:$0xff] }
 0x248   :  { %v1323_v41 = vsel %vm1319_vm9, %v1290_v40, %v999_v56  ;;  %v6445_v27 = vsel %vm1154_vm4, %v6091_v47, %v9066_v39  ;;  %v1226_v7 = vsel %vm1220_vm6, %v1193_v35, %v5170_v50  ;;  %v1225_v51 = vsel %vm1220_vm6, %v1192_v4, %v5177_v61  ;;  %2007 = vrot.lane.b32.xlu1 %v6405_v48, %s3938_s7  ;;  %v6481_v56 = vld [vmem:[%s8398_s0 + $0x328] sm:$0x3] }
 0x249   :  { %v1322_v29 = vsel %vm1319_vm9, %v1289_v38, %v997_v37  ;;  %v1259_v60 = vsel %vm1253_vm7, %v1226_v7, %v9067_v55  ;;  %2005 = vrot.lane.b32.xlu0 %v6415_v1, %s3938_s7  ;;  %v6460_v47 = vsel %vm132_vm0, %v1943_v20, %v1945_v8  ;;  %v1948_v50 = vrot.slane %v6421_v45, 1  ;;  %v6476_v8 = vld [vmem:[%s8398_s0 + $0x320] sm:$0xff]  ;;  %v9072_v35 = vld [vmem:[#allocation135_spill] sm:$0xff]  ;;  %v9073_v38 = vld [vmem:[#allocation136_spill] sm:$0xff] }
 0x24a   :  { %3718 = vmatprep.mubr.msk.f32.mxu0 %vm1352_vm10, %v1322_v29  ;;  %9068 = vst [vmem:[#allocation96_spill] sm:$0xff] %v6460_v47  ;;  %v1950_v61 = vrot.slane %v6426_v25, 1  ;;  %v1258_v18 = vsel %vm1253_vm7, %v1225_v51, %v9069_v23  ;;  %v1292_v10 = vsel %vm1286_vm8, %v1259_v60, %v9070_v43  ;;  %v1003_v26 = vpop.permute.xlu1 %1002  ;;  %v6470_v32 = vsel %vm132_vm0, %v1942_v12, %v1943_v20  ;;  %v9074_v12 = vld [vmem:[#allocation183_spill] sm:$0xff]  ;;  %v6495_v7 = vld [vmem:[%s8398_s0 + $0x318] sm:$0xff]  ;;  %v7205_v1 = vld [vmem:[%s8398_s0 + $0x270] sm:$0xff] }
 0x24b   :  { %3719 = vmatmul.mubr.msk.f32.gmra.mrb[2].mxu0 %vm1352_vm10, %v1323_v41  ;;  %9071 = vst [vmem:[#allocation97_spill] sm:$0xff] %v6470_v32  ;;  %v1947_v40 = vrot.slane %v6440_v19, 1  ;;  %v1195_v4 = vsel %vm1187_vm5, %v6226_v0, %v9072_v35  ;;  %v1194_v20 = vsel %vm1187_vm5, %v6247_v33, %v9073_v38  ;;  %v1291_v41 = vsel %vm1286_vm8, %v1258_v18, %v9074_v12  ;;  %v1001_v39 = vpop.permute.xlu0 %1000  ;;  %v9075_v51 = vld [vmem:[#allocation121_spill] sm:$0xff]  ;;  %v9077_v33 = vld [vmem:[#allocation162_spill] sm:$0xff]  ;;  %v9078_v18 = vld [vmem:[#allocation167_spill] sm:$0xff] }
 0x24c   :  { %v1325_v37 = vsel %vm1319_vm9, %v1292_v10, %v1003_v26  ;;  %v6500_v29 = vsel %vm1154_vm4, %v6096_v52, %v9075_v51  ;;  %v9076_v0 = vld [vmem:[#allocation161_spill] sm:$0xff]  ;;  %v1227_v60 = vsel %vm1220_vm6, %v1194_v20, %v9077_v33  ;;  %v1324_v23 = vsel %vm1319_vm9, %v1291_v41, %v1001_v39  ;;  %2011 = vrot.lane.b32.xlu1 %v6460_v47, %s3938_s7  ;;  %v9080_v35 = vld [vmem:[#allocation168_spill] sm:$0xff]  ;;  %v9085_v33 = vld [vmem:[#allocation187_spill] sm:$0xff] }
 0x24d   :  { %v1228_v55 = vsel %vm1220_vm6, %v1195_v4, %v9076_v0  ;;  %2009 = vrot.lane.b32.xlu0 %v6470_v32, %s3938_s7  ;;  %3721 = vmatprep.mubr.msk.f32.mxu0 %vm1352_vm10, %v1324_v23  ;;  %v6515_v52 = vsel %vm132_vm0, %v1948_v50, %v1950_v61  ;;  %v1953_v10 = vrot.slane %v6476_v8, 1  ;;  %v1955_v26 = vrot.slane %v6481_v56, 1  ;;  %v9081_v38 = vld [vmem:[#allocation184_spill] sm:$0xff]  ;;  %v9083_v61 = vld [vmem:[#allocation137_spill] sm:$0xff]  ;;  %v9084_v0 = vld [vmem:[#allocation138_spill] sm:$0xff] }
 0x24e   :  { %v1261_v43 = vsel %vm1253_vm7, %v1228_v55, %v9078_v18  ;;  %9079 = vst [vmem:[#allocation98_spill] sm:$0xff] %v6515_v52  ;;  %v1260_v4 = vsel %vm1253_vm7, %v1227_v60, %v9080_v35  ;;  %v1007_v12 = vpop.permute.xlu1 %1006  ;;  %v6525_v41 = vsel %vm132_vm0, %v1947_v40, %v1948_v50  ;;  %v1952_v39 = vrot.slane %v6495_v7, 1  ;;  %v9086_v18 = vld [vmem:[#allocation122_spill] sm:$0xff]  ;;  %v9087_v40 = vld [vmem:[#allocation163_spill] sm:$0xff]  ;;  %v9088_v35 = vld [vmem:[#allocation164_spill] sm:$0xff] }
 0x24f   :  { %v1294_v20 = vsel %vm1286_vm8, %v1261_v43, %v9081_v38  ;;  %3722 = vmatmul.mubr.msk.f32.gmra.mrb[4].mxu0 %vm1352_vm10, %v1325_v37  ;;  %9082 = vst [vmem:[#allocation99_spill] sm:$0xff] %v6525_v41  ;;  %v1197_v51 = vsel %vm1187_vm5, %v6252_v42, %v9083_v61  ;;  %v1196_v55 = vsel %vm1187_vm5, %v6257_v13, %v9084_v0  ;;  %v1005_v37 = vpop.permute.xlu0 %1004  ;;  %v9089_v13 = vld [vmem:[#allocation169_spill] sm:$0xff]  ;;  %v9092_v61 = vld [vmem:[#allocation186_spill] sm:$0xff]  ;;  %v7151_v47 = vld [vmem:[%s8398_s0 + $0x228] sm:$0xff] }
 0x250   :  { %v1293_v60 = vsel %vm1286_vm8, %v1260_v4, %v9085_v33  ;;  %v1327_v23 = vsel %vm1319_vm9, %v1294_v20, %v1007_v12  ;;  %v6540_v50 = vsel %vm1154_vm4, %v6101_v58, %v9086_v18  ;;  %v1230_v43 = vsel %vm1220_vm6, %v1197_v51, %v9087_v40  ;;  %2015 = vrot.lane.b32.xlu1 %v6515_v52, %s3938_s7  ;;  %v9091_v20 = vld [vmem:[#allocation185_spill] sm:$0xff]  ;;  %v9093_v0 = vld [vmem:[#allocation170_spill] sm:$0xff]  ;;  %v9096_v40 = vld [vmem:[#allocation188_spill] sm:$0xff] }
 0x251   :  { %v1229_v42 = vsel %vm1220_vm6, %v1196_v55, %v9088_v35  ;;  %v1326_v38 = vsel %vm1319_vm9, %v1293_v60, %v1005_v37  ;;  %v1263_v4 = vsel %vm1253_vm7, %v1230_v43, %v9089_v13  ;;  %2013 = vrot.lane.b32.xlu0 %v6525_v41, %s3938_s7  ;;  %v6555_v58 = vsel %vm132_vm0, %v1953_v10, %v1955_v26  ;;  %v9094_v33 = vld [vmem:[#allocation189_spill] sm:$0xff]  ;;  %v9097_v26 = vld [vmem:[#allocation139_spill] sm:$0xff]  ;;  %v7133_v52 = vld [vmem:[%s8398_s0 + $0x210] sm:$0xff] }
 0x252   :  { %3724 = vmatprep.mubr.msk.f32.mxu0 %vm1352_vm10, %v1326_v38  ;;  %9090 = vst [vmem:[#allocation100_spill] sm:$0xff] %v6555_v58  ;;  %v2054_v12 = vrot.slane %v9091_v20, 2  ;;  %v2056_v51 = vrot.slane %v9092_v61, 2  ;;  %v1262_v55 = vsel %vm1253_vm7, %v1229_v42, %v9093_v0  ;;  %v1296_v60 = vsel %vm1286_vm8, %v1263_v4, %v9094_v33  ;;  %v1011_v37 = vpop.permute.xlu1 %1010  ;;  %v9098_v38 = vld [vmem:[#allocation140_spill] sm:$0xff]  ;;  %v9100_v61 = vld [vmem:[#allocation123_spill] sm:$0xff]  ;;  %v9102_v33 = vld [vmem:[#allocation166_spill] sm:$0xff] }
 0x253   :  { %3725 = vmatmul.mubr.msk.f32.gmra.mrb[6].mxu0 %vm1352_vm10, %v1327_v23  ;;  %v6565_v18 = vsel %vm132_vm0, %v1952_v39, %v1953_v10  ;;  %v2053_v43 = vrot.slane %v9096_v40, 2  ;;  %v1199_v35 = vsel %vm1187_vm5, %v6262_v15, %v9097_v26  ;;  %v1198_v13 = vsel %vm1187_vm5, %v6274_v46, %v9098_v38  ;;  %v9099_v42 = vld [vmem:[#allocation192_spill] sm:$0xff]  ;;  %v1009_v23 = vpop.permute.xlu0 %1008  ;;  %v9101_v39 = vld [vmem:[#allocation165_spill] sm:$0xff]  ;;  %v9103_v46 = vld [vmem:[#allocation171_spill] sm:$0xff] }
 0x254   :  { %9095 = vst [vmem:[#allocation101_spill] sm:$0xff] %v6565_v18  ;;  %v1295_v20 = vsel %vm1286_vm8, %v1262_v55, %v9099_v42  ;;  %v1329_v4 = vsel %vm1319_vm9, %v1296_v60, %v1011_v37  ;;  %v6580_v10 = vsel %vm1154_vm4, %v6113_v6, %v9100_v61  ;;  %v1232_v0 = vsel %vm1220_vm6, %v1199_v35, %v9101_v39  ;;  %v9104_v60 = vld [vmem:[#allocation190_spill] sm:$0xff]  ;;  %v9105_v26 = vld [vmem:[#allocation191_spill] sm:$0xff]  ;;  %v9106_v38 = vld [vmem:[#allocation172_spill] sm:$0xff] }
 0x255   :  { %v1231_v15 = vsel %vm1220_vm6, %v1198_v13, %v9102_v33  ;;  %v1328_v40 = vsel %vm1319_vm9, %v1295_v20, %v1009_v23  ;;  %2019 = vrot.lane.b32.xlu1 %v6555_v58, %s3938_s7  ;;  %v1265_v55 = vsel %vm1253_vm7, %v1232_v0, %v9103_v46  ;;  %2017 = vrot.lane.b32.xlu0 %v6565_v18, %s3938_s7  ;;  %v2059_v37 = vrot.slane %v9104_v60, 2  ;;  %v9107_v42 = vld [vmem:[#allocation194_spill] sm:$0xff]  ;;  %v9108_v39 = vld [vmem:[#allocation193_spill] sm:$0xff]  ;;  %v9212_v58 = vld [vmem:[#allocation20_spill] sm:$0xff] }
 0x256   :  { %3727 = vmatprep.mubr.msk.f32.mxu0 %vm1352_vm10, %v1328_v40  ;;  %v2057_v6 = vsel %vm309_vm1, %v2054_v12, %v2056_v51  ;;  %v2061_v35 = vrot.slane %v9105_v26, 2  ;;  %v1264_v13 = vsel %vm1253_vm7, %v1231_v15, %v9106_v38  ;;  %v1298_v20 = vsel %vm1286_vm8, %v1265_v55, %v9107_v42  ;;  %v1015_v23 = vpop.permute.xlu1 %1014  ;;  %v9109_v33 = vld [vmem:[#allocation141_spill] sm:$0xff]  ;;  %v9110_v40 = vld [vmem:[#allocation142_spill] sm:$0xff]  ;;  %v9114_v42 = vld [vmem:[#allocation4_spill] sm:$0xff] }
 0x257   :  { %3728 = vmatmul.mubr.msk.f32.gmra.mrb[8].mxu0 %vm1352_vm10, %v1329_v4  ;;  %v2055_v61 = vsel %vm309_vm1, %v2053_v43, %v2054_v12  ;;  %v2058_v0 = vrot.slane %v9108_v39, 2  ;;  %v1201_v51 = vsel %vm1187_vm5, %v6279_v62, %v9109_v33  ;;  %v1200_v46 = vsel %vm1187_vm5, %v6284_v57, %v9110_v40  ;;  %v9111_v60 = vld [vmem:[#allocation197_spill] sm:$0xff]  ;;  %v1013_v26 = vpop.permute.xlu0 %1012  ;;  %v9112_v4 = vld [vmem:[#allocation124_spill] sm:$0xff]  ;;  %v9113_v43 = vld [vmem:[#allocation3_spill] sm:$0xff] }
 0x258   :  { %v1297_v15 = vsel %vm1286_vm8, %v1264_v13, %v9111_v60  ;;  %v1331_v55 = vsel %vm1319_vm9, %v1298_v20, %v1015_v23  ;;  %v6616_v12 = vsel %vm1154_vm4, %v6118_v17, %v9112_v4  ;;  %v1234_v38 = vsel %vm1220_vm6, %v1201_v51, %v9113_v43  ;;  %v9115_v57 = vld [vmem:[#allocation173_spill] sm:$0xff]  ;;  %v9116_v20 = vld [vmem:[#allocation195_spill] sm:$0xff]  ;;  %v9117_v33 = vld [vmem:[#allocation196_spill] sm:$0xff] }
 0x259   :  { %v1233_v62 = vsel %vm1220_vm6, %v1200_v46, %v9114_v42  ;;  %v1330_v39 = vsel %vm1319_vm9, %v1297_v15, %v1013_v26  ;;  %2135 = vrot.lane.b32.xlu1 %v2057_v6, %s3939_s11  ;;  %v1267_v13 = vsel %vm1253_vm7, %v1234_v38, %v9115_v57  ;;  %2133 = vrot.lane.b32.xlu0 %v2055_v61, %s3939_s11  ;;  %v2064_v23 = vrot.slane %v9116_v20, 2  ;;  %v9118_v40 = vld [vmem:[#allocation174_spill] sm:$0xff]  ;;  %v9119_v60 = vld [vmem:[#allocation200_spill] sm:$0xff] }
 0x25a   :  { %3730 = vmatprep.mubr.msk.f32.mxu0 %vm1352_vm10, %v1330_v39  ;;  %v6629_v17 = vsel %vm309_vm1, %v2059_v37, %v2061_v35  ;;  %v2066_v51 = vrot.slane %v9117_v33, 2  ;;  %v1266_v46 = vsel %vm1253_vm7, %v1233_v62, %v9118_v40  ;;  %v1300_v6 = vsel %vm1286_vm8, %v1267_v13, %v9119_v60  ;;  %v1019_v15 = vpop.permute.xlu1 %1018  ;;  %v9120_v26 = vld [vmem:[#allocation198_spill] sm:$0xff]  ;;  %v9121_v35 = vld [vmem:[#allocation143_spill] sm:$0xff]  ;;  %v9122_v38 = vld [vmem:[#allocation144_spill] sm:$0xff] }
 0x25b   :  { %3731 = vmatmul.mubr.msk.f32.gmra.mrb[10].mxu0 %vm1352_vm10, %v1331_v55  ;;  %v6639_v61 = vsel %vm309_vm1, %v2058_v0, %v2059_v37  ;;  %v2063_v4 = vrot.slane %v9120_v26, 2  ;;  %v1203_v43 = vsel %vm1187_vm5, %v6289_v53, %v9121_v35  ;;  %v1202_v42 = vsel %vm1187_vm5, %v6303_v24, %v9122_v38  ;;  %v9123_v62 = vld [vmem:[#allocation204_spill] sm:$0xff]  ;;  %v1017_v55 = vpop.permute.xlu0 %1016  ;;  %v9124_v13 = vld [vmem:[#allocation125_spill] sm:$0xff]  ;;  %v9126_v33 = vld [vmem:[#allocation6_spill] sm:$0xff] }
 0x25c   :  { %v1299_v39 = vsel %vm1286_vm8, %v1266_v46, %v9123_v62  ;;  %v1333_v57 = vsel %vm1319_vm9, %v1300_v6, %v1019_v15  ;;  %v6654_v37 = vsel %vm1154_vm4, %v6123_v34, %v9124_v13  ;;  %v9125_v0 = vld [vmem:[#allocation5_spill] sm:$0xff]  ;;  %v1235_v53 = vsel %vm1220_vm6, %v1202_v42, %v9126_v33  ;;  %v9127_v24 = vld [vmem:[#allocation28_spill] sm:$0xff]  ;;  %v9128_v60 = vld [vmem:[#allocation202_spill] sm:$0xff] }
 0x25d   :  { %v1236_v20 = vsel %vm1220_vm6, %v1203_v43, %v9125_v0  ;;  %v1332_v40 = vsel %vm1319_vm9, %v1299_v39, %v1017_v55  ;;  %2139 = vrot.lane.b32.xlu1 %v6629_v17, %s3939_s11  ;;  %2137 = vrot.lane.b32.xlu0 %v6639_v61, %s3939_s11  ;;  %v6669_v34 = vsel %vm309_vm1, %v2064_v23, %v2066_v51  ;;  %v2069_v6 = vrot.slane %v9128_v60, 2  ;;  %v9129_v15 = vld [vmem:[#allocation203_spill] sm:$0xff]  ;;  %v9132_v55 = vld [vmem:[#allocation205_spill] sm:$0xff] }
 0x25e   :  { %v1269_v46 = vsel %vm1253_vm7, %v1236_v20, %v9127_v24  ;;  %3733 = vmatprep.mubr.msk.f32.mxu0 %vm1352_vm10, %v1332_v40  ;;  %v2071_v26 = vrot.slane %v9129_v15, 2  ;;  %v9130_v35 = vld [vmem:[#allocation175_spill] sm:$0xff]  ;;  %v1023_v62 = vpop.permute.xlu1 %1022  ;;  %v6679_v39 = vsel %vm309_vm1, %v2063_v4, %v2064_v23  ;;  %v2068_v13 = vrot.slane %v9132_v55, 2  ;;  %v9133_v51 = vld [vmem:[#allocation145_spill] sm:$0xff]  ;;  %v9134_v20 = vld [vmem:[#allocation146_spill] sm:$0xff] }
 0x25f   :  { %v1268_v43 = vsel %vm1253_vm7, %v1235_v53, %v9130_v35  ;;  %v9131_v38 = vld [vmem:[#allocation207_spill] sm:$0xff]  ;;  %3734 = vmatmul.mubr.msk.f32.gmra.mrb[12].mxu0 %vm1352_vm10, %v1333_v57  ;;  %v1205_v0 = vsel %vm1187_vm5, %v6326_v54, %v9133_v51  ;;  %v1204_v33 = vsel %vm1187_vm5, %v6342_v16, %v9134_v20  ;;  %v1021_v57 = vpop.permute.xlu0 %1020  ;;  %v9138_v15 = vld [vmem:[#allocation8_spill] sm:$0xff]  ;;  %v9139_v16 = vld [vmem:[#allocation29_spill] sm:$0xff] }
 0x260   :  { %v1302_v42 = vsel %vm1286_vm8, %v1269_v46, %v9131_v38  ;;  %v9135_v53 = vld [vmem:[#allocation211_spill] sm:$0xff]  ;;  %v9136_v46 = vld [vmem:[#allocation126_spill] sm:$0xff]  ;;  %v1237_v54 = vsel %vm1220_vm6, %v1204_v33, %v9138_v15  ;;  %v9140_v38 = vld [vmem:[#allocation209_spill] sm:$0xff] }
 0x261   :  { %v1301_v40 = vsel %vm1286_vm8, %v1268_v43, %v9135_v53  ;;  %v1335_v24 = vsel %vm1319_vm9, %v1302_v42, %v1023_v62  ;;  %v6694_v23 = vsel %vm1154_vm4, %v6128_v63, %v9136_v46  ;;  %v9137_v4 = vld [vmem:[#allocation7_spill] sm:$0xff]  ;;  %2143 = vrot.lane.b32.xlu1 %v6669_v34, %s3939_s11  ;;  %2141 = vrot.lane.b32.xlu0 %v6679_v39, %s3939_s11  ;;  %v2074_v42 = vrot.slane %v9140_v38, 2  ;;  %v9141_v62 = vld [vmem:[#allocation210_spill] sm:$0xff]  ;;  %v9142_v51 = vld [vmem:[#allocation176_spill] sm:$0xff] }
 0x262   :  { %v1238_v60 = vsel %vm1220_vm6, %v1205_v0, %v9137_v4  ;;  %v1334_v35 = vsel %vm1319_vm9, %v1301_v40, %v1021_v57  ;;  %v6709_v63 = vsel %vm309_vm1, %v2069_v6, %v2071_v26  ;;  %v2076_v55 = vrot.slane %v9141_v62, 2  ;;  %v9143_v20 = vld [vmem:[#allocation41_spill] sm:$0xff]  ;;  %v1027_v53 = vpop.permute.xlu1 %1026  ;;  %v9144_v57 = vld [vmem:[#allocation212_spill] sm:$0xff]  ;;  %v9145_v26 = vld [vmem:[#allocation147_spill] sm:$0xff] }
 0x263   :  { %v1271_v43 = vsel %vm1253_vm7, %v1238_v60, %v9139_v16  ;;  %3736 = vmatprep.mubr.msk.f32.mxu0 %vm1352_vm10, %v1334_v35  ;;  %v1270_v0 = vsel %vm1253_vm7, %v1237_v54, %v9142_v51  ;;  %v6719_v40 = vsel %vm309_vm1, %v2068_v13, %v2069_v6  ;;  %v2073_v46 = vrot.slane %v9144_v57, 2  ;;  %v9146_v60 = vld [vmem:[#allocation148_spill] sm:$0xff]  ;;  %v9147_v54 = vld [vmem:[#allocation46_spill] sm:$0xff]  ;;  %v9149_v13 = vld [vmem:[#allocation9_spill] sm:$0xff] }
 0x264   :  { %v1304_v33 = vsel %vm1286_vm8, %v1271_v43, %v9143_v20  ;;  %3737 = vmatmul.mubr.msk.f32.gmra.mrb[14].mxu0 %vm1352_vm10, %v1335_v24  ;;  %v1207_v4 = vsel %vm1187_vm5, %v6390_v36, %v9145_v26  ;;  %v1206_v15 = vsel %vm1187_vm5, %v6445_v27, %v9146_v60  ;;  %v1303_v35 = vsel %vm1286_vm8, %v1270_v0, %v9147_v54  ;;  %v1025_v24 = vpop.permute.xlu0 %1024  ;;  %v9148_v43 = vld [vmem:[#allocation127_spill] sm:$0xff]  ;;  %v9150_v62 = vld [vmem:[#allocation10_spill] sm:$0xff]  ;;  %v9152_v20 = vld [vmem:[#allocation44_spill] sm:$0xff] }
 0x265   :  { %v1337_v16 = vsel %vm1319_vm9, %v1304_v33, %v1027_v53  ;;  %v6734_v6 = vsel %vm1154_vm4, %v6135_v44, %v9148_v43  ;;  %v1240_v38 = vsel %vm1220_vm6, %v1207_v4, %v9149_v13  ;;  %v1239_v36 = vsel %vm1220_vm6, %v1206_v15, %v9150_v62  ;;  %2147 = vrot.lane.b32.xlu1 %v6709_v63, %s3939_s11  ;;  %v9151_v27 = vld [vmem:[#allocation30_spill] sm:$0xff]  ;;  %v9153_v53 = vld [vmem:[#allocation45_spill] sm:$0xff] }
 0x266   :  { %v1336_v51 = vsel %vm1319_vm9, %v1303_v35, %v1025_v24  ;;  %v1273_v0 = vsel %vm1253_vm7, %v1240_v38, %v9151_v27  ;;  %2145 = vrot.lane.b32.xlu0 %v6719_v40, %s3939_s11  ;;  %v6749_v44 = vsel %vm309_vm1, %v2074_v42, %v2076_v55  ;;  %v2079_v33 = vrot.slane %v9152_v20, 2  ;;  %v9154_v26 = vld [vmem:[#allocation177_spill] sm:$0xff]  ;;  %v1031_v54 = vpop.permute.xlu1 %1030  ;;  %v9156_v24 = vld [vmem:[#allocation47_spill] sm:$0xff]  ;;  %v9158_v38 = vld [vmem:[#allocation150_spill] sm:$0xff] }
 0x267   :  { %3739 = vmatprep.mubr.msk.f32.mxu0 %vm1352_vm10, %v1336_v51  ;;  %v2081_v57 = vrot.slane %v9153_v53, 2  ;;  %v1272_v4 = vsel %vm1253_vm7, %v1239_v36, %v9154_v26  ;;  %v9155_v60 = vld [vmem:[#allocation49_spill] sm:$0xff]  ;;  %v6759_v35 = vsel %vm309_vm1, %v2073_v46, %v2074_v42  ;;  %v2078_v43 = vrot.slane %v9156_v24, 2  ;;  %v9161_v46 = vld [vmem:[#allocation11_spill] sm:$0xff]  ;;  %v9162_v53 = vld [vmem:[#allocation12_spill] sm:$0xff] }
 0x268   :  { %v1306_v15 = vsel %vm1286_vm8, %v1273_v0, %v9155_v60  ;;  %3740 = vmatmul.mubr.msk.f32.gmra.mrb[16].mxu0 %vm1352_vm10, %v1337_v16  ;;  %v9157_v55 = vld [vmem:[#allocation149_spill] sm:$0xff]  ;;  %v1208_v62 = vsel %vm1187_vm5, %v6540_v50, %v9158_v38  ;;  %v1029_v16 = vpop.permute.xlu0 %1028  ;;  %v9160_v0 = vld [vmem:[#allocation128_spill] sm:$0xff]  ;;  %v9163_v50 = vld [vmem:[#allocation31_spill] sm:$0xff] }
 0x269   :  { %v1209_v13 = vsel %vm1187_vm5, %v6500_v29, %v9157_v55  ;;  %v9159_v36 = vld [vmem:[#allocation53_spill] sm:$0xff]  ;;  %v1339_v27 = vsel %vm1319_vm9, %v1306_v15, %v1031_v54  ;;  %v6774_v42 = vsel %vm1154_vm4, %v6147_v11, %v9160_v0  ;;  %v1241_v29 = vsel %vm1220_vm6, %v1208_v62, %v9162_v53  ;;  %2151 = vrot.lane.b32.xlu1 %v6749_v44, %s3939_s11  ;;  %v9164_v60 = vld [vmem:[#allocation51_spill] sm:$0xff]  ;;  %v9165_v54 = vld [vmem:[#allocation52_spill] sm:$0xff] }
 0x26a   :  { %v1305_v51 = vsel %vm1286_vm8, %v1272_v4, %v9159_v36  ;;  %v1242_v20 = vsel %vm1220_vm6, %v1209_v13, %v9161_v46  ;;  %2149 = vrot.lane.b32.xlu0 %v6759_v35, %s3939_s11  ;;  %v6789_v11 = vsel %vm309_vm1, %v2079_v33, %v2081_v57  ;;  %v2084_v15 = vrot.slane %v9164_v60, 2  ;;  %v9166_v55 = vld [vmem:[#allocation178_spill] sm:$0xff]  ;;  %v9167_v38 = vld [vmem:[#allocation56_spill] sm:$0xff]  ;;  %v1035_v36 = vpop.permute.xlu1 %1034  ;;  %v9169_v57 = vld [vmem:[#allocation151_spill] sm:$0xff] }
 0x26b   :  { %v1338_v26 = vsel %vm1319_vm9, %v1305_v51, %v1029_v16  ;;  %v1275_v4 = vsel %vm1253_vm7, %v1242_v20, %v9163_v50  ;;  %v2086_v24 = vrot.slane %v9165_v54, 2  ;;  %v1274_v13 = vsel %vm1253_vm7, %v1241_v29, %v9166_v55  ;;  %v9168_v16 = vld [vmem:[#allocation54_spill] sm:$0xff]  ;;  %v9170_v20 = vld [vmem:[#allocation152_spill] sm:$0xff] }
 0x26c   :  { %3742 = vmatprep.mubr.msk.f32.mxu0 %vm1352_vm10, %v1338_v26  ;;  %v1308_v62 = vsel %vm1286_vm8, %v1275_v4, %v9167_v38  ;;  %v6799_v51 = vsel %vm309_vm1, %v2078_v43, %v2079_v33  ;;  %v2083_v0 = vrot.slane %v9168_v16, 2  ;;  %v1211_v46 = vsel %vm1187_vm5, %v6580_v10, %v9169_v57  ;;  %v9171_v29 = vld [vmem:[#allocation60_spill] sm:$0xff]  ;;  %v9172_v4 = vld [vmem:[#allocation35_spill] sm:$0xff]  ;;  %v9173_v43 = vld [vmem:[#allocation13_spill] sm:$0xff] }
 0x26d   :  { %3743 = vmatmul.mubr.msk.f32.gmra.mrb[18].mxu0 %vm1352_vm10, %v1339_v27  ;;  %v1210_v53 = vsel %vm1187_vm5, %v6616_v12, %v9170_v20  ;;  %v1307_v26 = vsel %vm1286_vm8, %v1274_v13, %v9171_v29  ;;  %v1341_v50 = vsel %vm1319_vm9, %v1308_v62, %v1035_v36  ;;  %v1033_v27 = vpop.permute.xlu0 %1032  ;;  %v1184_v33 = vsel %vm1154_vm4, %v6152_v30, %v9172_v4  ;;  %v9174_v54 = vld [vmem:[#allocation14_spill] sm:$0xff]  ;;  %v9175_v12 = vld [vmem:[#allocation32_spill] sm:$0xff]  ;;  %v9177_v36 = vld [vmem:[#allocation59_spill] sm:$0xff] }
 0x26e   :  { %v1244_v60 = vsel %vm1220_vm6, %v1211_v46, %v9173_v43  ;;  %v1243_v10 = vsel %vm1220_vm6, %v1210_v53, %v9174_v54  ;;  %v1340_v55 = vsel %vm1319_vm9, %v1307_v26, %v1033_v27  ;;  %2155 = vrot.lane.b32.xlu1 %v6789_v11, %s3939_s11  ;;  %2153 = vrot.lane.b32.xlu0 %v6799_v51, %s3939_s11  ;;  %v9176_v38 = vld [vmem:[#allocation58_spill] sm:$0xff]  ;;  %v2091_v16 = vrot.slane %v9177_v36, 2  ;;  %v9178_v57 = vld [vmem:[#allocation33_spill] sm:$0xff]  ;;  %v9179_v20 = vld [vmem:[#allocation63_spill] sm:$0xff]  ;;  %v1039_v29 = vpop.permute.xlu1 %1038 }
 0x26f   :  { %v1277_v13 = vsel %vm1253_vm7, %v1244_v60, %v9175_v12  ;;  %3745 = vmatprep.mubr.msk.f32.mxu0 %vm1352_vm10, %v1340_v55  ;;  %v6827_v30 = vsel %vm309_vm1, %v2084_v15, %v2086_v24  ;;  %v2089_v62 = vrot.slane %v9176_v38, 2  ;;  %v1276_v46 = vsel %vm1253_vm7, %v1243_v10, %v9178_v57  ;;  %v9180_v27 = vld [vmem:[#allocation61_spill] sm:$0xff]  ;;  %v9182_v60 = vld [vmem:[#allocation154_spill] sm:$0xff]  ;;  %v9183_v10 = vld [vmem:[#allocation67_spill] sm:$0xff] }
 0x270   :  { %v1310_v53 = vsel %vm1286_vm8, %v1277_v13, %v9179_v20  ;;  %v6837_v26 = vsel %vm309_vm1, %v2083_v0, %v2084_v15  ;;  %v2088_v4 = vrot.slane %v9180_v27, 2  ;;  %v9181_v24 = vld [vmem:[#allocation153_spill] sm:$0xff]  ;;  %v1212_v54 = vsel %vm1187_vm5, %v6694_v23, %v9182_v60  ;;  %v9185_v0 = vld [vmem:[#allocation15_spill] sm:$0xff]  ;;  %v9186_v36 = vld [vmem:[#allocation16_spill] sm:$0xff] }
 0x271   :  { %3746 = vmatmul.mubr.msk.f32.gmra.mrb[20].mxu0 %vm1352_vm10, %v1341_v50  ;;  %v1213_v43 = vsel %vm1187_vm5, %v6654_v37, %v9181_v24  ;;  %v1309_v55 = vsel %vm1286_vm8, %v1276_v46, %v9183_v10  ;;  %v1343_v12 = vsel %vm1319_vm9, %v1310_v53, %v1039_v29  ;;  %v1037_v50 = vpop.permute.xlu0 %1036  ;;  %v9184_v13 = vld [vmem:[#allocation129_spill] sm:$0xff]  ;;  %v1245_v37 = vsel %vm1220_vm6, %v1212_v54, %v9186_v36  ;;  %v9187_v23 = vld [vmem:[#allocation34_spill] sm:$0xff]  ;;  %v9190_v24 = vld [vmem:[#allocation179_spill] sm:$0xff] }
 0x272   :  { %v1183_v15 = vsel %vm1154_vm4, %v6173_v22, %v9184_v13  ;;  %v1246_v38 = vsel %vm1220_vm6, %v1213_v43, %v9185_v0  ;;  %v1342_v57 = vsel %vm1319_vm9, %v1309_v55, %v1037_v50  ;;  %2159 = vrot.lane.b32.xlu1 %v6827_v30, %s3939_s11  ;;  %2157 = vrot.lane.b32.xlu0 %v6837_v26, %s3939_s11  ;;  %v9188_v20 = vld [vmem:[#allocation65_spill] sm:$0xff]  ;;  %v9189_v29 = vld [vmem:[#allocation66_spill] sm:$0xff]  ;;  %v1043_v10 = vpop.permute.xlu1 %1042  ;;  %v9192_v50 = vld [vmem:[#allocation68_spill] sm:$0xff] }
 0x273   :  { %v1279_v46 = vsel %vm1253_vm7, %v1246_v38, %v9187_v23  ;;  %3748 = vmatprep.mubr.msk.f32.mxu0 %vm1352_vm10, %v1342_v57  ;;  %v6865_v22 = vsel %vm309_vm1, %v2089_v62, %v2091_v16  ;;  %v2094_v53 = vrot.slane %v9188_v20, 2  ;;  %v2096_v27 = vrot.slane %v9189_v29, 2  ;;  %v9191_v60 = vld [vmem:[#allocation70_spill] sm:$0xff]  ;;  %v9193_v16 = vld [vmem:[#allocation155_spill] sm:$0xff]  ;;  %v9194_v38 = vld [vmem:[#allocation156_spill] sm:$0xff] }
 0x274   :  { %v1278_v43 = vsel %vm1253_vm7, %v1245_v37, %v9190_v24  ;;  %v1312_v54 = vsel %vm1286_vm8, %v1279_v46, %v9191_v60  ;;  %v6875_v55 = vsel %vm309_vm1, %v2088_v4, %v2089_v62  ;;  %v2093_v13 = vrot.slane %v9192_v50, 2  ;;  %v9195_v37 = vld [vmem:[#allocation74_spill] sm:$0xff]  ;;  %v9197_v20 = vld [vmem:[#allocation79_spill] sm:$0xff]  ;;  %v9198_v4 = vld [vmem:[#allocation17_spill] sm:$0xff] }
 0x275   :  { %3749 = vmatmul.mubr.msk.f32.gmra.mrb[22].mxu0 %vm1352_vm10, %v1343_v12  ;;  %v1215_v0 = vsel %vm1187_vm5, %v6734_v6, %v9193_v16  ;;  %v1214_v36 = vsel %vm1187_vm5, %v6774_v42, %v9194_v38  ;;  %v1311_v57 = vsel %vm1286_vm8, %v1278_v43, %v9195_v37  ;;  %v1345_v23 = vsel %vm1319_vm9, %v1312_v54, %v1043_v10  ;;  %v1041_v12 = vpop.permute.xlu0 %1040  ;;  %v9196_v46 = vld [vmem:[#allocation130_spill] sm:$0xff]  ;;  %v9200_v42 = vld [vmem:[#allocation36_spill] sm:$0xff]  ;;  %v9202_v16 = vld [vmem:[#allocation73_spill] sm:$0xff] }
 0x276   :  { %v1186_v62 = vsel %vm1154_vm4, %v9197_v20, %v9196_v46  ;;  %v1248_v29 = vsel %vm1220_vm6, %v1215_v0, %v9198_v4  ;;  %v9199_v24 = vld [vmem:[#allocation18_spill] sm:$0xff]  ;;  %v1344_v60 = vsel %vm1319_vm9, %v1311_v57, %v1041_v12  ;;  %2163 = vrot.lane.b32.xlu1 %v6865_v22, %s3939_s11  ;;  %2161 = vrot.lane.b32.xlu0 %v6875_v55, %s3939_s11  ;;  %v9201_v10 = vld [vmem:[#allocation72_spill] sm:$0xff]  ;;  %v2101_v0 = vrot.slane %v9202_v16, 2  ;;  %v9204_v37 = vld [vmem:[#allocation77_spill] sm:$0xff]  ;;  %v1047_v12 = vpop.permute.xlu1 %1046 }
 0x277   :  { %v1247_v6 = vsel %vm1220_vm6, %v1214_v36, %v9199_v24  ;;  %v1281_v43 = vsel %vm1253_vm7, %v1248_v29, %v9200_v42  ;;  %3751 = vmatprep.mubr.msk.f32.mxu0 %vm1352_vm10, %v1344_v60  ;;  %v6903_v54 = vsel %vm309_vm1, %v2094_v53, %v2096_v27  ;;  %v2099_v50 = vrot.slane %v9201_v10, 2  ;;  %v9203_v38 = vld [vmem:[#allocation180_spill] sm:$0xff]  ;;  %v9205_v20 = vld [vmem:[#allocation75_spill] sm:$0xff]  ;;  %v9206_v27 = vld [vmem:[#allocation157_spill] sm:$0xff] }
 0x278   :  { %v1280_v36 = vsel %vm1253_vm7, %v1247_v6, %v9203_v38  ;;  %v1314_v57 = vsel %vm1286_vm8, %v1281_v43, %v9204_v37  ;;  %v6913_v46 = vsel %vm309_vm1, %v2093_v13, %v2094_v53  ;;  %v2098_v4 = vrot.slane %v9205_v20, 2  ;;  %v9207_v24 = vld [vmem:[#allocation158_spill] sm:$0xff]  ;;  %v9208_v42 = vld [vmem:[#allocation81_spill] sm:$0xff]  ;;  %v9209_v38 = vld [vmem:[#allocation131_spill] sm:$0xff] }
 0x279   :  { %3752 = vmatmul.mubr.msk.f32.gmra.mrb[24].mxu0 %vm1352_vm10, %v1345_v23  ;;  %v1217_v29 = vsel %vm1187_vm5, %v1184_v33, %v9206_v27  ;;  %v1216_v60 = vsel %vm1187_vm5, %v1183_v15, %v9207_v24  ;;  %v1313_v6 = vsel %vm1286_vm8, %v1280_v36, %v9208_v42  ;;  %v1347_v16 = vsel %vm1319_vm9, %v1314_v57, %v1047_v12  ;;  %v1045_v43 = vpop.permute.xlu0 %1044  ;;  %v9210_v23 = vld [vmem:[#allocation80_spill] sm:$0xff]  ;;  %v9211_v53 = vld [vmem:[#allocation19_spill] sm:$0xff]  ;;  %v9213_v15 = vld [vmem:[#allocation37_spill] sm:$0xff] }
 0x27a   :  { %v1185_v37 = vsel %vm1154_vm4, %v9210_v23, %v9209_v38  ;;  %v1250_v13 = vsel %vm1220_vm6, %v1217_v29, %v9211_v53  ;;  %v1249_v18 = vsel %vm1220_vm6, %v1216_v60, %v9212_v58  ;;  %v1346_v33 = vsel %vm1319_vm9, %v1313_v6, %v1045_v43  ;;  %2167 = vrot.lane.b32.xlu1 %v6903_v54, %s3939_s11  ;;  %v9214_v27 = vld [vmem:[#allocation181_spill] sm:$0xff]  ;;  %v9215_v24 = vld [vmem:[#allocation84_spill] sm:$0xff]  ;;  %v1051_v42 = vpop.permute.xlu1 %1050  ;;  %v9216_v43 = vld [vmem:[#allocation82_spill] sm:$0xff] }
 0x27b   :  { %v1283_v36 = vsel %vm1253_vm7, %v1250_v13, %v9213_v15  ;;  %2165 = vrot.lane.b32.xlu0 %v6913_v46, %s3939_s11  ;;  %3754 = vmatprep.mubr.msk.f32.mxu0 %vm1352_vm10, %v1346_v33  ;;  %v6939_v57 = vsel %vm309_vm1, %v2099_v50, %v2101_v0  ;;  %v2104_v12 = vrot.slane %v6163_v59, 2  ;;  %v2106_v58 = vrot.slane %v6168_v49, 2  ;;  %v9217_v0 = vld [vmem:[#allocation159_spill] sm:$0xff]  ;;  %v9218_v53 = vld [vmem:[#allocation160_spill] sm:$0xff] }
 0x27c   :  { %v1282_v29 = vsel %vm1253_vm7, %v1249_v18, %v9214_v27  ;;  %v1316_v60 = vsel %vm1286_vm8, %v1283_v36, %v9215_v24  ;;  %v6949_v6 = vsel %vm309_vm1, %v2098_v4, %v2099_v50  ;;  %v2103_v38 = vrot.slane %v9216_v43, 2  ;;  %v9219_v13 = vld [vmem:[#allocation87_spill] sm:$0xff]  ;;  %v9220_v36 = vld [vmem:[#allocation21_spill] sm:$0xff]  ;;  %v9221_v27 = vld [vmem:[#allocation22_spill] sm:$0xff] }
 0x27d   :  { %3755 = vmatmul.mubr.msk.f32.gmra.mrb[26].mxu0 %vm1352_vm10, %v1347_v16  ;;  %v1219_v23 = vsel %vm1187_vm5, %v1186_v62, %v9217_v0  ;;  %v1218_v49 = vsel %vm1187_vm5, %v1185_v37, %v9218_v53  ;;  %v1315_v18 = vsel %vm1286_vm8, %v1282_v29, %v9219_v13  ;;  %v1349_v33 = vsel %vm1319_vm9, %v1316_v60, %v1051_v42  ;;  %v1049_v15 = vpop.permute.xlu0 %1048  ;;  %v9222_v62 = vld [vmem:[#allocation38_spill] sm:$0xff]  ;;  %v9223_v24 = vld [vmem:[#allocation85_spill] sm:$0xff] }
 0x27e   :  { %v1252_v16 = vsel %vm1220_vm6, %v1219_v23, %v9220_v36  ;;  %v1251_v50 = vsel %vm1220_vm6, %v1218_v49, %v9221_v27  ;;  %v1348_v4 = vsel %vm1319_vm9, %v1315_v18, %v1049_v15  ;;  %2171 = vrot.lane.b32.xlu1 %v6939_v57, %s3939_s11  ;;  %v6972_v29 = vsel %vm309_vm1, %v2104_v12, %v2106_v58  ;;  %v9224_v42 = vld [vmem:[#allocation86_spill] sm:$0xff]  ;;  %v1055_v18 = vpop.permute.xlu1 %1054  ;;  %v9227_v36 = vld [vmem:[#allocation88_spill] sm:$0xff] }
 0x27f   :  { %v1285_v37 = vsel %vm1253_vm7, %v1252_v16, %v9222_v62  ;;  %2169 = vrot.lane.b32.xlu0 %v6949_v6, %s3939_s11  ;;  %3757 = vmatprep.mubr.msk.f32.mxu0 %vm1352_vm10, %v1348_v4  ;;  %v2109_v60 = vrot.slane %v9223_v24, 2  ;;  %v2111_v0 = vrot.slane %v9224_v42, 2  ;;  %v9225_v23 = vld [vmem:[#allocation182_spill] sm:$0xff]  ;;  %v6982_v15 = vsel %vm309_vm1, %v2103_v38, %v2104_v12 }
 0x280   :  { %v1284_v53 = vsel %vm1253_vm7, %v1251_v50, %v9225_v23  ;;  %v9226_v49 = vld [vmem:[#allocation90_spill] sm:$0xff]  ;;  %v2108_v16 = vrot.slane %v9227_v36, 2  ;;  %v2114_v38 = vrot.slane %v6316_v28, 2  ;;  %v9229_v50 = vld [vmem:[#allocation92_spill] sm:$0xff] }
 0x281   :  { %v1318_v13 = vsel %vm1286_vm8, %v1285_v37, %v9226_v49  ;;  %3758 = vmatmul.mubr.msk.f32.gmra.mrb[28].mxu0 %vm1352_vm10, %v1349_v33  ;;  %v1317_v58 = vsel %vm1286_vm8, %v1284_v53, %v6332_v14  ;;  %v1053_v4 = vpop.permute.xlu0 %1052  ;;  %v6995_v12 = vsel %vm309_vm1, %v2109_v60, %v2111_v0  ;;  %v2116_v14 = vrot.slane %v6321_v5, 2 }
 0x282   :  { %v1351_v27 = vsel %vm1319_vm9, %v1318_v13, %v1055_v18  ;;  %v1350_v62 = vsel %vm1319_vm9, %v1317_v58, %v1053_v4  ;;  %2175 = vrot.lane.b32.xlu1 %v6972_v29, %s3939_s11  ;;  %9228 = vst [vmem:[#allocation102_spill] sm:$0xff] %v6995_v12  ;;  %v7001_v33 = vsel %vm309_vm1, %v2108_v16, %v2109_v60  ;;  %v2113_v37 = vrot.slane %v9229_v50, 2 }
 0x283   :  { %2173 = vrot.lane.b32.xlu0 %v6982_v15, %s3939_s11  ;;  %3760 = vmatprep.mubr.msk.f32.mxu0 %vm1352_vm10, %v1350_v62  ;;  %v7009_v42 = vsel %vm309_vm1, %v2114_v38, %v2116_v14  ;;  %v2119_v0 = vrot.slane %v6368_v31, 2  ;;  %v2121_v5 = vrot.slane %v6373_v2, 2  ;;  %v2118_v60 = vrot.slane %v6385_v3, 2 }
 0x284   :  { %9230 = vst [vmem:[#allocation103_spill] sm:$0xff] %v7009_v42  ;;  %v7014_v23 = vsel %vm309_vm1, %v2113_v37, %v2114_v38  ;;  %v2124_v49 = vrot.slane %v6421_v45, 2  ;;  %v2126_v13 = vrot.slane %v6426_v25, 2  ;;  %v2123_v18 = vrot.slane %v6440_v19, 2  ;;  %v7043_v62 = vpop.permute.xlu1 %1745 }
 0x285   :  { %3761 = vmatmul.mubr.msk.f32.gmra.mrb[30].mxu0 %vm1352_vm10, %v1351_v27  ;;  %9231 = vst [vmem:[#allocation104_spill] sm:$0xff] %v7014_v23  ;;  %v7022_v53 = vsel %vm309_vm1, %v2119_v0, %v2121_v5  ;;  %v7027_v2 = vsel %vm309_vm1, %v2118_v60, %v2119_v0  ;;  %v2129_v58 = vrot.slane %v6476_v8, 2  ;;  %v2131_v27 = vrot.slane %v6481_v56, 2  ;;  %9236 = vst [vmem:[#allocation108_spill] sm:$0xff] %v7043_v62  ;;  %v7045_v38 = vpop.permute.xlu0 %1740 }
 0x286   :  { %2179 = vrot.lane.b32.xlu1 %v6995_v12, %s3939_s11  ;;  %9232 = vst [vmem:[#allocation105_spill] sm:$0xff] %v7022_v53  ;;  %9233 = vst [vmem:[#allocation106_spill] sm:$0xff] %v7027_v2  ;;  %v7035_v16 = vsel %vm309_vm1, %v2124_v49, %v2126_v13  ;;  %v7040_v25 = vsel %vm309_vm1, %v2123_v18, %v2124_v49  ;;  %v2128_v4 = vrot.slane %v6495_v7, 2  ;;  %v7072_v49 = vld [vmem:[%s8398_s0 + $0x1d0] sm:$0xff]  ;;  %v7079_v13 = vld [vmem:[%s8398_s0 + $0x1c8] sm:$0xff] }
 0x287   :  { %2177 = vrot.lane.b32.xlu0 %v7001_v33, %s3939_s11  ;;  %9234 = vst [vmem:[#allocation107_spill] sm:$0xff] %v7035_v16  ;;  %9235 = vst [vmem:[#allocation25_spill] sm:$0xff] %v7040_v25  ;;  %v7052_v14 = vsel %vm309_vm1, %v2129_v58, %v2131_v27  ;;  %v7090_v27 = vld [vmem:[%s8398_s0 + $0x1e8] sm:$0xff] }
 0x288   :  { %9237 = vst [vmem:[#allocation109_spill] sm:$0xff] %v7045_v38  ;;  %9238 = vst [vmem:[#allocation110_spill] sm:$0xff] %v7052_v14  ;;  %v7055_v56 = vsel %vm309_vm1, %v2128_v4, %v2129_v58  ;;  %v7057_v37 = vpop.permute.xlu1 %1759  ;;  %v7097_v4 = vld [vmem:[%s8398_s0 + $0x1e0] sm:$0xff]  ;;  %v7115_v38 = vld [vmem:[%s8398_s0 + $0x1f8] sm:$0xff] }
 0x289   :  { %9239 = vst [vmem:[#allocation111_spill] sm:$0xff] %v7055_v56  ;;  %9240 = vst [vmem:[#allocation112_spill] sm:$0xff] %v7057_v37  ;;  %v7059_v0 = vpop.permute.xlu0 %1754 }
 0x28a   :  { %2183 = vrot.lane.b32.xlu1 %v7009_v42, %s3939_s11  ;;  %9241 = vst [vmem:[#allocation113_spill] sm:$0xff] %v7059_v0  ;;  %v7108_v0 = vld [vmem:[%s8398_s0 + $0x200] sm:$0xff] }
 0x28b   :  { %2181 = vrot.lane.b32.xlu0 %v7014_v23, %s3939_s11  ;;  %v7169_v42 = vld [vmem:[%s8398_s0 + $0x240] sm:$0xff] }
 0x28c   :  { %v7065_v5 = vpop.permute.xlu1 %1959  ;;  %9249 = vst [vmem:[#allocation132_spill] sm:$0xff] %v7169_v42 }
 0x28d   :  { %v7067_v60 = vpop.permute.xlu0 %1957 }
 0x28e   :  { %2187 = vrot.lane.b32.xlu1 %v7022_v53, %s3939_s11  ;;  %v7144_v53 = vld [vmem:[%s8398_s0 + $0x230] sm:$0xff] }
 0x28f   :  { %2185 = vrot.lane.b32.xlu0 %v7027_v2, %s3939_s11  ;;  %9245 = vst [vmem:[#allocation27_spill] sm:$0xff] %v7144_v53 }
 0x290   :  { %v7083_v18 = vpop.permute.xlu1 %1963 }
 0x291   :  { %v7085_v58 = vpop.permute.xlu0 %1961 }
 0x292   :  { %2191 = vrot.lane.b32.xlu1 %v7035_v16, %s3939_s11  ;;  %v7126_v16 = vld [vmem:[%s8398_s0 + $0x218] sm:$0xff] }
 0x293   :  { %2189 = vrot.lane.b32.xlu0 %v7040_v25, %s3939_s11 }
 0x294   :  { %v7101_v37 = vpop.permute.xlu1 %1967 }
 0x295   :  { %v7103_v62 = vpop.permute.xlu0 %1965 }
 0x296   :  { %2195 = vrot.lane.b32.xlu1 %v7052_v14, %s3939_s11 }
 0x297   :  { %2193 = vrot.lane.b32.xlu0 %v7055_v56, %s3939_s11 }
 0x298   :  { %v7119_v14 = vpop.permute.xlu1 %1971 }
 0x299   :  { %9242 = vst [vmem:[#allocation114_spill] sm:$0xff] %v7119_v14  ;;  %v7121_v56 = vpop.permute.xlu0 %1969 }
 0x29a   :  { %2233 = vrot.lane.b32.xlu1 %v7072_v49, %s3940_s12 }
 0x29b   :  { %2231 = vrot.lane.b32.xlu0 %v7079_v13, %s3940_s12 }
 0x29c   :  { %v7137_v25 = vpop.permute.xlu1 %1975 }
 0x29d   :  { %9243 = vst [vmem:[#allocation26_spill] sm:$0xff] %v7137_v25  ;;  %v7139_v41 = vpop.permute.xlu0 %1973  ;;  %v7162_v25 = vld [vmem:[%s8398_s0 + $0x248] sm:$0xff] }
 0x29e   :  { %2237 = vrot.lane.b32.xlu1 %v7090_v27, %s3940_s12  ;;  %9244 = vst [vmem:[#allocation115_spill] sm:$0xff] %v7139_v41  ;;  %9248 = vst [vmem:[#allocation117_spill] sm:$0xff] %v7162_v25  ;;  %v7187_v41 = vld [vmem:[%s8398_s0 + $0x258] sm:$0xff] }
 0x29f   :  { %2235 = vrot.lane.b32.xlu0 %v7097_v4, %s3940_s12  ;;  %9253 = vst [vmem:[#allocation119_spill] sm:$0xff] %v7187_v41 }
 0x2a0   :  { %v7155_v2 = vpop.permute.xlu1 %1979 }
 0x2a1   :  { %9246 = vst [vmem:[#allocation116_spill] sm:$0xff] %v7155_v2  ;;  %v7157_v32 = vpop.permute.xlu0 %1977 }
 0x2a2   :  { %2241 = vrot.lane.b32.xlu1 %v7108_v0, %s3940_s12  ;;  %9247 = vst [vmem:[#allocation40_spill] sm:$0xff] %v7157_v32  ;;  %v7180_v32 = vld [vmem:[%s8398_s0 + $0x260] sm:$0xff] }
 0x2a3   :  { %2239 = vrot.lane.b32.xlu0 %v7115_v38, %s3940_s12  ;;  %9252 = vst [vmem:[#allocation134_spill] sm:$0xff] %v7180_v32 }
 0x2a4   :  { %v7173_v48 = vpop.permute.xlu1 %1983 }
 0x2a5   :  { %9250 = vst [vmem:[#allocation118_spill] sm:$0xff] %v7173_v48  ;;  %v7175_v2 = vpop.permute.xlu0 %1981 }
 0x2a6   :  { %2245 = vrot.lane.b32.xlu1 %v7126_v16, %s3940_s12  ;;  %9251 = vst [vmem:[#allocation133_spill] sm:$0xff] %v7175_v2  ;;  %v7198_v2 = vld [vmem:[%s8398_s0 + $0x278] sm:$0xff] }
 0x2a7   :  { %2243 = vrot.lane.b32.xlu0 %v7133_v52, %s3940_s12 }
 0x2a8   :  { %v7191_v23 = vpop.permute.xlu1 %1987 }
 0x2a9   :  { %9254 = vst [vmem:[#allocation120_spill] sm:$0xff] %v7191_v23  ;;  %v7193_v48 = vpop.permute.xlu0 %1985 }
 0x2aa   :  { %2249 = vrot.lane.b32.xlu1 %v7144_v53, %s3940_s12  ;;  %9255 = vst [vmem:[#allocation23_spill] sm:$0xff] %v7193_v48 }
 0x2ab   :  { %2247 = vrot.lane.b32.xlu0 %v7151_v47, %s3940_s12 }
 0x2ac   :  { %v7209_v14 = vpop.permute.xlu1 %1991 }
 0x2ad   :  { %9256 = vst [vmem:[#allocation24_spill] sm:$0xff] %v7209_v14  ;;  %v7211_v23 = vpop.permute.xlu0 %1989 }
 0x2ae   :  { %2253 = vrot.lane.b32.xlu1 %v7162_v25, %s3940_s12  ;;  %9257 = vst [vmem:[#allocation43_spill] sm:$0xff] %v7211_v23 }
 0x2af   :  { %2251 = vrot.lane.b32.xlu0 %v7169_v42, %s3940_s12 }
 0x2b0   :  { %v7217_v48 = vpop.permute.xlu1 %1995 }
 0x2b1   :  { %9258 = vst [vmem:[#allocation135_spill] sm:$0xff] %v7217_v48  ;;  %v7219_v12 = vpop.permute.xlu0 %1993 }
 0x2b2   :  { %2257 = vrot.lane.b32.xlu1 %v7180_v32, %s3940_s12  ;;  %9259 = vst [vmem:[#allocation136_spill] sm:$0xff] %v7219_v12 }
 0x2b3   :  { %2255 = vrot.lane.b32.xlu0 %v7187_v41, %s3940_s12 }
 0x2b4   :  { %v7225_v9 = vpop.permute.xlu1 %1999 }
 0x2b5   :  { %9260 = vst [vmem:[#allocation183_spill] sm:$0xff] %v7225_v9  ;;  %v7227_v14 = vpop.permute.xlu0 %1997  ;;  %v9280_v9 = vld [vmem:[#allocation48_spill] sm:$0xff] }
 0x2b6   :  { %2261 = vrot.lane.b32.xlu1 %v7198_v2, %s3940_s12  ;;  %9261 = vst [vmem:[#allocation121_spill] sm:$0xff] %v7227_v14  ;;  %v9281_v14 = vld [vmem:[#allocation50_spill] sm:$0xff] }
 0x2b7   :  { %2259 = vrot.lane.b32.xlu0 %v7205_v1, %s3940_s12 }
 0x2ba   :  { %2265 = vrot.lane.b32.xlu1 %v9201_v10, %s3940_s12  ;;  %v7233_v10 = vpop.permute.xlu1 %2003 }
 0x2bb   :  { %2263 = vrot.lane.b32.xlu0 %v9205_v20, %s3940_s12  ;;  %9262 = vst [vmem:[#allocation161_spill] sm:$0xff] %v7233_v10  ;;  %v7235_v20 = vpop.permute.xlu0 %2001  ;;  %v9278_v10 = vld [vmem:[#allocation39_spill] sm:$0xff] }
 0x2bc   :  { %9263 = vst [vmem:[#allocation162_spill] sm:$0xff] %v7235_v20 }
 0x2be   :  { %2269 = vrot.lane.b32.xlu1 %v6163_v59, %s3940_s12  ;;  %v7241_v59 = vpop.permute.xlu1 %2007 }
 0x2bf   :  { %2267 = vrot.lane.b32.xlu0 %v9216_v43, %s3940_s12  ;;  %9264 = vst [vmem:[#allocation167_spill] sm:$0xff] %v7241_v59  ;;  %v7243_v43 = vpop.permute.xlu0 %2005 }
 0x2c0   :  { %9265 = vst [vmem:[#allocation168_spill] sm:$0xff] %v7243_v43 }
 0x2c2   :  { %2273 = vrot.lane.b32.xlu1 %v9223_v24, %s3940_s12  ;;  %v7249_v24 = vpop.permute.xlu1 %2011 }
 0x2c3   :  { %2271 = vrot.lane.b32.xlu0 %v9227_v36, %s3940_s12  ;;  %9266 = vst [vmem:[#allocation184_spill] sm:$0xff] %v7249_v24  ;;  %v7251_v36 = vpop.permute.xlu0 %2009 }
 0x2c4   :  { %9267 = vst [vmem:[#allocation137_spill] sm:$0xff] %v7251_v36  ;;  %v9277_v36 = vld [vmem:[#allocation208_spill] sm:$0xff] }
 0x2c6   :  { %2277 = vrot.lane.b32.xlu1 %v6316_v28, %s3940_s12  ;;  %v7257_v28 = vpop.permute.xlu1 %2015 }
 0x2c7   :  { %2275 = vrot.lane.b32.xlu0 %v9229_v50, %s3940_s12  ;;  %9268 = vst [vmem:[#allocation138_spill] sm:$0xff] %v7257_v28  ;;  %v7259_v50 = vpop.permute.xlu0 %2013  ;;  %v9274_v28 = vld [vmem:[#allocation199_spill] sm:$0xff] }
 0x2c8   :  { %9269 = vst [vmem:[#allocation187_spill] sm:$0xff] %v7259_v50  ;;  %v9275_v50 = vld [vmem:[#allocation201_spill] sm:$0xff] }
 0x2ca   :  { %2281 = vrot.lane.b32.xlu1 %v6368_v31, %s3940_s12  ;;  %v7273_v31 = vld [vmem:[%s8398_s0 + $0x330] sm:$0xff] }
 0x2cb   :  { %2279 = vrot.lane.b32.xlu0 %v6385_v3, %s3940_s12  ;;  %v7268_v3 = vld [vmem:[%s8398_s0 + $0x338] sm:$0xff]  ;;  %9271 = vst [vmem:[#allocation163_spill] sm:$0xff] %v7273_v31 }
 0x2cc   :  { %9270 = vst [vmem:[#allocation122_spill] sm:$0xff] %v7268_v3 }
 0x2ce   :  { %2285 = vrot.lane.b32.xlu1 %v6421_v45, %s3940_s12  ;;  %v7275_v45 = vpop.permute.xlu1 %2019 }
 0x2cf   :  { %2283 = vrot.lane.b32.xlu0 %v6440_v19, %s3940_s12  ;;  %9272 = vst [vmem:[#allocation164_spill] sm:$0xff] %v7275_v45  ;;  %v7277_v19 = vpop.permute.xlu0 %2017 }
 0x2d0   :  { %9273 = vst [vmem:[#allocation169_spill] sm:$0xff] %v7277_v19  ;;  %v9276_v19 = vld [vmem:[#allocation206_spill] sm:$0xff] }
 0x2d2   :  { %2289 = vrot.lane.b32.xlu1 %v6476_v8, %s3940_s12  ;;  %v7283_v8 = vpop.permute.xlu1 %2135 }
 0x2d3   :  { %2287 = vrot.lane.b32.xlu0 %v6495_v7, %s3940_s12  ;;  %v7285_v7 = vpop.permute.xlu0 %2133 }
 0x2d6   :  { %2293 = vrot.lane.b32.xlu1 %v7268_v3, %s3940_s12  ;;  %v7291_v24 = vpop.permute.xlu1 %2139 }
 0x2d7   :  { %2291 = vrot.lane.b32.xlu0 %v7273_v31, %s3940_s12  ;;  %v7293_v45 = vpop.permute.xlu0 %2137 }
 0x2da   :  { %2335 = vrot.lane.b32.xlu1 %v9274_v28, %s3941_s17  ;;  %v7299_v59 = vpop.permute.xlu1 %2143  ;;  %v9279_v28 = vld [vmem:[#allocation42_spill] sm:$0xff] }
 0x2db   :  { %2333 = vrot.lane.b32.xlu0 %v9275_v50, %s3941_s17  ;;  %v7301_v43 = vpop.permute.xlu0 %2141 }
 0x2de   :  { %2339 = vrot.lane.b32.xlu1 %v9276_v19, %s3941_s17  ;;  %v7307_v50 = vpop.permute.xlu1 %2147 }
 0x2df   :  { %2337 = vrot.lane.b32.xlu0 %v9277_v36, %s3941_s17  ;;  %v7309_v20 = vpop.permute.xlu0 %2145 }
 0x2e2   :  { %2343 = vrot.lane.b32.xlu1 %v9278_v10, %s3941_s17  ;;  %v7315_v48 = vpop.permute.xlu1 %2151 }
 0x2e3   :  { %2341 = vrot.lane.b32.xlu0 %v9279_v28, %s3941_s17  ;;  %9282 = vst [vmem:[#allocation185_spill] sm:$0xff] %v7315_v48  ;;  %v7317_v12 = vpop.permute.xlu0 %2149 }
 0x2e6   :  { %2347 = vrot.lane.b32.xlu1 %v9280_v9, %s3941_s17  ;;  %v7323_v23 = vpop.permute.xlu1 %2155 }
 0x2e7   :  { %2345 = vrot.lane.b32.xlu0 %v9281_v14, %s3941_s17  ;;  %9283 = vst [vmem:[#allocation186_spill] sm:$0xff] %v7323_v23  ;;  %v7325_v31 = vpop.permute.xlu0 %2153 }
 0x2ea   :  { %2436 = vrot.lane.b32.xlu1 %v6629_v17, %s3942_s20  ;;  %v7331_v3 = vpop.permute.xlu1 %2159 }
 0x2eb   :  { %2434 = vrot.lane.b32.xlu0 %v6639_v61, %s3942_s20  ;;  %9284 = vst [vmem:[#allocation170_spill] sm:$0xff] %v7331_v3  ;;  %v7333_v48 = vpop.permute.xlu0 %2157 }
 0x2ec   :  { %9285 = vst [vmem:[#allocation189_spill] sm:$0xff] %v7333_v48 }
 0x2ee   :  { %2534 = vrot.lane.b32.xlu1 %v7090_v27, %s3943_s21  ;;  %v7339_v17 = vpop.permute.xlu1 %2163 }
 0x2ef   :  { %2532 = vrot.lane.b32.xlu0 %v7097_v4, %s3943_s21  ;;  %9286 = vst [vmem:[#allocation188_spill] sm:$0xff] %v7339_v17  ;;  %v7341_v61 = vpop.permute.xlu0 %2161 }
 0x2f0   :  { %9287 = vst [vmem:[#allocation139_spill] sm:$0xff] %v7341_v61 }
 0x2f2   :  { %2636 = vrot.lane.b32.xlu1 %v9276_v19, %s3944_s26  ;;  %v7347_v23 = vpop.permute.xlu1 %2167 }
 0x2f3   :  { %2634 = vrot.lane.b32.xlu0 %v9277_v36, %s3944_s26  ;;  %9288 = vst [vmem:[#allocation140_spill] sm:$0xff] %v7347_v23  ;;  %v7349_v3 = vpop.permute.xlu0 %2165 }
 0x2f4   :  { %9289 = vst [vmem:[#allocation192_spill] sm:$0xff] %v7349_v3 }
 0x2f6   :  { %2438 = vrot.lane.b32.xlu1 %v6679_v39, %s3942_s20  ;;  %v7355_v36 = vpop.permute.xlu1 %2171 }
 0x2f7   :  { %2735 = vrot.lane.b32.xlu0 %v6679_v39, %s3946_s1  ;;  %9290 = vst [vmem:[#allocation123_spill] sm:$0xff] %v7355_v36  ;;  %v7357_v19 = vpop.permute.xlu0 %2169 }
 0x2f8   :  { %9291 = vst [vmem:[#allocation165_spill] sm:$0xff] %v7357_v19 }
 0x2fa   :  { %2440 = vrot.lane.b32.xlu1 %v6669_v34, %s3942_s20  ;;  %v7363_v39 = vpop.permute.xlu1 %2175 }
 0x2fb   :  { %2737 = vrot.lane.b32.xlu0 %v6669_v34, %s3946_s1  ;;  %9292 = vst [vmem:[#allocation166_spill] sm:$0xff] %v7363_v39  ;;  %v7365_v23 = vpop.permute.xlu0 %2173 }
 0x2fc   :  { %9293 = vst [vmem:[#allocation171_spill] sm:$0xff] %v7365_v23  ;;  %v9312_v23 = vld [vmem:[#allocation55_spill] sm:$0xff] }
 0x2fe   :  { %2538 = vrot.lane.b32.xlu1 %v7108_v0, %s3943_s21  ;;  %v7371_v34 = vpop.permute.xlu1 %2179 }
 0x2ff   :  { %2536 = vrot.lane.b32.xlu0 %v7115_v38, %s3943_s21  ;;  %9294 = vst [vmem:[#allocation190_spill] sm:$0xff] %v7371_v34  ;;  %v7373_v36 = vpop.permute.xlu0 %2177 }
 0x300   :  { %9295 = vst [vmem:[#allocation191_spill] sm:$0xff] %v7373_v36 }
 0x302   :  { %2640 = vrot.lane.b32.xlu1 %v9278_v10, %s3944_s26  ;;  %v7379_v19 = vpop.permute.xlu1 %2183 }
 0x303   :  { %2638 = vrot.lane.b32.xlu0 %v9279_v28, %s3944_s26  ;;  %9296 = vst [vmem:[#allocation172_spill] sm:$0xff] %v7379_v19  ;;  %v7381_v39 = vpop.permute.xlu0 %2181 }
 0x304   :  { %9297 = vst [vmem:[#allocation194_spill] sm:$0xff] %v7381_v39 }
 0x306   :  { %2442 = vrot.lane.b32.xlu1 %v6719_v40, %s3942_s20  ;;  %v7387_v10 = vpop.permute.xlu1 %2187 }
 0x307   :  { %2739 = vrot.lane.b32.xlu0 %v6719_v40, %s3946_s1  ;;  %9298 = vst [vmem:[#allocation193_spill] sm:$0xff] %v7387_v10  ;;  %v7389_v28 = vpop.permute.xlu0 %2185 }
 0x308   :  { %9299 = vst [vmem:[#allocation141_spill] sm:$0xff] %v7389_v28 }
 0x30a   :  { %2444 = vrot.lane.b32.xlu1 %v6709_v63, %s3942_s20  ;;  %v7395_v40 = vpop.permute.xlu1 %2191 }
 0x30b   :  { %2741 = vrot.lane.b32.xlu0 %v6709_v63, %s3946_s1  ;;  %9300 = vst [vmem:[#allocation142_spill] sm:$0xff] %v7395_v40  ;;  %v7397_v19 = vpop.permute.xlu0 %2189 }
 0x30c   :  { %9301 = vst [vmem:[#allocation197_spill] sm:$0xff] %v7397_v19 }
 0x30e   :  { %2542 = vrot.lane.b32.xlu1 %v7126_v16, %s3943_s21  ;;  %v7403_v63 = vpop.permute.xlu1 %2195 }
 0x30f   :  { %2540 = vrot.lane.b32.xlu0 %v7133_v52, %s3943_s21  ;;  %9302 = vst [vmem:[#allocation124_spill] sm:$0xff] %v7403_v63  ;;  %v7405_v10 = vpop.permute.xlu0 %2193 }
 0x310   :  { %9303 = vst [vmem:[#allocation3_spill] sm:$0xff] %v7405_v10 }
 0x312   :  { %2644 = vrot.lane.b32.xlu1 %v9280_v9, %s3944_s26  ;;  %v7411_v28 = vpop.permute.xlu1 %2233 }
 0x313   :  { %2642 = vrot.lane.b32.xlu0 %v9281_v14, %s3944_s26  ;;  %v7413_v40 = vpop.permute.xlu0 %2231 }
 0x316   :  { %2446 = vrot.lane.b32.xlu1 %v6759_v35, %s3942_s20  ;;  %v7423_v10 = vpop.permute.xlu1 %2237 }
 0x317   :  { %2743 = vrot.lane.b32.xlu0 %v6759_v35, %s3946_s1  ;;  %v7425_v63 = vpop.permute.xlu0 %2235 }
 0x31a   :  { %2448 = vrot.lane.b32.xlu1 %v6749_v44, %s3942_s20  ;;  %v7417_v9 = vpop.f32.mrb[0].mxu0  ;;  %v7435_v39 = vpop.permute.xlu1 %2241 }
 0x31b   :  { %9304 = vst [vmem:[#allocation4_spill] sm:$0xff] %v7417_v9  ;;  %2745 = vrot.lane.b32.xlu0 %v6749_v44, %s3946_s1  ;;  %v7421_v14 = vpop.f32.mrb[1].mxu0  ;;  %v7437_v34 = vpop.permute.xlu0 %2239  ;;  %v9308_v44 = vld [vmem:[#allocation57_spill] sm:$0xff] }
 0x31c   :  { %9305 = vst [vmem:[#allocation173_spill] sm:$0xff] %v7421_v14 }
 0x31e   :  { %2546 = vrot.lane.b32.xlu1 %v7144_v53, %s3943_s21  ;;  %v7429_v35 = vpop.f32.mrb[2].mxu0 }
 0x31f   :  { %9306 = vst [vmem:[#allocation195_spill] sm:$0xff] %v7429_v35  ;;  %2544 = vrot.lane.b32.xlu0 %v7151_v47, %s3943_s21  ;;  %v7433_v19 = vpop.f32.mrb[3].mxu0  ;;  %v7447_v35 = vpop.permute.xlu1 %2245 }
 0x320   :  { %9307 = vst [vmem:[#allocation196_spill] sm:$0xff] %v7433_v19  ;;  %v7449_v14 = vpop.permute.xlu0 %2243 }
 0x322   :  { %2349 = vrot.lane.b32.xlu1 %v9308_v44, %s3941_s17  ;;  %v7441_v36 = vpop.f32.mrb[4].mxu0 }
 0x323   :  { %9309 = vst [vmem:[#allocation174_spill] sm:$0xff] %v7441_v36  ;;  %2646 = vrot.lane.b32.xlu0 %v9308_v44, %s3944_s26  ;;  %v7445_v9 = vpop.f32.mrb[5].mxu0  ;;  %v7459_v36 = vpop.permute.xlu1 %2249 }
 0x324   :  { %9310 = vst [vmem:[#allocation200_spill] sm:$0xff] %v7445_v9  ;;  %v7461_v17 = vpop.permute.xlu0 %2247 }
 0x326   :  { %2747 = vrot.lane.b32.xlu1 %v6799_v51, %s3946_s1  ;;  %v7453_v19 = vpop.f32.mrb[6].mxu0 }
 0x327   :  { %9311 = vst [vmem:[#allocation198_spill] sm:$0xff] %v7453_v19  ;;  %2648 = vrot.lane.b32.xlu0 %v9312_v23, %s3944_s26  ;;  %v7457_v3 = vpop.f32.mrb[7].mxu0  ;;  %v7471_v19 = vpop.permute.xlu1 %2253 }
 0x328   :  { %9313 = vst [vmem:[#allocation143_spill] sm:$0xff] %v7457_v3  ;;  %9316 = vst [vmem:[#allocation125_spill] sm:$0xff] %v7471_v19  ;;  %v7473_v61 = vpop.permute.xlu0 %2251 }
 0x32a   :  { %2450 = vrot.lane.b32.xlu1 %v6799_v51, %s3942_s20  ;;  %v7465_v44 = vpop.f32.mrb[8].mxu0 }
 0x32b   :  { %9314 = vst [vmem:[#allocation144_spill] sm:$0xff] %v7465_v44  ;;  %2351 = vrot.lane.b32.xlu0 %v9312_v23, %s3941_s17  ;;  %v7469_v9 = vpop.f32.mrb[9].mxu0  ;;  %v7483_v44 = vpop.permute.xlu1 %2257 }
 0x32c   :  { %9315 = vst [vmem:[#allocation204_spill] sm:$0xff] %v7469_v9  ;;  %9319 = vst [vmem:[#allocation28_spill] sm:$0xff] %v7483_v44  ;;  %v7485_v48 = vpop.permute.xlu0 %2255 }
 0x32d   :  { %9320 = vst [vmem:[#allocation202_spill] sm:$0xff] %v7485_v48 }
 0x32e   :  { %2452 = vrot.lane.b32.xlu1 %v6789_v11, %s3942_s20  ;;  %v7477_v3 = vpop.f32.mrb[10].mxu0 }
 0x32f   :  { %9317 = vst [vmem:[#allocation5_spill] sm:$0xff] %v7477_v3  ;;  %2749 = vrot.lane.b32.xlu0 %v6789_v11, %s3946_s1  ;;  %v7481_v51 = vpop.f32.mrb[11].mxu0  ;;  %v7495_v3 = vpop.permute.xlu1 %2261  ;;  %v9325_v11 = vld [vmem:[#allocation64_spill] sm:$0xff] }
 0x330   :  { %9318 = vst [vmem:[#allocation6_spill] sm:$0xff] %v7481_v51  ;;  %9323 = vst [vmem:[#allocation207_spill] sm:$0xff] %v7495_v3  ;;  %v7497_v19 = vpop.permute.xlu0 %2259  ;;  %v9331_v3 = vld [vmem:[#allocation62_spill] sm:$0xff] }
 0x331   :  { %9324 = vst [vmem:[#allocation205_spill] sm:$0xff] %v7497_v19 }
 0x332   :  { %2550 = vrot.lane.b32.xlu1 %v7162_v25, %s3943_s21  ;;  %v7489_v23 = vpop.f32.mrb[12].mxu0 }
 0x333   :  { %9321 = vst [vmem:[#allocation203_spill] sm:$0xff] %v7489_v23  ;;  %2548 = vrot.lane.b32.xlu0 %v7169_v42, %s3943_s21  ;;  %v7493_v9 = vpop.f32.mrb[13].mxu0  ;;  %v7507_v23 = vpop.permute.xlu1 %2265  ;;  %v9367_v42 = vld [vmem:[#allocation2_spill] sm:$0xff] }
 0x334   :  { %9322 = vst [vmem:[#allocation175_spill] sm:$0xff] %v7493_v9  ;;  %9328 = vst [vmem:[#allocation211_spill] sm:$0xff] %v7507_v23  ;;  %v7509_v25 = vpop.permute.xlu0 %2263 }
 0x335   :  { %9329 = vst [vmem:[#allocation126_spill] sm:$0xff] %v7509_v25 }
 0x336   :  { %2353 = vrot.lane.b32.xlu1 %v9325_v11, %s3941_s17 }
 0x337   :  { %v7501_v51 = vpop.f32.mrb[14].mxu0  ;;  %2650 = vrot.lane.b32.xlu0 %v9325_v11, %s3944_s26 }
 0x338   :  { %9326 = vst [vmem:[#allocation145_spill] sm:$0xff] %v7501_v51  ;;  %v7505_v44 = vpop.f32.mrb[15].mxu0  ;;  %v7519_v51 = vpop.permute.xlu1 %2269 }
 0x339   :  { %9327 = vst [vmem:[#allocation146_spill] sm:$0xff] %v7505_v44  ;;  %9333 = vst [vmem:[#allocation29_spill] sm:$0xff] %v7519_v51  ;;  %v7521_v48 = vpop.permute.xlu0 %2267 }
 0x33a   :  { %2751 = vrot.lane.b32.xlu1 %v6837_v26, %s3946_s1  ;;  %9334 = vst [vmem:[#allocation209_spill] sm:$0xff] %v7521_v48  ;;  %v7638_v48 = vld [vmem:[%s8398_s0 + $0x290] sm:$0xff] }
 0x33b   :  { %v7513_v9 = vpop.f32.mrb[16].mxu0  ;;  %2652 = vrot.lane.b32.xlu0 %v9331_v3, %s3944_s26  ;;  %9365 = vst [vmem:[#allocation56_spill] sm:$0xff] %v7638_v48 }
 0x33c   :  { %9330 = vst [vmem:[#allocation7_spill] sm:$0xff] %v7513_v9  ;;  %v7517_v19 = vpop.f32.mrb[17].mxu0  ;;  %v7531_v9 = vpop.permute.xlu1 %2273 }
 0x33d   :  { %9332 = vst [vmem:[#allocation8_spill] sm:$0xff] %v7517_v19  ;;  %9337 = vst [vmem:[#allocation41_spill] sm:$0xff] %v7531_v9  ;;  %v7533_v23 = vpop.permute.xlu0 %2271 }
 0x33e   :  { %2454 = vrot.lane.b32.xlu1 %v6837_v26, %s3942_s20  ;;  %9338 = vst [vmem:[#allocation212_spill] sm:$0xff] %v7533_v23 }
 0x33f   :  { %2355 = vrot.lane.b32.xlu0 %v9331_v3, %s3941_s17 }
 0x340   :  { %v7525_v11 = vpop.f32.mrb[18].mxu0 }
 0x341   :  { %9335 = vst [vmem:[#allocation210_spill] sm:$0xff] %v7525_v11  ;;  %v7529_v44 = vpop.f32.mrb[19].mxu0  ;;  %v7543_v11 = vpop.permute.xlu1 %2277 }
 0x342   :  { %9336 = vst [vmem:[#allocation176_spill] sm:$0xff] %v7529_v44  ;;  %2456 = vrot.lane.b32.xlu1 %v6827_v30, %s3942_s20  ;;  %9341 = vst [vmem:[#allocation46_spill] sm:$0xff] %v7543_v11  ;;  %v7545_v51 = vpop.permute.xlu0 %2275 }
 0x343   :  { %2753 = vrot.lane.b32.xlu0 %v6827_v30, %s3946_s1  ;;  %9342 = vst [vmem:[#allocation127_spill] sm:$0xff] %v7545_v51  ;;  %v9347_v30 = vld [vmem:[#allocation71_spill] sm:$0xff] }
 0x344   :  { %v7537_v19 = vpop.f32.mrb[20].mxu0 }
 0x345   :  { %9339 = vst [vmem:[#allocation147_spill] sm:$0xff] %v7537_v19  ;;  %v7541_v26 = vpop.f32.mrb[21].mxu0  ;;  %v7555_v19 = vpop.permute.xlu1 %2281 }
 0x346   :  { %9340 = vst [vmem:[#allocation148_spill] sm:$0xff] %v7541_v26  ;;  %2554 = vrot.lane.b32.xlu1 %v7180_v32, %s3943_s21  ;;  %9345 = vst [vmem:[#allocation30_spill] sm:$0xff] %v7555_v19  ;;  %v7557_v9 = vpop.permute.xlu0 %2279 }
 0x347   :  { %2552 = vrot.lane.b32.xlu0 %v7187_v41, %s3943_s21  ;;  %9346 = vst [vmem:[#allocation44_spill] sm:$0xff] %v7557_v9 }
 0x348   :  { %v7549_v3 = vpop.f32.mrb[22].mxu0 }
 0x349   :  { %9343 = vst [vmem:[#allocation9_spill] sm:$0xff] %v7549_v3  ;;  %v7553_v44 = vpop.f32.mrb[23].mxu0  ;;  %v7567_v3 = vpop.permute.xlu1 %2285 }
 0x34a   :  { %9344 = vst [vmem:[#allocation10_spill] sm:$0xff] %v7553_v44  ;;  %2357 = vrot.lane.b32.xlu1 %v9347_v30, %s3941_s17  ;;  %9350 = vst [vmem:[#allocation49_spill] sm:$0xff] %v7567_v3  ;;  %v7569_v51 = vpop.permute.xlu0 %2283  ;;  %v9353_v44 = vld [vmem:[#allocation69_spill] sm:$0xff] }
 0x34b   :  { %2654 = vrot.lane.b32.xlu0 %v9347_v30, %s3944_s26  ;;  %9351 = vst [vmem:[#allocation47_spill] sm:$0xff] %v7569_v51 }
 0x34c   :  { %v7561_v26 = vpop.f32.mrb[24].mxu0 }
 0x34d   :  { %9348 = vst [vmem:[#allocation45_spill] sm:$0xff] %v7561_v26  ;;  %v7565_v11 = vpop.f32.mrb[25].mxu0  ;;  %v7579_v26 = vpop.permute.xlu1 %2289 }
 0x34e   :  { %9349 = vst [vmem:[#allocation177_spill] sm:$0xff] %v7565_v11  ;;  %2755 = vrot.lane.b32.xlu1 %v6875_v55, %s3946_s1  ;;  %9355 = vst [vmem:[#allocation53_spill] sm:$0xff] %v7579_v26  ;;  %v7581_v23 = vpop.permute.xlu0 %2287 }
 0x34f   :  { %2656 = vrot.lane.b32.xlu0 %v9353_v44, %s3944_s26  ;;  %9356 = vst [vmem:[#allocation128_spill] sm:$0xff] %v7581_v23 }
 0x350   :  { %v7573_v19 = vpop.f32.mrb[26].mxu0 }
 0x351   :  { %9352 = vst [vmem:[#allocation149_spill] sm:$0xff] %v7573_v19  ;;  %v7577_v9 = vpop.f32.mrb[27].mxu0  ;;  %v7591_v19 = vpop.permute.xlu1 %2293 }
 0x352   :  { %9354 = vst [vmem:[#allocation150_spill] sm:$0xff] %v7577_v9  ;;  %2458 = vrot.lane.b32.xlu1 %v6875_v55, %s3942_s20  ;;  %9359 = vst [vmem:[#allocation31_spill] sm:$0xff] %v7591_v19  ;;  %v7593_v51 = vpop.permute.xlu0 %2291  ;;  %v9363_v19 = vld [vmem:[#allocation78_spill] sm:$0xff] }
 0x353   :  { %2359 = vrot.lane.b32.xlu0 %v9353_v44, %s3941_s17  ;;  %9360 = vst [vmem:[#allocation51_spill] sm:$0xff] %v7593_v51 }
 0x354   :  { %v7585_v30 = vpop.f32.mrb[28].mxu0 }
 0x355   :  { %9357 = vst [vmem:[#allocation11_spill] sm:$0xff] %v7585_v30  ;;  %v7589_v3 = vpop.f32.mrb[29].mxu0  ;;  %v2336_v23 = vpop.permute.xlu1 %2335 }
 0x356   :  { %9358 = vst [vmem:[#allocation12_spill] sm:$0xff] %v7589_v3  ;;  %2460 = vrot.lane.b32.xlu1 %v6865_v22, %s3942_s20  ;;  %v2334_v30 = vpop.permute.xlu0 %2333 }
 0x357   :  { %2757 = vrot.lane.b32.xlu0 %v6865_v22, %s3946_s1 }
 0x358   :  { %v7597_v26 = vpop.f32.mrb[30].mxu0 }
 0x359   :  { %9361 = vst [vmem:[#allocation52_spill] sm:$0xff] %v7597_v26  ;;  %v7601_v55 = vpop.f32.mrb[31].mxu0  ;;  %v7607_v44 = vpop.permute.xlu1 %2339 }
 0x35a   :  { %9362 = vst [vmem:[#allocation178_spill] sm:$0xff] %v7601_v55  ;;  %2558 = vrot.lane.b32.xlu1 %v7198_v2, %s3943_s21  ;;  %v7609_v51 = vpop.permute.xlu0 %2337  ;;  %v9364_v2 = vld [vmem:[#allocation76_spill] sm:$0xff] }
 0x35b   :  { %2556 = vrot.lane.b32.xlu0 %v7205_v1, %s3943_s21 }
 0x35d   :  { %v7615_v22 = vpop.permute.xlu1 %2343 }
 0x35e   :  { %2361 = vrot.lane.b32.xlu1 %v9363_v19, %s3941_s17  ;;  %v7617_v26 = vpop.permute.xlu0 %2341 }
 0x35f   :  { %2658 = vrot.lane.b32.xlu0 %v9363_v19, %s3944_s26 }
 0x361   :  { %v7623_v1 = vpop.permute.xlu1 %2347 }
 0x362   :  { %2759 = vrot.lane.b32.xlu1 %v6913_v46, %s3946_s1  ;;  %v7625_v55 = vpop.permute.xlu0 %2345 }
 0x363   :  { %2660 = vrot.lane.b32.xlu0 %v9364_v2, %s3944_s26 }
 0x365   :  { %v2437_v19 = vpop.permute.xlu1 %2436 }
 0x366   :  { %2462 = vrot.lane.b32.xlu1 %v6913_v46, %s3942_s20  ;;  %v2435_v3 = vpop.permute.xlu0 %2434  ;;  %v7645_v46 = vld [vmem:[%s8398_s0 + $0x288] sm:$0xff] }
 0x367   :  { %2363 = vrot.lane.b32.xlu0 %v9364_v2, %s3941_s17  ;;  %9366 = vst [vmem:[#allocation54_spill] sm:$0xff] %v7645_v46 }
 0x369   :  { %v2535_v9 = vpop.permute.xlu1 %2534 }
 0x36a   :  { %2464 = vrot.lane.b32.xlu1 %v6903_v54, %s3942_s20  ;;  %v2533_v11 = vpop.permute.xlu0 %2532 }
 0x36b   :  { %2761 = vrot.lane.b32.xlu0 %v6903_v54, %s3946_s1  ;;  %v3922_v54 = vld [vmem:[%s8398_s0 + $0x1b0] sm:$0xff] }
 0x36c   :  { %v2831_v2 = vsel %vm1088_vm2, %v3922_v54, %v7067_v60  ;;  %v3923_v60 = vld [vmem:[%s8398_s0 + $0x1b8] sm:$0xff] }
 0x36d   :  { %v2863_v25 = vsel %vm1121_vm3, %v2831_v2, %v7285_v7  ;;  %v2637_v32 = vpop.permute.xlu1 %2636  ;;  %v2832_v7 = vsel %vm1088_vm2, %v3923_v60, %v7065_v5  ;;  %v9368_v5 = vld [vmem:[#allocation83_spill] sm:$0xff] }
 0x36e   :  { %2562 = vrot.lane.b32.xlu1 %v7638_v48, %s3943_s21  ;;  %v2895_v48 = vsel %vm1154_vm4, %v2863_v25, %v7413_v40  ;;  %v2635_v41 = vpop.permute.xlu0 %2634  ;;  %v2864_v25 = vsel %vm1121_vm3, %v2832_v7, %v7283_v8 }
 0x36f   :  { %2560 = vrot.lane.b32.xlu0 %v7645_v46, %s3943_s21  ;;  %v2927_v46 = vsel %vm1187_vm5, %v2895_v48, %v2334_v30  ;;  %v2896_v48 = vsel %vm1154_vm4, %v2864_v25, %v7411_v28 }
 0x370   :  { %v2959_v54 = vsel %vm1220_vm6, %v2927_v46, %v2435_v3  ;;  %v2928_v53 = vsel %vm1187_vm5, %v2896_v48, %v2336_v23 }
 0x371   :  { %v2991_v40 = vsel %vm1253_vm7, %v2959_v54, %v2533_v11  ;;  %v2439_v2 = vpop.permute.xlu1 %2438  ;;  %v2960_v8 = vsel %vm1220_vm6, %v2928_v53, %v2437_v19  ;;  %v7705_v54 = vld [vmem:[%s8398_s0 + $0x2a8] sm:$0xff] }
 0x372   :  { %2365 = vrot.lane.b32.xlu1 %v9367_v42, %s3941_s17  ;;  %v2736_v30 = vpop.permute.xlu0 %2735  ;;  %v2992_v11 = vsel %vm1253_vm7, %v2960_v8, %v2535_v9  ;;  %v9370_v8 = vld [vmem:[#allocation89_spill] sm:$0xff] }
 0x373   :  { %2662 = vrot.lane.b32.xlu0 %v9367_v42, %s3944_s26  ;;  %v3023_v42 = vsel %vm1286_vm8, %v2991_v40, %v2635_v41  ;;  %v3024_v41 = vsel %vm1286_vm8, %v2992_v11, %v2637_v32  ;;  %v2833_v32 = vsel %vm1088_vm2, %v7079_v13, %v7085_v58  ;;  %v7714_v13 = vld [vmem:[%s8398_s0 + $0x2a0] sm:$0xff]  ;;  %v2834_v58 = vsel %vm1088_vm2, %v7072_v49, %v7083_v18 }
 0x374   :  { %v3055_v3 = vsel %vm1319_vm9, %v3023_v42, %v2736_v30  ;;  %v9369_v30 = vld [vmem:[#allocation91_spill] sm:$0xff] }
 0x375   :  { %3781 = vmatprep.mubr.msk.f32.mxu1 %vm1352_vm10, %v3055_v3  ;;  %v2441_v28 = vpop.permute.xlu1 %2440 }
 0x376   :  { %2763 = vrot.lane.b32.xlu1 %v6949_v6, %s3946_s1  ;;  %v2738_v46 = vpop.permute.xlu0 %2737 }
 0x377   :  { %2664 = vrot.lane.b32.xlu0 %v9368_v5, %s3944_s26  ;;  %v3056_v23 = vsel %vm1319_vm9, %v3024_v41, %v2738_v46  ;;  %v2835_v41 = vsel %vm1088_vm2, %v7097_v4, %v7103_v62  ;;  %v2836_v62 = vsel %vm1088_vm2, %v7090_v27, %v7101_v37 }
 0x378   :  { %3782 = vmatmul.mubr.msk.f32.vlgmr.msra.gmra.mrb[0].mxu1 %vm1352_vm10, %v3056_v23  ;;  %v2867_v46 = vsel %vm1121_vm3, %v2835_v41, %v7301_v43  ;;  %v2868_v43 = vsel %vm1121_vm3, %v2836_v62, %v7299_v59  ;;  %v7785_v59 = vld [vmem:[%s8398_s0 + $0x2b8] sm:$0xff] }
 0x379   :  { %v2539_v60 = vpop.permute.xlu1 %2538 }
 0x37a   :  { %2466 = vrot.lane.b32.xlu1 %v6949_v6, %s3942_s20  ;;  %v2537_v53 = vpop.permute.xlu0 %2536  ;;  %v2865_v6 = vsel %vm1121_vm3, %v2833_v32, %v7293_v45 }
 0x37b   :  { %2367 = vrot.lane.b32.xlu0 %v9368_v5, %s3941_s17  ;;  %v2897_v19 = vsel %vm1154_vm4, %v2865_v6, %v7425_v63  ;;  %v2866_v63 = vsel %vm1121_vm3, %v2834_v58, %v7291_v24  ;;  %v2900_v6 = vsel %vm1154_vm4, %v2868_v43, %v7435_v39 }
 0x37c   :  { %v2898_v40 = vsel %vm1154_vm4, %v2866_v63, %v7423_v10  ;;  %v2932_v37 = vsel %vm1187_vm5, %v2900_v6, %v7615_v22 }
 0x37d   :  { %v2641_v9 = vpop.permute.xlu1 %2640  ;;  %v2930_v49 = vsel %vm1187_vm5, %v2898_v40, %v7607_v44 }
 0x37e   :  { %2468 = vrot.lane.b32.xlu1 %v6939_v57, %s3942_s20  ;;  %v2639_v7 = vpop.permute.xlu0 %2638  ;;  %v2962_v24 = vsel %vm1220_vm6, %v2930_v49, %v2441_v28 }
 0x37f   :  { %2765 = vrot.lane.b32.xlu0 %v6939_v57, %s3946_s1  ;;  %v2929_v57 = vsel %vm1187_vm5, %v2897_v19, %v7609_v51  ;;  %v2994_v10 = vsel %vm1253_vm7, %v2962_v24, %v2539_v60  ;;  %v2899_v60 = vsel %vm1154_vm4, %v2867_v46, %v7437_v34  ;;  %v9372_v24 = vld [vmem:[#allocation102_spill] sm:$0xff]  ;;  %v9374_v46 = vld [vmem:[#allocation95_spill] sm:$0xff] }
 0x380   :  { %v2961_v45 = vsel %vm1220_vm6, %v2929_v57, %v2439_v2  ;;  %v3026_v5 = vsel %vm1286_vm8, %v2994_v10, %v2641_v9 }
 0x381   :  { %v2993_v25 = vsel %vm1253_vm7, %v2961_v45, %v2537_v53  ;;  %v2443_v51 = vpop.permute.xlu1 %2442 }
 0x382   :  { %2566 = vrot.lane.b32.xlu1 %v7705_v54, %s3943_s21  ;;  %v3025_v48 = vsel %vm1286_vm8, %v2993_v25, %v2639_v7  ;;  %v2740_v42 = vpop.permute.xlu0 %2739  ;;  %v2837_v25 = vsel %vm1088_vm2, %v7115_v38, %v7121_v56 }
 0x383   :  { %2564 = vrot.lane.b32.xlu0 %v7714_v13, %s3943_s21  ;;  %v3057_v18 = vsel %vm1319_vm9, %v3025_v48, %v2740_v42  ;;  %v2869_v40 = vsel %vm1121_vm3, %v2837_v25, %v7309_v20  ;;  %v7892_v25 = vld [vmem:[%s8398_s0 + $0x2f0] sm:$0xff] }
 0x384   :  { %3784 = vmatprep.mubr.msk.f32.mxu1 %vm1352_vm10, %v3057_v18 }
 0x385   :  { %v2445_v2 = vpop.permute.xlu1 %2444 }
 0x386   :  { %2369 = vrot.lane.b32.xlu1 %v9369_v30, %s3941_s17  ;;  %v2742_v3 = vpop.permute.xlu0 %2741  ;;  %v2964_v39 = vsel %vm1220_vm6, %v2932_v37, %v2445_v2 }
 0x387   :  { %2666 = vrot.lane.b32.xlu0 %v9369_v30, %s3944_s26  ;;  %v3058_v44 = vsel %vm1319_vm9, %v3026_v5, %v2742_v3 }
 0x388   :  { %3785 = vmatmul.mubr.msk.f32.gmra.mrb[2].mxu1 %vm1352_vm10, %v3058_v44  ;;  %v7835_v44 = vld [vmem:[%s8398_s0 + $0x2d8] sm:$0xff] }
 0x389   :  { %v2543_v11 = vpop.permute.xlu1 %2542 }
 0x38a   :  { %2767 = vrot.lane.b32.xlu1 %v6982_v15, %s3946_s1  ;;  %v2541_v28 = vpop.permute.xlu0 %2540  ;;  %v2996_v19 = vsel %vm1253_vm7, %v2964_v39, %v2543_v11  ;;  %v9378_v39 = vld [vmem:[#allocation103_spill] sm:$0xff] }
 0x38b   :  { %2668 = vrot.lane.b32.xlu0 %v9370_v8, %s3944_s26 }
 0x38d   :  { %v2645_v23 = vpop.permute.xlu1 %2644 }
 0x38e   :  { %2470 = vrot.lane.b32.xlu1 %v6982_v15, %s3942_s20  ;;  %v2643_v53 = vpop.permute.xlu0 %2642  ;;  %v2931_v15 = vsel %vm1187_vm5, %v2899_v60, %v7617_v26  ;;  %v3028_v57 = vsel %vm1286_vm8, %v2996_v19, %v2645_v23  ;;  %v9379_v19 = vld [vmem:[#allocation26_spill] sm:$0xff] }
 0x38f   :  { %2371 = vrot.lane.b32.xlu0 %v9370_v8, %s3941_s17  ;;  %v2963_v4 = vsel %vm1220_vm6, %v2931_v15, %v2443_v51  ;;  %v9371_v51 = vld [vmem:[#allocation93_spill] sm:$0xff]  ;;  %v9376_v15 = vld [vmem:[#allocation115_spill] sm:$0xff] }
 0x390   :  { %v2995_v34 = vsel %vm1253_vm7, %v2963_v4, %v2541_v28  ;;  %v2839_v62 = vsel %vm1088_vm2, %v7133_v52, %v9376_v15  ;;  %v9377_v4 = vld [vmem:[#allocation94_spill] sm:$0xff] }
 0x391   :  { %v2447_v32 = vpop.permute.xlu1 %2446  ;;  %v3027_v26 = vsel %vm1286_vm8, %v2995_v34, %v2643_v53  ;;  %v9375_v53 = vld [vmem:[#allocation104_spill] sm:$0xff]  ;;  %v2871_v43 = vsel %vm1121_vm3, %v2839_v62, %v7317_v12  ;;  %v7948_v62 = vld [vmem:[%s8398_s0 + $0x308] sm:$0xff] }
 0x392   :  { %2472 = vrot.lane.b32.xlu1 %v6972_v29, %s3942_s20  ;;  %v2744_v9 = vpop.permute.xlu0 %2743  ;;  %v2903_v34 = vsel %vm1154_vm4, %v2871_v43, %v7461_v17  ;;  %v7956_v43 = vld [vmem:[%s8398_s0 + $0x300] sm:$0xff] }
 0x393   :  { %2769 = vrot.lane.b32.xlu0 %v6972_v29, %s3946_s1  ;;  %v7775_v29 = vld [vmem:[%s8398_s0 + $0x2c0] sm:$0xff]  ;;  %v3059_v27 = vsel %vm1319_vm9, %v3027_v26, %v2744_v9 }
 0x394   :  { %3787 = vmatprep.mubr.msk.f32.mxu1 %vm1352_vm10, %v3059_v27 }
 0x395   :  { %v2449_v7 = vpop.permute.xlu1 %2448 }
 0x396   :  { %2570 = vrot.lane.b32.xlu1 %v7775_v29, %s3943_s21  ;;  %v2746_v22 = vpop.permute.xlu0 %2745 }
 0x397   :  { %2568 = vrot.lane.b32.xlu0 %v7785_v59, %s3943_s21  ;;  %v3060_v58 = vsel %vm1319_vm9, %v3028_v57, %v2746_v22  ;;  %v9380_v57 = vld [vmem:[#allocation185_spill] sm:$0xff] }
 0x398   :  { %3788 = vmatmul.mubr.msk.f32.gmra.mrb[4].mxu1 %vm1352_vm10, %v3060_v58 }
 0x399   :  { %v2547_v45 = vpop.permute.xlu1 %2546 }
 0x39a   :  { %2373 = vrot.lane.b32.xlu1 %v6362_v21, %s3941_s17  ;;  %v2545_v63 = vpop.permute.xlu0 %2544 }
 0x39b   :  { %2670 = vrot.lane.b32.xlu0 %v6362_v21, %s3944_s26  ;;  %v2901_v21 = vsel %vm1154_vm4, %v2869_v40, %v7449_v14 }
 0x39c   :  { %v2933_v42 = vsel %vm1187_vm5, %v2901_v21, %v7625_v55 }
 0x39d   :  { %v2350_v48 = vpop.permute.xlu1 %2349  ;;  %v2965_v49 = vsel %vm1220_vm6, %v2933_v42, %v2447_v32 }
 0x39e   :  { %2771 = vrot.lane.b32.xlu1 %v7001_v33, %s3946_s1  ;;  %v2647_v30 = vpop.permute.xlu0 %2646  ;;  %v2997_v38 = vsel %vm1253_vm7, %v2965_v49, %v2545_v63  ;;  %v2935_v6 = vsel %vm1187_vm5, %v2903_v34, %v2350_v48 }
 0x39f   :  { %2672 = vrot.lane.b32.xlu0 %v9371_v51, %s3944_s26  ;;  %v3029_v56 = vsel %vm1286_vm8, %v2997_v38, %v2647_v30  ;;  %v9381_v30 = vld [vmem:[#allocation97_spill] sm:$0xff] }
 0x3a1   :  { %v2748_v20 = vpop.permute.xlu1 %2747 }
 0x3a2   :  { %2474 = vrot.lane.b32.xlu1 %v7001_v33, %s3942_s20  ;;  %v3061_v14 = vsel %vm1319_vm9, %v3029_v56, %v2748_v20  ;;  %v2649_v18 = vpop.permute.xlu0 %2648  ;;  %v9373_v33 = vld [vmem:[#allocation114_spill] sm:$0xff] }
 0x3a3   :  { %2375 = vrot.lane.b32.xlu0 %v9371_v51, %s3941_s17  ;;  %3790 = vmatprep.mubr.msk.f32.mxu1 %vm1352_vm10, %v3061_v14  ;;  %v2838_v55 = vsel %vm1088_vm2, %v7108_v0, %v9373_v33  ;;  %v7844_v0 = vld [vmem:[%s8398_s0 + $0x2d0] sm:$0xff]  ;;  %v9382_v20 = vld [vmem:[#allocation106_spill] sm:$0xff] }
 0x3a4   :  { %v2870_v10 = vsel %vm1121_vm3, %v2838_v55, %v7307_v50  ;;  %v9383_v14 = vld [vmem:[#allocation40_spill] sm:$0xff] }
 0x3a5   :  { %v2451_v2 = vpop.permute.xlu1 %2450  ;;  %v2902_v5 = vsel %vm1154_vm4, %v2870_v10, %v7447_v35 }
 0x3a6   :  { %2476 = vrot.lane.b32.xlu1 %v9372_v24, %s3942_s20  ;;  %v2352_v3 = vpop.permute.xlu0 %2351  ;;  %v2934_v8 = vsel %vm1187_vm5, %v2902_v5, %v7623_v1  ;;  %v2967_v9 = vsel %vm1220_vm6, %v2935_v6, %v2451_v2 }
 0x3a7   :  { %2773 = vrot.lane.b32.xlu0 %v9372_v24, %s3946_s1  ;;  %v2966_v50 = vsel %vm1220_vm6, %v2934_v8, %v2449_v7  ;;  %v2840_v7 = vsel %vm1088_vm2, %v7126_v16, %v9379_v19  ;;  %v7900_v16 = vld [vmem:[%s8398_s0 + $0x2e8] sm:$0xff]  ;;  %v9384_v24 = vld [vmem:[#allocation96_spill] sm:$0xff] }
 0x3a8   :  { %v2998_v35 = vsel %vm1253_vm7, %v2966_v50, %v2547_v45  ;;  %v2872_v22 = vsel %vm1121_vm3, %v2840_v7, %v9380_v57  ;;  %v9393_v19 = vld [vmem:[#allocation132_spill] sm:$0xff]  ;;  %v9394_v57 = vld [vmem:[#allocation98_spill] sm:$0xff] }
 0x3a9   :  { %v2453_v11 = vpop.permute.xlu1 %2452  ;;  %v3030_v28 = vsel %vm1286_vm8, %v2998_v35, %v2649_v18  ;;  %v2904_v45 = vsel %vm1154_vm4, %v2872_v22, %v7459_v36  ;;  %v2841_v18 = vsel %vm1088_vm2, %v7151_v47, %v9383_v14  ;;  %v9385_v35 = vld [vmem:[#allocation105_spill] sm:$0xff] }
 0x3aa   :  { %2574 = vrot.lane.b32.xlu1 %v7835_v44, %s3943_s21  ;;  %v2750_v41 = vpop.permute.xlu0 %2749  ;;  %v2936_v51 = vsel %vm1187_vm5, %v2904_v45, %v2352_v3  ;;  %v2873_v33 = vsel %vm1121_vm3, %v2841_v18, %v7325_v31  ;;  %v9395_v22 = vld [vmem:[#allocation189_spill] sm:$0xff]  ;;  %v9396_v45 = vld [vmem:[#allocation202_spill] sm:$0xff] }
 0x3ab   :  { %2572 = vrot.lane.b32.xlu0 %v7844_v0, %s3943_s21  ;;  %v3062_v1 = vsel %vm1319_vm9, %v3030_v28, %v2750_v41  ;;  %v2968_v36 = vsel %vm1220_vm6, %v2936_v51, %v2453_v11  ;;  %v2905_v55 = vsel %vm1154_vm4, %v2873_v33, %v7473_v61  ;;  %v9386_v11 = vld [vmem:[#allocation116_spill] sm:$0xff]  ;;  %v9387_v28 = vld [vmem:[#allocation27_spill] sm:$0xff]  ;;  %v9399_v14 = vld [vmem:[#allocation117_spill] sm:$0xff] }
 0x3ac   :  { %3791 = vmatmul.mubr.msk.f32.gmra.mrb[6].mxu1 %vm1352_vm10, %v3062_v1  ;;  %v2842_v41 = vsel %vm1088_vm2, %v9387_v28, %v9386_v11  ;;  %v9402_v28 = vld [vmem:[#allocation101_spill] sm:$0xff] }
 0x3ad   :  { %v2551_v23 = vpop.permute.xlu1 %2550 }
 0x3ae   :  { %2377 = vrot.lane.b32.xlu1 %v9374_v46, %s3941_s17  ;;  %v2549_v60 = vpop.permute.xlu0 %2548  ;;  %v3000_v40 = vsel %vm1253_vm7, %v2968_v36, %v2551_v23 }
 0x3af   :  { %2674 = vrot.lane.b32.xlu0 %v9374_v46, %s3944_s26  ;;  %v2999_v52 = vsel %vm1253_vm7, %v2967_v9, %v2549_v60  ;;  %v9388_v46 = vld [vmem:[#allocation186_spill] sm:$0xff]  ;;  %v9389_v60 = vld [vmem:[#allocation125_spill] sm:$0xff] }
 0x3b0   :  { %v2874_v1 = vsel %vm1121_vm3, %v2842_v41, %v9388_v46 }
 0x3b1   :  { %v2354_v32 = vpop.permute.xlu1 %2353 }
 0x3b2   :  { %2775 = vrot.lane.b32.xlu1 %v9375_v53, %s3946_s1  ;;  %v2651_v26 = vpop.permute.xlu0 %2650  ;;  %v2937_v2 = vsel %vm1187_vm5, %v2905_v55, %v2354_v32 }
 0x3b3   :  { %2676 = vrot.lane.b32.xlu0 %v9377_v4, %s3944_s26  ;;  %v3031_v37 = vsel %vm1286_vm8, %v2999_v52, %v2651_v26  ;;  %v9390_v52 = vld [vmem:[#allocation99_spill] sm:$0xff] }
 0x3b5   :  { %v2752_v12 = vpop.permute.xlu1 %2751 }
 0x3b6   :  { %2478 = vrot.lane.b32.xlu1 %v9375_v53, %s3942_s20  ;;  %v3063_v27 = vsel %vm1319_vm9, %v3031_v37, %v2752_v12  ;;  %v2653_v17 = vpop.permute.xlu0 %2652  ;;  %v2906_v53 = vsel %vm1154_vm4, %v2874_v1, %v9389_v60  ;;  %v9404_v60 = vld [vmem:[#allocation23_spill] sm:$0xff] }
 0x3b7   :  { %2379 = vrot.lane.b32.xlu0 %v9377_v4, %s3941_s17  ;;  %3793 = vmatprep.mubr.msk.f32.mxu1 %vm1352_vm10, %v3063_v27  ;;  %v3032_v48 = vsel %vm1286_vm8, %v3000_v40, %v2653_v17  ;;  %v9391_v17 = vld [vmem:[#allocation25_spill] sm:$0xff] }
 0x3b9   :  { %v2455_v58 = vpop.permute.xlu1 %2454 }
 0x3ba   :  { %2480 = vrot.lane.b32.xlu1 %v9378_v39, %s3942_s20  ;;  %v2356_v63 = vpop.permute.xlu0 %2355  ;;  %v2969_v3 = vsel %vm1220_vm6, %v2937_v2, %v2455_v58 }
 0x3bb   :  { %2777 = vrot.lane.b32.xlu0 %v9378_v39, %s3946_s1  ;;  %v2938_v4 = vsel %vm1187_vm5, %v2906_v53, %v2356_v63  ;;  %v9392_v39 = vld [vmem:[#allocation133_spill] sm:$0xff]  ;;  %v9405_v53 = vld [vmem:[#allocation119_spill] sm:$0xff] }
 0x3bc   :  { %v2843_v7 = vsel %vm1088_vm2, %v9393_v19, %v9392_v39 }
 0x3bd   :  { %v2457_v21 = vpop.permute.xlu1 %2456  ;;  %v2875_v58 = vsel %vm1121_vm3, %v2843_v7, %v9395_v22  ;;  %v9410_v22 = vld [vmem:[#allocation122_spill] sm:$0xff] }
 0x3be   :  { %2578 = vrot.lane.b32.xlu1 %v7892_v25, %s3943_s21  ;;  %v2754_v42 = vpop.permute.xlu0 %2753  ;;  %v2970_v34 = vsel %vm1220_vm6, %v2938_v4, %v2457_v21  ;;  %v2907_v63 = vsel %vm1154_vm4, %v2875_v58, %v9396_v45  ;;  %v9406_v4 = vld [vmem:[#allocation100_spill] sm:$0xff]  ;;  %v2329_v58 = vrot.slane %v9410_v22, 1  ;;  %v9411_v45 = vld [vmem:[#allocation163_spill] sm:$0xff] }
 0x3bf   :  { %2576 = vrot.lane.b32.xlu0 %v7900_v16, %s3943_s21  ;;  %v3064_v49 = vsel %vm1319_vm9, %v3032_v48, %v2754_v42 }
 0x3c0   :  { %3794 = vmatmul.mubr.msk.f32.gmra.mrb[8].mxu1 %vm1352_vm10, %v3064_v49 }
 0x3c1   :  { %v2555_v38 = vpop.permute.xlu1 %2554 }
 0x3c2   :  { %2381 = vrot.lane.b32.xlu1 %v9381_v30, %s3941_s17  ;;  %v2553_v56 = vpop.permute.xlu0 %2552  ;;  %v3002_v32 = vsel %vm1253_vm7, %v2970_v34, %v2555_v38  ;;  %v9407_v34 = vld [vmem:[#allocation139_spill] sm:$0xff] }
 0x3c3   :  { %2678 = vrot.lane.b32.xlu0 %v9381_v30, %s3944_s26  ;;  %v3001_v47 = vsel %vm1253_vm7, %v2969_v3, %v2553_v56  ;;  %v9397_v56 = vld [vmem:[#allocation107_spill] sm:$0xff]  ;;  %v8004_v3 = vld [vmem:[%s8398_s0 + $0x320] sm:$0xff] }
 0x3c5   :  { %v2358_v10 = vpop.permute.xlu1 %2357 }
 0x3c6   :  { %2779 = vrot.lane.b32.xlu1 %v9382_v20, %s3946_s1  ;;  %v2655_v5 = vpop.permute.xlu0 %2654  ;;  %v2939_v36 = vsel %vm1187_vm5, %v2907_v63, %v2358_v10  ;;  %v9401_v10 = vld [vmem:[#allocation28_spill] sm:$0xff]  ;;  %v2328_v63 = vrot.slane %v9411_v45, 1 }
 0x3c7   :  { %2680 = vrot.lane.b32.xlu0 %v9384_v24, %s3944_s26  ;;  %v3033_v8 = vsel %vm1286_vm8, %v3001_v47, %v2655_v5 }
 0x3c9   :  { %v2756_v31 = vpop.permute.xlu1 %2755 }
 0x3ca   :  { %2482 = vrot.lane.b32.xlu1 %v9382_v20, %s3942_s20  ;;  %v3065_v50 = vsel %vm1319_vm9, %v3033_v8, %v2756_v31  ;;  %v2657_v61 = vpop.permute.xlu0 %2656  ;;  %v9398_v20 = vld [vmem:[#allocation118_spill] sm:$0xff]  ;;  %v8012_v8 = vld [vmem:[%s8398_s0 + $0x318] sm:$0xff] }
 0x3cb   :  { %2383 = vrot.lane.b32.xlu0 %v9384_v24, %s3941_s17  ;;  %3796 = vmatprep.mubr.msk.f32.mxu1 %vm1352_vm10, %v3065_v50  ;;  %v3034_v26 = vsel %vm1286_vm8, %v3002_v32, %v2657_v61  ;;  %v2844_v18 = vsel %vm1088_vm2, %v9399_v14, %v9398_v20  ;;  %v9400_v24 = vld [vmem:[#allocation170_spill] sm:$0xff]  ;;  %v2430_v20 = vrot.slane %v9410_v22, 2  ;;  %v2429_v14 = vrot.slane %v9411_v45, 2 }
 0x3cc   :  { %v2876_v33 = vsel %vm1121_vm3, %v2844_v18, %v9400_v24  ;;  %v2330_v24 = vsel %vm132_vm0, %v2328_v63, %v2329_v58 }
 0x3cd   :  { %v2459_v23 = vpop.permute.xlu1 %2458  ;;  %v2908_v2 = vsel %vm1154_vm4, %v2876_v33, %v9401_v10 }
 0x3ce   :  { %2484 = vrot.lane.b32.xlu1 %v9385_v35, %s3942_s20  ;;  %v2360_v15 = vpop.permute.xlu0 %2359  ;;  %v2971_v21 = vsel %vm1220_vm6, %v2939_v36, %v2459_v23  ;;  %v9403_v23 = vld [vmem:[#allocation111_spill] sm:$0xff]  ;;  %v9413_v36 = vld [vmem:[#allocation134_spill] sm:$0xff] }
 0x3cf   :  { %2781 = vrot.lane.b32.xlu0 %v9385_v35, %s3946_s1  ;;  %v2940_v47 = vsel %vm1187_vm5, %v2908_v2, %v2360_v15  ;;  %v2845_v15 = vsel %vm1088_vm2, %v9405_v53, %v9404_v60  ;;  %v9418_v53 = vld [vmem:[#allocation126_spill] sm:$0xff] }
 0x3d0   :  { %v2877_v32 = vsel %vm1121_vm3, %v2845_v15, %v9407_v34 }
 0x3d1   :  { %v2461_v6 = vpop.permute.xlu1 %2460 }
 0x3d2   :  { %2582 = vrot.lane.b32.xlu1 %v7948_v62, %s3943_s21  ;;  %v2758_v9 = vpop.permute.xlu0 %2757  ;;  %v2972_v31 = vsel %vm1220_vm6, %v2940_v47, %v2461_v6  ;;  %v9408_v6 = vld [vmem:[#allocation205_spill] sm:$0xff] }
 0x3d3   :  { %2580 = vrot.lane.b32.xlu0 %v7956_v43, %s3943_s21  ;;  %v3066_v37 = vsel %vm1319_vm9, %v3034_v26, %v2758_v9  ;;  %v2909_v26 = vsel %vm1154_vm4, %v2877_v32, %v9408_v6 }
 0x3d4   :  { %3797 = vmatmul.mubr.msk.f32.gmra.mrb[10].mxu1 %vm1352_vm10, %v3066_v37 }
 0x3d5   :  { %v2559_v12 = vpop.permute.xlu1 %2558 }
 0x3d6   :  { %2385 = vrot.lane.b32.xlu1 %v9390_v52, %s3941_s17  ;;  %v2557_v27 = vpop.permute.xlu0 %2556  ;;  %v3004_v50 = vsel %vm1253_vm7, %v2972_v31, %v2559_v12 }
 0x3d7   :  { %2682 = vrot.lane.b32.xlu0 %v9390_v52, %s3944_s26  ;;  %v3003_v48 = vsel %vm1253_vm7, %v2971_v21, %v2557_v27  ;;  %v9414_v21 = vld [vmem:[#allocation188_spill] sm:$0xff] }
 0x3d9   :  { %v2362_v51 = vpop.permute.xlu1 %2361 }
 0x3da   :  { %2783 = vrot.lane.b32.xlu1 %v9391_v17, %s3946_s1  ;;  %v2659_v40 = vpop.permute.xlu0 %2658  ;;  %v2941_v52 = vsel %vm1187_vm5, %v2909_v26, %v2362_v51  ;;  %v9412_v51 = vld [vmem:[#allocation120_spill] sm:$0xff] }
 0x3db   :  { %2684 = vrot.lane.b32.xlu0 %v9394_v57, %s3944_s26  ;;  %v3035_v42 = vsel %vm1286_vm8, %v3003_v48, %v2659_v40  ;;  %v2846_v40 = vsel %vm1088_vm2, %v9413_v36, %v9412_v51  ;;  %v9420_v51 = vld [vmem:[#allocation140_spill] sm:$0xff] }
 0x3dc   :  { %v2878_v48 = vsel %vm1121_vm3, %v2846_v40, %v9414_v21  ;;  %v9421_v21 = vld [vmem:[#allocation211_spill] sm:$0xff] }
 0x3dd   :  { %v2760_v30 = vpop.permute.xlu1 %2759 }
 0x3de   :  { %2486 = vrot.lane.b32.xlu1 %v9391_v17, %s3942_s20  ;;  %v3067_v49 = vsel %vm1319_vm9, %v3035_v42, %v2760_v30  ;;  %v2661_v38 = vpop.permute.xlu0 %2660  ;;  %v3575_v30 = vld [vmem:[%s8398_s0 + $0x340] sm:$0x3] }
 0x3df   :  { %2387 = vrot.lane.b32.xlu0 %v9394_v57, %s3941_s17  ;;  %3799 = vmatprep.mubr.msk.f32.mxu1 %vm1352_vm10, %v3067_v49  ;;  %v3036_v35 = vsel %vm1286_vm8, %v3004_v50, %v2661_v38  ;;  %v9409_v57 = vld [vmem:[#allocation110_spill] sm:$0xff]  ;;  %v9415_v49 = vld [vmem:[#allocation207_spill] sm:$0xff] }
 0x3e0   :  { %v2910_v38 = vsel %vm1154_vm4, %v2878_v48, %v9415_v49 }
 0x3e1   :  { %v2463_v55 = vpop.permute.xlu1 %2462 }
 0x3e2   :  { %2488 = vrot.lane.b32.xlu1 %v9397_v56, %s3942_s20  ;;  %v2364_v5 = vpop.permute.xlu0 %2363  ;;  %v2973_v12 = vsel %vm1220_vm6, %v2941_v52, %v2463_v55  ;;  %v2331_v55 = vrot.slane %v3575_v30, 1 }
 0x3e3   :  { %2785 = vrot.lane.b32.xlu0 %v9397_v56, %s3946_s1  ;;  %v2942_v18 = vsel %vm1187_vm5, %v2910_v38, %v2364_v5  ;;  %v2431_v5 = vsel %vm309_vm1, %v2429_v14, %v2430_v20 }
 0x3e5   :  { %v2465_v61 = vpop.permute.xlu1 %2464 }
 0x3e6   :  { %2586 = vrot.lane.b32.xlu1 %v8004_v3, %s3943_s21  ;;  %v2762_v11 = vpop.permute.xlu0 %2761  ;;  %v2974_v33 = vsel %vm1220_vm6, %v2942_v18, %v2465_v61 }
 0x3e7   :  { %2584 = vrot.lane.b32.xlu0 %v8012_v8, %s3943_s21  ;;  %v3068_v41 = vsel %vm1319_vm9, %v3036_v35, %v2762_v11  ;;  %v2332_v35 = vsel %vm132_vm0, %v2329_v58, %v2331_v55  ;;  %v9419_v58 = vld [vmem:[#allocation24_spill] sm:$0xff] }
 0x3e8   :  { %3800 = vmatmul.mubr.msk.f32.gmra.mrb[12].mxu1 %vm1352_vm10, %v3068_v41  ;;  %v9416_v41 = vld [vmem:[#allocation43_spill] sm:$0xff] }
 0x3e9   :  { %v2563_v46 = vpop.permute.xlu1 %2562 }
 0x3ea   :  { %2389 = vrot.lane.b32.xlu1 %v9402_v28, %s3941_s17  ;;  %v2561_v1 = vpop.permute.xlu0 %2560  ;;  %v3006_v10 = vsel %vm1253_vm7, %v2974_v33, %v2563_v46 }
 0x3eb   :  { %2686 = vrot.lane.b32.xlu0 %v9402_v28, %s3944_s26  ;;  %v3005_v27 = vsel %vm1253_vm7, %v2973_v12, %v2561_v1  ;;  %v3936_v28 = vld [vmem:[%s8398_s0 + $0x270] sm:$0xff]  ;;  %v2432_v1 = vrot.slane %v3575_v30, 2  ;;  %v3578_v12 = vld [vmem:[%s8398_s0 + $0x358] sm:$0x3] }
 0x3ec   :  { %v2847_v46 = vsel %vm1088_vm2, %v3936_v28, %v9416_v41  ;;  %v9424_v28 = vld [vmem:[#allocation165_spill] sm:$0xff] }
 0x3ed   :  { %v2366_v9 = vpop.permute.xlu1 %2365  ;;  %v2433_v26 = vsel %vm309_vm1, %v2430_v20, %v2432_v1  ;;  %v2733_v20 = vrot.slane %v3578_v12, 2 }
 0x3ee   :  { %2787 = vrot.lane.b32.xlu1 %v9403_v23, %s3946_s1  ;;  %v2663_v37 = vpop.permute.xlu0 %2662 }
 0x3ef   :  { %2688 = vrot.lane.b32.xlu0 %v9406_v4, %s3944_s26  ;;  %v3037_v17 = vsel %vm1286_vm8, %v3005_v27, %v2663_v37  ;;  %v3577_v37 = vld [vmem:[%s8398_s0 + $0x350] sm:$0xff] }
 0x3f0   :  { %v2731_v49 = vrot.slane %v3577_v37, 2 }
 0x3f1   :  { %v2764_v39 = vpop.permute.xlu1 %2763 }
 0x3f2   :  { %2490 = vrot.lane.b32.xlu1 %v9403_v23, %s3942_s20  ;;  %v3069_v19 = vsel %vm1319_vm9, %v3037_v17, %v2764_v39  ;;  %v2665_v7 = vpop.permute.xlu0 %2664  ;;  %v9417_v23 = vld [vmem:[#allocation192_spill] sm:$0xff]  ;;  %v3576_v17 = vld [vmem:[%s8398_s0 + $0x348] sm:$0xff] }
 0x3f3   :  { %2391 = vrot.lane.b32.xlu0 %v9406_v4, %s3941_s17  ;;  %3802 = vmatprep.mubr.msk.f32.mxu1 %vm1352_vm10, %v3069_v19  ;;  %v3038_v47 = vsel %vm1286_vm8, %v3006_v10, %v2665_v7  ;;  %v2879_v60 = vsel %vm1121_vm3, %v2847_v46, %v9417_v23  ;;  %v2630_v7 = vrot.slane %v3577_v37, 1  ;;  %v2629_v63 = vrot.slane %v3576_v17, 1  ;;  %v9425_v46 = vld [vmem:[#allocation209_spill] sm:$0xff] }
 0x3f4   :  { %v2911_v15 = vsel %vm1154_vm4, %v2879_v60, %v9418_v53  ;;  %v2730_v18 = vrot.slane %v3576_v17, 2 }
 0x3f5   :  { %v2467_v42 = vpop.permute.xlu1 %2466  ;;  %v2943_v34 = vsel %vm1187_vm5, %v2911_v15, %v2366_v9 }
 0x3f6   :  { %2492 = vrot.lane.b32.xlu1 %v9409_v57, %s3942_s20  ;;  %v2368_v56 = vpop.permute.xlu0 %2367  ;;  %v2975_v6 = vsel %vm1220_vm6, %v2943_v34, %v2467_v42 }
 0x3f7   :  { %2789 = vrot.lane.b32.xlu0 %v9409_v57, %s3946_s1  ;;  %v2632_v57 = vrot.slane %v3578_v12, 1  ;;  %v9427_v12 = vld [vmem:[#allocation56_spill] sm:$0xff] }
 0x3f9   :  { %v2469_v2 = vpop.permute.xlu1 %2468  ;;  %v2633_v38 = vsel %vm132_vm0, %v2630_v7, %v2632_v57 }
 0x3fa   :  { %2590 = vrot.lane.b32.xlu1 %v9410_v22, %s3943_s21  ;;  %v2766_v31 = vpop.permute.xlu0 %2765  ;;  %v3937_v22 = vld [vmem:[%s8398_s0 + $0x278] sm:$0xff] }
 0x3fb   :  { %2588 = vrot.lane.b32.xlu0 %v9411_v45, %s3943_s21  ;;  %v3070_v50 = vsel %vm1319_vm9, %v3038_v47, %v2766_v31  ;;  %v2848_v45 = vsel %vm1088_vm2, %v3937_v22, %v9419_v58  ;;  %v2734_v31 = vsel %vm309_vm1, %v2731_v49, %v2733_v20 }
 0x3fc   :  { %3803 = vmatmul.mubr.msk.f32.gmra.mrb[14].mxu1 %vm1352_vm10, %v3070_v50  ;;  %v2880_v36 = vsel %vm1121_vm3, %v2848_v45, %v9420_v51 }
 0x3fd   :  { %v2567_v61 = vpop.permute.xlu1 %2566  ;;  %v2912_v48 = vsel %vm1154_vm4, %v2880_v36, %v9421_v21 }
 0x3fe   :  { %2393 = vrot.lane.b32.xlu1 %v2330_v24, %s3941_s17  ;;  %v2565_v11 = vpop.permute.xlu0 %2564  ;;  %v2944_v30 = vsel %vm1187_vm5, %v2912_v48, %v2368_v56  ;;  %v9430_v48 = vld [vmem:[#allocation121_spill] sm:$0xff] }
 0x3ff   :  { %2690 = vrot.lane.b32.xlu0 %v2330_v24, %s3944_s26  ;;  %v3007_v52 = vsel %vm1253_vm7, %v2975_v6, %v2565_v11  ;;  %v2976_v14 = vsel %vm1220_vm6, %v2944_v30, %v2469_v2  ;;  %v2631_v24 = vsel %vm132_vm0, %v2629_v63, %v2630_v7  ;;  %v2732_v2 = vsel %vm309_vm1, %v2730_v18, %v2731_v49  ;;  %v9431_v49 = vld [vmem:[#allocation171_spill] sm:$0xff] }
 0x400   :  { %v3008_v33 = vsel %vm1253_vm7, %v2976_v14, %v2567_v61  ;;  %v9423_v61 = vld [vmem:[#allocation54_spill] sm:$0xff]  ;;  %v2851_v30 = vsel %vm1088_vm2, %v7714_v13, %v9430_v48  ;;  %v9447_v48 = vld [vmem:[#allocation161_spill] sm:$0xff] }
 0x401   :  { %v2370_v4 = vpop.permute.xlu1 %2369 }
 0x402   :  { %2791 = vrot.lane.b32.xlu1 %v2431_v5, %s3946_s1  ;;  %v2667_v32 = vpop.permute.xlu0 %2666 }
 0x403   :  { %2692 = vrot.lane.b32.xlu0 %v2332_v35, %s3944_s26  ;;  %v3039_v9 = vsel %vm1286_vm8, %v3007_v52, %v2667_v32 }
 0x405   :  { %v2768_v27 = vpop.permute.xlu1 %2767 }
 0x406   :  { %2494 = vrot.lane.b32.xlu1 %v2431_v5, %s3942_s20  ;;  %v3071_v39 = vsel %vm1319_vm9, %v3039_v9, %v2768_v27  ;;  %v2669_v19 = vpop.permute.xlu0 %2668  ;;  %v9428_v27 = vld [vmem:[#allocation123_spill] sm:$0xff] }
 0x407   :  { %2395 = vrot.lane.b32.xlu0 %v2332_v35, %s3941_s17  ;;  %3805 = vmatprep.mubr.msk.f32.mxu1 %vm1352_vm10, %v3071_v39  ;;  %v3040_v10 = vsel %vm1286_vm8, %v3008_v33, %v2669_v19  ;;  %v9422_v35 = vld [vmem:[#allocation136_spill] sm:$0xff]  ;;  %v9429_v39 = vld [vmem:[#allocation29_spill] sm:$0xff] }
 0x408   :  { %v2849_v11 = vsel %vm1088_vm2, %v9423_v61, %v9422_v35  ;;  %v9435_v35 = vld [vmem:[#allocation173_spill] sm:$0xff] }
 0x409   :  { %v2471_v40 = vpop.permute.xlu1 %2470  ;;  %v2881_v41 = vsel %vm1121_vm3, %v2849_v11, %v9424_v28  ;;  %v9436_v11 = vld [vmem:[#allocation41_spill] sm:$0xff] }
 0x40a   :  { %2496 = vrot.lane.b32.xlu1 %v2433_v26, %s3942_s20  ;;  %v2372_v42 = vpop.permute.xlu0 %2371  ;;  %v2913_v1 = vsel %vm1154_vm4, %v2881_v41, %v9425_v46 }
 0x40b   :  { %2793 = vrot.lane.b32.xlu0 %v2433_v26, %s3946_s1  ;;  %v2945_v60 = vsel %vm1187_vm5, %v2913_v1, %v2370_v4 }
 0x40c   :  { %v2977_v15 = vsel %vm1220_vm6, %v2945_v60, %v2471_v40  ;;  %v9437_v60 = vld [vmem:[#allocation4_spill] sm:$0xff] }
 0x40d   :  { %v2473_v55 = vpop.permute.xlu1 %2472 }
 0x40e   :  { %2594 = vrot.lane.b32.xlu1 %v3577_v37, %s3943_s21  ;;  %v2770_v47 = vpop.permute.xlu0 %2769  ;;  %v9426_v37 = vld [vmem:[#allocation135_spill] sm:$0xff] }
 0x40f   :  { %2592 = vrot.lane.b32.xlu0 %v3576_v17, %s3943_s21  ;;  %v3072_v56 = vsel %vm1319_vm9, %v3040_v10, %v2770_v47  ;;  %v2850_v9 = vsel %vm1088_vm2, %v9427_v12, %v9426_v37  ;;  %v9440_v12 = vld [vmem:[#allocation8_spill] sm:$0xff] }
 0x410   :  { %3806 = vmatmul.mubr.msk.f32.gmra.mrb[16].mxu1 %vm1352_vm10, %v3072_v56  ;;  %v2882_v4 = vsel %vm1121_vm3, %v2850_v9, %v9428_v27  ;;  %v9441_v9 = vld [vmem:[#allocation191_spill] sm:$0xff] }
 0x411   :  { %v2571_v50 = vpop.permute.xlu1 %2570  ;;  %v2914_v19 = vsel %vm1154_vm4, %v2882_v4, %v9429_v39  ;;  %v9442_v4 = vld [vmem:[#allocation127_spill] sm:$0xff] }
 0x412   :  { %2696 = vrot.lane.b32.xlu1 %v2633_v38, %s3944_s26  ;;  %v2569_v5 = vpop.permute.xlu0 %2568  ;;  %v2946_v57 = vsel %vm1187_vm5, %v2914_v19, %v2372_v42  ;;  %v2883_v42 = vsel %vm1121_vm3, %v2851_v30, %v9431_v49  ;;  %v9432_v38 = vld [vmem:[#allocation212_spill] sm:$0xff]  ;;  %v9443_v39 = vld [vmem:[#allocation195_spill] sm:$0xff]  ;;  %v2854_v30 = vsel %vm1088_vm2, %v7775_v29, %v9447_v48  ;;  %v9448_v49 = vld [vmem:[#allocation190_spill] sm:$0xff] }
 0x413   :  { %2694 = vrot.lane.b32.xlu0 %v2631_v24, %s3944_s26  ;;  %v3009_v34 = vsel %vm1253_vm7, %v2977_v15, %v2569_v5  ;;  %v2978_v22 = vsel %vm1220_vm6, %v2946_v57, %v2473_v55  ;;  %v2915_v20 = vsel %vm1154_vm4, %v2883_v42, %v9432_v38  ;;  %v2886_v42 = vsel %vm1121_vm3, %v2854_v30, %v9448_v49  ;;  %v9449_v38 = vld [vmem:[#allocation174_spill] sm:$0xff]  ;;  %v9468_v30 = vld [vmem:[#allocation5_spill] sm:$0xff] }
 0x414   :  { %v3010_v58 = vsel %vm1253_vm7, %v2978_v22, %v2571_v50  ;;  %v9434_v50 = vld [vmem:[#allocation166_spill] sm:$0xff] }
 0x415   :  { %v2374_v23 = vpop.permute.xlu1 %2373 }
 0x416   :  { %2797 = vrot.lane.b32.xlu1 %v2734_v31, %s3946_s1  ;;  %v2671_v53 = vpop.permute.xlu0 %2670  ;;  %v2947_v18 = vsel %vm1187_vm5, %v2915_v20, %v2374_v23  ;;  %v9433_v31 = vld [vmem:[#allocation183_spill] sm:$0xff] }
 0x417   :  { %2795 = vrot.lane.b32.xlu0 %v2732_v2, %s3946_s1  ;;  %v3041_v32 = vsel %vm1286_vm8, %v3009_v34, %v2671_v53  ;;  %v2852_v2 = vsel %vm1088_vm2, %v7705_v54, %v9433_v31 }
 0x418   :  { %v2884_v5 = vsel %vm1121_vm3, %v2852_v2, %v9434_v50 }
 0x419   :  { %v2772_v6 = vpop.permute.xlu1 %2771  ;;  %v2916_v28 = vsel %vm1154_vm4, %v2884_v5, %v9436_v11  ;;  %v9453_v5 = vld [vmem:[#allocation148_spill] sm:$0xff] }
 0x41a   :  { %v3073_v26 = vsel %vm1319_vm9, %v3041_v32, %v2772_v6  ;;  %v2673_v52 = vpop.permute.xlu0 %2672  ;;  %v9438_v32 = vld [vmem:[#allocation196_spill] sm:$0xff] }
 0x41b   :  { %3808 = vmatprep.mubr.msk.f32.mxu1 %vm1352_vm10, %v3073_v26  ;;  %v3042_v63 = vsel %vm1286_vm8, %v3010_v58, %v2673_v52  ;;  %v9439_v52 = vld [vmem:[#allocation162_spill] sm:$0xff]  ;;  %v9444_v58 = vld [vmem:[#allocation7_spill] sm:$0xff] }
 0x41c   :  { %v2853_v37 = vsel %vm1088_vm2, %v7785_v59, %v9439_v52  ;;  %v9460_v52 = vld [vmem:[#allocation10_spill] sm:$0xff] }
 0x41d   :  { %v2475_v17 = vpop.permute.xlu1 %2474  ;;  %v2885_v27 = vsel %vm1121_vm3, %v2853_v37, %v9441_v9 }
 0x41e   :  { %v2376_v7 = vpop.permute.xlu0 %2375  ;;  %v2979_v33 = vsel %vm1220_vm6, %v2947_v18, %v2475_v17  ;;  %v2917_v17 = vsel %vm1154_vm4, %v2885_v27, %v9442_v4 }
 0x41f   :  { %v2948_v46 = vsel %vm1187_vm5, %v2916_v28, %v2376_v7 }
 0x421   :  { %v2477_v45 = vpop.permute.xlu1 %2476 }
 0x422   :  { %v2774_v51 = vpop.permute.xlu0 %2773  ;;  %v2980_v1 = vsel %vm1220_vm6, %v2948_v46, %v2477_v45 }
 0x423   :  { %v3074_v36 = vsel %vm1319_vm9, %v3042_v63, %v2774_v51  ;;  %v9445_v63 = vld [vmem:[#allocation200_spill] sm:$0xff] }
 0x424   :  { %3809 = vmatmul.mubr.msk.f32.gmra.mrb[18].mxu1 %vm1352_vm10, %v3074_v36 }
 0x425   :  { %v2575_v40 = vpop.permute.xlu1 %2574 }
 0x426   :  { %v2573_v21 = vpop.permute.xlu0 %2572  ;;  %v3012_v23 = vsel %vm1253_vm7, %v2980_v1, %v2575_v40  ;;  %v9456_v1 = vld [vmem:[#allocation147_spill] sm:$0xff] }
 0x427   :  { %v3011_v55 = vsel %vm1253_vm7, %v2979_v33, %v2573_v21  ;;  %v9446_v21 = vld [vmem:[#allocation176_spill] sm:$0xff] }
 0x429   :  { %v2378_v14 = vpop.permute.xlu1 %2377 }
 0x42a   :  { %v2675_v24 = vpop.permute.xlu0 %2674  ;;  %v2949_v7 = vsel %vm1187_vm5, %v2917_v17, %v2378_v14  ;;  %v9450_v14 = vld [vmem:[#allocation46_spill] sm:$0xff]  ;;  %v9462_v17 = vld [vmem:[#allocation9_spill] sm:$0xff] }
 0x42b   :  { %v3043_v10 = vsel %vm1286_vm8, %v3011_v55, %v2675_v24  ;;  %v2918_v18 = vsel %vm1154_vm4, %v2886_v42, %v9450_v14  ;;  %v9451_v55 = vld [vmem:[#allocation210_spill] sm:$0xff]  ;;  %v9469_v14 = vld [vmem:[#allocation45_spill] sm:$0xff] }
 0x42d   :  { %v2776_v47 = vpop.permute.xlu1 %2775 }
 0x42e   :  { %v3075_v56 = vsel %vm1319_vm9, %v3043_v10, %v2776_v47  ;;  %v2677_v13 = vpop.permute.xlu0 %2676 }
 0x42f   :  { %3811 = vmatprep.mubr.msk.f32.mxu1 %vm1352_vm10, %v3075_v56  ;;  %v3044_v54 = vsel %vm1286_vm8, %v3012_v23, %v2677_v13  ;;  %v9452_v56 = vld [vmem:[#allocation143_spill] sm:$0xff]  ;;  %v9457_v23 = vld [vmem:[#allocation194_spill] sm:$0xff] }
 0x431   :  { %v2479_v61 = vpop.permute.xlu1 %2478 }
 0x432   :  { %v2380_v41 = vpop.permute.xlu0 %2379  ;;  %v2981_v22 = vsel %vm1220_vm6, %v2949_v7, %v2479_v61  ;;  %v9454_v61 = vld [vmem:[#allocation198_spill] sm:$0xff]  ;;  %v9464_v7 = vld [vmem:[#allocation172_spill] sm:$0xff] }
 0x433   :  { %v2950_v33 = vsel %vm1187_vm5, %v2918_v18, %v2380_v41  ;;  %v9455_v41 = vld [vmem:[#allocation168_spill] sm:$0xff]  ;;  %v9470_v18 = vld [vmem:[#allocation175_spill] sm:$0xff] }
 0x434   :  { %v2855_v46 = vsel %vm1088_vm2, %v7844_v0, %v9455_v41  ;;  %v9476_v41 = vld [vmem:[#allocation149_spill] sm:$0xff] }
 0x435   :  { %1674 = vxpose.xlu0.b32.start [1/16] (narrow) %v9435_v35, 16  ;;  %v2481_v53 = vpop.permute.xlu1 %2480 }
 0x436   :  { %v2778_v15 = vpop.permute.xlu0 %2777  ;;  %v2982_v10 = vsel %vm1220_vm6, %v2950_v33, %v2481_v53  ;;  %v9458_v53 = vld [vmem:[#allocation44_spill] sm:$0xff] }
 0x437   :  { %v3076_v34 = vsel %vm1319_vm9, %v3044_v54, %v2778_v15  ;;  %v9459_v15 = vld [vmem:[#allocation204_spill] sm:$0xff] }
 0x438   :  { %3812 = vmatmul.mubr.msk.f32.gmra.mrb[20].mxu1 %vm1352_vm10, %v3076_v34 }
 0x439   :  { %1675 = vxpose.xlu0.b32.cont [2/16] (narrow) %v9437_v60, 16  ;;  %v2579_v6 = vpop.permute.xlu1 %2578  ;;  %v2887_v60 = vsel %vm1121_vm3, %v2855_v46, %v9457_v23 }
 0x43a   :  { %v2577_v26 = vpop.permute.xlu0 %2576  ;;  %v3014_v47 = vsel %vm1253_vm7, %v2982_v10, %v2579_v6  ;;  %v2919_v54 = vsel %vm1154_vm4, %v2887_v60, %v9458_v53 }
 0x43b   :  { %v3013_v59 = vsel %vm1253_vm7, %v2981_v22, %v2577_v26  ;;  %v9465_v22 = vld [vmem:[#allocation6_spill] sm:$0xff] }
 0x43d   :  { %1676 = vxpose.xlu0.b32.cont [3/16] (narrow) %v9438_v32, 16  ;;  %v2382_v19 = vpop.permute.xlu1 %2381 }
 0x43e   :  { %v2679_v57 = vpop.permute.xlu0 %2678  ;;  %v2951_v32 = vsel %vm1187_vm5, %v2919_v54, %v2382_v19 }
 0x43f   :  { %1706 = vxpose.xlu1.b32.start [1/16] (narrow) %v9440_v12, 16  ;;  %v3045_v45 = vsel %vm1286_vm8, %v3013_v59, %v2679_v57  ;;  %v9461_v12 = vld [vmem:[#allocation144_spill] sm:$0xff]  ;;  %v9466_v59 = vld [vmem:[#allocation30_spill] sm:$0xff] }
 0x441   :  { %1677 = vxpose.xlu0.b32.cont [4/16] (narrow) %v9443_v39, 16  ;;  %v2780_v51 = vpop.permute.xlu1 %2779  ;;  %v9463_v39 = vld [vmem:[#allocation167_spill] sm:$0xff] }
 0x442   :  { %v3077_v36 = vsel %vm1319_vm9, %v3045_v45, %v2780_v51  ;;  %v2681_v40 = vpop.permute.xlu0 %2680  ;;  %v2856_v19 = vsel %vm1088_vm2, %v7835_v44, %v9463_v39 }
 0x443   :  { %1707 = vxpose.xlu1.b32.cont [2/16] (narrow) %v9444_v58, 16  ;;  %3814 = vmatprep.mubr.msk.f32.mxu1 %vm1352_vm10, %v3077_v36  ;;  %v3046_v13 = vsel %vm1286_vm8, %v3014_v47, %v2681_v40  ;;  %v2888_v57 = vsel %vm1121_vm3, %v2856_v19, %v9464_v7  ;;  %v9467_v40 = vld [vmem:[#allocation177_spill] sm:$0xff]  ;;  %v9472_v47 = vld [vmem:[#allocation150_spill] sm:$0xff] }
 0x444   :  { %v2920_v45 = vsel %vm1154_vm4, %v2888_v57, %v9466_v59 }
 0x445   :  { %1678 = vxpose.xlu0.b32.cont [5/16] (narrow) %v9445_v63, 16  ;;  %v2483_v20 = vpop.permute.xlu1 %2482 }
 0x446   :  { %v2384_v24 = vpop.permute.xlu0 %2383  ;;  %v2983_v26 = vsel %vm1220_vm6, %v2951_v32, %v2483_v20 }
 0x447   :  { %1708 = vxpose.xlu1.b32.cont [3/16] (narrow) %v9446_v21, 16  ;;  %v2952_v51 = vsel %vm1187_vm5, %v2920_v45, %v2384_v24 }
 0x449   :  { %1679 = vxpose.xlu0.b32.cont [6/16] (narrow) %v9449_v38, 16  ;;  %v2485_v29 = vpop.permute.xlu1 %2484 }
 0x44a   :  { %v2782_v31 = vpop.permute.xlu0 %2781  ;;  %v2984_v21 = vsel %vm1220_vm6, %v2952_v51, %v2485_v29 }
 0x44b   :  { %1709 = vxpose.xlu1.b32.cont [4/16] (narrow) %v9451_v55, 16  ;;  %v3078_v2 = vsel %vm1319_vm9, %v3046_v13, %v2782_v31  ;;  %v8223_v50 = vpop.f32.mrb[0].mxu1  ;;  %v9471_v55 = vld [vmem:[#allocation137_spill] sm:$0xff]  ;;  %v9474_v13 = vld [vmem:[#allocation47_spill] sm:$0xff] }
 0x44c   :  { %v8226_v35 = vpop.f32.mrb[1].mxu1  ;;  %3815 = vmatmul.mubr.msk.f32.gmra.mrb[22].mxu1 %vm1352_vm10, %v3078_v2  ;;  %v2857_v10 = vsel %vm1088_vm2, %v7900_v16, %v9471_v55  ;;  %v9475_v2 = vld [vmem:[#allocation203_spill] sm:$0xff] }
 0x44d   :  { %1680 = vxpose.xlu0.b32.cont [7/16] (narrow) %v9452_v56, 16  ;;  %v2583_v11 = vpop.permute.xlu1 %2582  ;;  %v9473_v56 = vld [vmem:[#allocation141_spill] sm:$0xff] }
 0x44e   :  { %v2581_v28 = vpop.permute.xlu0 %2580  ;;  %v3016_v44 = vsel %vm1253_vm7, %v2984_v21, %v2583_v11  ;;  %v2889_v29 = vsel %vm1121_vm3, %v2857_v10, %v9473_v56 }
 0x44f   :  { %1710 = vxpose.xlu1.b32.cont [5/16] (narrow) %v9453_v5, 16  ;;  %v3015_v0 = vsel %vm1253_vm7, %v2983_v26, %v2581_v28  ;;  %v2921_v31 = vsel %vm1154_vm4, %v2889_v29, %v9474_v13  ;;  %v9480_v26 = vld [vmem:[#allocation193_spill] sm:$0xff] }
 0x450   :  { %v9491_v13 = vld [vmem:[#allocation53_spill] sm:$0xff] }
 0x451   :  { %1681 = vxpose.xlu0.b32.cont [8/16] (narrow) %v9454_v61, 16  ;;  %v2386_v34 = vpop.permute.xlu1 %2385 }
 0x452   :  { %v2683_v6 = vpop.permute.xlu0 %2682  ;;  %v2953_v61 = vsel %vm1187_vm5, %v2921_v31, %v2386_v34  ;;  %v9479_v34 = vld [vmem:[#allocation184_spill] sm:$0xff] }
 0x453   :  { %1711 = vxpose.xlu1.b32.cont [6/16] (narrow) %v9456_v1, 16  ;;  %v3047_v37 = vsel %vm1286_vm8, %v3015_v0, %v2683_v6  ;;  %v9477_v1 = vld [vmem:[#allocation146_spill] sm:$0xff]  ;;  %v2858_v32 = vsel %vm1088_vm2, %v7892_v25, %v9479_v34  ;;  %v9481_v0 = vld [vmem:[#allocation145_spill] sm:$0xff]  ;;  %v9495_v34 = vld [vmem:[#allocation3_spill] sm:$0xff] }
 0x455   :  { %1682 = vxpose.xlu0.b32.cont [9/16] (narrow) %v9459_v15, 16  ;;  %v2784_v9 = vpop.permute.xlu1 %2783  ;;  %v9478_v15 = vld [vmem:[#allocation12_spill] sm:$0xff] }
 0x456   :  { %v3079_v27 = vsel %vm1319_vm9, %v3047_v37, %v2784_v9  ;;  %v2685_v4 = vpop.permute.xlu0 %2684 }
 0x457   :  { %1712 = vxpose.xlu1.b32.cont [7/16] (narrow) %v9460_v52, 16  ;;  %3817 = vmatprep.mubr.msk.f32.mxu1 %vm1352_vm10, %v3079_v27  ;;  %v3048_v42 = vsel %vm1286_vm8, %v3016_v44, %v2685_v4  ;;  %v2890_v52 = vsel %vm1121_vm3, %v2858_v32, %v9480_v26  ;;  %v9488_v44 = vld [vmem:[#allocation128_spill] sm:$0xff] }
 0x459   :  { %1683 = vxpose.xlu0.b32.cont [10/16] (narrow) %v9461_v12, 16  ;;  %v2487_v58 = vpop.permute.xlu1 %2486  ;;  %v9482_v12 = vld [vmem:[#allocation49_spill] sm:$0xff] }
 0x45a   :  { %v2388_v63 = vpop.permute.xlu0 %2387  ;;  %v2985_v28 = vsel %vm1220_vm6, %v2953_v61, %v2487_v58  ;;  %v2922_v9 = vsel %vm1154_vm4, %v2890_v52, %v9482_v12  ;;  %v9484_v58 = vld [vmem:[#allocation178_spill] sm:$0xff] }
 0x45b   :  { %1713 = vxpose.xlu1.b32.cont [8/16] (narrow) %v9462_v17, 16  ;;  %v8257_v36 = vpop.f32.mrb[2].mxu1  ;;  %v2954_v4 = vsel %vm1187_vm5, %v2922_v9, %v2388_v63  ;;  %v9483_v17 = vld [vmem:[#allocation11_spill] sm:$0xff] }
 0x45c   :  { %v3259_v48 = vpop.f32.mrb[3].mxu1  ;;  %v9485_v63 = vld [vmem:[#allocation187_spill] sm:$0xff] }
 0x45d   :  { %1684 = vxpose.xlu0.b32.cont [11/16] (narrow) %v9465_v22, 16  ;;  %v2489_v49 = vpop.permute.xlu1 %2488  ;;  %v2859_v51 = vsel %vm1088_vm2, %v7956_v43, %v9485_v63 }
 0x45e   :  { %v2786_v38 = vpop.permute.xlu0 %2785  ;;  %v2986_v39 = vsel %vm1220_vm6, %v2954_v4, %v2489_v49 }
 0x45f   :  { %1714 = vxpose.xlu1.b32.cont [9/16] (narrow) %v9467_v40, 16  ;;  %v3080_v20 = vsel %vm1319_vm9, %v3048_v42, %v2786_v38  ;;  %v9486_v40 = vld [vmem:[#allocation52_spill] sm:$0xff] }
 0x460   :  { %3818 = vmatmul.mubr.msk.f32.gmra.mrb[24].mxu1 %vm1352_vm10, %v3080_v20 }
 0x461   :  { %1685 = vxpose.xlu0.b32.cont [12/16] (narrow) %v9468_v30, 16  ;;  %v2587_v24 = vpop.permute.xlu1 %2586 }
 0x462   :  { %v2585_v33 = vpop.permute.xlu0 %2584  ;;  %v3018_v19 = vsel %vm1253_vm7, %v2986_v39, %v2587_v24 }
 0x463   :  { %1715 = vxpose.xlu1.b32.cont [10/16] (narrow) %v9469_v14, 16  ;;  %v3017_v16 = vsel %vm1253_vm7, %v2985_v28, %v2585_v33 }
 0x465   :  { %1686 = vxpose.xlu0.b32.cont [13/16] (narrow) %v9470_v18, 16  ;;  %v2390_v5 = vpop.permute.xlu1 %2389 }
 0x466   :  { %v2687_v11 = vpop.permute.xlu0 %2686 }
 0x467   :  { %1716 = vxpose.xlu1.b32.cont [11/16] (narrow) %v9472_v47, 16  ;;  %v3049_v46 = vsel %vm1286_vm8, %v3017_v16, %v2687_v11  ;;  %v9490_v47 = vld [vmem:[#allocation142_spill] sm:$0xff] }
 0x469   :  { %1687 = vxpose.xlu0.b32.cont [14/16] (narrow) %v9475_v2, 16  ;;  %v2788_v23 = vpop.permute.xlu1 %2787 }
 0x46a   :  { %v3081_v60 = vsel %vm1319_vm9, %v3049_v46, %v2788_v23  ;;  %v2689_v53 = vpop.permute.xlu0 %2688 }
 0x46b   :  { %1717 = vxpose.xlu1.b32.cont [12/16] (narrow) %v9476_v41, 16  ;;  %v3789_v54 = vpop.f32.mrb[4].mxu1  ;;  %3820 = vmatprep.mubr.msk.f32.mxu1 %vm1352_vm10, %v3081_v60  ;;  %v3050_v7 = vsel %vm1286_vm8, %v3018_v19, %v2689_v53  ;;  %v9493_v60 = vld [vmem:[#allocation169_spill] sm:$0xff] }
 0x46c   :  { %v3269_v6 = vpop.f32.mrb[5].mxu1  ;;  %v2861_v53 = vsel %vm1088_vm2, %v8012_v8, %v9493_v60 }
 0x46d   :  { %1688 = vxpose.xlu0.b32.cont [15/16] (narrow) %v9477_v1, 16  ;;  %v2491_v37 = vpop.permute.xlu1 %2490  ;;  %v9492_v1 = vld [vmem:[#allocation164_spill] sm:$0xff]  ;;  %v2893_v32 = vsel %vm1121_vm3, %v2861_v53, %v9495_v34 }
 0x46e   :  { %v2392_v27 = vpop.permute.xlu0 %2391  ;;  %v2862_v23 = vsel %vm1088_vm2, %v8004_v3, %v9492_v1 }
 0x46f   :  { %1718 = vxpose.xlu1.b32.cont [13/16] (narrow) %v9478_v15, 16 }
 0x471   :  { %1689 = vxpose.xlu0.b32.end [16/16] (narrow) %v9481_v0, 16  ;;  %v2493_v25 = vpop.permute.xlu1 %2492  ;;  %v9497_v0 = vld [vmem:[#allocation51_spill] sm:$0xff] }
 0x472   :  { %v2790_v57 = vpop.permute.xlu0 %2789 }
 0x473   :  { %1719 = vxpose.xlu1.b32.cont [14/16] (narrow) %v9483_v17, 16  ;;  %v3082_v22 = vsel %vm1319_vm9, %v3050_v7, %v2790_v57 }
 0x474   :  { %3821 = vmatmul.mubr.msk.f32.gmra.mrb[26].mxu1 %vm1352_vm10, %v3082_v22 }
 0x475   :  { %3408 = vxpose.xlu0.b32.start [1/16] (narrow) %v8226_v35, 16  ;;  %v2591_v59 = vpop.permute.xlu1 %2590  ;;  %v9487_v35 = vld [vmem:[#allocation197_spill] sm:$0xff] }
 0x476   :  { %v2589_v45 = vpop.permute.xlu0 %2588  ;;  %v2891_v21 = vsel %vm1121_vm3, %v2859_v51, %v9487_v35 }
 0x477   :  { %1720 = vxpose.xlu1.b32.cont [15/16] (narrow) %v9484_v58, 16  ;;  %v2923_v30 = vsel %vm1154_vm4, %v2891_v21, %v9488_v44  ;;  %v9499_v21 = vld [vmem:[#allocation113_spill] sm:$0xff] }
 0x478   :  { %v2955_v42 = vsel %vm1187_vm5, %v2923_v30, %v2390_v5 }
 0x479   :  { %3409 = vxpose.xlu0.b32.cont [2/16] (narrow) %v8223_v50, 16  ;;  %v2394_v49 = vpop.permute.xlu1 %2393  ;;  %v2987_v50 = vsel %vm1220_vm6, %v2955_v42, %v2491_v37  ;;  %v2925_v37 = vsel %vm1154_vm4, %v2893_v32, %v9497_v0  ;;  %v9500_v42 = vld [vmem:[#allocation108_spill] sm:$0xff] }
 0x47a   :  { %v2691_v38 = vpop.permute.xlu0 %2690  ;;  %v3019_v20 = vsel %vm1253_vm7, %v2987_v50, %v2589_v45  ;;  %v2957_v9 = vsel %vm1187_vm5, %v2925_v37, %v2394_v49  ;;  %v9501_v50 = vld [vmem:[#allocation112_spill] sm:$0xff] }
 0x47b   :  { %1721 = vxpose.xlu1.b32.end [16/16] (narrow) %v9486_v40, 16  ;;  %v3051_v14 = vsel %vm1286_vm8, %v3019_v20, %v2691_v38  ;;  %v9498_v40 = vld [vmem:[#allocation109_spill] sm:$0xff] }
 0x47d   :  { %3410 = vxpose.xlu0.b32.cont [3/16] (narrow) %v3259_v48, 16  ;;  %v2792_v43 = vpop.permute.xlu1 %2791  ;;  %v9489_v48 = vld [vmem:[#allocation138_spill] sm:$0xff] }
 0x47e   :  { %v3083_v18 = vsel %vm1319_vm9, %v3051_v14, %v2792_v43  ;;  %v2693_v24 = vpop.permute.xlu0 %2692  ;;  %v2860_v55 = vsel %vm1088_vm2, %v7948_v62, %v9489_v48 }
 0x47f   :  { %v3792_v33 = vpop.f32.mrb[6].mxu1  ;;  %3823 = vmatprep.mubr.msk.f32.mxu1 %vm1352_vm10, %v3083_v18  ;;  %v2892_v56 = vsel %vm1121_vm3, %v2860_v55, %v9490_v47 }
 0x480   :  { %v3279_v10 = vpop.f32.mrb[7].mxu1 }
 0x481   :  { %3411 = vxpose.xlu0.b32.cont [4/16] (narrow) %v8257_v36, 16  ;;  %v2495_v29 = vpop.permute.xlu1 %2494  ;;  %v2924_v36 = vsel %vm1154_vm4, %v2892_v56, %v9491_v13 }
 0x482   :  { %v2396_v31 = vpop.permute.xlu0 %2395  ;;  %v2956_v2 = vsel %vm1187_vm5, %v2924_v36, %v2392_v27  ;;  %v2989_v27 = vsel %vm1220_vm6, %v2957_v9, %v2495_v29 }
 0x483   :  { %v2988_v5 = vsel %vm1220_vm6, %v2956_v2, %v2493_v25 }
 0x484   :  { %v3020_v61 = vsel %vm1253_vm7, %v2988_v5, %v2591_v59 }
 0x485   :  { %3412 = vxpose.xlu0.b32.cont [5/16] (narrow) %v3269_v6, 16  ;;  %v2497_v11 = vpop.permute.xlu1 %2496  ;;  %v3052_v62 = vsel %vm1286_vm8, %v3020_v61, %v2693_v24  ;;  %v9496_v6 = vld [vmem:[#allocation31_spill] sm:$0xff] }
 0x486   :  { %v2794_v28 = vpop.permute.xlu0 %2793 }
 0x487   :  { %v3084_v41 = vsel %vm1319_vm9, %v3052_v62, %v2794_v28 }
 0x488   :  { %3824 = vmatmul.mubr.msk.f32.gmra.mrb[28].mxu1 %vm1352_vm10, %v3084_v41 }
 0x489   :  { %3413 = vxpose.xlu0.b32.cont [6/16] (narrow) %v3789_v54, 16  ;;  %v2595_v16 = vpop.permute.xlu1 %2594  ;;  %v9494_v54 = vld [vmem:[#allocation124_spill] sm:$0xff] }
 0x48a   :  { %v2593_v46 = vpop.permute.xlu0 %2592  ;;  %v2894_v15 = vsel %vm1121_vm3, %v2862_v23, %v9494_v54 }
 0x48b   :  { %v2926_v26 = vsel %vm1154_vm4, %v2894_v15, %v9496_v6  ;;  %v3021_v17 = vsel %vm1253_vm7, %v2989_v27, %v2593_v46 }
 0x48c   :  { %v2958_v3 = vsel %vm1187_vm5, %v2926_v26, %v2396_v31 }
 0x48d   :  { %3414 = vxpose.xlu0.b32.cont [7/16] (narrow) %v3279_v10, 16  ;;  %v2697_v52 = vpop.permute.xlu1 %2696  ;;  %v2990_v8 = vsel %vm1220_vm6, %v2958_v3, %v2497_v11 }
 0x48e   :  { %v2695_v12 = vpop.permute.xlu0 %2694  ;;  %v3022_v4 = vsel %vm1253_vm7, %v2990_v8, %v2595_v16 }
 0x48f   :  { %v3054_v39 = vsel %vm1286_vm8, %v3022_v4, %v2697_v52  ;;  %v3053_v25 = vsel %vm1286_vm8, %v3021_v17, %v2695_v12 }
 0x491   :  { %3415 = vxpose.xlu0.b32.cont [8/16] (narrow) %v3792_v33, 16  ;;  %v2798_v19 = vpop.permute.xlu1 %2797 }
 0x492   :  { %v3086_v7 = vsel %vm1319_vm9, %v3054_v39, %v2798_v19  ;;  %v2796_v57 = vpop.permute.xlu0 %2795 }
 0x493   :  { %v3085_v22 = vsel %vm1319_vm9, %v3053_v25, %v2796_v57  ;;  %v3795_v58 = vpop.f32.mrb[8].mxu1 }
 0x494   :  { %v3289_v59 = vpop.f32.mrb[9].mxu1  ;;  %3826 = vmatprep.mubr.msk.f32.mxu1 %vm1352_vm10, %v3085_v22 }
 0x495   :  { %3416 = vxpose.xlu0.b32.cont [9/16] (narrow) %v3289_v59, 16  ;;  %3827 = vmatmul.mubr.msk.f32.gmra.mrb[30].mxu1 %vm1352_vm10, %v3086_v7 }
 0x499   :  { %3417 = vxpose.xlu0.b32.cont [10/16] (narrow) %v3795_v58, 16 }
 0x4a7   :  { %v3798_v45 = vpop.f32.mrb[10].mxu1 }
 0x4a8   :  { %v3299_v63 = vpop.f32.mrb[11].mxu1 }
 0x4a9   :  { %3418 = vxpose.xlu0.b32.cont [11/16] (narrow) %v3299_v63, 16 }
 0x4ad   :  { %3419 = vxpose.xlu0.b32.cont [12/16] (narrow) %v3798_v45, 16 }
 0x4b5   :  { %v1690_v51 = vpop.trf.xlu0 }
 0x4b6   :  { %v1748_v35 = vmul.f32 %v9498_v40, %v1690_v51 }
 0x4b8   :  { %v1762_v44 = vadd.f32 %v9499_v21, %v1748_v35 }
 0x4b9   :  { %v1691_v30 = vpop.trf.xlu0 }
 0x4ba   :  { %v1766_v49 = vmax.f32 %v1762_v44, 0.0  ;;  %v1750_v38 = vmul.f32 %v9500_v42, %v1691_v30 }
 0x4bb   :  { %v3801_v43 = vpop.f32.mrb[12].mxu1 }
 0x4bc   :  { %1770 = vst [vmem:[%s8402_s4] sm:$0xff] %v1766_v49  ;;  %v1764_v20 = vadd.f32 %v9501_v50, %v1750_v38  ;;  %v3309_v33 = vpop.f32.mrb[13].mxu1 }
 0x4bd   :  { %3420 = vxpose.xlu0.b32.cont [13/16] (narrow) %v3309_v33, 16 }
 0x4be   :  { %v1768_v14 = vmax.f32 %v1764_v20, 0.0 }
 0x4bf   :  { %v1722_v18 = vpop.trf.xlu1 }
 0x4c0   :  { %1772 = vst [vmem:[%s8402_s4 + $0x10] sm:$0xff] %v1768_v14  ;;  %v1749_v24 = vmul.f32 %v9498_v40, %v1722_v18 }
 0x4c1   :  { %3421 = vxpose.xlu0.b32.cont [14/16] (narrow) %v3801_v43, 16 }
 0x4c2   :  { %v1763_v48 = vadd.f32 %v9499_v21, %v1749_v24 }
 0x4c3   :  { %v1723_v55 = vpop.trf.xlu1 }
 0x4c4   :  { %v1767_v10 = vmax.f32 %v1763_v48, 0.0  ;;  %v1751_v47 = vmul.f32 %v9500_v42, %v1723_v55 }
 0x4c6   :  { %1771 = vst [vmem:[%s8402_s4 + $0x8] sm:$0xff] %v1767_v10  ;;  %v1765_v56 = vadd.f32 %v9501_v50, %v1751_v47 }
 0x4c8   :  { %v1769_v29 = vmax.f32 %v1765_v56, 0.0 }
 0x4ca   :  { %1773 = vst [vmem:[%s8402_s4 + $0x18] sm:$0xff] %v1769_v29 }
 0x4cf   :  { %v3804_v13 = vpop.f32.mrb[14].mxu1 }
 0x4d0   :  { %v3319_v36 = vpop.f32.mrb[15].mxu1 }
 0x4d1   :  { %3422 = vxpose.xlu0.b32.cont [15/16] (narrow) %v3319_v36, 16 }
 0x4d5   :  { %3423 = vxpose.xlu0.b32.end [16/16] (narrow) %v3804_v13, 16 }
 0x4e3   :  { %v3807_v31 = vpop.f32.mrb[16].mxu1 }
 0x4e4   :  { %v3329_v2 = vpop.f32.mrb[17].mxu1 }
 0x4e5   :  { %3440 = vxpose.xlu1.b32.start [1/16] (narrow) %v3329_v2, 16 }
 0x4e9   :  { %3441 = vxpose.xlu1.b32.cont [2/16] (narrow) %v3807_v31, 16 }
 0x4f7   :  { %v3810_v5 = vpop.f32.mrb[18].mxu1 }
 0x4f8   :  { %v3339_v61 = vpop.f32.mrb[19].mxu1 }
 0x4f9   :  { %3442 = vxpose.xlu1.b32.cont [3/16] (narrow) %v3339_v61, 16 }
 0x4fd   :  { %3443 = vxpose.xlu1.b32.cont [4/16] (narrow) %v3810_v5, 16 }
 0x50b   :  { %v3813_v11 = vpop.f32.mrb[20].mxu1 }
 0x50c   :  { %v3349_v62 = vpop.f32.mrb[21].mxu1 }
 0x50d   :  { %3444 = vxpose.xlu1.b32.cont [5/16] (narrow) %v3349_v62, 16 }
 0x511   :  { %3445 = vxpose.xlu1.b32.cont [6/16] (narrow) %v3813_v11, 16 }
 0x519   :  { %v3424_v28 = vpop.trf.xlu0 }
 0x51a   :  { %v3472_v41 = vmul.f32 %v3424_v28, %v9498_v40 }
 0x51c   :  { %v3476_v16 = vadd.f32 %v3472_v41, %v9499_v21 }
 0x51d   :  { %v3425_v46 = vpop.trf.xlu0 }
 0x51e   :  { %v3480_v1 = vmax.f32 %v3476_v16, 0.0  ;;  %v3474_v23 = vmul.f32 %v3425_v46, %v9500_v42 }
 0x51f   :  { %v3816_v60 = vpop.f32.mrb[22].mxu1 }
 0x520   :  { %3611 = vst [vmem:[%s8402_s4 + $0x20] sm:$0xff] %v3480_v1  ;;  %v3478_v53 = vadd.f32 %v3474_v23, %v9501_v50  ;;  %v3359_v54 = vpop.f32.mrb[23].mxu1 }
 0x521   :  { %3446 = vxpose.xlu1.b32.cont [7/16] (narrow) %v3359_v54, 16 }
 0x522   :  { %v3482_v15 = vmax.f32 %v3478_v53, 0.0 }
 0x524   :  { %3613 = vst [vmem:[%s8402_s4 + $0x30] sm:$0xff] %v3482_v15 }
 0x525   :  { %3447 = vxpose.xlu1.b32.cont [8/16] (narrow) %v3816_v60, 16 }
 0x533   :  { %v3819_v34 = vpop.f32.mrb[24].mxu1 }
 0x534   :  { %v3369_v32 = vpop.f32.mrb[25].mxu1 }
 0x535   :  { %3448 = vxpose.xlu1.b32.cont [9/16] (narrow) %v3369_v32, 16 }
 0x539   :  { %3449 = vxpose.xlu1.b32.cont [10/16] (narrow) %v3819_v34, 16 }
 0x547   :  { %v3822_v6 = vpop.f32.mrb[26].mxu1 }
 0x548   :  { %v3379_v26 = vpop.f32.mrb[27].mxu1 }
 0x549   :  { %3450 = vxpose.xlu1.b32.cont [11/16] (narrow) %v3379_v26, 16 }
 0x54d   :  { %3451 = vxpose.xlu1.b32.cont [12/16] (narrow) %v3822_v6, 16 }
 0x55b   :  { %v3825_v52 = vpop.f32.mrb[28].mxu1 }
 0x55c   :  { %v3389_v0 = vpop.f32.mrb[29].mxu1 }
 0x55d   :  { %3452 = vxpose.xlu1.b32.cont [13/16] (narrow) %v3389_v0, 16 }
 0x561   :  { %3453 = vxpose.xlu1.b32.cont [14/16] (narrow) %v3825_v52, 16 }
 0x568   :  { %v3828_v37 = vpop.f32.mrb[30].mxu1 }
 0x569   :  { %v3399_v3 = vpop.f32.mrb[31].mxu1 }
 0x56a   :  { %3454 = vxpose.xlu1.b32.cont [15/16] (narrow) %v3399_v3, 16 }
 0x56e   :  { %3455 = vxpose.xlu1.b32.end [16/16] (narrow) %v3828_v37, 16 }
 0x5b2   :  { %v3456_v12 = vpop.trf.xlu1 }
 0x5b3   :  { %v3473_v9 = vmul.f32 %v3456_v12, %v9498_v40 }
 0x5b5   :  { %v3477_v8 = vadd.f32 %v3473_v9, %v9499_v21 }
 0x5b6   :  { %v3457_v27 = vpop.trf.xlu1 }
 0x5b7   :  { %v3481_v4 = vmax.f32 %v3477_v8, 0.0  ;;  %v3475_v17 = vmul.f32 %v3457_v27, %v9500_v42 }
 0x5b9   :  { %3612 = vst [vmem:[%s8402_s4 + $0x28] sm:$0xff] %v3481_v4  ;;  %v3479_v39 = vadd.f32 %v3475_v17, %v9501_v50 }
 0x5bb   :  { %v3483_v19 = vmax.f32 %v3479_v39, 0.0 }
 0x5bd   :  { %3614 = vst [vmem:[%s8402_s4 + $0x38] sm:$0xff] %v3483_v19 }

</bundles_post_ra>
